<compile_context>
chip_gen: v7x
topology: tpu7x:2x2x1
jax: 0.10.0
libtpu: 0.0.40
codegen_flags: <defaults>
</compile_context>

<pallas_src>
import functools

import numpy as np
import jax
import jax.numpy as jnp
from jax.experimental import pallas as pl
from jax.experimental.pallas import tpu as pltpu

BN_EPS = 1e-5
COMPUTE_DTYPE = jnp.bfloat16      # MXU input dtype (accumulation & epilogue stay f32)


# --------------------------- selection-matrix helpers --------------------------
def _conv_out_size(h, stride):
    return (h - 1) // stride + 1


def _make_tap_select(H, W, stride):
    """(9, Ho*Wo, H*W) 0/1 mats: tap t of a 3x3 / pad=1 / stride=s conv as a row gather."""
    Ho, Wo = _conv_out_size(H, stride), _conv_out_size(W, stride)
    m = np.zeros((9, Ho * Wo, H * W), np.float32)
    for di in range(3):
        for dj in range(3):
            t = di * 3 + dj
            for ho in range(Ho):
                hi = ho * stride + di - 1
                if not 0 <= hi < H:
                    continue
                for wo in range(Wo):
                    wi = wo * stride + dj - 1
                    if 0 <= wi < W:
                        m[t, ho * Wo + wo, hi * W + wi] = 1.0
    return jnp.asarray(m, COMPUTE_DTYPE)


def _make_subsample(H, W, stride):
    """(Ho*Wo, H*W) 0/1 mat: x[::s, ::s] row gather (1x1 / stride=s downsample conv)."""
    Ho, Wo = _conv_out_size(H, stride), _conv_out_size(W, stride)
    m = np.zeros((Ho * Wo, H * W), np.float32)
    for ho in range(Ho):
        for wo in range(Wo):
            m[ho * Wo + wo, ho * stride * W + wo * stride] = 1.0
    return jnp.asarray(m, COMPUTE_DTYPE)


def _im2col_conv1(x, KH, KW, stride, pad):
    """x: (N,H,W,C) -> patches (N, Ho*Wo, KH*KW*C), tap-major / channel-minor."""
    N, H, W, C = x.shape
    Ho = (H + 2 * pad - KH) // stride + 1
    Wo = (W + 2 * pad - KW) // stride + 1
    xp = jnp.pad(x, ((0, 0), (pad, pad), (pad, pad), (0, 0)))
    taps = []
    for i in range(KH):
        for j in range(KW):
            taps.append(xp[:, i:i + stride * Ho:stride, j:j + stride * Wo:stride, :])
    patches = jnp.stack(taps, axis=3)                       # (N, Ho, Wo, KH*KW, C)
    return patches.reshape(N, Ho * Wo, KH * KW * C), Ho, Wo


# ---------------------------------- kernel -------------------------------------
def _encoder_kernel(down_flags, *refs):
    """Whole SmallEncoder forward for one image (one grid step).

    Operand order matches small_encoder_forward(): conv1 patches, conv1 (w, b),
    then per bottleneck (wc1, bc1, wc2_taps, bc2, wc3, bc3, tap_select
    [, subsample, wd, bd]), finally conv2 (w, b).  The last ref is the output.
    """
    refs = list(refs)
    o_ref = refs.pop()
    it = iter(refs)

    def nxt():
        return next(it)

    def mm(a, b):                                  # MXU matmul: bf16 in / f32 accumulate
        return jnp.dot(a.astype(COMPUTE_DTYPE), b.astype(COMPUTE_DTYPE),
                       preferred_element_type=jnp.float32)

    # conv1 (7x7 / s2 / p3) + folded BN + relu: one GEMM over pre-extracted patches.
    p_ref, w_ref, b_ref = nxt(), nxt(), nxt()
    x = jnp.maximum(mm(p_ref[0], w_ref[...]) + b_ref[...], 0.0)     # (R1, 32) f32

    for has_down in down_flags:
        w1, b1, w2, b2, w3, b3, s2 = nxt(), nxt(), nxt(), nxt(), nxt(), nxt(), nxt()
        if has_down:
            ssub, wd, bd = nxt(), nxt(), nxt()

        xin = x                                                     # (Rin, Cin) f32

        # block conv1: 1x1 + BN + relu
        y = jnp.maximum(mm(xin, w1[...]) + b1[...], 0.0)            # (Rin, C4) f32
        y = y.astype(COMPUTE_DTYPE)

        # block conv2: 3x3 / pad 1 / stride s via per-tap selection matmuls
        r_out = s2.shape[1]
        c4 = w2.shape[2]
        acc = jnp.zeros((r_out, c4), jnp.float32)
        for t in range(s2.shape[0]):
            g = mm(s2[t], y)                       # gather shifted rows (pad taps -> 0)
            acc = acc + mm(g, w2[t])
        y = jnp.maximum(acc + b2[...], 0.0)                         # (Rout, C4) f32

        # block conv3: 1x1 + BN + relu
        z = jnp.maximum(mm(y, w3[...]) + b3[...], 0.0)              # (Rout, P) f32

        if has_down:                               # 1x1/stride-s downsample + residual
            xs = mm(ssub[...], xin)                                  # (Rout, Cin) f32
            x = jnp.maximum(z + mm(xs, wd[...]) + bd[...], 0.0)
        else:                                      # identity residual
            x = jnp.maximum(z + xin, 0.0)

    # final 1x1 conv (no norm / relu); lane-dense 128-wide store
    wf, bf_ = nxt(), nxt()
    o_ref[0] = (mm(x, wf[...]) + bf_[...]).astype(o_ref.dtype)


# -------------------------------- parameters -----------------------------------
def _conv_raw(key, cout, cin, kh, kw):
    kw_, kb_ = jax.random.split(key)
    fan_out = cout * kh * kw
    std = (2.0 / fan_out) ** 0.5                   # kaiming_normal_, fan_out, relu
    w = std * jax.random.normal(kw_, (cout, cin, kh, kw), jnp.float32)
    bound = 1.0 / float(cin * kh * kw) ** 0.5      # PyTorch default conv bias init
    b = jax.random.uniform(kb_, (cout,), jnp.float32, -bound, bound)
    return w, b


def _bn_affine(c):
    # eval-mode BatchNorm2d, freshly-initialized stats: y = x / sqrt(1 + eps)
    scale = jnp.full((c,), 1.0 / (1.0 + BN_EPS) ** 0.5, jnp.float32)
    shift = jnp.zeros((c,), jnp.float32)
    return scale, shift


def _fold_conv_bn(w, b, scale, shift):
    """Fold eval-BN affine into the conv; emit GEMM (KxCout) and per-tap weight layouts."""
    cout, cin, kh, kw = w.shape
    wf = w * scale[:, None, None, None]
    bf = b * scale + shift
    wkc = jnp.transpose(wf, (2, 3, 1, 0))                           # (KH, KW, Cin, Cout)
    p = {'wmat': wkc.reshape(kh * kw * cin, cout).astype(COMPUTE_DTYPE),
         'bias': bf.reshape(1, cout).astype(jnp.float32),
         'ksize': (kh, kw)}
    if (kh, kw) == (3, 3):
        p['wtaps'] = wkc.reshape(kh * kw, cin, cout).astype(COMPUTE_DTYPE)
    return p


def _conv_bn_block(key, cout, cin, kh, kw, with_bn=True):
    w, b = _conv_raw(key, cout, cin, kh, kw)
    if with_bn:
        scale, shift = _bn_affine(cout)
    else:
        scale, shift = jnp.ones((cout,), jnp.float32), jnp.zeros((cout,), jnp.float32)
    return _fold_conv_bn(w, b, scale, shift)


def _bottleneck_params(key, in_planes, planes, stride):
    k1, k2, k3, k4 = jax.random.split(key, 4)
    p = {'c1': _conv_bn_block(k1, planes // 4, in_planes, 1, 1),
         'c2': _conv_bn_block(k2, planes // 4, planes // 4, 3, 3),
         'c3': _conv_bn_block(k3, planes, planes // 4, 1, 1),
         'stride': stride}
    if stride != 1:
        p['cd'] = _conv_bn_block(k4, planes, in_planes, 1, 1)
    return p


def make_small_encoder_params(key, output_dim=128):
    ks = jax.random.split(key, 8)
    return {'conv1': _conv_bn_block(ks[0], 32, 3, 7, 7),            # norm1 folded
            'layer1': [_bottleneck_params(ks[1], 32, 32, 1),
                       _bottleneck_params(ks[2], 32, 32, 1)],
            'layer2': [_bottleneck_params(ks[3], 32, 64, 2),
                       _bottleneck_params(ks[4], 64, 64, 1)],
            'layer3': [_bottleneck_params(ks[5], 64, 96, 2),
                       _bottleneck_params(ks[6], 96, 96, 1)],
            'conv2': _conv_bn_block(ks[7], output_dim, 96, 1, 1, with_bn=False)}


# ---------------------------------- forward ------------------------------------
def _resident_spec(arr):
    nd = arr.ndim
    return pl.BlockSpec(arr.shape, lambda i, _nd=nd: (0,) * _nd)    # constant index: resident


def small_encoder_forward(x_nchw, params):
    x = jnp.transpose(x_nchw, (0, 2, 3, 1))                         # NCHW -> NHWC, f32
    n = x.shape[0]

    patches1, h, w = _im2col_conv1(x, 7, 7, stride=2, pad=3)        # (N, 64, 147) for 16x16
    patches1 = patches1.astype(COMPUTE_DTYPE)

    operands = [patches1]
    in_specs = [pl.BlockSpec((1,) + patches1.shape[1:], lambda i: (i, 0, 0))]
    down_flags = []

    def add(arr):
        operands.append(arr)
        in_specs.append(_resident_spec(arr))

    add(params['conv1']['wmat'])
    add(params['conv1']['bias'])

    for blk in params['layer1'] + params['layer2'] + params['layer3']:
        stride = blk['stride']
        add(blk['c1']['wmat']); add(blk['c1']['bias'])
        add(blk['c2']['wtaps']); add(blk['c2']['bias'])
        add(blk['c3']['wmat']); add(blk['c3']['bias'])
        add(_make_tap_select(h, w, stride))
        if stride != 1:
            add(_make_subsample(h, w, stride))
            add(blk['cd']['wmat']); add(blk['cd']['bias'])
        down_flags.append(stride != 1)
        h, w = _conv_out_size(h, stride), _conv_out_size(w, stride)

    add(params['conv2']['wmat'])
    add(params['conv2']['bias'])

    r_out = h * w
    c_out = params['conv2']['wmat'].shape[1]

    out = pl.pallas_call(
        functools.partial(_encoder_kernel, tuple(down_flags)),
        out_shape=jax.ShapeDtypeStruct((n, r_out, c_out), jnp.float32),
        grid=(n,),
        in_specs=in_specs,
        out_specs=pl.BlockSpec((1, r_out, c_out), lambda i: (i, 0, 0)),
        compiler_params=pltpu.CompilerParams(
            dimension_semantics=("parallel",),       # batch across both TCs on v7x megacore
            vmem_limit_bytes=32 * 1024 * 1024,       # fits v5e/v6e/v7x scoped budgets
        ),
    )(*operands)

    out = out.reshape(n, h, w, c_out)
    return jnp.transpose(out, (0, 3, 1, 2))                         # NHWC -> NCHW


if __name__ == "__main__":
    key = jax.random.PRNGKey(0)
    kx, kp = jax.random.split(key)
    x = jax.random.normal(kx, (2, 3, 16, 16), jnp.float32)          # NCHW, like PyTorch
    params = make_small_encoder_params(kp, output_dim=128)

    fwd = jax.jit(lambda inp: small_encoder_forward(inp, params))   # fuse XLA glue once
    out = jax.block_until_ready(fwd(x))

    assert out.shape == (2, 128, 2, 2), out.shape
    assert bool(jnp.isfinite(out).all())
    print("KERNEL_OK")
</pallas_src>

<mosaic_0001>
module attributes {stable_mosaic.version = 11 : i64} {
  func.func @_encoder_kernel(%arg0: i32, %arg1: memref<1x64x147xbf16, #tpu.memory_space<vmem>>, %arg2: memref<147x32xbf16, #tpu.memory_space<vmem>>, %arg3: memref<1x32xf32, #tpu.memory_space<vmem>>, %arg4: memref<32x8xbf16, #tpu.memory_space<vmem>>, %arg5: memref<1x8xf32, #tpu.memory_space<vmem>>, %arg6: memref<9x8x8xbf16, #tpu.memory_space<vmem>>, %arg7: memref<1x8xf32, #tpu.memory_space<vmem>>, %arg8: memref<8x32xbf16, #tpu.memory_space<vmem>>, %arg9: memref<1x32xf32, #tpu.memory_space<vmem>>, %arg10: memref<9x64x64xbf16, #tpu.memory_space<vmem>>, %arg11: memref<32x8xbf16, #tpu.memory_space<vmem>>, %arg12: memref<1x8xf32, #tpu.memory_space<vmem>>, %arg13: memref<9x8x8xbf16, #tpu.memory_space<vmem>>, %arg14: memref<1x8xf32, #tpu.memory_space<vmem>>, %arg15: memref<8x32xbf16, #tpu.memory_space<vmem>>, %arg16: memref<1x32xf32, #tpu.memory_space<vmem>>, %arg17: memref<9x64x64xbf16, #tpu.memory_space<vmem>>, %arg18: memref<32x16xbf16, #tpu.memory_space<vmem>>, %arg19: memref<1x16xf32, #tpu.memory_space<vmem>>, %arg20: memref<9x16x16xbf16, #tpu.memory_space<vmem>>, %arg21: memref<1x16xf32, #tpu.memory_space<vmem>>, %arg22: memref<16x64xbf16, #tpu.memory_space<vmem>>, %arg23: memref<1x64xf32, #tpu.memory_space<vmem>>, %arg24: memref<9x16x64xbf16, #tpu.memory_space<vmem>>, %arg25: memref<16x64xbf16, #tpu.memory_space<vmem>>, %arg26: memref<32x64xbf16, #tpu.memory_space<vmem>>, %arg27: memref<1x64xf32, #tpu.memory_space<vmem>>, %arg28: memref<64x16xbf16, #tpu.memory_space<vmem>>, %arg29: memref<1x16xf32, #tpu.memory_space<vmem>>, %arg30: memref<9x16x16xbf16, #tpu.memory_space<vmem>>, %arg31: memref<1x16xf32, #tpu.memory_space<vmem>>, %arg32: memref<16x64xbf16, #tpu.memory_space<vmem>>, %arg33: memref<1x64xf32, #tpu.memory_space<vmem>>, %arg34: memref<9x16x16xbf16, #tpu.memory_space<vmem>>, %arg35: memref<64x24xbf16, #tpu.memory_space<vmem>>, %arg36: memref<1x24xf32, #tpu.memory_space<vmem>>, %arg37: memref<9x24x24xbf16, #tpu.memory_space<vmem>>, %arg38: memref<1x24xf32, #tpu.memory_space<vmem>>, %arg39: memref<24x96xbf16, #tpu.memory_space<vmem>>, %arg40: memref<1x96xf32, #tpu.memory_space<vmem>>, %arg41: memref<9x4x16xbf16, #tpu.memory_space<vmem>>, %arg42: memref<4x16xbf16, #tpu.memory_space<vmem>>, %arg43: memref<64x96xbf16, #tpu.memory_space<vmem>>, %arg44: memref<1x96xf32, #tpu.memory_space<vmem>>, %arg45: memref<96x24xbf16, #tpu.memory_space<vmem>>, %arg46: memref<1x24xf32, #tpu.memory_space<vmem>>, %arg47: memref<9x24x24xbf16, #tpu.memory_space<vmem>>, %arg48: memref<1x24xf32, #tpu.memory_space<vmem>>, %arg49: memref<24x96xbf16, #tpu.memory_space<vmem>>, %arg50: memref<1x96xf32, #tpu.memory_space<vmem>>, %arg51: memref<9x4x4xbf16, #tpu.memory_space<vmem>>, %arg52: memref<96x128xbf16, #tpu.memory_space<vmem>>, %arg53: memref<1x128xf32, #tpu.memory_space<vmem>>, %arg54: memref<1x4x128xf32, #tpu.memory_space<vmem>>) attributes {dimension_semantics = [#tpu.dimension_semantics<parallel>], iteration_bounds = array<i64: 2>, scalar_prefetch = 0 : i64, scratch_operands = 0 : i64, tpu.core_type = #tpu.core_type<tc>, window_params = [{transform_indices = @transform_0, window_bounds = array<i64: 1, 64, 147>}, {pipeline_mode = #tpu.pipeline_mode<synchronous>, transform_indices = @transform_1, window_bounds = array<i64: 147, 32>}, {pipeline_mode = #tpu.pipeline_mode<synchronous>, transform_indices = @transform_2, window_bounds = array<i64: 1, 32>}, {pipeline_mode = #tpu.pipeline_mode<synchronous>, transform_indices = @transform_3, window_bounds = array<i64: 32, 8>}, {pipeline_mode = #tpu.pipeline_mode<synchronous>, transform_indices = @transform_4, window_bounds = array<i64: 1, 8>}, {pipeline_mode = #tpu.pipeline_mode<synchronous>, transform_indices = @transform_5, window_bounds = array<i64: 9, 8, 8>}, {pipeline_mode = #tpu.pipeline_mode<synchronous>, transform_indices = @transform_6, window_bounds = array<i64: 1, 8>}, {pipeline_mode = #tpu.pipeline_mode<synchronous>, transform_indices = @transform_7, window_bounds = array<i64: 8, 32>}, {pipeline_mode = #tpu.pipeline_mode<synchronous>, transform_indices = @transform_8, window_bounds = array<i64: 1, 32>}, {pipeline_mode = #tpu.pipeline_mode<synchronous>, transform_indices = @transform_9, window_bounds = array<i64: 9, 64, 64>}, {pipeline_mode = #tpu.pipeline_mode<synchronous>, transform_indices = @transform_10, window_bounds = array<i64: 32, 8>}, {pipeline_mode = #tpu.pipeline_mode<synchronous>, transform_indices = @transform_11, window_bounds = array<i64: 1, 8>}, {pipeline_mode = #tpu.pipeline_mode<synchronous>, transform_indices = @transform_12, window_bounds = array<i64: 9, 8, 8>}, {pipeline_mode = #tpu.pipeline_mode<synchronous>, transform_indices = @transform_13, window_bounds = array<i64: 1, 8>}, {pipeline_mode = #tpu.pipeline_mode<synchronous>, transform_indices = @transform_14, window_bounds = array<i64: 8, 32>}, {pipeline_mode = #tpu.pipeline_mode<synchronous>, transform_indices = @transform_15, window_bounds = array<i64: 1, 32>}, {pipeline_mode = #tpu.pipeline_mode<synchronous>, transform_indices = @transform_16, window_bounds = array<i64: 9, 64, 64>}, {pipeline_mode = #tpu.pipeline_mode<synchronous>, transform_indices = @transform_17, window_bounds = array<i64: 32, 16>}, {pipeline_mode = #tpu.pipeline_mode<synchronous>, transform_indices = @transform_18, window_bounds = array<i64: 1, 16>}, {pipeline_mode = #tpu.pipeline_mode<synchronous>, transform_indices = @transform_19, window_bounds = array<i64: 9, 16, 16>}, {pipeline_mode = #tpu.pipeline_mode<synchronous>, transform_indices = @transform_20, window_bounds = array<i64: 1, 16>}, {pipeline_mode = #tpu.pipeline_mode<synchronous>, transform_indices = @transform_21, window_bounds = array<i64: 16, 64>}, {pipeline_mode = #tpu.pipeline_mode<synchronous>, transform_indices = @transform_22, window_bounds = array<i64: 1, 64>}, {pipeline_mode = #tpu.pipeline_mode<synchronous>, transform_indices = @transform_23, window_bounds = array<i64: 9, 16, 64>}, {pipeline_mode = #tpu.pipeline_mode<synchronous>, transform_indices = @transform_24, window_bounds = array<i64: 16, 64>}, {pipeline_mode = #tpu.pipeline_mode<synchronous>, transform_indices = @transform_25, window_bounds = array<i64: 32, 64>}, {pipeline_mode = #tpu.pipeline_mode<synchronous>, transform_indices = @transform_26, window_bounds = array<i64: 1, 64>}, {pipeline_mode = #tpu.pipeline_mode<synchronous>, transform_indices = @transform_27, window_bounds = array<i64: 64, 16>}, {pipeline_mode = #tpu.pipeline_mode<synchronous>, transform_indices = @transform_28, window_bounds = array<i64: 1, 16>}, {pipeline_mode = #tpu.pipeline_mode<synchronous>, transform_indices = @transform_29, window_bounds = array<i64: 9, 16, 16>}, {pipeline_mode = #tpu.pipeline_mode<synchronous>, transform_indices = @transform_30, window_bounds = array<i64: 1, 16>}, {pipeline_mode = #tpu.pipeline_mode<synchronous>, transform_indices = @transform_31, window_bounds = array<i64: 16, 64>}, {pipeline_mode = #tpu.pipeline_mode<synchronous>, transform_indices = @transform_32, window_bounds = array<i64: 1, 64>}, {pipeline_mode = #tpu.pipeline_mode<synchronous>, transform_indices = @transform_33, window_bounds = array<i64: 9, 16, 16>}, {pipeline_mode = #tpu.pipeline_mode<synchronous>, transform_indices = @transform_34, window_bounds = array<i64: 64, 24>}, {pipeline_mode = #tpu.pipeline_mode<synchronous>, transform_indices = @transform_35, window_bounds = array<i64: 1, 24>}, {pipeline_mode = #tpu.pipeline_mode<synchronous>, transform_indices = @transform_36, window_bounds = array<i64: 9, 24, 24>}, {pipeline_mode = #tpu.pipeline_mode<synchronous>, transform_indices = @transform_37, window_bounds = array<i64: 1, 24>}, {pipeline_mode = #tpu.pipeline_mode<synchronous>, transform_indices = @transform_38, window_bounds = array<i64: 24, 96>}, {pipeline_mode = #tpu.pipeline_mode<synchronous>, transform_indices = @transform_39, window_bounds = array<i64: 1, 96>}, {pipeline_mode = #tpu.pipeline_mode<synchronous>, transform_indices = @transform_40, window_bounds = array<i64: 9, 4, 16>}, {pipeline_mode = #tpu.pipeline_mode<synchronous>, transform_indices = @transform_41, window_bounds = array<i64: 4, 16>}, {pipeline_mode = #tpu.pipeline_mode<synchronous>, transform_indices = @transform_42, window_bounds = array<i64: 64, 96>}, {pipeline_mode = #tpu.pipeline_mode<synchronous>, transform_indices = @transform_43, window_bounds = array<i64: 1, 96>}, {pipeline_mode = #tpu.pipeline_mode<synchronous>, transform_indices = @transform_44, window_bounds = array<i64: 96, 24>}, {pipeline_mode = #tpu.pipeline_mode<synchronous>, transform_indices = @transform_45, window_bounds = array<i64: 1, 24>}, {pipeline_mode = #tpu.pipeline_mode<synchronous>, transform_indices = @transform_46, window_bounds = array<i64: 9, 24, 24>}, {pipeline_mode = #tpu.pipeline_mode<synchronous>, transform_indices = @transform_47, window_bounds = array<i64: 1, 24>}, {pipeline_mode = #tpu.pipeline_mode<synchronous>, transform_indices = @transform_48, window_bounds = array<i64: 24, 96>}, {pipeline_mode = #tpu.pipeline_mode<synchronous>, transform_indices = @transform_49, window_bounds = array<i64: 1, 96>}, {pipeline_mode = #tpu.pipeline_mode<synchronous>, transform_indices = @transform_50, window_bounds = array<i64: 9, 4, 4>}, {pipeline_mode = #tpu.pipeline_mode<synchronous>, transform_indices = @transform_51, window_bounds = array<i64: 96, 128>}, {pipeline_mode = #tpu.pipeline_mode<synchronous>, transform_indices = @transform_52, window_bounds = array<i64: 1, 128>}, {transform_indices = @transform_53, window_bounds = array<i64: 1, 4, 128>}]} {
    %c0 = arith.constant 0 : index
    %c0_0 = arith.constant 0 : index
    %c0_1 = arith.constant 0 : index
    %0 = vector.load %arg1[%c0, %c0_0, %c0_1] : memref<1x64x147xbf16, #tpu.memory_space<vmem>>, vector<1x64x147xbf16>
    %1 = vector.shape_cast %0 : vector<1x64x147xbf16> to vector<64x147xbf16>
    %c0_2 = arith.constant 0 : index
    %c0_3 = arith.constant 0 : index
    %2 = vector.load %arg2[%c0_2, %c0_3] : memref<147x32xbf16, #tpu.memory_space<vmem>>, vector<147x32xbf16>
    %cst = arith.constant dense<0.000000e+00> : vector<64x32xf32>
    %3 = tpu.matmul %1, %2, %cst {dimension_numbers = #tpu.dot_dimension_numbers<[1], [0], [0], [1], [0, 0, 1, 1], [], []>} : vector<64x147xbf16>, vector<147x32xbf16>, vector<64x32xf32> -> vector<64x32xf32>
    %c0_4 = arith.constant 0 : index
    %c0_5 = arith.constant 0 : index
    %4 = vector.load %arg3[%c0_4, %c0_5] : memref<1x32xf32, #tpu.memory_space<vmem>>, vector<1x32xf32>
    %5 = vector.broadcast %4 : vector<1x32xf32> to vector<64x32xf32>
    %6 = arith.addf %3, %5 : vector<64x32xf32>
    %cst_6 = arith.constant 0.000000e+00 : f32
    %7 = vector.broadcast %cst_6 : f32 to vector<64x32xf32>
    %8 = arith.maximumf %6, %7 : vector<64x32xf32>
    %c0_7 = arith.constant 0 : index
    %c0_8 = arith.constant 0 : index
    %9 = vector.load %arg4[%c0_7, %c0_8] : memref<32x8xbf16, #tpu.memory_space<vmem>>, vector<32x8xbf16>
    %10 = arith.truncf %8 : vector<64x32xf32> to vector<64x32xbf16>
    %cst_9 = arith.constant dense<0.000000e+00> : vector<64x8xf32>
    %11 = tpu.matmul %10, %9, %cst_9 {dimension_numbers = #tpu.dot_dimension_numbers<[1], [0], [0], [1], [0, 0, 1, 1], [], []>} : vector<64x32xbf16>, vector<32x8xbf16>, vector<64x8xf32> -> vector<64x8xf32>
    %c0_10 = arith.constant 0 : index
    %c0_11 = arith.constant 0 : index
    %12 = vector.load %arg5[%c0_10, %c0_11] : memref<1x8xf32, #tpu.memory_space<vmem>>, vector<1x8xf32>
    %13 = vector.broadcast %12 : vector<1x8xf32> to vector<64x8xf32>
    %14 = arith.addf %11, %13 : vector<64x8xf32>
    %cst_12 = arith.constant 0.000000e+00 : f32
    %15 = vector.broadcast %cst_12 : f32 to vector<64x8xf32>
    %16 = arith.maximumf %14, %15 : vector<64x8xf32>
    %17 = arith.truncf %16 : vector<64x8xf32> to vector<64x8xbf16>
    %cst_13 = arith.constant 0.000000e+00 : f32
    %18 = vector.broadcast %cst_13 : f32 to vector<64x8xf32>
    %c0_14 = arith.constant 0 : index
    %c0_15 = arith.constant 0 : index
    %c0_16 = arith.constant 0 : index
    %19 = vector.load %arg10[%c0_14, %c0_15, %c0_16] : memref<9x64x64xbf16, #tpu.memory_space<vmem>>, vector<1x64x64xbf16>
    %20 = vector.shape_cast %19 : vector<1x64x64xbf16> to vector<64x64xbf16>
    %cst_17 = arith.constant dense<0.000000e+00> : vector<64x8xf32>
    %21 = tpu.matmul %20, %17, %cst_17 {dimension_numbers = #tpu.dot_dimension_numbers<[1], [0], [0], [1], [0, 0, 1, 1], [], []>} : vector<64x64xbf16>, vector<64x8xbf16>, vector<64x8xf32> -> vector<64x8xf32>
    %c0_18 = arith.constant 0 : index
    %c0_19 = arith.constant 0 : index
    %c0_20 = arith.constant 0 : index
    %22 = vector.load %arg6[%c0_18, %c0_19, %c0_20] : memref<9x8x8xbf16, #tpu.memory_space<vmem>>, vector<1x8x8xbf16>
    %23 = vector.shape_cast %22 : vector<1x8x8xbf16> to vector<8x8xbf16>
    %24 = arith.truncf %21 : vector<64x8xf32> to vector<64x8xbf16>
    %cst_21 = arith.constant dense<0.000000e+00> : vector<64x8xf32>
    %25 = tpu.matmul %24, %23, %cst_21 {dimension_numbers = #tpu.dot_dimension_numbers<[1], [0], [0], [1], [0, 0, 1, 1], [], []>} : vector<64x8xbf16>, vector<8x8xbf16>, vector<64x8xf32> -> vector<64x8xf32>
    %26 = arith.addf %18, %25 : vector<64x8xf32>
    %c1 = arith.constant 1 : index
    %c0_22 = arith.constant 0 : index
    %c0_23 = arith.constant 0 : index
    %27 = vector.load %arg10[%c1, %c0_22, %c0_23] : memref<9x64x64xbf16, #tpu.memory_space<vmem>>, vector<1x64x64xbf16>
    %28 = vector.shape_cast %27 : vector<1x64x64xbf16> to vector<64x64xbf16>
    %cst_24 = arith.constant dense<0.000000e+00> : vector<64x8xf32>
    %29 = tpu.matmul %28, %17, %cst_24 {dimension_numbers = #tpu.dot_dimension_numbers<[1], [0], [0], [1], [0, 0, 1, 1], [], []>} : vector<64x64xbf16>, vector<64x8xbf16>, vector<64x8xf32> -> vector<64x8xf32>
    %c1_25 = arith.constant 1 : index
    %c0_26 = arith.constant 0 : index
    %c0_27 = arith.constant 0 : index
    %30 = vector.load %arg6[%c1_25, %c0_26, %c0_27] : memref<9x8x8xbf16, #tpu.memory_space<vmem>>, vector<1x8x8xbf16>
    %31 = vector.shape_cast %30 : vector<1x8x8xbf16> to vector<8x8xbf16>
    %32 = arith.truncf %29 : vector<64x8xf32> to vector<64x8xbf16>
    %cst_28 = arith.constant dense<0.000000e+00> : vector<64x8xf32>
    %33 = tpu.matmul %32, %31, %cst_28 {dimension_numbers = #tpu.dot_dimension_numbers<[1], [0], [0], [1], [0, 0, 1, 1], [], []>} : vector<64x8xbf16>, vector<8x8xbf16>, vector<64x8xf32> -> vector<64x8xf32>
    %34 = arith.addf %26, %33 : vector<64x8xf32>
    %c2 = arith.constant 2 : index
    %c0_29 = arith.constant 0 : index
    %c0_30 = arith.constant 0 : index
    %35 = vector.load %arg10[%c2, %c0_29, %c0_30] : memref<9x64x64xbf16, #tpu.memory_space<vmem>>, vector<1x64x64xbf16>
    %36 = vector.shape_cast %35 : vector<1x64x64xbf16> to vector<64x64xbf16>
    %cst_31 = arith.constant dense<0.000000e+00> : vector<64x8xf32>
    %37 = tpu.matmul %36, %17, %cst_31 {dimension_numbers = #tpu.dot_dimension_numbers<[1], [0], [0], [1], [0, 0, 1, 1], [], []>} : vector<64x64xbf16>, vector<64x8xbf16>, vector<64x8xf32> -> vector<64x8xf32>
    %c2_32 = arith.constant 2 : index
    %c0_33 = arith.constant 0 : index
    %c0_34 = arith.constant 0 : index
    %38 = vector.load %arg6[%c2_32, %c0_33, %c0_34] : memref<9x8x8xbf16, #tpu.memory_space<vmem>>, vector<1x8x8xbf16>
    %39 = vector.shape_cast %38 : vector<1x8x8xbf16> to vector<8x8xbf16>
    %40 = arith.truncf %37 : vector<64x8xf32> to vector<64x8xbf16>
    %cst_35 = arith.constant dense<0.000000e+00> : vector<64x8xf32>
    %41 = tpu.matmul %40, %39, %cst_35 {dimension_numbers = #tpu.dot_dimension_numbers<[1], [0], [0], [1], [0, 0, 1, 1], [], []>} : vector<64x8xbf16>, vector<8x8xbf16>, vector<64x8xf32> -> vector<64x8xf32>
    %42 = arith.addf %34, %41 : vector<64x8xf32>
    %c3 = arith.constant 3 : index
    %c0_36 = arith.constant 0 : index
    %c0_37 = arith.constant 0 : index
    %43 = vector.load %arg10[%c3, %c0_36, %c0_37] : memref<9x64x64xbf16, #tpu.memory_space<vmem>>, vector<1x64x64xbf16>
    %44 = vector.shape_cast %43 : vector<1x64x64xbf16> to vector<64x64xbf16>
    %cst_38 = arith.constant dense<0.000000e+00> : vector<64x8xf32>
    %45 = tpu.matmul %44, %17, %cst_38 {dimension_numbers = #tpu.dot_dimension_numbers<[1], [0], [0], [1], [0, 0, 1, 1], [], []>} : vector<64x64xbf16>, vector<64x8xbf16>, vector<64x8xf32> -> vector<64x8xf32>
    %c3_39 = arith.constant 3 : index
    %c0_40 = arith.constant 0 : index
    %c0_41 = arith.constant 0 : index
    %46 = vector.load %arg6[%c3_39, %c0_40, %c0_41] : memref<9x8x8xbf16, #tpu.memory_space<vmem>>, vector<1x8x8xbf16>
    %47 = vector.shape_cast %46 : vector<1x8x8xbf16> to vector<8x8xbf16>
    %48 = arith.truncf %45 : vector<64x8xf32> to vector<64x8xbf16>
    %cst_42 = arith.constant dense<0.000000e+00> : vector<64x8xf32>
    %49 = tpu.matmul %48, %47, %cst_42 {dimension_numbers = #tpu.dot_dimension_numbers<[1], [0], [0], [1], [0, 0, 1, 1], [], []>} : vector<64x8xbf16>, vector<8x8xbf16>, vector<64x8xf32> -> vector<64x8xf32>
    %50 = arith.addf %42, %49 : vector<64x8xf32>
    %c4 = arith.constant 4 : index
    %c0_43 = arith.constant 0 : index
    %c0_44 = arith.constant 0 : index
    %51 = vector.load %arg10[%c4, %c0_43, %c0_44] : memref<9x64x64xbf16, #tpu.memory_space<vmem>>, vector<1x64x64xbf16>
    %52 = vector.shape_cast %51 : vector<1x64x64xbf16> to vector<64x64xbf16>
    %cst_45 = arith.constant dense<0.000000e+00> : vector<64x8xf32>
    %53 = tpu.matmul %52, %17, %cst_45 {dimension_numbers = #tpu.dot_dimension_numbers<[1], [0], [0], [1], [0, 0, 1, 1], [], []>} : vector<64x64xbf16>, vector<64x8xbf16>, vector<64x8xf32> -> vector<64x8xf32>
    %c4_46 = arith.constant 4 : index
    %c0_47 = arith.constant 0 : index
    %c0_48 = arith.constant 0 : index
    %54 = vector.load %arg6[%c4_46, %c0_47, %c0_48] : memref<9x8x8xbf16, #tpu.memory_space<vmem>>, vector<1x8x8xbf16>
    %55 = vector.shape_cast %54 : vector<1x8x8xbf16> to vector<8x8xbf16>
    %56 = arith.truncf %53 : vector<64x8xf32> to vector<64x8xbf16>
    %cst_49 = arith.constant dense<0.000000e+00> : vector<64x8xf32>
    %57 = tpu.matmul %56, %55, %cst_49 {dimension_numbers = #tpu.dot_dimension_numbers<[1], [0], [0], [1], [0, 0, 1, 1], [], []>} : vector<64x8xbf16>, vector<8x8xbf16>, vector<64x8xf32> -> vector<64x8xf32>
    %58 = arith.addf %50, %57 : vector<64x8xf32>
    %c5 = arith.constant 5 : index
    %c0_50 = arith.constant 0 : index
    %c0_51 = arith.constant 0 : index
    %59 = vector.load %arg10[%c5, %c0_50, %c0_51] : memref<9x64x64xbf16, #tpu.memory_space<vmem>>, vector<1x64x64xbf16>
    %60 = vector.shape_cast %59 : vector<1x64x64xbf16> to vector<64x64xbf16>
    %cst_52 = arith.constant dense<0.000000e+00> : vector<64x8xf32>
    %61 = tpu.matmul %60, %17, %cst_52 {dimension_numbers = #tpu.dot_dimension_numbers<[1], [0], [0], [1], [0, 0, 1, 1], [], []>} : vector<64x64xbf16>, vector<64x8xbf16>, vector<64x8xf32> -> vector<64x8xf32>
    %c5_53 = arith.constant 5 : index
    %c0_54 = arith.constant 0 : index
    %c0_55 = arith.constant 0 : index
    %62 = vector.load %arg6[%c5_53, %c0_54, %c0_55] : memref<9x8x8xbf16, #tpu.memory_space<vmem>>, vector<1x8x8xbf16>
    %63 = vector.shape_cast %62 : vector<1x8x8xbf16> to vector<8x8xbf16>
    %64 = arith.truncf %61 : vector<64x8xf32> to vector<64x8xbf16>
    %cst_56 = arith.constant dense<0.000000e+00> : vector<64x8xf32>
    %65 = tpu.matmul %64, %63, %cst_56 {dimension_numbers = #tpu.dot_dimension_numbers<[1], [0], [0], [1], [0, 0, 1, 1], [], []>} : vector<64x8xbf16>, vector<8x8xbf16>, vector<64x8xf32> -> vector<64x8xf32>
    %66 = arith.addf %58, %65 : vector<64x8xf32>
    %c6 = arith.constant 6 : index
    %c0_57 = arith.constant 0 : index
    %c0_58 = arith.constant 0 : index
    %67 = vector.load %arg10[%c6, %c0_57, %c0_58] : memref<9x64x64xbf16, #tpu.memory_space<vmem>>, vector<1x64x64xbf16>
    %68 = vector.shape_cast %67 : vector<1x64x64xbf16> to vector<64x64xbf16>
    %cst_59 = arith.constant dense<0.000000e+00> : vector<64x8xf32>
    %69 = tpu.matmul %68, %17, %cst_59 {dimension_numbers = #tpu.dot_dimension_numbers<[1], [0], [0], [1], [0, 0, 1, 1], [], []>} : vector<64x64xbf16>, vector<64x8xbf16>, vector<64x8xf32> -> vector<64x8xf32>
    %c6_60 = arith.constant 6 : index
    %c0_61 = arith.constant 0 : index
    %c0_62 = arith.constant 0 : index
    %70 = vector.load %arg6[%c6_60, %c0_61, %c0_62] : memref<9x8x8xbf16, #tpu.memory_space<vmem>>, vector<1x8x8xbf16>
    %71 = vector.shape_cast %70 : vector<1x8x8xbf16> to vector<8x8xbf16>
    %72 = arith.truncf %69 : vector<64x8xf32> to vector<64x8xbf16>
    %cst_63 = arith.constant dense<0.000000e+00> : vector<64x8xf32>
    %73 = tpu.matmul %72, %71, %cst_63 {dimension_numbers = #tpu.dot_dimension_numbers<[1], [0], [0], [1], [0, 0, 1, 1], [], []>} : vector<64x8xbf16>, vector<8x8xbf16>, vector<64x8xf32> -> vector<64x8xf32>
    %74 = arith.addf %66, %73 : vector<64x8xf32>
    %c7 = arith.constant 7 : index
    %c0_64 = arith.constant 0 : index
    %c0_65 = arith.constant 0 : index
    %75 = vector.load %arg10[%c7, %c0_64, %c0_65] : memref<9x64x64xbf16, #tpu.memory_space<vmem>>, vector<1x64x64xbf16>
    %76 = vector.shape_cast %75 : vector<1x64x64xbf16> to vector<64x64xbf16>
    %cst_66 = arith.constant dense<0.000000e+00> : vector<64x8xf32>
    %77 = tpu.matmul %76, %17, %cst_66 {dimension_numbers = #tpu.dot_dimension_numbers<[1], [0], [0], [1], [0, 0, 1, 1], [], []>} : vector<64x64xbf16>, vector<64x8xbf16>, vector<64x8xf32> -> vector<64x8xf32>
    %c7_67 = arith.constant 7 : index
    %c0_68 = arith.constant 0 : index
    %c0_69 = arith.constant 0 : index
    %78 = vector.load %arg6[%c7_67, %c0_68, %c0_69] : memref<9x8x8xbf16, #tpu.memory_space<vmem>>, vector<1x8x8xbf16>
    %79 = vector.shape_cast %78 : vector<1x8x8xbf16> to vector<8x8xbf16>
    %80 = arith.truncf %77 : vector<64x8xf32> to vector<64x8xbf16>
    %cst_70 = arith.constant dense<0.000000e+00> : vector<64x8xf32>
    %81 = tpu.matmul %80, %79, %cst_70 {dimension_numbers = #tpu.dot_dimension_numbers<[1], [0], [0], [1], [0, 0, 1, 1], [], []>} : vector<64x8xbf16>, vector<8x8xbf16>, vector<64x8xf32> -> vector<64x8xf32>
    %82 = arith.addf %74, %81 : vector<64x8xf32>
    %c8 = arith.constant 8 : index
    %c0_71 = arith.constant 0 : index
    %c0_72 = arith.constant 0 : index
    %83 = vector.load %arg10[%c8, %c0_71, %c0_72] : memref<9x64x64xbf16, #tpu.memory_space<vmem>>, vector<1x64x64xbf16>
    %84 = vector.shape_cast %83 : vector<1x64x64xbf16> to vector<64x64xbf16>
    %cst_73 = arith.constant dense<0.000000e+00> : vector<64x8xf32>
    %85 = tpu.matmul %84, %17, %cst_73 {dimension_numbers = #tpu.dot_dimension_numbers<[1], [0], [0], [1], [0, 0, 1, 1], [], []>} : vector<64x64xbf16>, vector<64x8xbf16>, vector<64x8xf32> -> vector<64x8xf32>
    %c8_74 = arith.constant 8 : index
    %c0_75 = arith.constant 0 : index
    %c0_76 = arith.constant 0 : index
    %86 = vector.load %arg6[%c8_74, %c0_75, %c0_76] : memref<9x8x8xbf16, #tpu.memory_space<vmem>>, vector<1x8x8xbf16>
    %87 = vector.shape_cast %86 : vector<1x8x8xbf16> to vector<8x8xbf16>
    %88 = arith.truncf %85 : vector<64x8xf32> to vector<64x8xbf16>
    %cst_77 = arith.constant dense<0.000000e+00> : vector<64x8xf32>
    %89 = tpu.matmul %88, %87, %cst_77 {dimension_numbers = #tpu.dot_dimension_numbers<[1], [0], [0], [1], [0, 0, 1, 1], [], []>} : vector<64x8xbf16>, vector<8x8xbf16>, vector<64x8xf32> -> vector<64x8xf32>
    %90 = arith.addf %82, %89 : vector<64x8xf32>
    %c0_78 = arith.constant 0 : index
    %c0_79 = arith.constant 0 : index
    %91 = vector.load %arg7[%c0_78, %c0_79] : memref<1x8xf32, #tpu.memory_space<vmem>>, vector<1x8xf32>
    %92 = vector.broadcast %91 : vector<1x8xf32> to vector<64x8xf32>
    %93 = arith.addf %90, %92 : vector<64x8xf32>
    %cst_80 = arith.constant 0.000000e+00 : f32
    %94 = vector.broadcast %cst_80 : f32 to vector<64x8xf32>
    %95 = arith.maximumf %93, %94 : vector<64x8xf32>
    %c0_81 = arith.constant 0 : index
    %c0_82 = arith.constant 0 : index
    %96 = vector.load %arg8[%c0_81, %c0_82] : memref<8x32xbf16, #tpu.memory_space<vmem>>, vector<8x32xbf16>
    %97 = arith.truncf %95 : vector<64x8xf32> to vector<64x8xbf16>
    %cst_83 = arith.constant dense<0.000000e+00> : vector<64x32xf32>
    %98 = tpu.matmul %97, %96, %cst_83 {dimension_numbers = #tpu.dot_dimension_numbers<[1], [0], [0], [1], [0, 0, 1, 1], [], []>} : vector<64x8xbf16>, vector<8x32xbf16>, vector<64x32xf32> -> vector<64x32xf32>
    %c0_84 = arith.constant 0 : index
    %c0_85 = arith.constant 0 : index
    %99 = vector.load %arg9[%c0_84, %c0_85] : memref<1x32xf32, #tpu.memory_space<vmem>>, vector<1x32xf32>
    %100 = vector.broadcast %99 : vector<1x32xf32> to vector<64x32xf32>
    %101 = arith.addf %98, %100 : vector<64x32xf32>
    %cst_86 = arith.constant 0.000000e+00 : f32
    %102 = vector.broadcast %cst_86 : f32 to vector<64x32xf32>
    %103 = arith.maximumf %101, %102 : vector<64x32xf32>
    %104 = arith.addf %103, %8 : vector<64x32xf32>
    %cst_87 = arith.constant 0.000000e+00 : f32
    %105 = vector.broadcast %cst_87 : f32 to vector<64x32xf32>
    %106 = arith.maximumf %104, %105 : vector<64x32xf32>
    %c0_88 = arith.constant 0 : index
    %c0_89 = arith.constant 0 : index
    %107 = vector.load %arg11[%c0_88, %c0_89] : memref<32x8xbf16, #tpu.memory_space<vmem>>, vector<32x8xbf16>
    %108 = arith.truncf %106 : vector<64x32xf32> to vector<64x32xbf16>
    %cst_90 = arith.constant dense<0.000000e+00> : vector<64x8xf32>
    %109 = tpu.matmul %108, %107, %cst_90 {dimension_numbers = #tpu.dot_dimension_numbers<[1], [0], [0], [1], [0, 0, 1, 1], [], []>} : vector<64x32xbf16>, vector<32x8xbf16>, vector<64x8xf32> -> vector<64x8xf32>
    %c0_91 = arith.constant 0 : index
    %c0_92 = arith.constant 0 : index
    %110 = vector.load %arg12[%c0_91, %c0_92] : memref<1x8xf32, #tpu.memory_space<vmem>>, vector<1x8xf32>
    %111 = vector.broadcast %110 : vector<1x8xf32> to vector<64x8xf32>
    %112 = arith.addf %109, %111 : vector<64x8xf32>
    %cst_93 = arith.constant 0.000000e+00 : f32
    %113 = vector.broadcast %cst_93 : f32 to vector<64x8xf32>
    %114 = arith.maximumf %112, %113 : vector<64x8xf32>
    %115 = arith.truncf %114 : vector<64x8xf32> to vector<64x8xbf16>
    %cst_94 = arith.constant 0.000000e+00 : f32
    %116 = vector.broadcast %cst_94 : f32 to vector<64x8xf32>
    %c0_95 = arith.constant 0 : index
    %c0_96 = arith.constant 0 : index
    %c0_97 = arith.constant 0 : index
    %117 = vector.load %arg17[%c0_95, %c0_96, %c0_97] : memref<9x64x64xbf16, #tpu.memory_space<vmem>>, vector<1x64x64xbf16>
    %118 = vector.shape_cast %117 : vector<1x64x64xbf16> to vector<64x64xbf16>
    %cst_98 = arith.constant dense<0.000000e+00> : vector<64x8xf32>
    %119 = tpu.matmul %118, %115, %cst_98 {dimension_numbers = #tpu.dot_dimension_numbers<[1], [0], [0], [1], [0, 0, 1, 1], [], []>} : vector<64x64xbf16>, vector<64x8xbf16>, vector<64x8xf32> -> vector<64x8xf32>
    %c0_99 = arith.constant 0 : index
    %c0_100 = arith.constant 0 : index
    %c0_101 = arith.constant 0 : index
    %120 = vector.load %arg13[%c0_99, %c0_100, %c0_101] : memref<9x8x8xbf16, #tpu.memory_space<vmem>>, vector<1x8x8xbf16>
    %121 = vector.shape_cast %120 : vector<1x8x8xbf16> to vector<8x8xbf16>
    %122 = arith.truncf %119 : vector<64x8xf32> to vector<64x8xbf16>
    %cst_102 = arith.constant dense<0.000000e+00> : vector<64x8xf32>
    %123 = tpu.matmul %122, %121, %cst_102 {dimension_numbers = #tpu.dot_dimension_numbers<[1], [0], [0], [1], [0, 0, 1, 1], [], []>} : vector<64x8xbf16>, vector<8x8xbf16>, vector<64x8xf32> -> vector<64x8xf32>
    %124 = arith.addf %116, %123 : vector<64x8xf32>
    %c1_103 = arith.constant 1 : index
    %c0_104 = arith.constant 0 : index
    %c0_105 = arith.constant 0 : index
    %125 = vector.load %arg17[%c1_103, %c0_104, %c0_105] : memref<9x64x64xbf16, #tpu.memory_space<vmem>>, vector<1x64x64xbf16>
    %126 = vector.shape_cast %125 : vector<1x64x64xbf16> to vector<64x64xbf16>
    %cst_106 = arith.constant dense<0.000000e+00> : vector<64x8xf32>
    %127 = tpu.matmul %126, %115, %cst_106 {dimension_numbers = #tpu.dot_dimension_numbers<[1], [0], [0], [1], [0, 0, 1, 1], [], []>} : vector<64x64xbf16>, vector<64x8xbf16>, vector<64x8xf32> -> vector<64x8xf32>
    %c1_107 = arith.constant 1 : index
    %c0_108 = arith.constant 0 : index
    %c0_109 = arith.constant 0 : index
    %128 = vector.load %arg13[%c1_107, %c0_108, %c0_109] : memref<9x8x8xbf16, #tpu.memory_space<vmem>>, vector<1x8x8xbf16>
    %129 = vector.shape_cast %128 : vector<1x8x8xbf16> to vector<8x8xbf16>
    %130 = arith.truncf %127 : vector<64x8xf32> to vector<64x8xbf16>
    %cst_110 = arith.constant dense<0.000000e+00> : vector<64x8xf32>
    %131 = tpu.matmul %130, %129, %cst_110 {dimension_numbers = #tpu.dot_dimension_numbers<[1], [0], [0], [1], [0, 0, 1, 1], [], []>} : vector<64x8xbf16>, vector<8x8xbf16>, vector<64x8xf32> -> vector<64x8xf32>
    %132 = arith.addf %124, %131 : vector<64x8xf32>
    %c2_111 = arith.constant 2 : index
    %c0_112 = arith.constant 0 : index
    %c0_113 = arith.constant 0 : index
    %133 = vector.load %arg17[%c2_111, %c0_112, %c0_113] : memref<9x64x64xbf16, #tpu.memory_space<vmem>>, vector<1x64x64xbf16>
    %134 = vector.shape_cast %133 : vector<1x64x64xbf16> to vector<64x64xbf16>
    %cst_114 = arith.constant dense<0.000000e+00> : vector<64x8xf32>
    %135 = tpu.matmul %134, %115, %cst_114 {dimension_numbers = #tpu.dot_dimension_numbers<[1], [0], [0], [1], [0, 0, 1, 1], [], []>} : vector<64x64xbf16>, vector<64x8xbf16>, vector<64x8xf32> -> vector<64x8xf32>
    %c2_115 = arith.constant 2 : index
    %c0_116 = arith.constant 0 : index
    %c0_117 = arith.constant 0 : index
    %136 = vector.load %arg13[%c2_115, %c0_116, %c0_117] : memref<9x8x8xbf16, #tpu.memory_space<vmem>>, vector<1x8x8xbf16>
    %137 = vector.shape_cast %136 : vector<1x8x8xbf16> to vector<8x8xbf16>
    %138 = arith.truncf %135 : vector<64x8xf32> to vector<64x8xbf16>
    %cst_118 = arith.constant dense<0.000000e+00> : vector<64x8xf32>
    %139 = tpu.matmul %138, %137, %cst_118 {dimension_numbers = #tpu.dot_dimension_numbers<[1], [0], [0], [1], [0, 0, 1, 1], [], []>} : vector<64x8xbf16>, vector<8x8xbf16>, vector<64x8xf32> -> vector<64x8xf32>
    %140 = arith.addf %132, %139 : vector<64x8xf32>
    %c3_119 = arith.constant 3 : index
    %c0_120 = arith.constant 0 : index
    %c0_121 = arith.constant 0 : index
    %141 = vector.load %arg17[%c3_119, %c0_120, %c0_121] : memref<9x64x64xbf16, #tpu.memory_space<vmem>>, vector<1x64x64xbf16>
    %142 = vector.shape_cast %141 : vector<1x64x64xbf16> to vector<64x64xbf16>
    %cst_122 = arith.constant dense<0.000000e+00> : vector<64x8xf32>
    %143 = tpu.matmul %142, %115, %cst_122 {dimension_numbers = #tpu.dot_dimension_numbers<[1], [0], [0], [1], [0, 0, 1, 1], [], []>} : vector<64x64xbf16>, vector<64x8xbf16>, vector<64x8xf32> -> vector<64x8xf32>
    %c3_123 = arith.constant 3 : index
    %c0_124 = arith.constant 0 : index
    %c0_125 = arith.constant 0 : index
    %144 = vector.load %arg13[%c3_123, %c0_124, %c0_125] : memref<9x8x8xbf16, #tpu.memory_space<vmem>>, vector<1x8x8xbf16>
    %145 = vector.shape_cast %144 : vector<1x8x8xbf16> to vector<8x8xbf16>
    %146 = arith.truncf %143 : vector<64x8xf32> to vector<64x8xbf16>
    %cst_126 = arith.constant dense<0.000000e+00> : vector<64x8xf32>
    %147 = tpu.matmul %146, %145, %cst_126 {dimension_numbers = #tpu.dot_dimension_numbers<[1], [0], [0], [1], [0, 0, 1, 1], [], []>} : vector<64x8xbf16>, vector<8x8xbf16>, vector<64x8xf32> -> vector<64x8xf32>
    %148 = arith.addf %140, %147 : vector<64x8xf32>
    %c4_127 = arith.constant 4 : index
    %c0_128 = arith.constant 0 : index
    %c0_129 = arith.constant 0 : index
    %149 = vector.load %arg17[%c4_127, %c0_128, %c0_129] : memref<9x64x64xbf16, #tpu.memory_space<vmem>>, vector<1x64x64xbf16>
    %150 = vector.shape_cast %149 : vector<1x64x64xbf16> to vector<64x64xbf16>
    %cst_130 = arith.constant dense<0.000000e+00> : vector<64x8xf32>
    %151 = tpu.matmul %150, %115, %cst_130 {dimension_numbers = #tpu.dot_dimension_numbers<[1], [0], [0], [1], [0, 0, 1, 1], [], []>} : vector<64x64xbf16>, vector<64x8xbf16>, vector<64x8xf32> -> vector<64x8xf32>
    %c4_131 = arith.constant 4 : index
    %c0_132 = arith.constant 0 : index
    %c0_133 = arith.constant 0 : index
    %152 = vector.load %arg13[%c4_131, %c0_132, %c0_133] : memref<9x8x8xbf16, #tpu.memory_space<vmem>>, vector<1x8x8xbf16>
    %153 = vector.shape_cast %152 : vector<1x8x8xbf16> to vector<8x8xbf16>
    %154 = arith.truncf %151 : vector<64x8xf32> to vector<64x8xbf16>
    %cst_134 = arith.constant dense<0.000000e+00> : vector<64x8xf32>
    %155 = tpu.matmul %154, %153, %cst_134 {dimension_numbers = #tpu.dot_dimension_numbers<[1], [0], [0], [1], [0, 0, 1, 1], [], []>} : vector<64x8xbf16>, vector<8x8xbf16>, vector<64x8xf32> -> vector<64x8xf32>
    %156 = arith.addf %148, %155 : vector<64x8xf32>
    %c5_135 = arith.constant 5 : index
    %c0_136 = arith.constant 0 : index
    %c0_137 = arith.constant 0 : index
    %157 = vector.load %arg17[%c5_135, %c0_136, %c0_137] : memref<9x64x64xbf16, #tpu.memory_space<vmem>>, vector<1x64x64xbf16>
    %158 = vector.shape_cast %157 : vector<1x64x64xbf16> to vector<64x64xbf16>
    %cst_138 = arith.constant dense<0.000000e+00> : vector<64x8xf32>
    %159 = tpu.matmul %158, %115, %cst_138 {dimension_numbers = #tpu.dot_dimension_numbers<[1], [0], [0], [1], [0, 0, 1, 1], [], []>} : vector<64x64xbf16>, vector<64x8xbf16>, vector<64x8xf32> -> vector<64x8xf32>
    %c5_139 = arith.constant 5 : index
    %c0_140 = arith.constant 0 : index
    %c0_141 = arith.constant 0 : index
    %160 = vector.load %arg13[%c5_139, %c0_140, %c0_141] : memref<9x8x8xbf16, #tpu.memory_space<vmem>>, vector<1x8x8xbf16>
    %161 = vector.shape_cast %160 : vector<1x8x8xbf16> to vector<8x8xbf16>
    %162 = arith.truncf %159 : vector<64x8xf32> to vector<64x8xbf16>
    %cst_142 = arith.constant dense<0.000000e+00> : vector<64x8xf32>
    %163 = tpu.matmul %162, %161, %cst_142 {dimension_numbers = #tpu.dot_dimension_numbers<[1], [0], [0], [1], [0, 0, 1, 1], [], []>} : vector<64x8xbf16>, vector<8x8xbf16>, vector<64x8xf32> -> vector<64x8xf32>
    %164 = arith.addf %156, %163 : vector<64x8xf32>
    %c6_143 = arith.constant 6 : index
    %c0_144 = arith.constant 0 : index
    %c0_145 = arith.constant 0 : index
    %165 = vector.load %arg17[%c6_143, %c0_144, %c0_145] : memref<9x64x64xbf16, #tpu.memory_space<vmem>>, vector<1x64x64xbf16>
    %166 = vector.shape_cast %165 : vector<1x64x64xbf16> to vector<64x64xbf16>
    %cst_146 = arith.constant dense<0.000000e+00> : vector<64x8xf32>
    %167 = tpu.matmul %166, %115, %cst_146 {dimension_numbers = #tpu.dot_dimension_numbers<[1], [0], [0], [1], [0, 0, 1, 1], [], []>} : vector<64x64xbf16>, vector<64x8xbf16>, vector<64x8xf32> -> vector<64x8xf32>
    %c6_147 = arith.constant 6 : index
    %c0_148 = arith.constant 0 : index
    %c0_149 = arith.constant 0 : index
    %168 = vector.load %arg13[%c6_147, %c0_148, %c0_149] : memref<9x8x8xbf16, #tpu.memory_space<vmem>>, vector<1x8x8xbf16>
    %169 = vector.shape_cast %168 : vector<1x8x8xbf16> to vector<8x8xbf16>
    %170 = arith.truncf %167 : vector<64x8xf32> to vector<64x8xbf16>
    %cst_150 = arith.constant dense<0.000000e+00> : vector<64x8xf32>
    %171 = tpu.matmul %170, %169, %cst_150 {dimension_numbers = #tpu.dot_dimension_numbers<[1], [0], [0], [1], [0, 0, 1, 1], [], []>} : vector<64x8xbf16>, vector<8x8xbf16>, vector<64x8xf32> -> vector<64x8xf32>
    %172 = arith.addf %164, %171 : vector<64x8xf32>
    %c7_151 = arith.constant 7 : index
    %c0_152 = arith.constant 0 : index
    %c0_153 = arith.constant 0 : index
    %173 = vector.load %arg17[%c7_151, %c0_152, %c0_153] : memref<9x64x64xbf16, #tpu.memory_space<vmem>>, vector<1x64x64xbf16>
    %174 = vector.shape_cast %173 : vector<1x64x64xbf16> to vector<64x64xbf16>
    %cst_154 = arith.constant dense<0.000000e+00> : vector<64x8xf32>
    %175 = tpu.matmul %174, %115, %cst_154 {dimension_numbers = #tpu.dot_dimension_numbers<[1], [0], [0], [1], [0, 0, 1, 1], [], []>} : vector<64x64xbf16>, vector<64x8xbf16>, vector<64x8xf32> -> vector<64x8xf32>
    %c7_155 = arith.constant 7 : index
    %c0_156 = arith.constant 0 : index
    %c0_157 = arith.constant 0 : index
    %176 = vector.load %arg13[%c7_155, %c0_156, %c0_157] : memref<9x8x8xbf16, #tpu.memory_space<vmem>>, vector<1x8x8xbf16>
    %177 = vector.shape_cast %176 : vector<1x8x8xbf16> to vector<8x8xbf16>
    %178 = arith.truncf %175 : vector<64x8xf32> to vector<64x8xbf16>
    %cst_158 = arith.constant dense<0.000000e+00> : vector<64x8xf32>
    %179 = tpu.matmul %178, %177, %cst_158 {dimension_numbers = #tpu.dot_dimension_numbers<[1], [0], [0], [1], [0, 0, 1, 1], [], []>} : vector<64x8xbf16>, vector<8x8xbf16>, vector<64x8xf32> -> vector<64x8xf32>
    %180 = arith.addf %172, %179 : vector<64x8xf32>
    %c8_159 = arith.constant 8 : index
    %c0_160 = arith.constant 0 : index
    %c0_161 = arith.constant 0 : index
    %181 = vector.load %arg17[%c8_159, %c0_160, %c0_161] : memref<9x64x64xbf16, #tpu.memory_space<vmem>>, vector<1x64x64xbf16>
    %182 = vector.shape_cast %181 : vector<1x64x64xbf16> to vector<64x64xbf16>
    %cst_162 = arith.constant dense<0.000000e+00> : vector<64x8xf32>
    %183 = tpu.matmul %182, %115, %cst_162 {dimension_numbers = #tpu.dot_dimension_numbers<[1], [0], [0], [1], [0, 0, 1, 1], [], []>} : vector<64x64xbf16>, vector<64x8xbf16>, vector<64x8xf32> -> vector<64x8xf32>
    %c8_163 = arith.constant 8 : index
    %c0_164 = arith.constant 0 : index
    %c0_165 = arith.constant 0 : index
    %184 = vector.load %arg13[%c8_163, %c0_164, %c0_165] : memref<9x8x8xbf16, #tpu.memory_space<vmem>>, vector<1x8x8xbf16>
    %185 = vector.shape_cast %184 : vector<1x8x8xbf16> to vector<8x8xbf16>
    %186 = arith.truncf %183 : vector<64x8xf32> to vector<64x8xbf16>
    %cst_166 = arith.constant dense<0.000000e+00> : vector<64x8xf32>
    %187 = tpu.matmul %186, %185, %cst_166 {dimension_numbers = #tpu.dot_dimension_numbers<[1], [0], [0], [1], [0, 0, 1, 1], [], []>} : vector<64x8xbf16>, vector<8x8xbf16>, vector<64x8xf32> -> vector<64x8xf32>
    %188 = arith.addf %180, %187 : vector<64x8xf32>
    %c0_167 = arith.constant 0 : index
    %c0_168 = arith.constant 0 : index
    %189 = vector.load %arg14[%c0_167, %c0_168] : memref<1x8xf32, #tpu.memory_space<vmem>>, vector<1x8xf32>
    %190 = vector.broadcast %189 : vector<1x8xf32> to vector<64x8xf32>
    %191 = arith.addf %188, %190 : vector<64x8xf32>
    %cst_169 = arith.constant 0.000000e+00 : f32
    %192 = vector.broadcast %cst_169 : f32 to vector<64x8xf32>
    %193 = arith.maximumf %191, %192 : vector<64x8xf32>
    %c0_170 = arith.constant 0 : index
    %c0_171 = arith.constant 0 : index
    %194 = vector.load %arg15[%c0_170, %c0_171] : memref<8x32xbf16, #tpu.memory_space<vmem>>, vector<8x32xbf16>
    %195 = arith.truncf %193 : vector<64x8xf32> to vector<64x8xbf16>
    %cst_172 = arith.constant dense<0.000000e+00> : vector<64x32xf32>
    %196 = tpu.matmul %195, %194, %cst_172 {dimension_numbers = #tpu.dot_dimension_numbers<[1], [0], [0], [1], [0, 0, 1, 1], [], []>} : vector<64x8xbf16>, vector<8x32xbf16>, vector<64x32xf32> -> vector<64x32xf32>
    %c0_173 = arith.constant 0 : index
    %c0_174 = arith.constant 0 : index
    %197 = vector.load %arg16[%c0_173, %c0_174] : memref<1x32xf32, #tpu.memory_space<vmem>>, vector<1x32xf32>
    %198 = vector.broadcast %197 : vector<1x32xf32> to vector<64x32xf32>
    %199 = arith.addf %196, %198 : vector<64x32xf32>
    %cst_175 = arith.constant 0.000000e+00 : f32
    %200 = vector.broadcast %cst_175 : f32 to vector<64x32xf32>
    %201 = arith.maximumf %199, %200 : vector<64x32xf32>
    %202 = arith.addf %201, %106 : vector<64x32xf32>
    %cst_176 = arith.constant 0.000000e+00 : f32
    %203 = vector.broadcast %cst_176 : f32 to vector<64x32xf32>
    %204 = arith.maximumf %202, %203 : vector<64x32xf32>
    %c0_177 = arith.constant 0 : index
    %c0_178 = arith.constant 0 : index
    %205 = vector.load %arg18[%c0_177, %c0_178] : memref<32x16xbf16, #tpu.memory_space<vmem>>, vector<32x16xbf16>
    %206 = arith.truncf %204 : vector<64x32xf32> to vector<64x32xbf16>
    %cst_179 = arith.constant dense<0.000000e+00> : vector<64x16xf32>
    %207 = tpu.matmul %206, %205, %cst_179 {dimension_numbers = #tpu.dot_dimension_numbers<[1], [0], [0], [1], [0, 0, 1, 1], [], []>} : vector<64x32xbf16>, vector<32x16xbf16>, vector<64x16xf32> -> vector<64x16xf32>
    %c0_180 = arith.constant 0 : index
    %c0_181 = arith.constant 0 : index
    %208 = vector.load %arg19[%c0_180, %c0_181] : memref<1x16xf32, #tpu.memory_space<vmem>>, vector<1x16xf32>
    %209 = vector.broadcast %208 : vector<1x16xf32> to vector<64x16xf32>
    %210 = arith.addf %207, %209 : vector<64x16xf32>
    %cst_182 = arith.constant 0.000000e+00 : f32
    %211 = vector.broadcast %cst_182 : f32 to vector<64x16xf32>
    %212 = arith.maximumf %210, %211 : vector<64x16xf32>
    %213 = arith.truncf %212 : vector<64x16xf32> to vector<64x16xbf16>
    %cst_183 = arith.constant 0.000000e+00 : f32
    %214 = vector.broadcast %cst_183 : f32 to vector<16x16xf32>
    %c0_184 = arith.constant 0 : index
    %c0_185 = arith.constant 0 : index
    %c0_186 = arith.constant 0 : index
    %215 = vector.load %arg24[%c0_184, %c0_185, %c0_186] : memref<9x16x64xbf16, #tpu.memory_space<vmem>>, vector<1x16x64xbf16>
    %216 = vector.shape_cast %215 : vector<1x16x64xbf16> to vector<16x64xbf16>
    %cst_187 = arith.constant dense<0.000000e+00> : vector<16x16xf32>
    %217 = tpu.matmul %216, %213, %cst_187 {dimension_numbers = #tpu.dot_dimension_numbers<[1], [0], [0], [1], [0, 0, 1, 1], [], []>} : vector<16x64xbf16>, vector<64x16xbf16>, vector<16x16xf32> -> vector<16x16xf32>
    %c0_188 = arith.constant 0 : index
    %c0_189 = arith.constant 0 : index
    %c0_190 = arith.constant 0 : index
    %218 = vector.load %arg20[%c0_188, %c0_189, %c0_190] : memref<9x16x16xbf16, #tpu.memory_space<vmem>>, vector<1x16x16xbf16>
    %219 = vector.shape_cast %218 : vector<1x16x16xbf16> to vector<16x16xbf16>
    %220 = arith.truncf %217 : vector<16x16xf32> to vector<16x16xbf16>
    %cst_191 = arith.constant dense<0.000000e+00> : vector<16x16xf32>
    %221 = tpu.matmul %220, %219, %cst_191 {dimension_numbers = #tpu.dot_dimension_numbers<[1], [0], [0], [1], [0, 0, 1, 1], [], []>} : vector<16x16xbf16>, vector<16x16xbf16>, vector<16x16xf32> -> vector<16x16xf32>
    %222 = arith.addf %214, %221 : vector<16x16xf32>
    %c1_192 = arith.constant 1 : index
    %c0_193 = arith.constant 0 : index
    %c0_194 = arith.constant 0 : index
    %223 = vector.load %arg24[%c1_192, %c0_193, %c0_194] : memref<9x16x64xbf16, #tpu.memory_space<vmem>>, vector<1x16x64xbf16>
    %224 = vector.shape_cast %223 : vector<1x16x64xbf16> to vector<16x64xbf16>
    %cst_195 = arith.constant dense<0.000000e+00> : vector<16x16xf32>
    %225 = tpu.matmul %224, %213, %cst_195 {dimension_numbers = #tpu.dot_dimension_numbers<[1], [0], [0], [1], [0, 0, 1, 1], [], []>} : vector<16x64xbf16>, vector<64x16xbf16>, vector<16x16xf32> -> vector<16x16xf32>
    %c1_196 = arith.constant 1 : index
    %c0_197 = arith.constant 0 : index
    %c0_198 = arith.constant 0 : index
    %226 = vector.load %arg20[%c1_196, %c0_197, %c0_198] : memref<9x16x16xbf16, #tpu.memory_space<vmem>>, vector<1x16x16xbf16>
    %227 = vector.shape_cast %226 : vector<1x16x16xbf16> to vector<16x16xbf16>
    %228 = arith.truncf %225 : vector<16x16xf32> to vector<16x16xbf16>
    %cst_199 = arith.constant dense<0.000000e+00> : vector<16x16xf32>
    %229 = tpu.matmul %228, %227, %cst_199 {dimension_numbers = #tpu.dot_dimension_numbers<[1], [0], [0], [1], [0, 0, 1, 1], [], []>} : vector<16x16xbf16>, vector<16x16xbf16>, vector<16x16xf32> -> vector<16x16xf32>
    %230 = arith.addf %222, %229 : vector<16x16xf32>
    %c2_200 = arith.constant 2 : index
    %c0_201 = arith.constant 0 : index
    %c0_202 = arith.constant 0 : index
    %231 = vector.load %arg24[%c2_200, %c0_201, %c0_202] : memref<9x16x64xbf16, #tpu.memory_space<vmem>>, vector<1x16x64xbf16>
    %232 = vector.shape_cast %231 : vector<1x16x64xbf16> to vector<16x64xbf16>
    %cst_203 = arith.constant dense<0.000000e+00> : vector<16x16xf32>
    %233 = tpu.matmul %232, %213, %cst_203 {dimension_numbers = #tpu.dot_dimension_numbers<[1], [0], [0], [1], [0, 0, 1, 1], [], []>} : vector<16x64xbf16>, vector<64x16xbf16>, vector<16x16xf32> -> vector<16x16xf32>
    %c2_204 = arith.constant 2 : index
    %c0_205 = arith.constant 0 : index
    %c0_206 = arith.constant 0 : index
    %234 = vector.load %arg20[%c2_204, %c0_205, %c0_206] : memref<9x16x16xbf16, #tpu.memory_space<vmem>>, vector<1x16x16xbf16>
    %235 = vector.shape_cast %234 : vector<1x16x16xbf16> to vector<16x16xbf16>
    %236 = arith.truncf %233 : vector<16x16xf32> to vector<16x16xbf16>
    %cst_207 = arith.constant dense<0.000000e+00> : vector<16x16xf32>
    %237 = tpu.matmul %236, %235, %cst_207 {dimension_numbers = #tpu.dot_dimension_numbers<[1], [0], [0], [1], [0, 0, 1, 1], [], []>} : vector<16x16xbf16>, vector<16x16xbf16>, vector<16x16xf32> -> vector<16x16xf32>
    %238 = arith.addf %230, %237 : vector<16x16xf32>
    %c3_208 = arith.constant 3 : index
    %c0_209 = arith.constant 0 : index
    %c0_210 = arith.constant 0 : index
    %239 = vector.load %arg24[%c3_208, %c0_209, %c0_210] : memref<9x16x64xbf16, #tpu.memory_space<vmem>>, vector<1x16x64xbf16>
    %240 = vector.shape_cast %239 : vector<1x16x64xbf16> to vector<16x64xbf16>
    %cst_211 = arith.constant dense<0.000000e+00> : vector<16x16xf32>
    %241 = tpu.matmul %240, %213, %cst_211 {dimension_numbers = #tpu.dot_dimension_numbers<[1], [0], [0], [1], [0, 0, 1, 1], [], []>} : vector<16x64xbf16>, vector<64x16xbf16>, vector<16x16xf32> -> vector<16x16xf32>
    %c3_212 = arith.constant 3 : index
    %c0_213 = arith.constant 0 : index
    %c0_214 = arith.constant 0 : index
    %242 = vector.load %arg20[%c3_212, %c0_213, %c0_214] : memref<9x16x16xbf16, #tpu.memory_space<vmem>>, vector<1x16x16xbf16>
    %243 = vector.shape_cast %242 : vector<1x16x16xbf16> to vector<16x16xbf16>
    %244 = arith.truncf %241 : vector<16x16xf32> to vector<16x16xbf16>
    %cst_215 = arith.constant dense<0.000000e+00> : vector<16x16xf32>
    %245 = tpu.matmul %244, %243, %cst_215 {dimension_numbers = #tpu.dot_dimension_numbers<[1], [0], [0], [1], [0, 0, 1, 1], [], []>} : vector<16x16xbf16>, vector<16x16xbf16>, vector<16x16xf32> -> vector<16x16xf32>
    %246 = arith.addf %238, %245 : vector<16x16xf32>
    %c4_216 = arith.constant 4 : index
    %c0_217 = arith.constant 0 : index
    %c0_218 = arith.constant 0 : index
    %247 = vector.load %arg24[%c4_216, %c0_217, %c0_218] : memref<9x16x64xbf16, #tpu.memory_space<vmem>>, vector<1x16x64xbf16>
    %248 = vector.shape_cast %247 : vector<1x16x64xbf16> to vector<16x64xbf16>
    %cst_219 = arith.constant dense<0.000000e+00> : vector<16x16xf32>
    %249 = tpu.matmul %248, %213, %cst_219 {dimension_numbers = #tpu.dot_dimension_numbers<[1], [0], [0], [1], [0, 0, 1, 1], [], []>} : vector<16x64xbf16>, vector<64x16xbf16>, vector<16x16xf32> -> vector<16x16xf32>
    %c4_220 = arith.constant 4 : index
    %c0_221 = arith.constant 0 : index
    %c0_222 = arith.constant 0 : index
    %250 = vector.load %arg20[%c4_220, %c0_221, %c0_222] : memref<9x16x16xbf16, #tpu.memory_space<vmem>>, vector<1x16x16xbf16>
    %251 = vector.shape_cast %250 : vector<1x16x16xbf16> to vector<16x16xbf16>
    %252 = arith.truncf %249 : vector<16x16xf32> to vector<16x16xbf16>
    %cst_223 = arith.constant dense<0.000000e+00> : vector<16x16xf32>
    %253 = tpu.matmul %252, %251, %cst_223 {dimension_numbers = #tpu.dot_dimension_numbers<[1], [0], [0], [1], [0, 0, 1, 1], [], []>} : vector<16x16xbf16>, vector<16x16xbf16>, vector<16x16xf32> -> vector<16x16xf32>
    %254 = arith.addf %246, %253 : vector<16x16xf32>
    %c5_224 = arith.constant 5 : index
    %c0_225 = arith.constant 0 : index
    %c0_226 = arith.constant 0 : index
    %255 = vector.load %arg24[%c5_224, %c0_225, %c0_226] : memref<9x16x64xbf16, #tpu.memory_space<vmem>>, vector<1x16x64xbf16>
    %256 = vector.shape_cast %255 : vector<1x16x64xbf16> to vector<16x64xbf16>
    %cst_227 = arith.constant dense<0.000000e+00> : vector<16x16xf32>
    %257 = tpu.matmul %256, %213, %cst_227 {dimension_numbers = #tpu.dot_dimension_numbers<[1], [0], [0], [1], [0, 0, 1, 1], [], []>} : vector<16x64xbf16>, vector<64x16xbf16>, vector<16x16xf32> -> vector<16x16xf32>
    %c5_228 = arith.constant 5 : index
    %c0_229 = arith.constant 0 : index
    %c0_230 = arith.constant 0 : index
    %258 = vector.load %arg20[%c5_228, %c0_229, %c0_230] : memref<9x16x16xbf16, #tpu.memory_space<vmem>>, vector<1x16x16xbf16>
    %259 = vector.shape_cast %258 : vector<1x16x16xbf16> to vector<16x16xbf16>
    %260 = arith.truncf %257 : vector<16x16xf32> to vector<16x16xbf16>
    %cst_231 = arith.constant dense<0.000000e+00> : vector<16x16xf32>
    %261 = tpu.matmul %260, %259, %cst_231 {dimension_numbers = #tpu.dot_dimension_numbers<[1], [0], [0], [1], [0, 0, 1, 1], [], []>} : vector<16x16xbf16>, vector<16x16xbf16>, vector<16x16xf32> -> vector<16x16xf32>
    %262 = arith.addf %254, %261 : vector<16x16xf32>
    %c6_232 = arith.constant 6 : index
    %c0_233 = arith.constant 0 : index
    %c0_234 = arith.constant 0 : index
    %263 = vector.load %arg24[%c6_232, %c0_233, %c0_234] : memref<9x16x64xbf16, #tpu.memory_space<vmem>>, vector<1x16x64xbf16>
    %264 = vector.shape_cast %263 : vector<1x16x64xbf16> to vector<16x64xbf16>
    %cst_235 = arith.constant dense<0.000000e+00> : vector<16x16xf32>
    %265 = tpu.matmul %264, %213, %cst_235 {dimension_numbers = #tpu.dot_dimension_numbers<[1], [0], [0], [1], [0, 0, 1, 1], [], []>} : vector<16x64xbf16>, vector<64x16xbf16>, vector<16x16xf32> -> vector<16x16xf32>
    %c6_236 = arith.constant 6 : index
    %c0_237 = arith.constant 0 : index
    %c0_238 = arith.constant 0 : index
    %266 = vector.load %arg20[%c6_236, %c0_237, %c0_238] : memref<9x16x16xbf16, #tpu.memory_space<vmem>>, vector<1x16x16xbf16>
    %267 = vector.shape_cast %266 : vector<1x16x16xbf16> to vector<16x16xbf16>
    %268 = arith.truncf %265 : vector<16x16xf32> to vector<16x16xbf16>
    %cst_239 = arith.constant dense<0.000000e+00> : vector<16x16xf32>
    %269 = tpu.matmul %268, %267, %cst_239 {dimension_numbers = #tpu.dot_dimension_numbers<[1], [0], [0], [1], [0, 0, 1, 1], [], []>} : vector<16x16xbf16>, vector<16x16xbf16>, vector<16x16xf32> -> vector<16x16xf32>
    %270 = arith.addf %262, %269 : vector<16x16xf32>
    %c7_240 = arith.constant 7 : index
    %c0_241 = arith.constant 0 : index
    %c0_242 = arith.constant 0 : index
    %271 = vector.load %arg24[%c7_240, %c0_241, %c0_242] : memref<9x16x64xbf16, #tpu.memory_space<vmem>>, vector<1x16x64xbf16>
    %272 = vector.shape_cast %271 : vector<1x16x64xbf16> to vector<16x64xbf16>
    %cst_243 = arith.constant dense<0.000000e+00> : vector<16x16xf32>
    %273 = tpu.matmul %272, %213, %cst_243 {dimension_numbers = #tpu.dot_dimension_numbers<[1], [0], [0], [1], [0, 0, 1, 1], [], []>} : vector<16x64xbf16>, vector<64x16xbf16>, vector<16x16xf32> -> vector<16x16xf32>
    %c7_244 = arith.constant 7 : index
    %c0_245 = arith.constant 0 : index
    %c0_246 = arith.constant 0 : index
    %274 = vector.load %arg20[%c7_244, %c0_245, %c0_246] : memref<9x16x16xbf16, #tpu.memory_space<vmem>>, vector<1x16x16xbf16>
    %275 = vector.shape_cast %274 : vector<1x16x16xbf16> to vector<16x16xbf16>
    %276 = arith.truncf %273 : vector<16x16xf32> to vector<16x16xbf16>
    %cst_247 = arith.constant dense<0.000000e+00> : vector<16x16xf32>
    %277 = tpu.matmul %276, %275, %cst_247 {dimension_numbers = #tpu.dot_dimension_numbers<[1], [0], [0], [1], [0, 0, 1, 1], [], []>} : vector<16x16xbf16>, vector<16x16xbf16>, vector<16x16xf32> -> vector<16x16xf32>
    %278 = arith.addf %270, %277 : vector<16x16xf32>
    %c8_248 = arith.constant 8 : index
    %c0_249 = arith.constant 0 : index
    %c0_250 = arith.constant 0 : index
    %279 = vector.load %arg24[%c8_248, %c0_249, %c0_250] : memref<9x16x64xbf16, #tpu.memory_space<vmem>>, vector<1x16x64xbf16>
    %280 = vector.shape_cast %279 : vector<1x16x64xbf16> to vector<16x64xbf16>
    %cst_251 = arith.constant dense<0.000000e+00> : vector<16x16xf32>
    %281 = tpu.matmul %280, %213, %cst_251 {dimension_numbers = #tpu.dot_dimension_numbers<[1], [0], [0], [1], [0, 0, 1, 1], [], []>} : vector<16x64xbf16>, vector<64x16xbf16>, vector<16x16xf32> -> vector<16x16xf32>
    %c8_252 = arith.constant 8 : index
    %c0_253 = arith.constant 0 : index
    %c0_254 = arith.constant 0 : index
    %282 = vector.load %arg20[%c8_252, %c0_253, %c0_254] : memref<9x16x16xbf16, #tpu.memory_space<vmem>>, vector<1x16x16xbf16>
    %283 = vector.shape_cast %282 : vector<1x16x16xbf16> to vector<16x16xbf16>
    %284 = arith.truncf %281 : vector<16x16xf32> to vector<16x16xbf16>
    %cst_255 = arith.constant dense<0.000000e+00> : vector<16x16xf32>
    %285 = tpu.matmul %284, %283, %cst_255 {dimension_numbers = #tpu.dot_dimension_numbers<[1], [0], [0], [1], [0, 0, 1, 1], [], []>} : vector<16x16xbf16>, vector<16x16xbf16>, vector<16x16xf32> -> vector<16x16xf32>
    %286 = arith.addf %278, %285 : vector<16x16xf32>
    %c0_256 = arith.constant 0 : index
    %c0_257 = arith.constant 0 : index
    %287 = vector.load %arg21[%c0_256, %c0_257] : memref<1x16xf32, #tpu.memory_space<vmem>>, vector<1x16xf32>
    %288 = vector.broadcast %287 : vector<1x16xf32> to vector<16x16xf32>
    %289 = arith.addf %286, %288 : vector<16x16xf32>
    %cst_258 = arith.constant 0.000000e+00 : f32
    %290 = vector.broadcast %cst_258 : f32 to vector<16x16xf32>
    %291 = arith.maximumf %289, %290 : vector<16x16xf32>
    %c0_259 = arith.constant 0 : index
    %c0_260 = arith.constant 0 : index
    %292 = vector.load %arg22[%c0_259, %c0_260] : memref<16x64xbf16, #tpu.memory_space<vmem>>, vector<16x64xbf16>
    %293 = arith.truncf %291 : vector<16x16xf32> to vector<16x16xbf16>
    %cst_261 = arith.constant dense<0.000000e+00> : vector<16x64xf32>
    %294 = tpu.matmul %293, %292, %cst_261 {dimension_numbers = #tpu.dot_dimension_numbers<[1], [0], [0], [1], [0, 0, 1, 1], [], []>} : vector<16x16xbf16>, vector<16x64xbf16>, vector<16x64xf32> -> vector<16x64xf32>
    %c0_262 = arith.constant 0 : index
    %c0_263 = arith.constant 0 : index
    %295 = vector.load %arg23[%c0_262, %c0_263] : memref<1x64xf32, #tpu.memory_space<vmem>>, vector<1x64xf32>
    %296 = vector.broadcast %295 : vector<1x64xf32> to vector<16x64xf32>
    %297 = arith.addf %294, %296 : vector<16x64xf32>
    %cst_264 = arith.constant 0.000000e+00 : f32
    %298 = vector.broadcast %cst_264 : f32 to vector<16x64xf32>
    %299 = arith.maximumf %297, %298 : vector<16x64xf32>
    %c0_265 = arith.constant 0 : index
    %c0_266 = arith.constant 0 : index
    %300 = vector.load %arg25[%c0_265, %c0_266] : memref<16x64xbf16, #tpu.memory_space<vmem>>, vector<16x64xbf16>
    %301 = arith.truncf %204 : vector<64x32xf32> to vector<64x32xbf16>
    %cst_267 = arith.constant dense<0.000000e+00> : vector<16x32xf32>
    %302 = tpu.matmul %300, %301, %cst_267 {dimension_numbers = #tpu.dot_dimension_numbers<[1], [0], [0], [1], [0, 0, 1, 1], [], []>} : vector<16x64xbf16>, vector<64x32xbf16>, vector<16x32xf32> -> vector<16x32xf32>
    %c0_268 = arith.constant 0 : index
    %c0_269 = arith.constant 0 : index
    %303 = vector.load %arg26[%c0_268, %c0_269] : memref<32x64xbf16, #tpu.memory_space<vmem>>, vector<32x64xbf16>
    %304 = arith.truncf %302 : vector<16x32xf32> to vector<16x32xbf16>
    %cst_270 = arith.constant dense<0.000000e+00> : vector<16x64xf32>
    %305 = tpu.matmul %304, %303, %cst_270 {dimension_numbers = #tpu.dot_dimension_numbers<[1], [0], [0], [1], [0, 0, 1, 1], [], []>} : vector<16x32xbf16>, vector<32x64xbf16>, vector<16x64xf32> -> vector<16x64xf32>
    %306 = arith.addf %299, %305 : vector<16x64xf32>
    %c0_271 = arith.constant 0 : index
    %c0_272 = arith.constant 0 : index
    %307 = vector.load %arg27[%c0_271, %c0_272] : memref<1x64xf32, #tpu.memory_space<vmem>>, vector<1x64xf32>
    %308 = vector.broadcast %307 : vector<1x64xf32> to vector<16x64xf32>
    %309 = arith.addf %306, %308 : vector<16x64xf32>
    %cst_273 = arith.constant 0.000000e+00 : f32
    %310 = vector.broadcast %cst_273 : f32 to vector<16x64xf32>
    %311 = arith.maximumf %309, %310 : vector<16x64xf32>
    %c0_274 = arith.constant 0 : index
    %c0_275 = arith.constant 0 : index
    %312 = vector.load %arg28[%c0_274, %c0_275] : memref<64x16xbf16, #tpu.memory_space<vmem>>, vector<64x16xbf16>
    %313 = arith.truncf %311 : vector<16x64xf32> to vector<16x64xbf16>
    %cst_276 = arith.constant dense<0.000000e+00> : vector<16x16xf32>
    %314 = tpu.matmul %313, %312, %cst_276 {dimension_numbers = #tpu.dot_dimension_numbers<[1], [0], [0], [1], [0, 0, 1, 1], [], []>} : vector<16x64xbf16>, vector<64x16xbf16>, vector<16x16xf32> -> vector<16x16xf32>
    %c0_277 = arith.constant 0 : index
    %c0_278 = arith.constant 0 : index
    %315 = vector.load %arg29[%c0_277, %c0_278] : memref<1x16xf32, #tpu.memory_space<vmem>>, vector<1x16xf32>
    %316 = vector.broadcast %315 : vector<1x16xf32> to vector<16x16xf32>
    %317 = arith.addf %314, %316 : vector<16x16xf32>
    %cst_279 = arith.constant 0.000000e+00 : f32
    %318 = vector.broadcast %cst_279 : f32 to vector<16x16xf32>
    %319 = arith.maximumf %317, %318 : vector<16x16xf32>
    %320 = arith.truncf %319 : vector<16x16xf32> to vector<16x16xbf16>
    %cst_280 = arith.constant 0.000000e+00 : f32
    %321 = vector.broadcast %cst_280 : f32 to vector<16x16xf32>
    %c0_281 = arith.constant 0 : index
    %c0_282 = arith.constant 0 : index
    %c0_283 = arith.constant 0 : index
    %322 = vector.load %arg34[%c0_281, %c0_282, %c0_283] : memref<9x16x16xbf16, #tpu.memory_space<vmem>>, vector<1x16x16xbf16>
    %323 = vector.shape_cast %322 : vector<1x16x16xbf16> to vector<16x16xbf16>
    %cst_284 = arith.constant dense<0.000000e+00> : vector<16x16xf32>
    %324 = tpu.matmul %323, %320, %cst_284 {dimension_numbers = #tpu.dot_dimension_numbers<[1], [0], [0], [1], [0, 0, 1, 1], [], []>} : vector<16x16xbf16>, vector<16x16xbf16>, vector<16x16xf32> -> vector<16x16xf32>
    %c0_285 = arith.constant 0 : index
    %c0_286 = arith.constant 0 : index
    %c0_287 = arith.constant 0 : index
    %325 = vector.load %arg30[%c0_285, %c0_286, %c0_287] : memref<9x16x16xbf16, #tpu.memory_space<vmem>>, vector<1x16x16xbf16>
    %326 = vector.shape_cast %325 : vector<1x16x16xbf16> to vector<16x16xbf16>
    %327 = arith.truncf %324 : vector<16x16xf32> to vector<16x16xbf16>
    %cst_288 = arith.constant dense<0.000000e+00> : vector<16x16xf32>
    %328 = tpu.matmul %327, %326, %cst_288 {dimension_numbers = #tpu.dot_dimension_numbers<[1], [0], [0], [1], [0, 0, 1, 1], [], []>} : vector<16x16xbf16>, vector<16x16xbf16>, vector<16x16xf32> -> vector<16x16xf32>
    %329 = arith.addf %321, %328 : vector<16x16xf32>
    %c1_289 = arith.constant 1 : index
    %c0_290 = arith.constant 0 : index
    %c0_291 = arith.constant 0 : index
    %330 = vector.load %arg34[%c1_289, %c0_290, %c0_291] : memref<9x16x16xbf16, #tpu.memory_space<vmem>>, vector<1x16x16xbf16>
    %331 = vector.shape_cast %330 : vector<1x16x16xbf16> to vector<16x16xbf16>
    %cst_292 = arith.constant dense<0.000000e+00> : vector<16x16xf32>
    %332 = tpu.matmul %331, %320, %cst_292 {dimension_numbers = #tpu.dot_dimension_numbers<[1], [0], [0], [1], [0, 0, 1, 1], [], []>} : vector<16x16xbf16>, vector<16x16xbf16>, vector<16x16xf32> -> vector<16x16xf32>
    %c1_293 = arith.constant 1 : index
    %c0_294 = arith.constant 0 : index
    %c0_295 = arith.constant 0 : index
    %333 = vector.load %arg30[%c1_293, %c0_294, %c0_295] : memref<9x16x16xbf16, #tpu.memory_space<vmem>>, vector<1x16x16xbf16>
    %334 = vector.shape_cast %333 : vector<1x16x16xbf16> to vector<16x16xbf16>
    %335 = arith.truncf %332 : vector<16x16xf32> to vector<16x16xbf16>
    %cst_296 = arith.constant dense<0.000000e+00> : vector<16x16xf32>
    %336 = tpu.matmul %335, %334, %cst_296 {dimension_numbers = #tpu.dot_dimension_numbers<[1], [0], [0], [1], [0, 0, 1, 1], [], []>} : vector<16x16xbf16>, vector<16x16xbf16>, vector<16x16xf32> -> vector<16x16xf32>
    %337 = arith.addf %329, %336 : vector<16x16xf32>
    %c2_297 = arith.constant 2 : index
    %c0_298 = arith.constant 0 : index
    %c0_299 = arith.constant 0 : index
    %338 = vector.load %arg34[%c2_297, %c0_298, %c0_299] : memref<9x16x16xbf16, #tpu.memory_space<vmem>>, vector<1x16x16xbf16>
    %339 = vector.shape_cast %338 : vector<1x16x16xbf16> to vector<16x16xbf16>
    %cst_300 = arith.constant dense<0.000000e+00> : vector<16x16xf32>
    %340 = tpu.matmul %339, %320, %cst_300 {dimension_numbers = #tpu.dot_dimension_numbers<[1], [0], [0], [1], [0, 0, 1, 1], [], []>} : vector<16x16xbf16>, vector<16x16xbf16>, vector<16x16xf32> -> vector<16x16xf32>
    %c2_301 = arith.constant 2 : index
    %c0_302 = arith.constant 0 : index
    %c0_303 = arith.constant 0 : index
    %341 = vector.load %arg30[%c2_301, %c0_302, %c0_303] : memref<9x16x16xbf16, #tpu.memory_space<vmem>>, vector<1x16x16xbf16>
    %342 = vector.shape_cast %341 : vector<1x16x16xbf16> to vector<16x16xbf16>
    %343 = arith.truncf %340 : vector<16x16xf32> to vector<16x16xbf16>
    %cst_304 = arith.constant dense<0.000000e+00> : vector<16x16xf32>
    %344 = tpu.matmul %343, %342, %cst_304 {dimension_numbers = #tpu.dot_dimension_numbers<[1], [0], [0], [1], [0, 0, 1, 1], [], []>} : vector<16x16xbf16>, vector<16x16xbf16>, vector<16x16xf32> -> vector<16x16xf32>
    %345 = arith.addf %337, %344 : vector<16x16xf32>
    %c3_305 = arith.constant 3 : index
    %c0_306 = arith.constant 0 : index
    %c0_307 = arith.constant 0 : index
    %346 = vector.load %arg34[%c3_305, %c0_306, %c0_307] : memref<9x16x16xbf16, #tpu.memory_space<vmem>>, vector<1x16x16xbf16>
    %347 = vector.shape_cast %346 : vector<1x16x16xbf16> to vector<16x16xbf16>
    %cst_308 = arith.constant dense<0.000000e+00> : vector<16x16xf32>
    %348 = tpu.matmul %347, %320, %cst_308 {dimension_numbers = #tpu.dot_dimension_numbers<[1], [0], [0], [1], [0, 0, 1, 1], [], []>} : vector<16x16xbf16>, vector<16x16xbf16>, vector<16x16xf32> -> vector<16x16xf32>
    %c3_309 = arith.constant 3 : index
    %c0_310 = arith.constant 0 : index
    %c0_311 = arith.constant 0 : index
    %349 = vector.load %arg30[%c3_309, %c0_310, %c0_311] : memref<9x16x16xbf16, #tpu.memory_space<vmem>>, vector<1x16x16xbf16>
    %350 = vector.shape_cast %349 : vector<1x16x16xbf16> to vector<16x16xbf16>
    %351 = arith.truncf %348 : vector<16x16xf32> to vector<16x16xbf16>
    %cst_312 = arith.constant dense<0.000000e+00> : vector<16x16xf32>
    %352 = tpu.matmul %351, %350, %cst_312 {dimension_numbers = #tpu.dot_dimension_numbers<[1], [0], [0], [1], [0, 0, 1, 1], [], []>} : vector<16x16xbf16>, vector<16x16xbf16>, vector<16x16xf32> -> vector<16x16xf32>
    %353 = arith.addf %345, %352 : vector<16x16xf32>
    %c4_313 = arith.constant 4 : index
    %c0_314 = arith.constant 0 : index
    %c0_315 = arith.constant 0 : index
    %354 = vector.load %arg34[%c4_313, %c0_314, %c0_315] : memref<9x16x16xbf16, #tpu.memory_space<vmem>>, vector<1x16x16xbf16>
    %355 = vector.shape_cast %354 : vector<1x16x16xbf16> to vector<16x16xbf16>
    %cst_316 = arith.constant dense<0.000000e+00> : vector<16x16xf32>
    %356 = tpu.matmul %355, %320, %cst_316 {dimension_numbers = #tpu.dot_dimension_numbers<[1], [0], [0], [1], [0, 0, 1, 1], [], []>} : vector<16x16xbf16>, vector<16x16xbf16>, vector<16x16xf32> -> vector<16x16xf32>
    %c4_317 = arith.constant 4 : index
    %c0_318 = arith.constant 0 : index
    %c0_319 = arith.constant 0 : index
    %357 = vector.load %arg30[%c4_317, %c0_318, %c0_319] : memref<9x16x16xbf16, #tpu.memory_space<vmem>>, vector<1x16x16xbf16>
    %358 = vector.shape_cast %357 : vector<1x16x16xbf16> to vector<16x16xbf16>
    %359 = arith.truncf %356 : vector<16x16xf32> to vector<16x16xbf16>
    %cst_320 = arith.constant dense<0.000000e+00> : vector<16x16xf32>
    %360 = tpu.matmul %359, %358, %cst_320 {dimension_numbers = #tpu.dot_dimension_numbers<[1], [0], [0], [1], [0, 0, 1, 1], [], []>} : vector<16x16xbf16>, vector<16x16xbf16>, vector<16x16xf32> -> vector<16x16xf32>
    %361 = arith.addf %353, %360 : vector<16x16xf32>
    %c5_321 = arith.constant 5 : index
    %c0_322 = arith.constant 0 : index
    %c0_323 = arith.constant 0 : index
    %362 = vector.load %arg34[%c5_321, %c0_322, %c0_323] : memref<9x16x16xbf16, #tpu.memory_space<vmem>>, vector<1x16x16xbf16>
    %363 = vector.shape_cast %362 : vector<1x16x16xbf16> to vector<16x16xbf16>
    %cst_324 = arith.constant dense<0.000000e+00> : vector<16x16xf32>
    %364 = tpu.matmul %363, %320, %cst_324 {dimension_numbers = #tpu.dot_dimension_numbers<[1], [0], [0], [1], [0, 0, 1, 1], [], []>} : vector<16x16xbf16>, vector<16x16xbf16>, vector<16x16xf32> -> vector<16x16xf32>
    %c5_325 = arith.constant 5 : index
    %c0_326 = arith.constant 0 : index
    %c0_327 = arith.constant 0 : index
    %365 = vector.load %arg30[%c5_325, %c0_326, %c0_327] : memref<9x16x16xbf16, #tpu.memory_space<vmem>>, vector<1x16x16xbf16>
    %366 = vector.shape_cast %365 : vector<1x16x16xbf16> to vector<16x16xbf16>
    %367 = arith.truncf %364 : vector<16x16xf32> to vector<16x16xbf16>
    %cst_328 = arith.constant dense<0.000000e+00> : vector<16x16xf32>
    %368 = tpu.matmul %367, %366, %cst_328 {dimension_numbers = #tpu.dot_dimension_numbers<[1], [0], [0], [1], [0, 0, 1, 1], [], []>} : vector<16x16xbf16>, vector<16x16xbf16>, vector<16x16xf32> -> vector<16x16xf32>
    %369 = arith.addf %361, %368 : vector<16x16xf32>
    %c6_329 = arith.constant 6 : index
    %c0_330 = arith.constant 0 : index
    %c0_331 = arith.constant 0 : index
    %370 = vector.load %arg34[%c6_329, %c0_330, %c0_331] : memref<9x16x16xbf16, #tpu.memory_space<vmem>>, vector<1x16x16xbf16>
    %371 = vector.shape_cast %370 : vector<1x16x16xbf16> to vector<16x16xbf16>
    %cst_332 = arith.constant dense<0.000000e+00> : vector<16x16xf32>
    %372 = tpu.matmul %371, %320, %cst_332 {dimension_numbers = #tpu.dot_dimension_numbers<[1], [0], [0], [1], [0, 0, 1, 1], [], []>} : vector<16x16xbf16>, vector<16x16xbf16>, vector<16x16xf32> -> vector<16x16xf32>
    %c6_333 = arith.constant 6 : index
    %c0_334 = arith.constant 0 : index
    %c0_335 = arith.constant 0 : index
    %373 = vector.load %arg30[%c6_333, %c0_334, %c0_335] : memref<9x16x16xbf16, #tpu.memory_space<vmem>>, vector<1x16x16xbf16>
    %374 = vector.shape_cast %373 : vector<1x16x16xbf16> to vector<16x16xbf16>
    %375 = arith.truncf %372 : vector<16x16xf32> to vector<16x16xbf16>
    %cst_336 = arith.constant dense<0.000000e+00> : vector<16x16xf32>
    %376 = tpu.matmul %375, %374, %cst_336 {dimension_numbers = #tpu.dot_dimension_numbers<[1], [0], [0], [1], [0, 0, 1, 1], [], []>} : vector<16x16xbf16>, vector<16x16xbf16>, vector<16x16xf32> -> vector<16x16xf32>
    %377 = arith.addf %369, %376 : vector<16x16xf32>
    %c7_337 = arith.constant 7 : index
    %c0_338 = arith.constant 0 : index
    %c0_339 = arith.constant 0 : index
    %378 = vector.load %arg34[%c7_337, %c0_338, %c0_339] : memref<9x16x16xbf16, #tpu.memory_space<vmem>>, vector<1x16x16xbf16>
    %379 = vector.shape_cast %378 : vector<1x16x16xbf16> to vector<16x16xbf16>
    %cst_340 = arith.constant dense<0.000000e+00> : vector<16x16xf32>
    %380 = tpu.matmul %379, %320, %cst_340 {dimension_numbers = #tpu.dot_dimension_numbers<[1], [0], [0], [1], [0, 0, 1, 1], [], []>} : vector<16x16xbf16>, vector<16x16xbf16>, vector<16x16xf32> -> vector<16x16xf32>
    %c7_341 = arith.constant 7 : index
    %c0_342 = arith.constant 0 : index
    %c0_343 = arith.constant 0 : index
    %381 = vector.load %arg30[%c7_341, %c0_342, %c0_343] : memref<9x16x16xbf16, #tpu.memory_space<vmem>>, vector<1x16x16xbf16>
    %382 = vector.shape_cast %381 : vector<1x16x16xbf16> to vector<16x16xbf16>
    %383 = arith.truncf %380 : vector<16x16xf32> to vector<16x16xbf16>
    %cst_344 = arith.constant dense<0.000000e+00> : vector<16x16xf32>
    %384 = tpu.matmul %383, %382, %cst_344 {dimension_numbers = #tpu.dot_dimension_numbers<[1], [0], [0], [1], [0, 0, 1, 1], [], []>} : vector<16x16xbf16>, vector<16x16xbf16>, vector<16x16xf32> -> vector<16x16xf32>
    %385 = arith.addf %377, %384 : vector<16x16xf32>
    %c8_345 = arith.constant 8 : index
    %c0_346 = arith.constant 0 : index
    %c0_347 = arith.constant 0 : index
    %386 = vector.load %arg34[%c8_345, %c0_346, %c0_347] : memref<9x16x16xbf16, #tpu.memory_space<vmem>>, vector<1x16x16xbf16>
    %387 = vector.shape_cast %386 : vector<1x16x16xbf16> to vector<16x16xbf16>
    %cst_348 = arith.constant dense<0.000000e+00> : vector<16x16xf32>
    %388 = tpu.matmul %387, %320, %cst_348 {dimension_numbers = #tpu.dot_dimension_numbers<[1], [0], [0], [1], [0, 0, 1, 1], [], []>} : vector<16x16xbf16>, vector<16x16xbf16>, vector<16x16xf32> -> vector<16x16xf32>
    %c8_349 = arith.constant 8 : index
    %c0_350 = arith.constant 0 : index
    %c0_351 = arith.constant 0 : index
    %389 = vector.load %arg30[%c8_349, %c0_350, %c0_351] : memref<9x16x16xbf16, #tpu.memory_space<vmem>>, vector<1x16x16xbf16>
    %390 = vector.shape_cast %389 : vector<1x16x16xbf16> to vector<16x16xbf16>
    %391 = arith.truncf %388 : vector<16x16xf32> to vector<16x16xbf16>
    %cst_352 = arith.constant dense<0.000000e+00> : vector<16x16xf32>
    %392 = tpu.matmul %391, %390, %cst_352 {dimension_numbers = #tpu.dot_dimension_numbers<[1], [0], [0], [1], [0, 0, 1, 1], [], []>} : vector<16x16xbf16>, vector<16x16xbf16>, vector<16x16xf32> -> vector<16x16xf32>
    %393 = arith.addf %385, %392 : vector<16x16xf32>
    %c0_353 = arith.constant 0 : index
    %c0_354 = arith.constant 0 : index
    %394 = vector.load %arg31[%c0_353, %c0_354] : memref<1x16xf32, #tpu.memory_space<vmem>>, vector<1x16xf32>
    %395 = vector.broadcast %394 : vector<1x16xf32> to vector<16x16xf32>
    %396 = arith.addf %393, %395 : vector<16x16xf32>
    %cst_355 = arith.constant 0.000000e+00 : f32
    %397 = vector.broadcast %cst_355 : f32 to vector<16x16xf32>
    %398 = arith.maximumf %396, %397 : vector<16x16xf32>
    %c0_356 = arith.constant 0 : index
    %c0_357 = arith.constant 0 : index
    %399 = vector.load %arg32[%c0_356, %c0_357] : memref<16x64xbf16, #tpu.memory_space<vmem>>, vector<16x64xbf16>
    %400 = arith.truncf %398 : vector<16x16xf32> to vector<16x16xbf16>
    %cst_358 = arith.constant dense<0.000000e+00> : vector<16x64xf32>
    %401 = tpu.matmul %400, %399, %cst_358 {dimension_numbers = #tpu.dot_dimension_numbers<[1], [0], [0], [1], [0, 0, 1, 1], [], []>} : vector<16x16xbf16>, vector<16x64xbf16>, vector<16x64xf32> -> vector<16x64xf32>
    %c0_359 = arith.constant 0 : index
    %c0_360 = arith.constant 0 : index
    %402 = vector.load %arg33[%c0_359, %c0_360] : memref<1x64xf32, #tpu.memory_space<vmem>>, vector<1x64xf32>
    %403 = vector.broadcast %402 : vector<1x64xf32> to vector<16x64xf32>
    %404 = arith.addf %401, %403 : vector<16x64xf32>
    %cst_361 = arith.constant 0.000000e+00 : f32
    %405 = vector.broadcast %cst_361 : f32 to vector<16x64xf32>
    %406 = arith.maximumf %404, %405 : vector<16x64xf32>
    %407 = arith.addf %406, %311 : vector<16x64xf32>
    %cst_362 = arith.constant 0.000000e+00 : f32
    %408 = vector.broadcast %cst_362 : f32 to vector<16x64xf32>
    %409 = arith.maximumf %407, %408 : vector<16x64xf32>
    %c0_363 = arith.constant 0 : index
    %c0_364 = arith.constant 0 : index
    %410 = vector.load %arg35[%c0_363, %c0_364] : memref<64x24xbf16, #tpu.memory_space<vmem>>, vector<64x24xbf16>
    %411 = arith.truncf %409 : vector<16x64xf32> to vector<16x64xbf16>
    %cst_365 = arith.constant dense<0.000000e+00> : vector<16x24xf32>
    %412 = tpu.matmul %411, %410, %cst_365 {dimension_numbers = #tpu.dot_dimension_numbers<[1], [0], [0], [1], [0, 0, 1, 1], [], []>} : vector<16x64xbf16>, vector<64x24xbf16>, vector<16x24xf32> -> vector<16x24xf32>
    %c0_366 = arith.constant 0 : index
    %c0_367 = arith.constant 0 : index
    %413 = vector.load %arg36[%c0_366, %c0_367] : memref<1x24xf32, #tpu.memory_space<vmem>>, vector<1x24xf32>
    %414 = vector.broadcast %413 : vector<1x24xf32> to vector<16x24xf32>
    %415 = arith.addf %412, %414 : vector<16x24xf32>
    %cst_368 = arith.constant 0.000000e+00 : f32
    %416 = vector.broadcast %cst_368 : f32 to vector<16x24xf32>
    %417 = arith.maximumf %415, %416 : vector<16x24xf32>
    %418 = arith.truncf %417 : vector<16x24xf32> to vector<16x24xbf16>
    %cst_369 = arith.constant 0.000000e+00 : f32
    %419 = vector.broadcast %cst_369 : f32 to vector<4x24xf32>
    %c0_370 = arith.constant 0 : index
    %c0_371 = arith.constant 0 : index
    %c0_372 = arith.constant 0 : index
    %420 = vector.load %arg41[%c0_370, %c0_371, %c0_372] : memref<9x4x16xbf16, #tpu.memory_space<vmem>>, vector<1x4x16xbf16>
    %421 = vector.shape_cast %420 : vector<1x4x16xbf16> to vector<4x16xbf16>
    %cst_373 = arith.constant dense<0.000000e+00> : vector<4x24xf32>
    %422 = tpu.matmul %421, %418, %cst_373 {dimension_numbers = #tpu.dot_dimension_numbers<[1], [0], [0], [1], [0, 0, 1, 1], [], []>} : vector<4x16xbf16>, vector<16x24xbf16>, vector<4x24xf32> -> vector<4x24xf32>
    %c0_374 = arith.constant 0 : index
    %c0_375 = arith.constant 0 : index
    %c0_376 = arith.constant 0 : index
    %423 = vector.load %arg37[%c0_374, %c0_375, %c0_376] : memref<9x24x24xbf16, #tpu.memory_space<vmem>>, vector<1x24x24xbf16>
    %424 = vector.shape_cast %423 : vector<1x24x24xbf16> to vector<24x24xbf16>
    %425 = arith.truncf %422 : vector<4x24xf32> to vector<4x24xbf16>
    %cst_377 = arith.constant dense<0.000000e+00> : vector<4x24xf32>
    %426 = tpu.matmul %425, %424, %cst_377 {dimension_numbers = #tpu.dot_dimension_numbers<[1], [0], [0], [1], [0, 0, 1, 1], [], []>} : vector<4x24xbf16>, vector<24x24xbf16>, vector<4x24xf32> -> vector<4x24xf32>
    %427 = arith.addf %419, %426 : vector<4x24xf32>
    %c1_378 = arith.constant 1 : index
    %c0_379 = arith.constant 0 : index
    %c0_380 = arith.constant 0 : index
    %428 = vector.load %arg41[%c1_378, %c0_379, %c0_380] : memref<9x4x16xbf16, #tpu.memory_space<vmem>>, vector<1x4x16xbf16>
    %429 = vector.shape_cast %428 : vector<1x4x16xbf16> to vector<4x16xbf16>
    %cst_381 = arith.constant dense<0.000000e+00> : vector<4x24xf32>
    %430 = tpu.matmul %429, %418, %cst_381 {dimension_numbers = #tpu.dot_dimension_numbers<[1], [0], [0], [1], [0, 0, 1, 1], [], []>} : vector<4x16xbf16>, vector<16x24xbf16>, vector<4x24xf32> -> vector<4x24xf32>
    %c1_382 = arith.constant 1 : index
    %c0_383 = arith.constant 0 : index
    %c0_384 = arith.constant 0 : index
    %431 = vector.load %arg37[%c1_382, %c0_383, %c0_384] : memref<9x24x24xbf16, #tpu.memory_space<vmem>>, vector<1x24x24xbf16>
    %432 = vector.shape_cast %431 : vector<1x24x24xbf16> to vector<24x24xbf16>
    %433 = arith.truncf %430 : vector<4x24xf32> to vector<4x24xbf16>
    %cst_385 = arith.constant dense<0.000000e+00> : vector<4x24xf32>
    %434 = tpu.matmul %433, %432, %cst_385 {dimension_numbers = #tpu.dot_dimension_numbers<[1], [0], [0], [1], [0, 0, 1, 1], [], []>} : vector<4x24xbf16>, vector<24x24xbf16>, vector<4x24xf32> -> vector<4x24xf32>
    %435 = arith.addf %427, %434 : vector<4x24xf32>
    %c2_386 = arith.constant 2 : index
    %c0_387 = arith.constant 0 : index
    %c0_388 = arith.constant 0 : index
    %436 = vector.load %arg41[%c2_386, %c0_387, %c0_388] : memref<9x4x16xbf16, #tpu.memory_space<vmem>>, vector<1x4x16xbf16>
    %437 = vector.shape_cast %436 : vector<1x4x16xbf16> to vector<4x16xbf16>
    %cst_389 = arith.constant dense<0.000000e+00> : vector<4x24xf32>
    %438 = tpu.matmul %437, %418, %cst_389 {dimension_numbers = #tpu.dot_dimension_numbers<[1], [0], [0], [1], [0, 0, 1, 1], [], []>} : vector<4x16xbf16>, vector<16x24xbf16>, vector<4x24xf32> -> vector<4x24xf32>
    %c2_390 = arith.constant 2 : index
    %c0_391 = arith.constant 0 : index
    %c0_392 = arith.constant 0 : index
    %439 = vector.load %arg37[%c2_390, %c0_391, %c0_392] : memref<9x24x24xbf16, #tpu.memory_space<vmem>>, vector<1x24x24xbf16>
    %440 = vector.shape_cast %439 : vector<1x24x24xbf16> to vector<24x24xbf16>
    %441 = arith.truncf %438 : vector<4x24xf32> to vector<4x24xbf16>
    %cst_393 = arith.constant dense<0.000000e+00> : vector<4x24xf32>
    %442 = tpu.matmul %441, %440, %cst_393 {dimension_numbers = #tpu.dot_dimension_numbers<[1], [0], [0], [1], [0, 0, 1, 1], [], []>} : vector<4x24xbf16>, vector<24x24xbf16>, vector<4x24xf32> -> vector<4x24xf32>
    %443 = arith.addf %435, %442 : vector<4x24xf32>
    %c3_394 = arith.constant 3 : index
    %c0_395 = arith.constant 0 : index
    %c0_396 = arith.constant 0 : index
    %444 = vector.load %arg41[%c3_394, %c0_395, %c0_396] : memref<9x4x16xbf16, #tpu.memory_space<vmem>>, vector<1x4x16xbf16>
    %445 = vector.shape_cast %444 : vector<1x4x16xbf16> to vector<4x16xbf16>
    %cst_397 = arith.constant dense<0.000000e+00> : vector<4x24xf32>
    %446 = tpu.matmul %445, %418, %cst_397 {dimension_numbers = #tpu.dot_dimension_numbers<[1], [0], [0], [1], [0, 0, 1, 1], [], []>} : vector<4x16xbf16>, vector<16x24xbf16>, vector<4x24xf32> -> vector<4x24xf32>
    %c3_398 = arith.constant 3 : index
    %c0_399 = arith.constant 0 : index
    %c0_400 = arith.constant 0 : index
    %447 = vector.load %arg37[%c3_398, %c0_399, %c0_400] : memref<9x24x24xbf16, #tpu.memory_space<vmem>>, vector<1x24x24xbf16>
    %448 = vector.shape_cast %447 : vector<1x24x24xbf16> to vector<24x24xbf16>
    %449 = arith.truncf %446 : vector<4x24xf32> to vector<4x24xbf16>
    %cst_401 = arith.constant dense<0.000000e+00> : vector<4x24xf32>
    %450 = tpu.matmul %449, %448, %cst_401 {dimension_numbers = #tpu.dot_dimension_numbers<[1], [0], [0], [1], [0, 0, 1, 1], [], []>} : vector<4x24xbf16>, vector<24x24xbf16>, vector<4x24xf32> -> vector<4x24xf32>
    %451 = arith.addf %443, %450 : vector<4x24xf32>
    %c4_402 = arith.constant 4 : index
    %c0_403 = arith.constant 0 : index
    %c0_404 = arith.constant 0 : index
    %452 = vector.load %arg41[%c4_402, %c0_403, %c0_404] : memref<9x4x16xbf16, #tpu.memory_space<vmem>>, vector<1x4x16xbf16>
    %453 = vector.shape_cast %452 : vector<1x4x16xbf16> to vector<4x16xbf16>
    %cst_405 = arith.constant dense<0.000000e+00> : vector<4x24xf32>
    %454 = tpu.matmul %453, %418, %cst_405 {dimension_numbers = #tpu.dot_dimension_numbers<[1], [0], [0], [1], [0, 0, 1, 1], [], []>} : vector<4x16xbf16>, vector<16x24xbf16>, vector<4x24xf32> -> vector<4x24xf32>
    %c4_406 = arith.constant 4 : index
    %c0_407 = arith.constant 0 : index
    %c0_408 = arith.constant 0 : index
    %455 = vector.load %arg37[%c4_406, %c0_407, %c0_408] : memref<9x24x24xbf16, #tpu.memory_space<vmem>>, vector<1x24x24xbf16>
    %456 = vector.shape_cast %455 : vector<1x24x24xbf16> to vector<24x24xbf16>
    %457 = arith.truncf %454 : vector<4x24xf32> to vector<4x24xbf16>
    %cst_409 = arith.constant dense<0.000000e+00> : vector<4x24xf32>
    %458 = tpu.matmul %457, %456, %cst_409 {dimension_numbers = #tpu.dot_dimension_numbers<[1], [0], [0], [1], [0, 0, 1, 1], [], []>} : vector<4x24xbf16>, vector<24x24xbf16>, vector<4x24xf32> -> vector<4x24xf32>
    %459 = arith.addf %451, %458 : vector<4x24xf32>
    %c5_410 = arith.constant 5 : index
    %c0_411 = arith.constant 0 : index
    %c0_412 = arith.constant 0 : index
    %460 = vector.load %arg41[%c5_410, %c0_411, %c0_412] : memref<9x4x16xbf16, #tpu.memory_space<vmem>>, vector<1x4x16xbf16>
    %461 = vector.shape_cast %460 : vector<1x4x16xbf16> to vector<4x16xbf16>
    %cst_413 = arith.constant dense<0.000000e+00> : vector<4x24xf32>
    %462 = tpu.matmul %461, %418, %cst_413 {dimension_numbers = #tpu.dot_dimension_numbers<[1], [0], [0], [1], [0, 0, 1, 1], [], []>} : vector<4x16xbf16>, vector<16x24xbf16>, vector<4x24xf32> -> vector<4x24xf32>
    %c5_414 = arith.constant 5 : index
    %c0_415 = arith.constant 0 : index
    %c0_416 = arith.constant 0 : index
    %463 = vector.load %arg37[%c5_414, %c0_415, %c0_416] : memref<9x24x24xbf16, #tpu.memory_space<vmem>>, vector<1x24x24xbf16>
    %464 = vector.shape_cast %463 : vector<1x24x24xbf16> to vector<24x24xbf16>
    %465 = arith.truncf %462 : vector<4x24xf32> to vector<4x24xbf16>
    %cst_417 = arith.constant dense<0.000000e+00> : vector<4x24xf32>
    %466 = tpu.matmul %465, %464, %cst_417 {dimension_numbers = #tpu.dot_dimension_numbers<[1], [0], [0], [1], [0, 0, 1, 1], [], []>} : vector<4x24xbf16>, vector<24x24xbf16>, vector<4x24xf32> -> vector<4x24xf32>
    %467 = arith.addf %459, %466 : vector<4x24xf32>
    %c6_418 = arith.constant 6 : index
    %c0_419 = arith.constant 0 : index
    %c0_420 = arith.constant 0 : index
    %468 = vector.load %arg41[%c6_418, %c0_419, %c0_420] : memref<9x4x16xbf16, #tpu.memory_space<vmem>>, vector<1x4x16xbf16>
    %469 = vector.shape_cast %468 : vector<1x4x16xbf16> to vector<4x16xbf16>
    %cst_421 = arith.constant dense<0.000000e+00> : vector<4x24xf32>
    %470 = tpu.matmul %469, %418, %cst_421 {dimension_numbers = #tpu.dot_dimension_numbers<[1], [0], [0], [1], [0, 0, 1, 1], [], []>} : vector<4x16xbf16>, vector<16x24xbf16>, vector<4x24xf32> -> vector<4x24xf32>
    %c6_422 = arith.constant 6 : index
    %c0_423 = arith.constant 0 : index
    %c0_424 = arith.constant 0 : index
    %471 = vector.load %arg37[%c6_422, %c0_423, %c0_424] : memref<9x24x24xbf16, #tpu.memory_space<vmem>>, vector<1x24x24xbf16>
    %472 = vector.shape_cast %471 : vector<1x24x24xbf16> to vector<24x24xbf16>
    %473 = arith.truncf %470 : vector<4x24xf32> to vector<4x24xbf16>
    %cst_425 = arith.constant dense<0.000000e+00> : vector<4x24xf32>
    %474 = tpu.matmul %473, %472, %cst_425 {dimension_numbers = #tpu.dot_dimension_numbers<[1], [0], [0], [1], [0, 0, 1, 1], [], []>} : vector<4x24xbf16>, vector<24x24xbf16>, vector<4x24xf32> -> vector<4x24xf32>
    %475 = arith.addf %467, %474 : vector<4x24xf32>
    %c7_426 = arith.constant 7 : index
    %c0_427 = arith.constant 0 : index
    %c0_428 = arith.constant 0 : index
    %476 = vector.load %arg41[%c7_426, %c0_427, %c0_428] : memref<9x4x16xbf16, #tpu.memory_space<vmem>>, vector<1x4x16xbf16>
    %477 = vector.shape_cast %476 : vector<1x4x16xbf16> to vector<4x16xbf16>
    %cst_429 = arith.constant dense<0.000000e+00> : vector<4x24xf32>
    %478 = tpu.matmul %477, %418, %cst_429 {dimension_numbers = #tpu.dot_dimension_numbers<[1], [0], [0], [1], [0, 0, 1, 1], [], []>} : vector<4x16xbf16>, vector<16x24xbf16>, vector<4x24xf32> -> vector<4x24xf32>
    %c7_430 = arith.constant 7 : index
    %c0_431 = arith.constant 0 : index
    %c0_432 = arith.constant 0 : index
    %479 = vector.load %arg37[%c7_430, %c0_431, %c0_432] : memref<9x24x24xbf16, #tpu.memory_space<vmem>>, vector<1x24x24xbf16>
    %480 = vector.shape_cast %479 : vector<1x24x24xbf16> to vector<24x24xbf16>
    %481 = arith.truncf %478 : vector<4x24xf32> to vector<4x24xbf16>
    %cst_433 = arith.constant dense<0.000000e+00> : vector<4x24xf32>
    %482 = tpu.matmul %481, %480, %cst_433 {dimension_numbers = #tpu.dot_dimension_numbers<[1], [0], [0], [1], [0, 0, 1, 1], [], []>} : vector<4x24xbf16>, vector<24x24xbf16>, vector<4x24xf32> -> vector<4x24xf32>
    %483 = arith.addf %475, %482 : vector<4x24xf32>
    %c8_434 = arith.constant 8 : index
    %c0_435 = arith.constant 0 : index
    %c0_436 = arith.constant 0 : index
    %484 = vector.load %arg41[%c8_434, %c0_435, %c0_436] : memref<9x4x16xbf16, #tpu.memory_space<vmem>>, vector<1x4x16xbf16>
    %485 = vector.shape_cast %484 : vector<1x4x16xbf16> to vector<4x16xbf16>
    %cst_437 = arith.constant dense<0.000000e+00> : vector<4x24xf32>
    %486 = tpu.matmul %485, %418, %cst_437 {dimension_numbers = #tpu.dot_dimension_numbers<[1], [0], [0], [1], [0, 0, 1, 1], [], []>} : vector<4x16xbf16>, vector<16x24xbf16>, vector<4x24xf32> -> vector<4x24xf32>
    %c8_438 = arith.constant 8 : index
    %c0_439 = arith.constant 0 : index
    %c0_440 = arith.constant 0 : index
    %487 = vector.load %arg37[%c8_438, %c0_439, %c0_440] : memref<9x24x24xbf16, #tpu.memory_space<vmem>>, vector<1x24x24xbf16>
    %488 = vector.shape_cast %487 : vector<1x24x24xbf16> to vector<24x24xbf16>
    %489 = arith.truncf %486 : vector<4x24xf32> to vector<4x24xbf16>
    %cst_441 = arith.constant dense<0.000000e+00> : vector<4x24xf32>
    %490 = tpu.matmul %489, %488, %cst_441 {dimension_numbers = #tpu.dot_dimension_numbers<[1], [0], [0], [1], [0, 0, 1, 1], [], []>} : vector<4x24xbf16>, vector<24x24xbf16>, vector<4x24xf32> -> vector<4x24xf32>
    %491 = arith.addf %483, %490 : vector<4x24xf32>
    %c0_442 = arith.constant 0 : index
    %c0_443 = arith.constant 0 : index
    %492 = vector.load %arg38[%c0_442, %c0_443] : memref<1x24xf32, #tpu.memory_space<vmem>>, vector<1x24xf32>
    %493 = vector.broadcast %492 : vector<1x24xf32> to vector<4x24xf32>
    %494 = arith.addf %491, %493 : vector<4x24xf32>
    %cst_444 = arith.constant 0.000000e+00 : f32
    %495 = vector.broadcast %cst_444 : f32 to vector<4x24xf32>
    %496 = arith.maximumf %494, %495 : vector<4x24xf32>
    %c0_445 = arith.constant 0 : index
    %c0_446 = arith.constant 0 : index
    %497 = vector.load %arg39[%c0_445, %c0_446] : memref<24x96xbf16, #tpu.memory_space<vmem>>, vector<24x96xbf16>
    %498 = arith.truncf %496 : vector<4x24xf32> to vector<4x24xbf16>
    %cst_447 = arith.constant dense<0.000000e+00> : vector<4x96xf32>
    %499 = tpu.matmul %498, %497, %cst_447 {dimension_numbers = #tpu.dot_dimension_numbers<[1], [0], [0], [1], [0, 0, 1, 1], [], []>} : vector<4x24xbf16>, vector<24x96xbf16>, vector<4x96xf32> -> vector<4x96xf32>
    %c0_448 = arith.constant 0 : index
    %c0_449 = arith.constant 0 : index
    %500 = vector.load %arg40[%c0_448, %c0_449] : memref<1x96xf32, #tpu.memory_space<vmem>>, vector<1x96xf32>
    %501 = vector.broadcast %500 : vector<1x96xf32> to vector<4x96xf32>
    %502 = arith.addf %499, %501 : vector<4x96xf32>
    %cst_450 = arith.constant 0.000000e+00 : f32
    %503 = vector.broadcast %cst_450 : f32 to vector<4x96xf32>
    %504 = arith.maximumf %502, %503 : vector<4x96xf32>
    %c0_451 = arith.constant 0 : index
    %c0_452 = arith.constant 0 : index
    %505 = vector.load %arg42[%c0_451, %c0_452] : memref<4x16xbf16, #tpu.memory_space<vmem>>, vector<4x16xbf16>
    %506 = arith.truncf %409 : vector<16x64xf32> to vector<16x64xbf16>
    %cst_453 = arith.constant dense<0.000000e+00> : vector<4x64xf32>
    %507 = tpu.matmul %505, %506, %cst_453 {dimension_numbers = #tpu.dot_dimension_numbers<[1], [0], [0], [1], [0, 0, 1, 1], [], []>} : vector<4x16xbf16>, vector<16x64xbf16>, vector<4x64xf32> -> vector<4x64xf32>
    %c0_454 = arith.constant 0 : index
    %c0_455 = arith.constant 0 : index
    %508 = vector.load %arg43[%c0_454, %c0_455] : memref<64x96xbf16, #tpu.memory_space<vmem>>, vector<64x96xbf16>
    %509 = arith.truncf %507 : vector<4x64xf32> to vector<4x64xbf16>
    %cst_456 = arith.constant dense<0.000000e+00> : vector<4x96xf32>
    %510 = tpu.matmul %509, %508, %cst_456 {dimension_numbers = #tpu.dot_dimension_numbers<[1], [0], [0], [1], [0, 0, 1, 1], [], []>} : vector<4x64xbf16>, vector<64x96xbf16>, vector<4x96xf32> -> vector<4x96xf32>
    %511 = arith.addf %504, %510 : vector<4x96xf32>
    %c0_457 = arith.constant 0 : index
    %c0_458 = arith.constant 0 : index
    %512 = vector.load %arg44[%c0_457, %c0_458] : memref<1x96xf32, #tpu.memory_space<vmem>>, vector<1x96xf32>
    %513 = vector.broadcast %512 : vector<1x96xf32> to vector<4x96xf32>
    %514 = arith.addf %511, %513 : vector<4x96xf32>
    %cst_459 = arith.constant 0.000000e+00 : f32
    %515 = vector.broadcast %cst_459 : f32 to vector<4x96xf32>
    %516 = arith.maximumf %514, %515 : vector<4x96xf32>
    %c0_460 = arith.constant 0 : index
    %c0_461 = arith.constant 0 : index
    %517 = vector.load %arg45[%c0_460, %c0_461] : memref<96x24xbf16, #tpu.memory_space<vmem>>, vector<96x24xbf16>
    %518 = arith.truncf %516 : vector<4x96xf32> to vector<4x96xbf16>
    %cst_462 = arith.constant dense<0.000000e+00> : vector<4x24xf32>
    %519 = tpu.matmul %518, %517, %cst_462 {dimension_numbers = #tpu.dot_dimension_numbers<[1], [0], [0], [1], [0, 0, 1, 1], [], []>} : vector<4x96xbf16>, vector<96x24xbf16>, vector<4x24xf32> -> vector<4x24xf32>
    %c0_463 = arith.constant 0 : index
    %c0_464 = arith.constant 0 : index
    %520 = vector.load %arg46[%c0_463, %c0_464] : memref<1x24xf32, #tpu.memory_space<vmem>>, vector<1x24xf32>
    %521 = vector.broadcast %520 : vector<1x24xf32> to vector<4x24xf32>
    %522 = arith.addf %519, %521 : vector<4x24xf32>
    %cst_465 = arith.constant 0.000000e+00 : f32
    %523 = vector.broadcast %cst_465 : f32 to vector<4x24xf32>
    %524 = arith.maximumf %522, %523 : vector<4x24xf32>
    %525 = arith.truncf %524 : vector<4x24xf32> to vector<4x24xbf16>
    %cst_466 = arith.constant 0.000000e+00 : f32
    %526 = vector.broadcast %cst_466 : f32 to vector<4x24xf32>
    %c0_467 = arith.constant 0 : index
    %c0_468 = arith.constant 0 : index
    %c0_469 = arith.constant 0 : index
    %527 = vector.load %arg51[%c0_467, %c0_468, %c0_469] : memref<9x4x4xbf16, #tpu.memory_space<vmem>>, vector<1x4x4xbf16>
    %528 = vector.shape_cast %527 : vector<1x4x4xbf16> to vector<4x4xbf16>
    %cst_470 = arith.constant dense<0.000000e+00> : vector<4x24xf32>
    %529 = tpu.matmul %528, %525, %cst_470 {dimension_numbers = #tpu.dot_dimension_numbers<[1], [0], [0], [1], [0, 0, 1, 1], [], []>} : vector<4x4xbf16>, vector<4x24xbf16>, vector<4x24xf32> -> vector<4x24xf32>
    %c0_471 = arith.constant 0 : index
    %c0_472 = arith.constant 0 : index
    %c0_473 = arith.constant 0 : index
    %530 = vector.load %arg47[%c0_471, %c0_472, %c0_473] : memref<9x24x24xbf16, #tpu.memory_space<vmem>>, vector<1x24x24xbf16>
    %531 = vector.shape_cast %530 : vector<1x24x24xbf16> to vector<24x24xbf16>
    %532 = arith.truncf %529 : vector<4x24xf32> to vector<4x24xbf16>
    %cst_474 = arith.constant dense<0.000000e+00> : vector<4x24xf32>
    %533 = tpu.matmul %532, %531, %cst_474 {dimension_numbers = #tpu.dot_dimension_numbers<[1], [0], [0], [1], [0, 0, 1, 1], [], []>} : vector<4x24xbf16>, vector<24x24xbf16>, vector<4x24xf32> -> vector<4x24xf32>
    %534 = arith.addf %526, %533 : vector<4x24xf32>
    %c1_475 = arith.constant 1 : index
    %c0_476 = arith.constant 0 : index
    %c0_477 = arith.constant 0 : index
    %535 = vector.load %arg51[%c1_475, %c0_476, %c0_477] : memref<9x4x4xbf16, #tpu.memory_space<vmem>>, vector<1x4x4xbf16>
    %536 = vector.shape_cast %535 : vector<1x4x4xbf16> to vector<4x4xbf16>
    %cst_478 = arith.constant dense<0.000000e+00> : vector<4x24xf32>
    %537 = tpu.matmul %536, %525, %cst_478 {dimension_numbers = #tpu.dot_dimension_numbers<[1], [0], [0], [1], [0, 0, 1, 1], [], []>} : vector<4x4xbf16>, vector<4x24xbf16>, vector<4x24xf32> -> vector<4x24xf32>
    %c1_479 = arith.constant 1 : index
    %c0_480 = arith.constant 0 : index
    %c0_481 = arith.constant 0 : index
    %538 = vector.load %arg47[%c1_479, %c0_480, %c0_481] : memref<9x24x24xbf16, #tpu.memory_space<vmem>>, vector<1x24x24xbf16>
    %539 = vector.shape_cast %538 : vector<1x24x24xbf16> to vector<24x24xbf16>
    %540 = arith.truncf %537 : vector<4x24xf32> to vector<4x24xbf16>
    %cst_482 = arith.constant dense<0.000000e+00> : vector<4x24xf32>
    %541 = tpu.matmul %540, %539, %cst_482 {dimension_numbers = #tpu.dot_dimension_numbers<[1], [0], [0], [1], [0, 0, 1, 1], [], []>} : vector<4x24xbf16>, vector<24x24xbf16>, vector<4x24xf32> -> vector<4x24xf32>
    %542 = arith.addf %534, %541 : vector<4x24xf32>
    %c2_483 = arith.constant 2 : index
    %c0_484 = arith.constant 0 : index
    %c0_485 = arith.constant 0 : index
    %543 = vector.load %arg51[%c2_483, %c0_484, %c0_485] : memref<9x4x4xbf16, #tpu.memory_space<vmem>>, vector<1x4x4xbf16>
    %544 = vector.shape_cast %543 : vector<1x4x4xbf16> to vector<4x4xbf16>
    %cst_486 = arith.constant dense<0.000000e+00> : vector<4x24xf32>
    %545 = tpu.matmul %544, %525, %cst_486 {dimension_numbers = #tpu.dot_dimension_numbers<[1], [0], [0], [1], [0, 0, 1, 1], [], []>} : vector<4x4xbf16>, vector<4x24xbf16>, vector<4x24xf32> -> vector<4x24xf32>
    %c2_487 = arith.constant 2 : index
    %c0_488 = arith.constant 0 : index
    %c0_489 = arith.constant 0 : index
    %546 = vector.load %arg47[%c2_487, %c0_488, %c0_489] : memref<9x24x24xbf16, #tpu.memory_space<vmem>>, vector<1x24x24xbf16>
    %547 = vector.shape_cast %546 : vector<1x24x24xbf16> to vector<24x24xbf16>
    %548 = arith.truncf %545 : vector<4x24xf32> to vector<4x24xbf16>
    %cst_490 = arith.constant dense<0.000000e+00> : vector<4x24xf32>
    %549 = tpu.matmul %548, %547, %cst_490 {dimension_numbers = #tpu.dot_dimension_numbers<[1], [0], [0], [1], [0, 0, 1, 1], [], []>} : vector<4x24xbf16>, vector<24x24xbf16>, vector<4x24xf32> -> vector<4x24xf32>
    %550 = arith.addf %542, %549 : vector<4x24xf32>
    %c3_491 = arith.constant 3 : index
    %c0_492 = arith.constant 0 : index
    %c0_493 = arith.constant 0 : index
    %551 = vector.load %arg51[%c3_491, %c0_492, %c0_493] : memref<9x4x4xbf16, #tpu.memory_space<vmem>>, vector<1x4x4xbf16>
    %552 = vector.shape_cast %551 : vector<1x4x4xbf16> to vector<4x4xbf16>
    %cst_494 = arith.constant dense<0.000000e+00> : vector<4x24xf32>
    %553 = tpu.matmul %552, %525, %cst_494 {dimension_numbers = #tpu.dot_dimension_numbers<[1], [0], [0], [1], [0, 0, 1, 1], [], []>} : vector<4x4xbf16>, vector<4x24xbf16>, vector<4x24xf32> -> vector<4x24xf32>
    %c3_495 = arith.constant 3 : index
    %c0_496 = arith.constant 0 : index
    %c0_497 = arith.constant 0 : index
    %554 = vector.load %arg47[%c3_495, %c0_496, %c0_497] : memref<9x24x24xbf16, #tpu.memory_space<vmem>>, vector<1x24x24xbf16>
    %555 = vector.shape_cast %554 : vector<1x24x24xbf16> to vector<24x24xbf16>
    %556 = arith.truncf %553 : vector<4x24xf32> to vector<4x24xbf16>
    %cst_498 = arith.constant dense<0.000000e+00> : vector<4x24xf32>
    %557 = tpu.matmul %556, %555, %cst_498 {dimension_numbers = #tpu.dot_dimension_numbers<[1], [0], [0], [1], [0, 0, 1, 1], [], []>} : vector<4x24xbf16>, vector<24x24xbf16>, vector<4x24xf32> -> vector<4x24xf32>
    %558 = arith.addf %550, %557 : vector<4x24xf32>
    %c4_499 = arith.constant 4 : index
    %c0_500 = arith.constant 0 : index
    %c0_501 = arith.constant 0 : index
    %559 = vector.load %arg51[%c4_499, %c0_500, %c0_501] : memref<9x4x4xbf16, #tpu.memory_space<vmem>>, vector<1x4x4xbf16>
    %560 = vector.shape_cast %559 : vector<1x4x4xbf16> to vector<4x4xbf16>
    %cst_502 = arith.constant dense<0.000000e+00> : vector<4x24xf32>
    %561 = tpu.matmul %560, %525, %cst_502 {dimension_numbers = #tpu.dot_dimension_numbers<[1], [0], [0], [1], [0, 0, 1, 1], [], []>} : vector<4x4xbf16>, vector<4x24xbf16>, vector<4x24xf32> -> vector<4x24xf32>
    %c4_503 = arith.constant 4 : index
    %c0_504 = arith.constant 0 : index
    %c0_505 = arith.constant 0 : index
    %562 = vector.load %arg47[%c4_503, %c0_504, %c0_505] : memref<9x24x24xbf16, #tpu.memory_space<vmem>>, vector<1x24x24xbf16>
    %563 = vector.shape_cast %562 : vector<1x24x24xbf16> to vector<24x24xbf16>
    %564 = arith.truncf %561 : vector<4x24xf32> to vector<4x24xbf16>
    %cst_506 = arith.constant dense<0.000000e+00> : vector<4x24xf32>
    %565 = tpu.matmul %564, %563, %cst_506 {dimension_numbers = #tpu.dot_dimension_numbers<[1], [0], [0], [1], [0, 0, 1, 1], [], []>} : vector<4x24xbf16>, vector<24x24xbf16>, vector<4x24xf32> -> vector<4x24xf32>
    %566 = arith.addf %558, %565 : vector<4x24xf32>
    %c5_507 = arith.constant 5 : index
    %c0_508 = arith.constant 0 : index
    %c0_509 = arith.constant 0 : index
    %567 = vector.load %arg51[%c5_507, %c0_508, %c0_509] : memref<9x4x4xbf16, #tpu.memory_space<vmem>>, vector<1x4x4xbf16>
    %568 = vector.shape_cast %567 : vector<1x4x4xbf16> to vector<4x4xbf16>
    %cst_510 = arith.constant dense<0.000000e+00> : vector<4x24xf32>
    %569 = tpu.matmul %568, %525, %cst_510 {dimension_numbers = #tpu.dot_dimension_numbers<[1], [0], [0], [1], [0, 0, 1, 1], [], []>} : vector<4x4xbf16>, vector<4x24xbf16>, vector<4x24xf32> -> vector<4x24xf32>
    %c5_511 = arith.constant 5 : index
    %c0_512 = arith.constant 0 : index
    %c0_513 = arith.constant 0 : index
    %570 = vector.load %arg47[%c5_511, %c0_512, %c0_513] : memref<9x24x24xbf16, #tpu.memory_space<vmem>>, vector<1x24x24xbf16>
    %571 = vector.shape_cast %570 : vector<1x24x24xbf16> to vector<24x24xbf16>
    %572 = arith.truncf %569 : vector<4x24xf32> to vector<4x24xbf16>
    %cst_514 = arith.constant dense<0.000000e+00> : vector<4x24xf32>
    %573 = tpu.matmul %572, %571, %cst_514 {dimension_numbers = #tpu.dot_dimension_numbers<[1], [0], [0], [1], [0, 0, 1, 1], [], []>} : vector<4x24xbf16>, vector<24x24xbf16>, vector<4x24xf32> -> vector<4x24xf32>
    %574 = arith.addf %566, %573 : vector<4x24xf32>
    %c6_515 = arith.constant 6 : index
    %c0_516 = arith.constant 0 : index
    %c0_517 = arith.constant 0 : index
    %575 = vector.load %arg51[%c6_515, %c0_516, %c0_517] : memref<9x4x4xbf16, #tpu.memory_space<vmem>>, vector<1x4x4xbf16>
    %576 = vector.shape_cast %575 : vector<1x4x4xbf16> to vector<4x4xbf16>
    %cst_518 = arith.constant dense<0.000000e+00> : vector<4x24xf32>
    %577 = tpu.matmul %576, %525, %cst_518 {dimension_numbers = #tpu.dot_dimension_numbers<[1], [0], [0], [1], [0, 0, 1, 1], [], []>} : vector<4x4xbf16>, vector<4x24xbf16>, vector<4x24xf32> -> vector<4x24xf32>
    %c6_519 = arith.constant 6 : index
    %c0_520 = arith.constant 0 : index
    %c0_521 = arith.constant 0 : index
    %578 = vector.load %arg47[%c6_519, %c0_520, %c0_521] : memref<9x24x24xbf16, #tpu.memory_space<vmem>>, vector<1x24x24xbf16>
    %579 = vector.shape_cast %578 : vector<1x24x24xbf16> to vector<24x24xbf16>
    %580 = arith.truncf %577 : vector<4x24xf32> to vector<4x24xbf16>
    %cst_522 = arith.constant dense<0.000000e+00> : vector<4x24xf32>
    %581 = tpu.matmul %580, %579, %cst_522 {dimension_numbers = #tpu.dot_dimension_numbers<[1], [0], [0], [1], [0, 0, 1, 1], [], []>} : vector<4x24xbf16>, vector<24x24xbf16>, vector<4x24xf32> -> vector<4x24xf32>
    %582 = arith.addf %574, %581 : vector<4x24xf32>
    %c7_523 = arith.constant 7 : index
    %c0_524 = arith.constant 0 : index
    %c0_525 = arith.constant 0 : index
    %583 = vector.load %arg51[%c7_523, %c0_524, %c0_525] : memref<9x4x4xbf16, #tpu.memory_space<vmem>>, vector<1x4x4xbf16>
    %584 = vector.shape_cast %583 : vector<1x4x4xbf16> to vector<4x4xbf16>
    %cst_526 = arith.constant dense<0.000000e+00> : vector<4x24xf32>
    %585 = tpu.matmul %584, %525, %cst_526 {dimension_numbers = #tpu.dot_dimension_numbers<[1], [0], [0], [1], [0, 0, 1, 1], [], []>} : vector<4x4xbf16>, vector<4x24xbf16>, vector<4x24xf32> -> vector<4x24xf32>
    %c7_527 = arith.constant 7 : index
    %c0_528 = arith.constant 0 : index
    %c0_529 = arith.constant 0 : index
    %586 = vector.load %arg47[%c7_527, %c0_528, %c0_529] : memref<9x24x24xbf16, #tpu.memory_space<vmem>>, vector<1x24x24xbf16>
    %587 = vector.shape_cast %586 : vector<1x24x24xbf16> to vector<24x24xbf16>
    %588 = arith.truncf %585 : vector<4x24xf32> to vector<4x24xbf16>
    %cst_530 = arith.constant dense<0.000000e+00> : vector<4x24xf32>
    %589 = tpu.matmul %588, %587, %cst_530 {dimension_numbers = #tpu.dot_dimension_numbers<[1], [0], [0], [1], [0, 0, 1, 1], [], []>} : vector<4x24xbf16>, vector<24x24xbf16>, vector<4x24xf32> -> vector<4x24xf32>
    %590 = arith.addf %582, %589 : vector<4x24xf32>
    %c8_531 = arith.constant 8 : index
    %c0_532 = arith.constant 0 : index
    %c0_533 = arith.constant 0 : index
    %591 = vector.load %arg51[%c8_531, %c0_532, %c0_533] : memref<9x4x4xbf16, #tpu.memory_space<vmem>>, vector<1x4x4xbf16>
    %592 = vector.shape_cast %591 : vector<1x4x4xbf16> to vector<4x4xbf16>
    %cst_534 = arith.constant dense<0.000000e+00> : vector<4x24xf32>
    %593 = tpu.matmul %592, %525, %cst_534 {dimension_numbers = #tpu.dot_dimension_numbers<[1], [0], [0], [1], [0, 0, 1, 1], [], []>} : vector<4x4xbf16>, vector<4x24xbf16>, vector<4x24xf32> -> vector<4x24xf32>
    %c8_535 = arith.constant 8 : index
    %c0_536 = arith.constant 0 : index
    %c0_537 = arith.constant 0 : index
    %594 = vector.load %arg47[%c8_535, %c0_536, %c0_537] : memref<9x24x24xbf16, #tpu.memory_space<vmem>>, vector<1x24x24xbf16>
    %595 = vector.shape_cast %594 : vector<1x24x24xbf16> to vector<24x24xbf16>
    %596 = arith.truncf %593 : vector<4x24xf32> to vector<4x24xbf16>
    %cst_538 = arith.constant dense<0.000000e+00> : vector<4x24xf32>
    %597 = tpu.matmul %596, %595, %cst_538 {dimension_numbers = #tpu.dot_dimension_numbers<[1], [0], [0], [1], [0, 0, 1, 1], [], []>} : vector<4x24xbf16>, vector<24x24xbf16>, vector<4x24xf32> -> vector<4x24xf32>
    %598 = arith.addf %590, %597 : vector<4x24xf32>
    %c0_539 = arith.constant 0 : index
    %c0_540 = arith.constant 0 : index
    %599 = vector.load %arg48[%c0_539, %c0_540] : memref<1x24xf32, #tpu.memory_space<vmem>>, vector<1x24xf32>
    %600 = vector.broadcast %599 : vector<1x24xf32> to vector<4x24xf32>
    %601 = arith.addf %598, %600 : vector<4x24xf32>
    %cst_541 = arith.constant 0.000000e+00 : f32
    %602 = vector.broadcast %cst_541 : f32 to vector<4x24xf32>
    %603 = arith.maximumf %601, %602 : vector<4x24xf32>
    %c0_542 = arith.constant 0 : index
    %c0_543 = arith.constant 0 : index
    %604 = vector.load %arg49[%c0_542, %c0_543] : memref<24x96xbf16, #tpu.memory_space<vmem>>, vector<24x96xbf16>
    %605 = arith.truncf %603 : vector<4x24xf32> to vector<4x24xbf16>
    %cst_544 = arith.constant dense<0.000000e+00> : vector<4x96xf32>
    %606 = tpu.matmul %605, %604, %cst_544 {dimension_numbers = #tpu.dot_dimension_numbers<[1], [0], [0], [1], [0, 0, 1, 1], [], []>} : vector<4x24xbf16>, vector<24x96xbf16>, vector<4x96xf32> -> vector<4x96xf32>
    %c0_545 = arith.constant 0 : index
    %c0_546 = arith.constant 0 : index
    %607 = vector.load %arg50[%c0_545, %c0_546] : memref<1x96xf32, #tpu.memory_space<vmem>>, vector<1x96xf32>
    %608 = vector.broadcast %607 : vector<1x96xf32> to vector<4x96xf32>
    %609 = arith.addf %606, %608 : vector<4x96xf32>
    %cst_547 = arith.constant 0.000000e+00 : f32
    %610 = vector.broadcast %cst_547 : f32 to vector<4x96xf32>
    %611 = arith.maximumf %609, %610 : vector<4x96xf32>
    %612 = arith.addf %611, %516 : vector<4x96xf32>
    %cst_548 = arith.constant 0.000000e+00 : f32
    %613 = vector.broadcast %cst_548 : f32 to vector<4x96xf32>
    %614 = arith.maximumf %612, %613 : vector<4x96xf32>
    %c0_549 = arith.constant 0 : index
    %c0_550 = arith.constant 0 : index
    %615 = vector.load %arg52[%c0_549, %c0_550] : memref<96x128xbf16, #tpu.memory_space<vmem>>, vector<96x128xbf16>
    %616 = arith.truncf %614 : vector<4x96xf32> to vector<4x96xbf16>
    %cst_551 = arith.constant dense<0.000000e+00> : vector<4x128xf32>
    %617 = tpu.matmul %616, %615, %cst_551 {dimension_numbers = #tpu.dot_dimension_numbers<[1], [0], [0], [1], [0, 0, 1, 1], [], []>} : vector<4x96xbf16>, vector<96x128xbf16>, vector<4x128xf32> -> vector<4x128xf32>
    %c0_552 = arith.constant 0 : index
    %c0_553 = arith.constant 0 : index
    %618 = vector.load %arg53[%c0_552, %c0_553] : memref<1x128xf32, #tpu.memory_space<vmem>>, vector<1x128xf32>
    %619 = vector.broadcast %618 : vector<1x128xf32> to vector<4x128xf32>
    %620 = arith.addf %617, %619 : vector<4x128xf32>
    %c0_554 = arith.constant 0 : index
    %c0_555 = arith.constant 0 : index
    %c0_556 = arith.constant 0 : index
    %621 = vector.load %arg54[%c0_554, %c0_555, %c0_556] : memref<1x4x128xf32, #tpu.memory_space<vmem>>, vector<1x4x128xf32>
    %622 = vector.shape_cast %621 : vector<1x4x128xf32> to vector<4x128xf32>
    %623 = vector.shape_cast %620 : vector<4x128xf32> to vector<1x4x128xf32>
    tpu.vector_store %arg54[%c0_554, %c0_555, %c0_556], %623 {strides = array<i32>} : memref<1x4x128xf32, #tpu.memory_space<vmem>>, vector<1x4x128xf32>,
    return
  }
  func.func @transform_0(%arg0: i32) -> (i32, i32, i32) {
    %c0_i32 = arith.constant 0 : i32
    %c0_i32_0 = arith.constant 0 : i32
    %c0_i32_1 = arith.constant 0 : i32
    return %arg0, %c0_i32, %c0_i32_0 : i32, i32, i32
  }
  func.func @transform_1(%arg0: i32) -> (i32, i32) {
    %c0_i32 = arith.constant 0 : i32
    %c0_i32_0 = arith.constant 0 : i32
    %c0_i32_1 = arith.constant 0 : i32
    return %c0_i32, %c0_i32_0 : i32, i32
  }
  func.func @transform_2(%arg0: i32) -> (i32, i32) {
    %c0_i32 = arith.constant 0 : i32
    %c0_i32_0 = arith.constant 0 : i32
    %c0_i32_1 = arith.constant 0 : i32
    return %c0_i32, %c0_i32_0 : i32, i32
  }
  func.func @transform_3(%arg0: i32) -> (i32, i32) {
    %c0_i32 = arith.constant 0 : i32
    %c0_i32_0 = arith.constant 0 : i32
    %c0_i32_1 = arith.constant 0 : i32
    return %c0_i32, %c0_i32_0 : i32, i32
  }
  func.func @transform_4(%arg0: i32) -> (i32, i32) {
    %c0_i32 = arith.constant 0 : i32
    %c0_i32_0 = arith.constant 0 : i32
    %c0_i32_1 = arith.constant 0 : i32
    return %c0_i32, %c0_i32_0 : i32, i32
  }
  func.func @transform_5(%arg0: i32) -> (i32, i32, i32) {
    %c0_i32 = arith.constant 0 : i32
    %c0_i32_0 = arith.constant 0 : i32
    %c0_i32_1 = arith.constant 0 : i32
    %c0_i32_2 = arith.constant 0 : i32
    return %c0_i32, %c0_i32_0, %c0_i32_1 : i32, i32, i32
  }
  func.func @transform_6(%arg0: i32) -> (i32, i32) {
    %c0_i32 = arith.constant 0 : i32
    %c0_i32_0 = arith.constant 0 : i32
    %c0_i32_1 = arith.constant 0 : i32
    return %c0_i32, %c0_i32_0 : i32, i32
  }
  func.func @transform_7(%arg0: i32) -> (i32, i32) {
    %c0_i32 = arith.constant 0 : i32
    %c0_i32_0 = arith.constant 0 : i32
    %c0_i32_1 = arith.constant 0 : i32
    return %c0_i32, %c0_i32_0 : i32, i32
  }
  func.func @transform_8(%arg0: i32) -> (i32, i32) {
    %c0_i32 = arith.constant 0 : i32
    %c0_i32_0 = arith.constant 0 : i32
    %c0_i32_1 = arith.constant 0 : i32
    return %c0_i32, %c0_i32_0 : i32, i32
  }
  func.func @transform_9(%arg0: i32) -> (i32, i32, i32) {
    %c0_i32 = arith.constant 0 : i32
    %c0_i32_0 = arith.constant 0 : i32
    %c0_i32_1 = arith.constant 0 : i32
    %c0_i32_2 = arith.constant 0 : i32
    return %c0_i32, %c0_i32_0, %c0_i32_1 : i32, i32, i32
  }
  func.func @transform_10(%arg0: i32) -> (i32, i32) {
    %c0_i32 = arith.constant 0 : i32
    %c0_i32_0 = arith.constant 0 : i32
    %c0_i32_1 = arith.constant 0 : i32
    return %c0_i32, %c0_i32_0 : i32, i32
  }
  func.func @transform_11(%arg0: i32) -> (i32, i32) {
    %c0_i32 = arith.constant 0 : i32
    %c0_i32_0 = arith.constant 0 : i32
    %c0_i32_1 = arith.constant 0 : i32
    return %c0_i32, %c0_i32_0 : i32, i32
  }
  func.func @transform_12(%arg0: i32) -> (i32, i32, i32) {
    %c0_i32 = arith.constant 0 : i32
    %c0_i32_0 = arith.constant 0 : i32
    %c0_i32_1 = arith.constant 0 : i32
    %c0_i32_2 = arith.constant 0 : i32
    return %c0_i32, %c0_i32_0, %c0_i32_1 : i32, i32, i32
  }
  func.func @transform_13(%arg0: i32) -> (i32, i32) {
    %c0_i32 = arith.constant 0 : i32
    %c0_i32_0 = arith.constant 0 : i32
    %c0_i32_1 = arith.constant 0 : i32
    return %c0_i32, %c0_i32_0 : i32, i32
  }
  func.func @transform_14(%arg0: i32) -> (i32, i32) {
    %c0_i32 = arith.constant 0 : i32
    %c0_i32_0 = arith.constant 0 : i32
    %c0_i32_1 = arith.constant 0 : i32
    return %c0_i32, %c0_i32_0 : i32, i32
  }
  func.func @transform_15(%arg0: i32) -> (i32, i32) {
    %c0_i32 = arith.constant 0 : i32
    %c0_i32_0 = arith.constant 0 : i32
    %c0_i32_1 = arith.constant 0 : i32
    return %c0_i32, %c0_i32_0 : i32, i32
  }
  func.func @transform_16(%arg0: i32) -> (i32, i32, i32) {
    %c0_i32 = arith.constant 0 : i32
    %c0_i32_0 = arith.constant 0 : i32
    %c0_i32_1 = arith.constant 0 : i32
    %c0_i32_2 = arith.constant 0 : i32
    return %c0_i32, %c0_i32_0, %c0_i32_1 : i32, i32, i32
  }
  func.func @transform_17(%arg0: i32) -> (i32, i32) {
    %c0_i32 = arith.constant 0 : i32
    %c0_i32_0 = arith.constant 0 : i32
    %c0_i32_1 = arith.constant 0 : i32
    return %c0_i32, %c0_i32_0 : i32, i32
  }
  func.func @transform_18(%arg0: i32) -> (i32, i32) {
    %c0_i32 = arith.constant 0 : i32
    %c0_i32_0 = arith.constant 0 : i32
    %c0_i32_1 = arith.constant 0 : i32
    return %c0_i32, %c0_i32_0 : i32, i32
  }
  func.func @transform_19(%arg0: i32) -> (i32, i32, i32) {
    %c0_i32 = arith.constant 0 : i32
    %c0_i32_0 = arith.constant 0 : i32
    %c0_i32_1 = arith.constant 0 : i32
    %c0_i32_2 = arith.constant 0 : i32
    return %c0_i32, %c0_i32_0, %c0_i32_1 : i32, i32, i32
  }
  func.func @transform_20(%arg0: i32) -> (i32, i32) {
    %c0_i32 = arith.constant 0 : i32
    %c0_i32_0 = arith.constant 0 : i32
    %c0_i32_1 = arith.constant 0 : i32
    return %c0_i32, %c0_i32_0 : i32, i32
  }
  func.func @transform_21(%arg0: i32) -> (i32, i32) {
    %c0_i32 = arith.constant 0 : i32
    %c0_i32_0 = arith.constant 0 : i32
    %c0_i32_1 = arith.constant 0 : i32
    return %c0_i32, %c0_i32_0 : i32, i32
  }
  func.func @transform_22(%arg0: i32) -> (i32, i32) {
    %c0_i32 = arith.constant 0 : i32
    %c0_i32_0 = arith.constant 0 : i32
    %c0_i32_1 = arith.constant 0 : i32
    return %c0_i32, %c0_i32_0 : i32, i32
  }
  func.func @transform_23(%arg0: i32) -> (i32, i32, i32) {
    %c0_i32 = arith.constant 0 : i32
    %c0_i32_0 = arith.constant 0 : i32
    %c0_i32_1 = arith.constant 0 : i32
    %c0_i32_2 = arith.constant 0 : i32
    return %c0_i32, %c0_i32_0, %c0_i32_1 : i32, i32, i32
  }
  func.func @transform_24(%arg0: i32) -> (i32, i32) {
    %c0_i32 = arith.constant 0 : i32
    %c0_i32_0 = arith.constant 0 : i32
    %c0_i32_1 = arith.constant 0 : i32
    return %c0_i32, %c0_i32_0 : i32, i32
  }
  func.func @transform_25(%arg0: i32) -> (i32, i32) {
    %c0_i32 = arith.constant 0 : i32
    %c0_i32_0 = arith.constant 0 : i32
    %c0_i32_1 = arith.constant 0 : i32
    return %c0_i32, %c0_i32_0 : i32, i32
  }
  func.func @transform_26(%arg0: i32) -> (i32, i32) {
    %c0_i32 = arith.constant 0 : i32
    %c0_i32_0 = arith.constant 0 : i32
    %c0_i32_1 = arith.constant 0 : i32
    return %c0_i32, %c0_i32_0 : i32, i32
  }
  func.func @transform_27(%arg0: i32) -> (i32, i32) {
    %c0_i32 = arith.constant 0 : i32
    %c0_i32_0 = arith.constant 0 : i32
    %c0_i32_1 = arith.constant 0 : i32
    return %c0_i32, %c0_i32_0 : i32, i32
  }
  func.func @transform_28(%arg0: i32) -> (i32, i32) {
    %c0_i32 = arith.constant 0 : i32
    %c0_i32_0 = arith.constant 0 : i32
    %c0_i32_1 = arith.constant 0 : i32
    return %c0_i32, %c0_i32_0 : i32, i32
  }
  func.func @transform_29(%arg0: i32) -> (i32, i32, i32) {
    %c0_i32 = arith.constant 0 : i32
    %c0_i32_0 = arith.constant 0 : i32
    %c0_i32_1 = arith.constant 0 : i32
    %c0_i32_2 = arith.constant 0 : i32
    return %c0_i32, %c0_i32_0, %c0_i32_1 : i32, i32, i32
  }
  func.func @transform_30(%arg0: i32) -> (i32, i32) {
    %c0_i32 = arith.constant 0 : i32
    %c0_i32_0 = arith.constant 0 : i32
    %c0_i32_1 = arith.constant 0 : i32
    return %c0_i32, %c0_i32_0 : i32, i32
  }
  func.func @transform_31(%arg0: i32) -> (i32, i32) {
    %c0_i32 = arith.constant 0 : i32
    %c0_i32_0 = arith.constant 0 : i32
    %c0_i32_1 = arith.constant 0 : i32
    return %c0_i32, %c0_i32_0 : i32, i32
  }
  func.func @transform_32(%arg0: i32) -> (i32, i32) {
    %c0_i32 = arith.constant 0 : i32
    %c0_i32_0 = arith.constant 0 : i32
    %c0_i32_1 = arith.constant 0 : i32
    return %c0_i32, %c0_i32_0 : i32, i32
  }
  func.func @transform_33(%arg0: i32) -> (i32, i32, i32) {
    %c0_i32 = arith.constant 0 : i32
    %c0_i32_0 = arith.constant 0 : i32
    %c0_i32_1 = arith.constant 0 : i32
    %c0_i32_2 = arith.constant 0 : i32
    return %c0_i32, %c0_i32_0, %c0_i32_1 : i32, i32, i32
  }
  func.func @transform_34(%arg0: i32) -> (i32, i32) {
    %c0_i32 = arith.constant 0 : i32
    %c0_i32_0 = arith.constant 0 : i32
    %c0_i32_1 = arith.constant 0 : i32
    return %c0_i32, %c0_i32_0 : i32, i32
  }
  func.func @transform_35(%arg0: i32) -> (i32, i32) {
    %c0_i32 = arith.constant 0 : i32
    %c0_i32_0 = arith.constant 0 : i32
    %c0_i32_1 = arith.constant 0 : i32
    return %c0_i32, %c0_i32_0 : i32, i32
  }
  func.func @transform_36(%arg0: i32) -> (i32, i32, i32) {
    %c0_i32 = arith.constant 0 : i32
    %c0_i32_0 = arith.constant 0 : i32
    %c0_i32_1 = arith.constant 0 : i32
    %c0_i32_2 = arith.constant 0 : i32
    return %c0_i32, %c0_i32_0, %c0_i32_1 : i32, i32, i32
  }
  func.func @transform_37(%arg0: i32) -> (i32, i32) {
    %c0_i32 = arith.constant 0 : i32
    %c0_i32_0 = arith.constant 0 : i32
    %c0_i32_1 = arith.constant 0 : i32
    return %c0_i32, %c0_i32_0 : i32, i32
  }
  func.func @transform_38(%arg0: i32) -> (i32, i32) {
    %c0_i32 = arith.constant 0 : i32
    %c0_i32_0 = arith.constant 0 : i32
    %c0_i32_1 = arith.constant 0 : i32
    return %c0_i32, %c0_i32_0 : i32, i32
  }
  func.func @transform_39(%arg0: i32) -> (i32, i32) {
    %c0_i32 = arith.constant 0 : i32
    %c0_i32_0 = arith.constant 0 : i32
    %c0_i32_1 = arith.constant 0 : i32
    return %c0_i32, %c0_i32_0 : i32, i32
  }
  func.func @transform_40(%arg0: i32) -> (i32, i32, i32) {
    %c0_i32 = arith.constant 0 : i32
    %c0_i32_0 = arith.constant 0 : i32
    %c0_i32_1 = arith.constant 0 : i32
    %c0_i32_2 = arith.constant 0 : i32
    return %c0_i32, %c0_i32_0, %c0_i32_1 : i32, i32, i32
  }
  func.func @transform_41(%arg0: i32) -> (i32, i32) {
    %c0_i32 = arith.constant 0 : i32
    %c0_i32_0 = arith.constant 0 : i32
    %c0_i32_1 = arith.constant 0 : i32
    return %c0_i32, %c0_i32_0 : i32, i32
  }
  func.func @transform_42(%arg0: i32) -> (i32, i32) {
    %c0_i32 = arith.constant 0 : i32
    %c0_i32_0 = arith.constant 0 : i32
    %c0_i32_1 = arith.constant 0 : i32
    return %c0_i32, %c0_i32_0 : i32, i32
  }
  func.func @transform_43(%arg0: i32) -> (i32, i32) {
    %c0_i32 = arith.constant 0 : i32
    %c0_i32_0 = arith.constant 0 : i32
    %c0_i32_1 = arith.constant 0 : i32
    return %c0_i32, %c0_i32_0 : i32, i32
  }
  func.func @transform_44(%arg0: i32) -> (i32, i32) {
    %c0_i32 = arith.constant 0 : i32
    %c0_i32_0 = arith.constant 0 : i32
    %c0_i32_1 = arith.constant 0 : i32
    return %c0_i32, %c0_i32_0 : i32, i32
  }
  func.func @transform_45(%arg0: i32) -> (i32, i32) {
    %c0_i32 = arith.constant 0 : i32
    %c0_i32_0 = arith.constant 0 : i32
    %c0_i32_1 = arith.constant 0 : i32
    return %c0_i32, %c0_i32_0 : i32, i32
  }
  func.func @transform_46(%arg0: i32) -> (i32, i32, i32) {
    %c0_i32 = arith.constant 0 : i32
    %c0_i32_0 = arith.constant 0 : i32
    %c0_i32_1 = arith.constant 0 : i32
    %c0_i32_2 = arith.constant 0 : i32
    return %c0_i32, %c0_i32_0, %c0_i32_1 : i32, i32, i32
  }
  func.func @transform_47(%arg0: i32) -> (i32, i32) {
    %c0_i32 = arith.constant 0 : i32
    %c0_i32_0 = arith.constant 0 : i32
    %c0_i32_1 = arith.constant 0 : i32
    return %c0_i32, %c0_i32_0 : i32, i32
  }
  func.func @transform_48(%arg0: i32) -> (i32, i32) {
    %c0_i32 = arith.constant 0 : i32
    %c0_i32_0 = arith.constant 0 : i32
    %c0_i32_1 = arith.constant 0 : i32
    return %c0_i32, %c0_i32_0 : i32, i32
  }
  func.func @transform_49(%arg0: i32) -> (i32, i32) {
    %c0_i32 = arith.constant 0 : i32
    %c0_i32_0 = arith.constant 0 : i32
    %c0_i32_1 = arith.constant 0 : i32
    return %c0_i32, %c0_i32_0 : i32, i32
  }
  func.func @transform_50(%arg0: i32) -> (i32, i32, i32) {
    %c0_i32 = arith.constant 0 : i32
    %c0_i32_0 = arith.constant 0 : i32
    %c0_i32_1 = arith.constant 0 : i32
    %c0_i32_2 = arith.constant 0 : i32
    return %c0_i32, %c0_i32_0, %c0_i32_1 : i32, i32, i32
  }
  func.func @transform_51(%arg0: i32) -> (i32, i32) {
    %c0_i32 = arith.constant 0 : i32
    %c0_i32_0 = arith.constant 0 : i32
    %c0_i32_1 = arith.constant 0 : i32
    return %c0_i32, %c0_i32_0 : i32, i32
  }
  func.func @transform_52(%arg0: i32) -> (i32, i32) {
    %c0_i32 = arith.constant 0 : i32
    %c0_i32_0 = arith.constant 0 : i32
    %c0_i32_1 = arith.constant 0 : i32
    return %c0_i32, %c0_i32_0 : i32, i32
  }
  func.func @transform_53(%arg0: i32) -> (i32, i32, i32) {
    %c0_i32 = arith.constant 0 : i32
    %c0_i32_0 = arith.constant 0 : i32
    %c0_i32_1 = arith.constant 0 : i32
    return %arg0, %c0_i32, %c0_i32_0 : i32, i32, i32
  }
}

</mosaic_0001>

<bundles_post_ra>
// kernel: _lambda_.1
= control target key start
LH: loop header
LB: loop body
LE: loop exit
PB: predicated region body
PF: predicated region fallthrough
CT: control target
= control target key end

     0   :  { %s14537_s6 = smov 1   ;;  %s14538_s10 = smov 2   ;;  %s16650_s0 = inlined_call_operand.smem [shape: u32[54], index: -1, kind: input, shape index: {}] }
   0x1   :  { %s14614_s5 = sld [smem:[%s16650_s0]]   ;;  %s14539_s14 = smov 3  }
   0x2   :  { %s14619_s9 = sld [smem:[%s16650_s0 + %s14537_s6]]   ;;  %s14540_s18 = smov 4  }
   0x3   :  { %s14624_s13 = sld [smem:[%s16650_s0 + %s14538_s10]]   ;;  %s14541_s22 = smov 5  }
   0x4   :  { %s14629_s17 = sld [smem:[%s16650_s0 + %s14539_s14]]   ;;  %s14542_s26 = smov 6  }
   0x5   :  { %s14634_s21 = sld [smem:[%s16650_s0 + %s14540_s18]]   ;;  %s14543_s30 = smov 7  }
   0x6   :  { %s14639_s25 = sld [smem:[%s16650_s0 + %s14541_s22]]   ;;  %s14544_s4 = smov 8  }
   0x7   :  { %16712 = sst [smem:[#allocation28_spill]] %s14614_s5  ;;  %s14545_s10 = smov 9  }
   0x8   :  { %s14644_s29 = sld [smem:[%s16650_s0 + %s14542_s26]]   ;;  %s14546_s15 = smov 10  }
   0x9   :  { %16713 = sst [smem:[#allocation29_spill]] %s14624_s13  ;;  %s14547_s20 = smov 11  }
   0xa   :  { %s14649_s3 = sld [smem:[%s16650_s0 + %s14543_s30]]   ;;  %s14548_s26 = smov 12  }
   0xb   :  { %16714 = sst [smem:[#allocation30_spill]] %s14634_s21  ;;  %s14549_s1 = smov 13  }
   0xc   :  { %16715 = sst [smem:[#allocation31_spill]] %s14639_s25  ;;  %s14550_s7 = smov 14  }
   0xd   :  { %s14654_s8 = sld [smem:[%s16650_s0 + %s14544_s4]]   ;;  %s14552_s22 = smov 16  }
   0xe   :  { %16716 = sst [smem:[#allocation32_spill]] %s14644_s29  ;;  %s14553_s28 = smov 17  }
   0xf   :  { %s14659_s14 = sld [smem:[%s16650_s0 + %s14545_s10]]  }
  0x10   :  { %16717 = sst [smem:[#allocation33_spill]] %s14649_s3 }
  0x11   :  { %s14664_s19 = sld [smem:[%s16650_s0 + %s14546_s15]]   ;;  %s14551_s15 = smov 15  }
  0x12   :  { %s14669_s24 = sld [smem:[%s16650_s0 + %s14547_s20]]  }
  0x13   :  { %16718 = sst [smem:[#allocation34_spill]] %s14654_s8 }
  0x14   :  { %s14674_s30 = sld [smem:[%s16650_s0 + %s14548_s26]]  }
  0x15   :  { %16719 = sst [smem:[#allocation35_spill]] %s14659_s14 }
  0x16   :  { %s14679_s6 = sld [smem:[%s16650_s0 + %s14549_s1]]  }
  0x17   :  { %16720 = sst [smem:[#allocation36_spill]] %s14664_s19 }
  0x18   :  { %16721 = sst [smem:[#allocation37_spill]] %s14669_s24 }
  0x19   :  { %s14684_s12 = sld [smem:[%s16650_s0 + %s14550_s7]]   ;;  %s14554_s7 = smov 18  }
  0x1a   :  { %16722 = sst [smem:[#allocation38_spill]] %s14674_s30 }
  0x1b   :  { %s14689_s20 = sld [smem:[%s16650_s0 + %s14551_s15]]   ;;  %s14555_s15 = smov 19  }
  0x1c   :  { %16723 = sst [smem:[#allocation39_spill]] %s14679_s6 }
  0x1d   :  { %s14694_s27 = sld [smem:[%s16650_s0 + %s14552_s22]]   ;;  %s14556_s22 = smov 20  }
  0x1e   :  { %s14699_s4 = sld [smem:[%s16650_s0 + %s14553_s28]]   ;;  %s14557_s28 = smov 21  }
  0x1f   :  { %16724 = sst [smem:[#allocation40_spill]] %s14684_s12 }
  0x20   :  { %s14704_s6 = sld [smem:[%s16650_s0 + %s14554_s7]]   ;;  %s14558_s7 = smov 22  }
  0x21   :  { %16725 = sst [smem:[#allocation41_spill]] %s14689_s20 }
  0x22   :  { %s14709_s20 = sld [smem:[%s16650_s0 + %s14555_s15]]   ;;  %s14559_s15 = smov 23  }
  0x23   :  { %16726 = sst [smem:[#allocation42_spill]] %s14694_s27 }
  0x24   :  { %16727 = sst [smem:[#allocation43_spill]] %s14699_s4 }
  0x25   :  { %s14714_s12 = sld [smem:[%s16650_s0 + %s14556_s22]]   ;;  %s14560_s22 = smov 24  }
  0x26   :  { %16728 = sst [smem:[#allocation44_spill]] %s14704_s6 }
  0x27   :  { %s14719_s4 = sld [smem:[%s16650_s0 + %s14557_s28]]   ;;  %s14561_s28 = smov 25  }
  0x28   :  { %16729 = sst [smem:[#allocation45_spill]] %s14709_s20 }
  0x29   :  { %s14724_s6 = sld [smem:[%s16650_s0 + %s14558_s7]]   ;;  %s14562_s7 = smov 26  }
  0x2a   :  { %s14729_s20 = sld [smem:[%s16650_s0 + %s14559_s15]]   ;;  %s14563_s15 = smov 27  }
  0x2b   :  { %16730 = sst [smem:[#allocation46_spill]] %s14714_s12 }
  0x2c   :  { %s14734_s12 = sld [smem:[%s16650_s0 + %s14560_s22]]   ;;  %s14564_s22 = smov 28  }
  0x2d   :  { %16731 = sst [smem:[#allocation47_spill]] %s14719_s4 }
  0x2e   :  { %s14739_s4 = sld [smem:[%s16650_s0 + %s14561_s28]]   ;;  %s14565_s28 = smov 29  }
  0x2f   :  { %16732 = sst [smem:[#allocation48_spill]] %s14724_s6 }
  0x30   :  { %16733 = sst [smem:[#allocation49_spill]] %s14729_s20 }
  0x31   :  { %s14744_s30 = sld [smem:[%s16650_s0 + %s14562_s7]]   ;;  %s14566_s7 = smov 30  }
  0x32   :  { %16734 = sst [smem:[#allocation50_spill]] %s14734_s12 }
  0x33   :  { %s14749_s20 = sld [smem:[%s16650_s0 + %s14563_s15]]   ;;  %s14567_s15 = smov 31  }
  0x34   :  { %16735 = sst [smem:[#allocation51_spill]] %s14739_s4 }
  0x35   :  { %s14754_s12 = sld [smem:[%s16650_s0 + %s14564_s22]]   ;;  %s14568_s22 = smov 32  }
  0x36   :  { %s14759_s4 = sld [smem:[%s16650_s0 + %s14565_s28]]   ;;  %s14569_s28 = smov 33  }
  0x37   :  { %16736 = sst [smem:[#allocation52_spill]] %s14744_s30 }
  0x38   :  { %s14764_s24 = sld [smem:[%s16650_s0 + %s14566_s7]]   ;;  %s14570_s7 = smov 34  }
  0x39   :  { %16737 = sst [smem:[#allocation53_spill]] %s14749_s20 }
  0x3a   :  { %s14769_s20 = sld [smem:[%s16650_s0 + %s14567_s15]]   ;;  %s14571_s15 = smov 35  }
  0x3b   :  { %s14774_s27 = sld [smem:[%s16650_s0 + %s14568_s22]]   ;;  %s14572_s22 = smov 36  }
  0x3c   :  { %16738 = sst [smem:[#allocation54_spill]] %s14759_s4 }
  0x3d   :  { %s14779_s4 = sld [smem:[%s16650_s0 + %s14569_s28]]   ;;  %s14573_s28 = smov 37  }
  0x3e   :  { %16739 = sst [smem:[#allocation55_spill]] %s14764_s24 }
  0x3f   :  { %s14784_s8 = sld [smem:[%s16650_s0 + %s14570_s7]]   ;;  %s14574_s7 = smov 38  }
  0x40   :  { %16740 = sst [smem:[#allocation56_spill]] %s14769_s20 }
  0x41   :  { %s14789_s20 = sld [smem:[%s16650_s0 + %s14571_s15]]   ;;  %s14575_s15 = smov 39  }
  0x42   :  { %s14794_s19 = sld [smem:[%s16650_s0 + %s14572_s22]]   ;;  %s14576_s22 = smov 40  }
  0x43   :  { %16741 = sst [smem:[#allocation57_spill]] %s14779_s4 }
  0x44   :  { %s14799_s4 = sld [smem:[%s16650_s0 + %s14573_s28]]   ;;  %s14577_s28 = smov 41  }
  0x45   :  { %16742 = sst [smem:[#allocation58_spill]] %s14784_s8 }
  0x46   :  { %s14804_s8 = sld [smem:[%s16650_s0 + %s14574_s7]]   ;;  %s14578_s7 = smov 42  }
  0x47   :  { %s14809_s29 = sld [smem:[%s16650_s0 + %s14575_s15]]   ;;  %s14579_s15 = smov 43  }
  0x48   :  { %16743 = sst [smem:[#allocation59_spill]] %s14794_s19 }
  0x49   :  { %s14814_s19 = sld [smem:[%s16650_s0 + %s14576_s22]]   ;;  %s14580_s22 = smov 44  }
  0x4a   :  { %16744 = sst [smem:[#allocation60_spill]] %s14799_s4 }
  0x4b   :  { %s14819_s3 = sld [smem:[%s16650_s0 + %s14577_s28]]   ;;  %s14581_s28 = smov 45  }
  0x4c   :  { %16745 = sst [smem:[#allocation61_spill]] %s14804_s8 }
  0x4d   :  { %s14824_s8 = sld [smem:[%s16650_s0 + %s14578_s7]]   ;;  %s14582_s7 = smov 46  }
  0x4e   :  { %s14829_s25 = sld [smem:[%s16650_s0 + %s14579_s15]]   ;;  %s14583_s15 = smov 47  }
  0x4f   :  { %16746 = sst [smem:[#allocation62_spill]] %s14814_s19 }
  0x50   :  { %s14834_s19 = sld [smem:[%s16650_s0 + %s14580_s22]]   ;;  %s14584_s22 = smov 48  }
  0x51   :  { %16747 = sst [smem:[#allocation63_spill]] %s14819_s3 }
  0x52   :  { %s14839_s3 = sld [smem:[%s16650_s0 + %s14581_s28]]   ;;  %s14585_s28 = smov 49  }
  0x53   :  { %16748 = sst [smem:[#allocation64_spill]] %s14824_s8 }
  0x54   :  { %s14844_s8 = sld [smem:[%s16650_s0 + %s14582_s7]]   ;;  %s14586_s7 = smov 50  }
  0x55   :  { %s14849_s21 = sld [smem:[%s16650_s0 + %s14583_s15]]   ;;  %s14587_s15 = smov 51  }
  0x56   :  { %16749 = sst [smem:[#allocation65_spill]] %s14834_s19 }
  0x57   :  { %s14854_s19 = sld [smem:[%s16650_s0 + %s14584_s22]]   ;;  %s14588_s22 = smov 52  }
  0x58   :  { %16750 = sst [smem:[#allocation66_spill]] %s14839_s3 }
  0x59   :  { %s14859_s14 = sld [smem:[%s16650_s0 + %s14585_s28]]   ;;  %s14589_s28 = smov 53  }
  0x5a   :  { %16751 = sst [smem:[#allocation67_spill]] %s14844_s8 }
  0x5b   :  { %s14864_s8 = sld [smem:[%s16650_s0 + %s14586_s7]]  }
  0x5c   :  { %s14869_s13 = sld [smem:[%s16650_s0 + %s14587_s15]]  }
  0x5d   :  { %16752 = sst [smem:[#allocation68_spill]] %s14854_s19 }
  0x5e   :  { %s14874_s19 = sld [smem:[%s16650_s0 + %s14588_s22]]  }
  0x5f   :  { %16753 = sst [smem:[#allocation69_spill]] %s14859_s14 }
  0x60   :  { %s14879_s14 = sld [smem:[%s16650_s0 + %s14589_s28]]  }
  0x61   :  { %16754 = sst [smem:[#allocation70_spill]] %s14864_s8 }
  0x62   :  { %112 = vsyncpa [#allocation3], 0 }
  0x63   :  { %113 = vsyncpa [#allocation6], 0 }
  0x64   :  { %114 = vsyncpa [#allocation9], 0 }
  0x65   :  { %115 = vsyncpa [#allocation12], 0 }
  0x66   :  { %116 = vsyncpa [#allocation15], 0 }
  0x67   :  { %117 = vsyncpa [#allocation18], 0 }
  0x68   :  { %118 = vsyncpa [#allocation4], 0 }
  0x69   :  { %120 = vsyncpa [#allocation4 + $0x1], 0  ;;  %s14881_s7 = smov 0   ;;  %s14883_s10 = smov 0  }
  0x6a   :  { %s14885_s11 = smov 0   ;;  %s14887_s15 = smov 0  }
  0x6b LB: > { %s16755_s8 = sld [smem:[#allocation70_spill]]  ;;  %s16756_s6 = sld [smem:[#allocation48_spill]]  ;;  %s14527_s10 = sphi %s14883_s10, %s16885_s10   ;;  %s14523_s7 = sphi %s14881_s7, %s16884_s7   ;;  %s14535_s15 = sphi %s14887_s15, %s16881_s15   ;;  %s14531_s11 = sphi %s14885_s11, %s16883_s11  }
  0x6c   : > { %s16757_s4 = sld [smem:[#allocation60_spill]]  ;;  %s16758_s3 = sld [smem:[#allocation66_spill]] }
  0x6d   : > { %s16759_s30 = sld [smem:[#allocation52_spill]]  ;;  %s16760_s24 = sld [smem:[#allocation55_spill]] }
  0x6e   : > { %16761 = sst [smem:[#allocation71_spill]] %s14523_s7  ;;  %s14902_s0 = sadd.s32 4294967295, %s14535_s15  }
  0x6f   : > { %16762 = sst [smem:[#allocation72_spill]] %s14531_s11  ;;  %s11132_s16 = sadd.s32 4294967294, %s14535_s15  }
  0x70   : > { %s14906_s18 = sadd.s32 1, %s14535_s15   ;;  %s1251_s22 = sadd.s32 1, %s14531_s11 }
  0x71   : > { %16763 = sst [smem:[#allocation73_spill]] %s14906_s18  ;;  %s1248_s23 = ssub.s32 %s14535_s15, %s14906_s18 }
  0x72   : > { %p1261_p0 = scmp.ne.s32.totalorder %s14531_s11, %s14527_s10  ;;  %p1249_p1 = scmp.eq.s32.totalorder %s1248_s23, 0 }
  0x73   : > { %p1262_p2 = scmp.eq.s32.totalorder %s14902_s0, 1  ;;  %p1267_p3 = scmp.ne.s32.totalorder %s14527_s10, %s14523_s7 }
  0x74   : > { %p1268_p4 = scmp.eq.s32.totalorder %s11132_s16, 1  ;;  %p11133_p7 = scmp.ge.s32.totalorder %s14535_s15, 1 }
  0x75   : > { %s14917_s26 = scalar_select %p1249_p1, %s14531_s11, %s1251_s22  }
  0x76   : > { %p14919_p5 = por %p1262_p2, %p1261_p0  ;;  %p14923_p6 = por %p1268_p4, %p1267_p3 }
  0x77   : > { %16764 = sst [smem:[#allocation74_spill]] %s14917_s26  ;;  %p1275_p8 = scmp.lt.s32.totalorder %s14535_s15, 3 }
  0x78   : > { %s16765_s28 = scalar_select %p14919_p5, 1, 0 }
  0x79   : > { %s16766_s1 = scalar_select %p14923_p6, 1, 0 }
  0x7a   : > { %p16676_p9 = scmp.eq.s32.totalorder %s14902_s0, 0  ;;  %p14930_p10 = pnand %p11133_p7, %p1275_p8 }
  0x7b   : > { %16767 = sst [smem:[#allocation75_spill]] %s16766_s1  ;;  %s14590_s16 = smov [#allocation5]  }
  0x7c   : > { %s16768_s2 = scalar_select %p14930_p10, 1, 0 }
  0x7d   : > { %s1371_s22 = sshll.u32 %s14590_s16, 4  ;;  %p13775_p11 = pneg %p14930_p10  ;;  %s1372_s22 = int_to_ptr.vmem [resolvable:$true] %s1371_s22 }
  0x7e   : > { %s14591_s23 = smov [#allocation8]   ;;  %s14592_s18 = smov [#allocation11]  }
  0x7f   : > { %s1399_s26 = sshll.u32 %s14591_s23, 4  ;;  %p14938_p12 = pnand %p16676_p9, %p13775_p11  ;;  %s14942_s26 = int_to_ptr.vmem [resolvable:$true] %s1399_s26 }
  0x80   : > { %s1430_s1 = sshll.u32 %s14592_s18, 4  ;;  %s14141_s7 = scalar_lea.hbm %s16759_s30, 16  ;;  %s14944_s1 = int_to_ptr.vmem [resolvable:$true] %s1430_s1 }
  0x81   : > { %p14142_p13 = scmp.ne.s32.totalorder %s16759_s30, %s14141_s7  ;;  %p14950_p0 = pneg %p14938_p12 }
  0x82   : > { %p14148_p3 = scmp.lt.u32.totalorder %s14141_s7, %s16759_s30 }
  0x83   : > { %p14144_p1 = pnand %p14950_p0, %p14142_p13 }
  0x85   : > { %p14145_p2 = pneg %p14144_p1 }
  0x87   : > { %p14150_p4 = pnand %p14148_p3, %p14145_p2 }
  0x89   : > { %14153 = shalt.err (!%p14150_p4)
}
  0x8a   : > { %s14154_s23 = scalar_lea.vmem %s1372_s22, 16  ;;  %s14161_s18 = scalar_lea.vmem %s1372_s22, 32 }
  0x8b   : > { %p14155_p7 = scmp.ne.s32.totalorder %s1372_s22, %s14154_s23  ;;  %p14162_p9 = scmp.lt.s32.totalorder %s1372_s22, %s1372_s22 }
  0x8c   : > { %p14163_p6 = scmp.lt.s32.totalorder %s14161_s18, %s14154_s23 }
  0x8d   : > { %p14157_p8 = pnand %p14155_p7, %p14950_p0 }
  0x8e   : > { %p14164_p5 = por %p14163_p6, %p14162_p9 }
  0x8f   : > { %p14158_p11 = pneg %p14157_p8 }
  0x91   : > { %p14165_p10 = pnand %p14164_p5, %p14158_p11 }
  0x93   : > { %14168 = shalt.err (!%p14165_p10)
}
  0x94   : > { %13781 = dma.hbm_to_vmem [thread:$0]  (!%p14938_p12), %s16759_s30, 16, %s1372_s22, [#allocation6]  }
  0x95   : > { %s14169_s7 = scalar_lea.hbm %s16760_s24, 16 }
  0x96   : > { %p14170_p13 = scmp.ne.s32.totalorder %s16760_s24, %s14169_s7  ;;  %p14176_p3 = scmp.lt.u32.totalorder %s14169_s7, %s16760_s24 }
  0x98   : > { %p14172_p1 = pnand %p14170_p13, %p14950_p0 }
  0x9a   : > { %p14173_p2 = pneg %p14172_p1 }
  0x9c   : > { %p14178_p4 = pnand %p14176_p3, %p14173_p2 }
  0x9e   : > { %14181 = shalt.err (!%p14178_p4)
}
  0x9f   : > { %s14182_s23 = scalar_lea.vmem %s14942_s26, 16  ;;  %s14189_s18 = scalar_lea.vmem %s14942_s26, 32 }
  0xa0   : > { %p14183_p5 = scmp.ne.s32.totalorder %s14942_s26, %s14182_s23  ;;  %p14190_p10 = scmp.lt.s32.totalorder %s14942_s26, %s14942_s26 }
  0xa1   : > { %p14191_p7 = scmp.lt.s32.totalorder %s14189_s18, %s14182_s23 }
  0xa2   : > { %p14185_p6 = pnand %p14183_p5, %p14950_p0 }
  0xa3   : > { %p14192_p8 = por %p14191_p7, %p14190_p10 }
  0xa4   : > { %p14186_p9 = pneg %p14185_p6 }
  0xa6   : > { %p14193_p11 = pnand %p14192_p8, %p14186_p9 }
  0xa8   : > { %14196 = shalt.err (!%p14193_p11)
}
  0xa9   : > { %13787 = dma.hbm_to_vmem [thread:$0]  (!%p14938_p12), %s16760_s24, 16, %s14942_s26, [#allocation9]  }
  0xaa   : > { %s14197_s22 = scalar_lea.hbm %s14789_s20, 16 }
  0xab   : > { %p14198_p13 = scmp.ne.s32.totalorder %s14789_s20, %s14197_s22  ;;  %p14204_p3 = scmp.lt.u32.totalorder %s14197_s22, %s14789_s20 }
  0xad   : > { %p14200_p1 = pnand %p14198_p13, %p14950_p0 }
  0xaf   : > { %p14201_p2 = pneg %p14200_p1 }
  0xb1   : > { %p14206_p4 = pnand %p14204_p3, %p14201_p2 }
  0xb3   : > { %14209 = shalt.err (!%p14206_p4)
}
  0xb4   : > { %s14210_s7 = scalar_lea.vmem %s14944_s1, 16  ;;  %s14217_s23 = scalar_lea.vmem %s14944_s1, 32 }
  0xb5   : > { %p14211_p5 = scmp.ne.s32.totalorder %s14944_s1, %s14210_s7  ;;  %p14218_p10 = scmp.lt.s32.totalorder %s14944_s1, %s14944_s1 }
  0xb6   : > { %p14219_p7 = scmp.lt.s32.totalorder %s14217_s23, %s14210_s7 }
  0xb7   : > { %p14213_p6 = pnand %p14211_p5, %p14950_p0 }
  0xb8   : > { %p14220_p8 = por %p14219_p7, %p14218_p10 }
  0xb9   : > { %p14214_p9 = pneg %p14213_p6 }
  0xbb   : > { %p14221_p11 = pnand %p14220_p8, %p14214_p9 }
  0xbd   : > { %14224 = shalt.err (!%p14221_p11)
}
  0xbe   : > { %13793 = dma.hbm_to_vmem [thread:$0]  (!%p14938_p12), %s14789_s20, 16, %s14944_s1, [#allocation12]  }
  0xbf   : > { %s14593_s26 = smov [#allocation14]   ;;  %s14594_s22 = smov [#allocation17]  }
  0xc0   : > { %s1458_s18 = sshll.u32 %s14593_s26, 4  ;;  %s1492_s24 = sshll.u32 %s14594_s22, 4  ;;  %s1459_s18 = int_to_ptr.vmem [resolvable:$true] %s1458_s18  ;;  %s1493_s24 = int_to_ptr.vmem [resolvable:$true] %s1492_s24 }
  0xc1   : > { %s14225_s30 = scalar_lea.hbm %s14809_s29, 16 }
  0xc2   : > { %p14226_p13 = scmp.ne.s32.totalorder %s14809_s29, %s14225_s30  ;;  %p14232_p3 = scmp.lt.u32.totalorder %s14225_s30, %s14809_s29 }
  0xc4   : > { %p14228_p1 = pnand %p14226_p13, %p14950_p0 }
  0xc6   : > { %p14229_p2 = pneg %p14228_p1 }
  0xc8   : > { %p14234_p4 = pnand %p14232_p3, %p14229_p2 }
  0xca   : > { %14237 = shalt.err (!%p14234_p4)
}
  0xcb   : > { %s14238_s7 = scalar_lea.vmem %s1459_s18, 16  ;;  %s14245_s1 = scalar_lea.vmem %s1459_s18, 32 }
  0xcc   : > { %p14239_p5 = scmp.ne.s32.totalorder %s1459_s18, %s14238_s7  ;;  %p14246_p10 = scmp.lt.s32.totalorder %s1459_s18, %s1459_s18 }
  0xcd   : > { %p14247_p7 = scmp.lt.s32.totalorder %s14245_s1, %s14238_s7 }
  0xce   : > { %p14241_p6 = pnand %p14239_p5, %p14950_p0 }
  0xcf   : > { %p14248_p8 = por %p14247_p7, %p14246_p10 }
  0xd0   : > { %p14242_p9 = pneg %p14241_p6 }
  0xd2   : > { %p14249_p11 = pnand %p14248_p8, %p14242_p9 }
  0xd4   : > { %14252 = shalt.err (!%p14249_p11)
}
  0xd5   : > { %13799 = dma.hbm_to_vmem [thread:$0]  (!%p14938_p12), %s14809_s29, 16, %s1459_s18, [#allocation15]  }
  0xd6   : > { %s14253_s30 = scalar_lea.hbm %s16758_s3, 16 }
  0xd7   : > { %p14254_p13 = scmp.ne.s32.totalorder %s16758_s3, %s14253_s30  ;;  %p14260_p3 = scmp.lt.u32.totalorder %s14253_s30, %s16758_s3 }
  0xd9   : > { %p14256_p1 = pnand %p14254_p13, %p14950_p0 }
  0xdb   : > { %p14257_p2 = pneg %p14256_p1 }
  0xdd   : > { %p14262_p4 = pnand %p14260_p3, %p14257_p2 }
  0xdf   : > { %14265 = shalt.err (!%p14262_p4)
}
  0xe0   : > { %s14266_s23 = scalar_lea.vmem %s1493_s24, 16  ;;  %s14273_s26 = scalar_lea.vmem %s1493_s24, 32 }
  0xe1   : > { %p14267_p5 = scmp.ne.s32.totalorder %s1493_s24, %s14266_s23  ;;  %p14274_p10 = scmp.lt.s32.totalorder %s1493_s24, %s1493_s24 }
  0xe2   : > { %p14275_p7 = scmp.lt.s32.totalorder %s14273_s26, %s14266_s23 }
  0xe3   : > { %p14269_p6 = pnand %p14267_p5, %p14950_p0 }
  0xe4   : > { %p14276_p8 = por %p14275_p7, %p14274_p10 }
  0xe5   : > { %p14270_p9 = pneg %p14269_p6 }
  0xe7   : > { %p14277_p11 = pnand %p14276_p8, %p14270_p9 }
  0xe9   : > { %14280 = shalt.err (!%p14277_p11)
}
  0xea   : > { %13805 = dma.hbm_to_vmem [thread:$0]  (!%p14938_p12), %s16758_s3, 16, %s1493_s24, [#allocation18]  }
  0xeb   : > { %s14595_s18 = smov [#allocation2]   ;;  %s14596_s7 = smov [#allocation7]  }
  0xec   : > { %s1351_s22 = sshll.u32 %s14595_s18, 4  ;;  %s1385_s1 = sshll.u32 %s14596_s7, 4  ;;  %s1352_s22 = int_to_ptr.vmem [resolvable:$true] %s1351_s22  ;;  %s1386_s1 = int_to_ptr.vmem [resolvable:$true] %s1385_s1 }
  0xed   : > { %s14281_s30 = scalar_lea.hbm %s16756_s6, 16 }
  0xee   : > { %p14282_p13 = scmp.ne.s32.totalorder %s16756_s6, %s14281_s30  ;;  %p14288_p3 = scmp.lt.u32.totalorder %s14281_s30, %s16756_s6 }
  0xf0   : > { %p14284_p1 = pnand %p14282_p13, %p14950_p0 }
  0xf2   : > { %p14285_p2 = pneg %p14284_p1 }
  0xf4   : > { %p14290_p4 = pnand %p14288_p3, %p14285_p2 }
  0xf6   : > { %14293 = shalt.err (!%p14290_p4)
}
  0xf7   : > { %s14294_s23 = scalar_lea.vmem %s1352_s22, 16  ;;  %s14301_s24 = scalar_lea.vmem %s1352_s22, 32 }
  0xf8   : > { %p14295_p5 = scmp.ne.s32.totalorder %s1352_s22, %s14294_s23  ;;  %p14302_p10 = scmp.lt.s32.totalorder %s1352_s22, %s1352_s22 }
  0xf9   : > { %p14303_p7 = scmp.lt.s32.totalorder %s14301_s24, %s14294_s23 }
  0xfa   : > { %p14297_p6 = pnand %p14295_p5, %p14950_p0 }
  0xfb   : > { %p14304_p8 = por %p14303_p7, %p14302_p10 }
  0xfc   : > { %p14298_p9 = pneg %p14297_p6 }
  0xfe   : > { %p14305_p11 = pnand %p14304_p8, %p14298_p9 }
 0x100   : > { %14308 = shalt.err (!%p14305_p11)
}
 0x101   : > { %13778 = dma.hbm_to_vmem [thread:$0]  (!%p14938_p12), %s16756_s6, 16, %s1352_s22, [#allocation3]  }
 0x102   : > { %s14309_s26 = scalar_lea.hbm %s14754_s12, 16 }
 0x103   : > { %p14310_p13 = scmp.ne.s32.totalorder %s14754_s12, %s14309_s26  ;;  %p14316_p3 = scmp.lt.u32.totalorder %s14309_s26, %s14754_s12 }
 0x105   : > { %p14312_p1 = pnand %p14310_p13, %p14950_p0 }
 0x107   : > { %p14313_p2 = pneg %p14312_p1 }
 0x109   : > { %p14318_p4 = pnand %p14316_p3, %p14313_p2 }
 0x10b   : > { %14321 = shalt.err (!%p14318_p4)
}
 0x10c   : > { %s14322_s18 = scalar_lea.vmem %s1386_s1, 16  ;;  %s14329_s7 = scalar_lea.vmem %s1386_s1, 32 }
 0x10d   : > { %p14323_p5 = scmp.ne.s32.totalorder %s1386_s1, %s14322_s18  ;;  %p14330_p10 = scmp.lt.s32.totalorder %s1386_s1, %s1386_s1 }
 0x10e   : > { %p14331_p7 = scmp.lt.s32.totalorder %s14329_s7, %s14322_s18 }
 0x10f   : > { %p14325_p6 = pnand %p14323_p5, %p14950_p0 }
 0x110   : > { %p14332_p8 = por %p14331_p7, %p14330_p10 }
 0x111   : > { %p14326_p9 = pneg %p14325_p6 }
 0x113   : > { %p14333_p11 = pnand %p14332_p8, %p14326_p9 }
 0x115   : > { %14336 = shalt.err (!%p14333_p11)
}
 0x116   : > { %13784 = dma.hbm_to_vmem [thread:$0]  (!%p14938_p12), %s14754_s12, 16, %s1386_s1, [#allocation6]  }
 0x117   : > { %s14597_s22 = smov [#allocation10]   ;;  %s14598_s23 = smov [#allocation13]  }
 0x118   : > { %s1413_s30 = sshll.u32 %s14597_s22, 4  ;;  %s1444_s24 = sshll.u32 %s14598_s23, 4  ;;  %s1414_s30 = int_to_ptr.vmem [resolvable:$true] %s1413_s30  ;;  %s1445_s24 = int_to_ptr.vmem [resolvable:$true] %s1444_s24 }
 0x119   : > { %s14337_s26 = scalar_lea.hbm %s14774_s27, 16 }
 0x11a   : > { %p14338_p13 = scmp.ne.s32.totalorder %s14774_s27, %s14337_s26  ;;  %p14344_p3 = scmp.lt.u32.totalorder %s14337_s26, %s14774_s27 }
 0x11c   : > { %p14340_p1 = pnand %p14338_p13, %p14950_p0 }
 0x11e   : > { %p14341_p2 = pneg %p14340_p1 }
 0x120   : > { %p14346_p4 = pnand %p14344_p3, %p14341_p2 }
 0x122   : > { %14349 = shalt.err (!%p14346_p4)
}
 0x123   : > { %s14350_s18 = scalar_lea.vmem %s1414_s30, 16  ;;  %s14357_s1 = scalar_lea.vmem %s1414_s30, 32 }
 0x124   : > { %p14351_p5 = scmp.ne.s32.totalorder %s1414_s30, %s14350_s18  ;;  %p14358_p10 = scmp.lt.s32.totalorder %s1414_s30, %s1414_s30 }
 0x125   : > { %p14359_p7 = scmp.lt.s32.totalorder %s14357_s1, %s14350_s18 }
 0x126   : > { %p14353_p6 = pnand %p14351_p5, %p14950_p0 }
 0x127   : > { %p14360_p8 = por %p14359_p7, %p14358_p10 }
 0x128   : > { %p14354_p9 = pneg %p14353_p6 }
 0x12a   : > { %p14361_p11 = pnand %p14360_p8, %p14354_p9 }
 0x12c   : > { %14364 = shalt.err (!%p14361_p11)
}
 0x12d   : > { %13790 = dma.hbm_to_vmem [thread:$0]  (!%p14938_p12), %s14774_s27, 16, %s1414_s30, [#allocation9]  }
 0x12e   : > { %s14365_s7 = scalar_lea.hbm %s16757_s4, 16 }
 0x12f   : > { %p14366_p13 = scmp.ne.s32.totalorder %s16757_s4, %s14365_s7  ;;  %p14372_p3 = scmp.lt.u32.totalorder %s14365_s7, %s16757_s4 }
 0x131   : > { %p14368_p1 = pnand %p14366_p13, %p14950_p0 }
 0x133   : > { %p14369_p2 = pneg %p14368_p1 }
 0x135   : > { %p14374_p4 = pnand %p14372_p3, %p14369_p2 }
 0x137   : > { %14377 = shalt.err (!%p14374_p4)
}
 0x138   : > { %s14378_s22 = scalar_lea.vmem %s1445_s24, 16  ;;  %s14385_s23 = scalar_lea.vmem %s1445_s24, 32 }
 0x139   : > { %p14379_p5 = scmp.ne.s32.totalorder %s1445_s24, %s14378_s22  ;;  %p14386_p10 = scmp.lt.s32.totalorder %s1445_s24, %s1445_s24 }
 0x13a   : > { %p14387_p7 = scmp.lt.s32.totalorder %s14385_s23, %s14378_s22 }
 0x13b   : > { %p14381_p6 = pnand %p14379_p5, %p14950_p0 }
 0x13c   : > { %p14388_p8 = por %p14387_p7, %p14386_p10 }
 0x13d   : > { %p14382_p9 = pneg %p14381_p6 }
 0x13f   : > { %p14389_p11 = pnand %p14388_p8, %p14382_p9 }
 0x141   : > { %14392 = shalt.err (!%p14389_p11)
}
 0x142   : > { %13796 = dma.hbm_to_vmem [thread:$0]  (!%p14938_p12), %s16757_s4, 16, %s1445_s24, [#allocation12]  }
 0x143   : > { %s14599_s30 = smov [#allocation16]   ;;  %s14600_s18 = smov [#allocation19]  }
 0x144   : > { %s1478_s26 = sshll.u32 %s14599_s30, 4  ;;  %s1506_s1 = sshll.u32 %s14600_s18, 4  ;;  %s1479_s26 = int_to_ptr.vmem [resolvable:$true] %s1478_s26  ;;  %s1507_s1 = int_to_ptr.vmem [resolvable:$true] %s1506_s1 }
 0x145   : > { %s14393_s7 = scalar_lea.hbm %s14829_s25, 16 }
 0x146   : > { %p14394_p13 = scmp.ne.s32.totalorder %s14829_s25, %s14393_s7  ;;  %p14400_p3 = scmp.lt.u32.totalorder %s14393_s7, %s14829_s25 }
 0x148   : > { %p14396_p1 = pnand %p14394_p13, %p14950_p0 }
 0x14a   : > { %p14397_p2 = pneg %p14396_p1 }
 0x14c   : > { %p14402_p4 = pnand %p14400_p3, %p14397_p2 }
 0x14e   : > { %14405 = shalt.err (!%p14402_p4)
}
 0x14f   : > { %s14406_s22 = scalar_lea.vmem %s1479_s26, 16  ;;  %s14413_s24 = scalar_lea.vmem %s1479_s26, 32 }
 0x150   : > { %p14407_p5 = scmp.ne.s32.totalorder %s1479_s26, %s14406_s22  ;;  %p14414_p10 = scmp.lt.s32.totalorder %s1479_s26, %s1479_s26 }
 0x151   : > { %p14415_p7 = scmp.lt.s32.totalorder %s14413_s24, %s14406_s22 }
 0x152   : > { %p14409_p6 = pnand %p14407_p5, %p14950_p0 }
 0x153   : > { %p14416_p8 = por %p14415_p7, %p14414_p10 }
 0x154   : > { %p14410_p9 = pneg %p14409_p6 }
 0x156   : > { %p14417_p11 = pnand %p14416_p8, %p14410_p9 }
 0x158   : > { %14420 = shalt.err (!%p14417_p11)
}
 0x159   : > { %13802 = dma.hbm_to_vmem [thread:$0]  (!%p14938_p12), %s14829_s25, 16, %s1479_s26, [#allocation15]  }
 0x15a   : > { %s14421_s23 = scalar_lea.hbm %s14849_s21, 16 }
 0x15b   : > { %p14422_p13 = scmp.ne.s32.totalorder %s14849_s21, %s14421_s23  ;;  %p14428_p3 = scmp.lt.u32.totalorder %s14421_s23, %s14849_s21 }
 0x15d   : > { %p14424_p1 = pnand %p14422_p13, %p14950_p0 }
 0x15f   : > { %p14425_p2 = pneg %p14424_p1 }
 0x161   : > { %p14430_p4 = pnand %p14428_p3, %p14425_p2 }
 0x163   : > { %14433 = shalt.err (!%p14430_p4)
}
 0x164   : > { %s14434_s30 = scalar_lea.vmem %s1507_s1, 16  ;;  %s14441_s18 = scalar_lea.vmem %s1507_s1, 32 }
 0x165   : > { %p14435_p5 = scmp.ne.s32.totalorder %s1507_s1, %s14434_s30  ;;  %p14442_p10 = scmp.lt.s32.totalorder %s1507_s1, %s1507_s1 }
 0x166   : > { %p14443_p7 = scmp.lt.s32.totalorder %s14441_s18, %s14434_s30 }
 0x167   : > { %p14437_p6 = pnand %p14435_p5, %p14950_p0 }
 0x168   : > { %p14444_p8 = por %p14443_p7, %p14442_p10 }
 0x169   : > { %p14438_p9 = pneg %p14437_p6 }
 0x16b   : > { %p14445_p11 = pnand %p14444_p8, %p14438_p9 }
 0x16d   : > { %14448 = shalt.err (!%p14445_p11)
}
 0x16e   : > { %13808 = dma.hbm_to_vmem [thread:$0]  (!%p14938_p12), %s14849_s21, 16, %s1507_s1, [#allocation18]  }
 0x16f   : > { %p16771_p13 = scmp.ne.s32.totalorder %s16768_s2, 0 }
 0x171   : > { %1542 = sbr.rel (%p16771_p13) target bundleno = 8999 (0x2327), region = 232 }
 0x178   : > { %p16772_p1 = scmp.eq.s32.totalorder %s14902_s0, 0 }
 0x17a   : > { %14494 = dma.done.wait (%p16772_p1), [#allocation3], 16   ;;  %p16773_p2 = pmov %p16772_p1 }
 0x17b   : > { %p16774_p0 = pmov %p16772_p1 }
 0x17c   : > { %14496 = vsyncadd (%p16773_p2), [#allocation3], 4294967280 }
 0x17d   : > { %14498 = dma.done.wait (%p16774_p0), [#allocation6], 32   ;;  %p16775_p3 = pmov %p16774_p0 }
 0x17e   : > { %p16776_p4 = pmov %p16774_p0 }
 0x17f   : > { %14500 = vsyncadd (%p16775_p3), [#allocation6], 4294967264 }
 0x180   : > { %14502 = dma.done.wait (%p16776_p4), [#allocation9], 32   ;;  %p16777_p12 = pmov %p16774_p0 }
 0x181   : > { %p16778_p5 = pmov %p16774_p0 }
 0x182   : > { %14504 = vsyncadd (%p16777_p12), [#allocation9], 4294967264 }
 0x183   : > { %14506 = dma.done.wait (%p16778_p5), [#allocation12], 32   ;;  %p16779_p6 = pmov %p16774_p0 }
 0x184   : > { %p16780_p9 = pmov %p16774_p0 }
 0x185   : > { %14508 = vsyncadd (%p16779_p6), [#allocation12], 4294967264 }
 0x186   : > { %14510 = dma.done.wait (%p16780_p9), [#allocation15], 32   ;;  %p16781_p10 = pmov %p16774_p0 }
 0x187   : > { %p16782_p7 = pmov %p16774_p0 }
 0x188   : > { %14512 = vsyncadd (%p16781_p10), [#allocation15], 4294967264 }
 0x189   : > { %14514 = dma.done.wait (%p16782_p7), [#allocation18], 32   ;;  %p16783_p8 = pmov %p16774_p0 }
 0x18a   : > { %s16784_s5 = sld [smem:[#allocation28_spill]]  ;;  %v14601_v0 = vmov 0   ;;  %p1706_p11 = scmp.lt.s32.totalorder %s14902_s0, 1  ;;  %v13936_v1 = vld [vmem:[%s14619_s9] sm:$0xff]   ;;  %v13937_v2 = vld [vmem:[%s14619_s9 + $0x8] sm:$0xff]   ;;  %v13938_v3 = vld [vmem:[%s14619_s9 + $0x10] sm:$0xff]  }
 0x18b   : > { %14516 = vsyncadd (%p16783_p8), [#allocation18], 4294967264  ;;  %1859 = vmatprep.subr.bf16.mxu0 %v14601_v0  ;;  %vm1852_vm0 = vcmask 1040384   ;;  %vm1839_vm1 = vcmask 154624   ;;  %v13939_v4 = vld [vmem:[%s14619_s9 + $0x18] sm:$0xff]   ;;  %vm1853_vm2 = vcmask 1041408  }
 0x18c   : > { %s1707_s11 = scalar_select %p1706_p11, %s14902_s0, 1  ;;  %1860 = vmatpush1.bf16.msra.mxu0 %v13936_v1  ;;  %v14602_v6 = vmov 65535   ;;  %v13940_v8 = vld [vmem:[%s14619_s9 + $0x20] sm:$0xff]   ;;  %v13941_v10 = vld [vmem:[%s14619_s9 + $0x28] sm:$0xff]   ;;  %v13942_v11 = vld [vmem:[%s14619_s9 + $0x30] sm:$0xff]   ;;  %vm1959_vm3 = vcmask 261120  }
 0x18d   : > { %1861 = vmatprep.subr.bf16.mxu0 %v14601_v0  ;;  %v1854_v7 = vsel %vm1852_vm0, 4294967295, %v14602_v6  ;;  %v13943_v12 = vld [vmem:[%s14619_s9 + $0x38] sm:$0xff]   ;;  %v13944_v13 = vld [vmem:[%s14619_s9 + $0x40] sm:$0xff]   ;;  %v13945_v14 = vld [vmem:[%s14619_s9 + $0x48] ss:$0 sps:$4 sm:$0x33]  }
 0x18e   : > { %s11912_s2 = sshll.u32 %s1707_s11, 6  ;;  %v1855_v9 = vsel %vm1853_vm2, %v1854_v7, 0  ;;  %s16785_s26 = sld [smem:[#allocation29_spill]]  ;;  %v13958_v23 = vld [vmem:[%s14629_s17] sm:$0xff]   ;;  %v13959_v24 = vld [vmem:[%s14629_s17 + $0x8] sm:$0xff]   ;;  %vm2077_vm4 = vcmask 523264  }
 0x18f   : > { %v1857_v15 = vand.u32 %v13945_v14, %v1855_v9  ;;  %12413 = vmatprep.subr.bf16.mxu1 %v13958_v23  ;;  %s16790_s1 = sld [smem:[#allocation35_spill]]  ;;  %s16791_s7 = sld [smem:[#allocation30_spill]]  ;;  %vm2285_vm5 = vcmask 1043456   ;;  %vm2272_vm6 = vcmask 64512   ;;  %vm14604_vm7 = vmmov 0  }
 0x190   : > { %1862 = vmatpush1.bf16.msra.mxu0 %v13937_v2  ;;  %s15106_s16 = scalar_lea.vmem %s16784_s5, %s11912_s2  ;;  %12414 = vmatpush3.bf16.msra.mxu1 %v13958_v23  ;;  %s16794_s22 = sld [smem:[#allocation31_spill]]  ;;  %vm6242_vm8 = vcmask 130048   ;;  %vm8615_vm9 = vcmask 195584   ;;  %vm9721_vm10 = vcmask 785408   ;;  %vm9768_vm11 = vcmask 31744  }
 0x191   : > { %1863 = vmatprep.subr.bf16.mxu0 %v14601_v0  ;;  %v13948_v5 = vld [vmem:[%s15106_s16 + $0x4] ss:$8 sps:$4 sm:$0xff]   ;;  %v13946_v16 = vld [vmem:[%s15106_s16] ss:$8 sps:$4 sm:$0xff]   ;;  %v13949_v17 = vld [vmem:[%s15106_s16 + $0x14] ss:$8 sps:$4 sm:$0xff]   ;;  %12415 = vmatprep.subr.bf16.mxu1 %v13959_v24 }
 0x192   : > { %11180 = vmatprep.mubr.msk.bf16.mxu0 %vm1839_vm1, %v13948_v5  ;;  %v13951_v18 = vld [vmem:[%s15106_s16 + $0x10] ss:$8 sps:$4 sm:$0xff]   ;;  %v13952_v19 = vld [vmem:[%s15106_s16 + $0x24] ss:$8 sps:$4 sm:$0xff]   ;;  %v13954_v20 = vld [vmem:[%s15106_s16 + $0x20] ss:$8 sps:$4 sm:$0xff]  }
 0x193   : > { %v13955_v21 = vld [vmem:[%s15106_s16 + $0x34] ss:$8 sps:$4 sm:$0xff]   ;;  %v13957_v22 = vld [vmem:[%s15106_s16 + $0x30] ss:$8 sps:$4 sm:$0xff]   ;;  %s16795_s24 = sld [smem:[#allocation33_spill]]  ;;  %s16811_s23 = sld [smem:[#allocation32_spill]] }
 0x194   : > { %1864 = vmatpush1.bf16.msra.mxu0 %v13938_v3  ;;  %12416 = vmatpush3.bf16.msra.mxu1 %v13959_v24  ;;  %v11161_v25 = vld [vmem:[%s16785_s26] ss:$0 sm:$0xff]  ;;  %s16821_s30 = sld [smem:[#allocation36_spill]]  ;;  %s16822_s18 = sld [smem:[#allocation34_spill]] }
 0x195   : > { %1865 = vmatprep.subr.bf16.mxu0 %v14601_v0  ;;  %v13960_v62 = vld [vmem:[%s16790_s1] sm:$0xff]   ;;  %s16831_s11 = sld [smem:[#allocation42_spill]]  ;;  %s16837_s16 = sld [smem:[#allocation37_spill]] }
 0x196   : > { %v13962_v63 = vld [vmem:[%s16790_s1 + $0x60] sm:$0xff]   ;;  %s16840_s26 = sld [smem:[#allocation38_spill]]  ;;  %p16877_p1 = scmp.ne.s32.totalorder %s16765_s28, 0 }
 0x198   : > { %1866 = vmatpush1.bf16.msra.mxu0 %v13939_v4 }
 0x199   : > { %1867 = vmatprep.subr.bf16.mxu0 %v14601_v0 }
 0x19b   : > { %s16832_s2 = smov %s16831_s11 }
 0x19c   : > { %1868 = vmatpush1.bf16.msra.mxu0 %v13940_v8 }
 0x19d   : > { %1869 = vmatprep.subr.bf16.mxu0 %v14601_v0 }
 0x1a0   : > { %1870 = vmatpush1.bf16.msra.mxu0 %v13941_v10 }
 0x1a1   : > { %1871 = vmatprep.subr.bf16.mxu0 %v14601_v0 }
 0x1a4   : > { %1872 = vmatpush1.bf16.msra.mxu0 %v13942_v11 }
 0x1a5   : > { %1873 = vmatprep.subr.bf16.mxu0 %v14601_v0 }
 0x1a8   : > { %1874 = vmatpush1.bf16.msra.mxu0 %v13943_v12 }
 0x1a9   : > { %1875 = vmatprep.subr.bf16.mxu0 %v14601_v0 }
 0x1ac   : > { %1876 = vmatpush1.bf16.msra.mxu0 %v13944_v13 }
 0x1ad   : > { %1877 = vmatprep.subr.bf16.mxu0 %v14601_v0  ;;  %v11184_v0 = vld [vmem:[%s16791_s7] ss:$0 sm:$0xff]  ;;  %s16841_s7 = sld [smem:[#allocation40_spill]] }
 0x1b0   : > { %1878 = vmatpush1.bf16.msra.mxu0 %v1857_v15 }
 0x1b3   : > { %1892 = vmatmul.mubr.bf16.vlgmr.msra.gmra.mrb[0].mxu0 %v13946_v16 }
 0x1b4   : > { %11181 = vmatprep.mubr.msk.bf16.mxu0 %vm1839_vm1, %v13949_v17 }
 0x1bb   : > { %1900 = vmatmul.mubr.bf16.gmra.mrb[4].mxu0 %v13951_v18 }
 0x1bc   : > { %11182 = vmatprep.mubr.msk.bf16.mxu0 %vm1839_vm1, %v13952_v19 }
 0x1c3   : > { %1908 = vmatmul.mubr.bf16.gmra.mrb[8].mxu0 %v13954_v20 }
 0x1c4   : > { %11183 = vmatprep.mubr.msk.bf16.mxu0 %vm1839_vm1, %v13955_v21 }
 0x1cb   : > { %1916 = vmatmul.mubr.bf16.gmra.mrb[12].mxu0 %v13957_v22 }
 0x1cc   : > { %12511 = vmatprep.mubr.msk.bf16.mxu0 %vm2077_vm4, %v13962_v63  ;;  %v13980_v63 = vld [vmem:[%s16790_s1 + $0xc0] sm:$0xff]  }
 0x286   : > { %v1893_v26 = vpop.f32.mrb[0].mxu0 }
 0x287   : > { %v15131_v27 = vadd.f32 %v11161_v25, %v1893_v26  ;;  %v1895_v28 = vpop.f32.mrb[1].mxu0 }
 0x288   : > { %v1896_v29 = vpop.f32.mrb[2].mxu0 }
 0x289   : > { %v15133_v30 = vadd.f32 %v11161_v25, %v1896_v29  ;;  %v1898_v31 = vpop.f32.mrb[3].mxu0  ;;  %v16688_v32 = vmax.f32 %v15131_v27, 0.0 }
 0x28a   : > { %v13961_v31 = vld [vmem:[%s16790_s1 + $0x8] sm:$0xff]  }
 0x28b   : > { %16786 = vst [vmem:[#allocation76_spill] sm:$0xff] %v15133_v30  ;;  %v16685_v33 = vmax.f32 %v15133_v30, 0.0 }
 0x28d   : > { %v1936_v34 = vpack.c.bf16 %v16685_v33, %v16688_v32 }
 0x28e   : > { %v1901_v35 = vpop.f32.mrb[4].mxu0 }
 0x28f   : > { %v15141_v36 = vadd.f32 %v11161_v25, %v1901_v35  ;;  %v1903_v37 = vpop.f32.mrb[5].mxu0  ;;  %12417 = vmatprep.mubr.msk.bf16.mxu1 %vm1959_vm3, %v1936_v34  ;;  %v13963_v34 = vld [vmem:[%s16790_s1 + $0x68] sm:$0xff]   ;;  %v13964_v35 = vld [vmem:[%s16790_s1 + $0x10] sm:$0xff]  }
 0x290   : > { %v1904_v38 = vpop.f32.mrb[6].mxu0  ;;  %v13966_v37 = vld [vmem:[%s16790_s1 + $0x70] sm:$0xff]  }
 0x291   : > { %v15144_v39 = vadd.f32 %v11161_v25, %v1904_v38  ;;  %v1906_v40 = vpop.f32.mrb[7].mxu0  ;;  %v16687_v41 = vmax.f32 %v15141_v36, 0.0  ;;  %v13965_v38 = vld [vmem:[%s16790_s1 + $0x18] sm:$0xff]  }
 0x292   : > { %v13967_v40 = vld [vmem:[%s16790_s1 + $0x78] sm:$0xff]  }
 0x293   : > { %16787 = vst [vmem:[#allocation77_spill] sm:$0xff] %v15144_v39  ;;  %v16686_v42 = vmax.f32 %v15144_v39, 0.0 }
 0x295   : > { %v1937_v43 = vpack.c.bf16 %v16686_v42, %v16687_v41 }
 0x296   : > { %v1909_v44 = vpop.f32.mrb[8].mxu0 }
 0x297   : > { %v15152_v45 = vadd.f32 %v11161_v25, %v1909_v44  ;;  %v1911_v46 = vpop.f32.mrb[9].mxu0  ;;  %12418 = vmatmul.mubr.msk.bf16.vlgmr.msra.gmra.mrb[0].mxu1 %vm1959_vm3, %v1937_v43  ;;  %v13968_v43 = vld [vmem:[%s16790_s1 + $0x20] sm:$0xff]  }
 0x298   : > { %v1912_v47 = vpop.f32.mrb[10].mxu0  ;;  %v13970_v44 = vld [vmem:[%s16790_s1 + $0x80] sm:$0xff]   ;;  %v13969_v46 = vld [vmem:[%s16790_s1 + $0x28] sm:$0xff]  }
 0x299   : > { %16788 = vst [vmem:[#allocation78_spill] sm:$0xff] %v15152_v45  ;;  %v15155_v48 = vadd.f32 %v11161_v25, %v1912_v47  ;;  %v1914_v49 = vpop.f32.mrb[11].mxu0  ;;  %v16684_v50 = vmax.f32 %v15152_v45, 0.0  ;;  %v13971_v47 = vld [vmem:[%s16790_s1 + $0x88] sm:$0xff]  }
 0x29a   : > { %v13972_v49 = vld [vmem:[%s16790_s1 + $0x30] sm:$0xff]  }
 0x29b   : > { %16789 = vst [vmem:[#allocation79_spill] sm:$0xff] %v15155_v48  ;;  %v16681_v51 = vmax.f32 %v15155_v48, 0.0 }
 0x29d   : > { %v1938_v52 = vpack.c.bf16 %v16681_v51, %v16684_v50 }
 0x29e   : > { %v1917_v53 = vpop.f32.mrb[12].mxu0 }
 0x29f   : > { %v15163_v54 = vadd.f32 %v11161_v25, %v1917_v53  ;;  %v1919_v55 = vpop.f32.mrb[13].mxu0  ;;  %12421 = vmatprep.mubr.msk.bf16.mxu1 %vm1959_vm3, %v1938_v52  ;;  %v13974_v52 = vld [vmem:[%s16790_s1 + $0x90] sm:$0xff]   ;;  %v13973_v53 = vld [vmem:[%s16790_s1 + $0x38] sm:$0xff]  }
 0x2a0   : > { %v1920_v56 = vpop.f32.mrb[14].mxu0  ;;  %v13975_v55 = vld [vmem:[%s16790_s1 + $0x98] sm:$0xff]  }
 0x2a1   : > { %16792 = vst [vmem:[#allocation80_spill] sm:$0xff] %v15163_v54  ;;  %v15166_v57 = vadd.f32 %v11161_v25, %v1920_v56  ;;  %v1922_v58 = vpop.f32.mrb[15].mxu0  ;;  %v16683_v59 = vmax.f32 %v15163_v54, 0.0  ;;  %v13976_v56 = vld [vmem:[%s16790_s1 + $0xa0] sm:$0xff]  }
 0x2a2   : > { %v13977_v58 = vld [vmem:[%s16790_s1 + $0xa8] sm:$0xff]  }
 0x2a3   : > { %16793 = vst [vmem:[#allocation81_spill] sm:$0xff] %v15166_v57  ;;  %v16682_v60 = vmax.f32 %v15166_v57, 0.0 }
 0x2a5   : > { %v1939_v61 = vpack.c.bf16 %v16682_v60, %v16683_v59 }
 0x2a7   : > { %12422 = vmatmul.mubr.msk.bf16.gmra.mrb[4].mxu1 %vm1959_vm3, %v1939_v61  ;;  %v13978_v61 = vld [vmem:[%s16790_s1 + $0xb0] sm:$0xff]  }
 0x2a8   : > { %12433 = vmatprep.mubr.msk.bf16.mxu1 %vm2077_vm4, %v13960_v62  ;;  %v13979_v62 = vld [vmem:[%s16790_s1 + $0xb8] sm:$0xff]  }
 0x36a   : > { %v12419_v1 = vpop.f32.mrb[0].mxu1 }
 0x36b   : > { %v2015_v2 = vadd.f32 %v12419_v1, %v11184_v0  ;;  %v2006_v3 = vpop.f32.mrb[1].mxu1  ;;  %v13982_v1 = vld [vmem:[%s16790_s1 + $0xd0] sm:$0xff]  }
 0x36c   : > { %v2007_v4 = vadd.f32 %v11184_v0, %v2006_v3  ;;  %v12420_v5 = vpop.f32.mrb[2].mxu1  ;;  %v13984_v3 = vld [vmem:[%s16790_s1 + $0xe0] sm:$0xff]  }
 0x36d   : > { %v2018_v6 = vadd.f32 %v12420_v5, %v11184_v0  ;;  %v2009_v7 = vpop.f32.mrb[3].mxu1  ;;  %v2039_v9 = vmax.f32 %v2015_v2, 0.0  ;;  %v13983_v2 = vld [vmem:[%s16790_s1 + $0xd8] sm:$0xff]   ;;  %v11215_v5 = vld [vmem:[%s16794_s22 + $0x4] sm:$0xf] }
 0x36e   : > { %v2010_v8 = vadd.f32 %v11184_v0, %v2009_v7  ;;  %v2037_v11 = vmax.f32 %v2007_v4, 0.0  ;;  %v13985_v4 = vld [vmem:[%s16790_s1 + $0xe8] sm:$0xff]   ;;  %v2155_v7 = vld [vmem:[%s16794_s22] sm:$0xf] }
 0x36f   : > { %v2040_v10 = vmax.f32 %v2018_v6, 0.0  ;;  %v2287_v6 = vsel %vm2285_vm5, %v11215_v5, 0 }
 0x370   : > { %v2038_v12 = vmax.f32 %v2010_v8, 0.0  ;;  %v13990_v8 = vld [vmem:[%s16790_s1 + $0xf0] sm:$0xff]  }
 0x371   : > { %v15180_v13 = vpack.c.bf16 %v2040_v10, %v2039_v9  ;;  %v13991_v9 = vld [vmem:[%s16790_s1 + $0xf8] sm:$0xff]   ;;  %v13992_v10 = vld [vmem:[%s16790_s1 + $0x100] sm:$0xff]  }
 0x372   : > { %v15182_v14 = vpack.c.bf16 %v2038_v12, %v2037_v11  ;;  %v13993_v11 = vld [vmem:[%s16790_s1 + $0x108] sm:$0xff]   ;;  %v13994_v12 = vld [vmem:[%s16790_s1 + $0x110] sm:$0xff]  }
 0x374   : > { %12425 = vmatprep.subr.bf16.mxu1 %v15182_v14  ;;  %12503 = vmatprep.subr.bf16.mxu0 %v15182_v14 }
 0x375   : > { %12426 = vmatpush3.bf16.msra.mxu1 %v15182_v14  ;;  %12504 = vmatpush3.bf16.msra.mxu0 %v15182_v14 }
 0x376   : > { %12427 = vmatprep.subr.bf16.mxu1 %v15180_v13  ;;  %12505 = vmatprep.subr.bf16.mxu0 %v15180_v13 }
 0x379   : > { %12428 = vmatpush3.bf16.msra.mxu1 %v15180_v13  ;;  %12506 = vmatpush3.bf16.msra.mxu0 %v15180_v13 }
 0x37a   : > { %v12423_v15 = vpop.f32.mrb[4].mxu1 }
 0x37b   : > { %v2031_v16 = vadd.f32 %v12423_v15, %v11184_v0  ;;  %v2022_v17 = vpop.f32.mrb[5].mxu1  ;;  %v13995_v15 = vld [vmem:[%s16790_s1 + $0x118] sm:$0xff]  }
 0x37c   : > { %v2023_v18 = vadd.f32 %v11184_v0, %v2022_v17  ;;  %v12424_v19 = vpop.f32.mrb[6].mxu1 }
 0x37d   : > { %v2034_v20 = vadd.f32 %v12424_v19, %v11184_v0  ;;  %v2025_v21 = vpop.f32.mrb[7].mxu1  ;;  %v2043_v23 = vmax.f32 %v2031_v16, 0.0 }
 0x37e   : > { %v2026_v22 = vadd.f32 %v11184_v0, %v2025_v21  ;;  %v2041_v25 = vmax.f32 %v2023_v18, 0.0  ;;  %v13981_v0 = vld [vmem:[%s16790_s1 + $0xc8] sm:$0xff]  }
 0x37f   : > { %v2044_v24 = vmax.f32 %v2034_v20, 0.0 }
 0x380   : > { %v2042_v26 = vmax.f32 %v2026_v22, 0.0 }
 0x381   : > { %v15192_v28 = vpack.c.bf16 %v2044_v24, %v2043_v23 }
 0x382   : > { %v15194_v29 = vpack.c.bf16 %v2042_v26, %v2041_v25 }
 0x384   : > { %12429 = vmatprep.subr.bf16.mxu1 %v15194_v29  ;;  %12507 = vmatprep.subr.bf16.mxu0 %v15194_v29 }
 0x385   : > { %12430 = vmatpush3.bf16.msra.mxu1 %v15194_v29  ;;  %12508 = vmatpush3.bf16.msra.mxu0 %v15194_v29 }
 0x386   : > { %12431 = vmatprep.subr.bf16.mxu1 %v15192_v28  ;;  %12509 = vmatprep.subr.bf16.mxu0 %v15192_v28 }
 0x389   : > { %12432 = vmatpush3.bf16.msra.mxu1 %v15192_v28  ;;  %12510 = vmatpush3.bf16.msra.mxu0 %v15192_v28 }
 0x38a   : > { %12441 = vmatprep.subr.bf16.mxu1 %v15182_v14  ;;  %12529 = vmatprep.subr.bf16.mxu0 %v15182_v14 }
 0x38c   : > { %12434 = vmatmul.mubr.msk.bf16.vlgmr.msra.gmra.mrb[8].mxu1 %vm2077_vm4, %v13961_v31  ;;  %12512 = vmatmul.mubr.msk.bf16.vlgmr.msra.gmra.mrb[16].mxu0 %vm2077_vm4, %v13963_v34 }
 0x38d   : > { %12442 = vmatpush3.bf16.msra.mxu1 %v15182_v14  ;;  %12530 = vmatpush3.bf16.msra.mxu0 %v15182_v14 }
 0x38e   : > { %12443 = vmatprep.subr.bf16.mxu1 %v15180_v13  ;;  %12531 = vmatprep.subr.bf16.mxu0 %v15180_v13 }
 0x38f   : > { %12437 = vmatprep.mubr.msk.bf16.mxu1 %vm2077_vm4, %v13964_v35  ;;  %12515 = vmatprep.mubr.msk.bf16.mxu0 %vm2077_vm4, %v13966_v37 }
 0x391   : > { %12444 = vmatpush3.bf16.msra.mxu1 %v15180_v13  ;;  %12532 = vmatpush3.bf16.msra.mxu0 %v15180_v13 }
 0x392   : > { %12445 = vmatprep.subr.bf16.mxu1 %v15194_v29  ;;  %12533 = vmatprep.subr.bf16.mxu0 %v15194_v29 }
 0x394   : > { %12438 = vmatmul.mubr.msk.bf16.gmra.mrb[12].mxu1 %vm2077_vm4, %v13965_v38  ;;  %12516 = vmatmul.mubr.msk.bf16.gmra.mrb[20].mxu0 %vm2077_vm4, %v13967_v40 }
 0x395   : > { %12446 = vmatpush3.bf16.msra.mxu1 %v15194_v29  ;;  %12534 = vmatpush3.bf16.msra.mxu0 %v15194_v29 }
 0x396   : > { %12447 = vmatprep.subr.bf16.mxu1 %v15192_v28  ;;  %12535 = vmatprep.subr.bf16.mxu0 %v15192_v28 }
 0x397   : > { %12449 = vmatprep.mubr.msk.bf16.mxu1 %vm2077_vm4, %v13968_v43  ;;  %12537 = vmatprep.mubr.msk.bf16.mxu0 %vm2077_vm4, %v13970_v44  ;;  %v2367_v44 = vsel %vm2285_vm5, %v2155_v7, 0 }
 0x399   : > { %12448 = vmatpush3.bf16.msra.mxu1 %v15192_v28  ;;  %12536 = vmatpush3.bf16.msra.mxu0 %v15192_v28 }
 0x39a   : > { %12555 = vmatprep.subr.bf16.mxu0 %v15182_v14  ;;  %13709 = vmatprep.subr.msk.bf16.mxu1 %vm2285_vm5, %v11215_v5 }
 0x39c   : > { %12450 = vmatmul.mubr.msk.bf16.vlgmr.msra.gmra.mrb[16].mxu1 %vm2077_vm4, %v13969_v46  ;;  %12538 = vmatmul.mubr.msk.bf16.vlgmr.msra.gmra.mrb[24].mxu0 %vm2077_vm4, %v13971_v47 }
 0x39d   : > { %12556 = vmatpush3.bf16.msra.mxu0 %v15182_v14  ;;  %12453 = vmatprep.mubr.msk.bf16.mxu1 %vm2077_vm4, %v13972_v49 }
 0x39e   : > { %12557 = vmatprep.subr.bf16.mxu0 %v15180_v13  ;;  %12541 = vmatprep.mubr.msk.bf16.mxu0 %vm2077_vm4, %v13974_v52 }
 0x39f   : > { %12458 = vmatpush3.bf16.msra.mxu1 %v2287_v6 }
 0x3a0   : > { %13710 = vmatprep.subr.msk.bf16.mxu1 %vm2285_vm5, %v2155_v7  ;;  %v15495_v7 = vld [vmem:[%s16795_s24] sm:$0xf]  ;;  %s16842_s24 = sld [smem:[#allocation39_spill]] }
 0x3a1   : > { %12558 = vmatpush3.bf16.msra.mxu0 %v15180_v13 }
 0x3a2   : > { %12559 = vmatprep.subr.bf16.mxu0 %v15194_v29 }
 0x3a4   : > { %12454 = vmatmul.mubr.msk.bf16.gmra.mrb[20].mxu1 %vm2077_vm4, %v13973_v53  ;;  %12542 = vmatmul.mubr.msk.bf16.gmra.mrb[28].mxu0 %vm2077_vm4, %v13975_v55 }
 0x3a5   : > { %12560 = vmatpush3.bf16.msra.mxu0 %v15194_v29  ;;  %12563 = vmatprep.mubr.msk.bf16.mxu0 %vm2077_vm4, %v13976_v56  ;;  %v13986_v56 = vld [vmem:[%s16790_s1 + $0x40] sm:$0xff]  }
 0x3a6   : > { %12561 = vmatprep.subr.bf16.mxu0 %v15192_v28 }
 0x3a9   : > { %12562 = vmatpush3.bf16.msra.mxu0 %v15192_v28 }
 0x3aa   : > { %12581 = vmatprep.subr.bf16.mxu0 %v15182_v14 }
 0x3ac   : > { %12564 = vmatmul.mubr.msk.bf16.vlgmr.msra.gmra.mrb[32].mxu0 %vm2077_vm4, %v13977_v58  ;;  %v13987_v58 = vld [vmem:[%s16790_s1 + $0x48] sm:$0xff]  }
 0x3ad   : > { %12582 = vmatpush3.bf16.msra.mxu0 %v15182_v14  ;;  %12567 = vmatprep.mubr.msk.bf16.mxu0 %vm2077_vm4, %v13978_v61  ;;  %v13988_v61 = vld [vmem:[%s16790_s1 + $0x50] sm:$0xff]  }
 0x3ae   : > { %12583 = vmatprep.subr.bf16.mxu0 %v15180_v13 }
 0x3b1   : > { %12584 = vmatpush3.bf16.msra.mxu0 %v15180_v13 }
 0x3b2   : > { %12585 = vmatprep.subr.bf16.mxu0 %v15194_v29 }
 0x3b4   : > { %12568 = vmatmul.mubr.msk.bf16.gmra.mrb[36].mxu0 %vm2077_vm4, %v13979_v62  ;;  %v13989_v62 = vld [vmem:[%s16790_s1 + $0x58] sm:$0xff]   ;;  %s16853_s1 = sld [smem:[#allocation53_spill]] }
 0x3b5   : > { %12586 = vmatpush3.bf16.msra.mxu0 %v15194_v29  ;;  %12589 = vmatprep.mubr.msk.bf16.mxu0 %vm2077_vm4, %v13980_v63 }
 0x3b6   : > { %12587 = vmatprep.subr.bf16.mxu0 %v15192_v28 }
 0x3b9   : > { %12588 = vmatpush3.bf16.msra.mxu0 %v15192_v28 }
 0x3ba   : > { %12607 = vmatprep.subr.bf16.mxu0 %v15182_v14 }
 0x3bc   : > { %12590 = vmatmul.mubr.msk.bf16.vlgmr.msra.gmra.mrb[40].mxu0 %vm2077_vm4, %v13981_v0 }
 0x3bd   : > { %12608 = vmatpush3.bf16.msra.mxu0 %v15182_v14  ;;  %12593 = vmatprep.mubr.msk.bf16.mxu0 %vm2077_vm4, %v13982_v1 }
 0x3be   : > { %12609 = vmatprep.subr.bf16.mxu0 %v15180_v13 }
 0x3c1   : > { %12610 = vmatpush3.bf16.msra.mxu0 %v15180_v13 }
 0x3c2   : > { %12611 = vmatprep.subr.bf16.mxu0 %v15194_v29 }
 0x3c4   : > { %12594 = vmatmul.mubr.msk.bf16.gmra.mrb[44].mxu0 %vm2077_vm4, %v13983_v2 }
 0x3c5   : > { %12612 = vmatpush3.bf16.msra.mxu0 %v15194_v29  ;;  %12615 = vmatprep.mubr.msk.bf16.mxu0 %vm2077_vm4, %v13984_v3 }
 0x3c6   : > { %12613 = vmatprep.subr.bf16.mxu0 %v15192_v28 }
 0x3c9   : > { %12614 = vmatpush3.bf16.msra.mxu0 %v15192_v28 }
 0x3ca   : > { %12633 = vmatprep.subr.bf16.mxu0 %v15182_v14 }
 0x3cc   : > { %12616 = vmatmul.mubr.msk.bf16.vlgmr.msra.gmra.mrb[48].mxu0 %vm2077_vm4, %v13985_v4 }
 0x3cd   : > { %12634 = vmatpush3.bf16.msra.mxu0 %v15182_v14  ;;  %12619 = vmatprep.mubr.msk.bf16.mxu0 %vm2077_vm4, %v13990_v8 }
 0x3ce   : > { %12635 = vmatprep.subr.bf16.mxu0 %v15180_v13 }
 0x3d1   : > { %12636 = vmatpush3.bf16.msra.mxu0 %v15180_v13 }
 0x3d2   : > { %12637 = vmatprep.subr.bf16.mxu0 %v15194_v29 }
 0x3d4   : > { %12620 = vmatmul.mubr.msk.bf16.gmra.mrb[52].mxu0 %vm2077_vm4, %v13991_v9 }
 0x3d5   : > { %12638 = vmatpush3.bf16.msra.mxu0 %v15194_v29  ;;  %12641 = vmatprep.mubr.msk.bf16.mxu0 %vm2077_vm4, %v13992_v10 }
 0x3d6   : > { %12639 = vmatprep.subr.bf16.mxu0 %v15192_v28 }
 0x3d9   : > { %12640 = vmatpush3.bf16.msra.mxu0 %v15192_v28 }
 0x3da   : > { %13718 = vmatprep.subr.msk.bf16.mxu0 %vm2285_vm5, %v15495_v7 }
 0x3dc   : > { %12642 = vmatmul.mubr.msk.bf16.vlgmr.msra.gmra.mrb[56].mxu0 %vm2077_vm4, %v13993_v11 }
 0x3dd   : > { %12645 = vmatprep.mubr.msk.bf16.mxu0 %vm2077_vm4, %v13994_v12 }
 0x3e4   : > { %12646 = vmatmul.mubr.msk.bf16.gmra.mrb[60].mxu0 %vm2077_vm4, %v13995_v15  ;;  %v11282_v15 = vld [vmem:[%s16794_s22 + $0x10] sm:$0xf] }
 0x45f   : > { %v12435_v16 = vpop.f32.mrb[8].mxu1  ;;  %v15348_v63 = vpop.f32.mrb[16].mxu0 }
 0x460   : > { %v2124_v17 = vpop.f32.mrb[9].mxu1 }
 0x461   : > { %v12436_v18 = vpop.f32.mrb[10].mxu1 }
 0x462   : > { %v2157_v19 = vpack.c.bf16 %v12436_v18, %v12435_v16  ;;  %v2127_v20 = vpop.f32.mrb[11].mxu1 }
 0x463   : > { %v2156_v21 = vpack.c.bf16 %v2127_v20, %v2124_v17 }
 0x467   : > { %v12439_v22 = vpop.f32.mrb[12].mxu1 }
 0x468   : > { %v2140_v23 = vpop.f32.mrb[13].mxu1 }
 0x469   : > { %v12440_v24 = vpop.f32.mrb[14].mxu1 }
 0x46a   : > { %v2159_v25 = vpack.c.bf16 %v12440_v24, %v12439_v22  ;;  %v2143_v26 = vpop.f32.mrb[15].mxu1 }
 0x46b   : > { %v2158_v31 = vpack.c.bf16 %v2143_v26, %v2140_v23 }
 0x46f   : > { %v12451_v34 = vpop.f32.mrb[16].mxu1 }
 0x470   : > { %v2235_v35 = vpop.f32.mrb[17].mxu1 }
 0x471   : > { %v12452_v37 = vpop.f32.mrb[18].mxu1 }
 0x472   : > { %v2269_v38 = vpack.c.bf16 %v12452_v37, %v12451_v34  ;;  %v2238_v40 = vpop.f32.mrb[19].mxu1 }
 0x473   : > { %v2268_v43 = vpack.c.bf16 %v2238_v40, %v2235_v35 }
 0x475   : > { %12459 = vmatprep.mubr.msk.bf16.mxu1 %vm2272_vm6, %v2268_v43 }
 0x476   : > { %12460 = vmatmul.mubr.msk.bf16.vlgmr.msra.gmra.mrb[24].mxu1 %vm2272_vm6, %v2269_v38 }
 0x477   : > { %12468 = vmatpush3.bf16.msra.mxu1 %v2367_v44  ;;  %v12455_v46 = vpop.f32.mrb[20].mxu1 }
 0x478   : > { %12477 = vmatprep.subr.bf16.mxu1 %v15182_v14  ;;  %v2251_v47 = vpop.f32.mrb[21].mxu1 }
 0x479   : > { %v12456_v49 = vpop.f32.mrb[22].mxu1 }
 0x47a   : > { %v2271_v52 = vpack.c.bf16 %v12456_v49, %v12455_v46  ;;  %v2254_v53 = vpop.f32.mrb[23].mxu1 }
 0x47b   : > { %v2270_v55 = vpack.c.bf16 %v2254_v53, %v2251_v47 }
 0x47d   : > { %12463 = vmatprep.mubr.msk.bf16.mxu1 %vm2272_vm6, %v2270_v55 }
 0x47e   : > { %12464 = vmatmul.mubr.msk.bf16.gmra.mrb[28].mxu1 %vm2272_vm6, %v2271_v52 }
 0x47f   : > { %12469 = vmatprep.mubr.msk.bf16.mxu1 %vm2272_vm6, %v2156_v21 }
 0x486   : > { %12470 = vmatmul.mubr.msk.bf16.vlgmr.msra.gmra.mrb[24].mxu1 %vm2272_vm6, %v2157_v19 }
 0x487   : > { %12478 = vmatpush3.bf16.msra.mxu1 %v15182_v14  ;;  %12473 = vmatprep.mubr.msk.bf16.mxu1 %vm2272_vm6, %v2158_v31  ;;  %v11240_v14 = vld [vmem:[%s16794_s22 + $0x8] sm:$0xf] }
 0x488   : > { %12479 = vmatprep.subr.bf16.mxu1 %v15180_v13 }
 0x48b   : > { %12480 = vmatpush3.bf16.msra.mxu1 %v15180_v13  ;;  %v2559_v13 = vsel %vm2285_vm5, %v11240_v14, 0 }
 0x48c   : > { %12481 = vmatprep.subr.bf16.mxu1 %v15194_v29 }
 0x48e   : > { %12474 = vmatmul.mubr.msk.bf16.gmra.mrb[28].mxu1 %vm2272_vm6, %v2159_v25 }
 0x48f   : > { %12482 = vmatpush3.bf16.msra.mxu1 %v15194_v29  ;;  %12485 = vmatprep.mubr.msk.bf16.mxu1 %vm2077_vm4, %v13986_v56  ;;  %v15346_v29 = vld [vmem:[%s16794_s22 + $0xc] sm:$0xf] }
 0x490   : > { %12483 = vmatprep.subr.bf16.mxu1 %v15192_v28  ;;  %v2759_v54 = vsel %vm2285_vm5, %v15346_v29, 0 }
 0x493   : > { %12484 = vmatpush3.bf16.msra.mxu1 %v15192_v28  ;;  %v15352_v28 = vpop.f32.mrb[17].mxu0 }
 0x494   : > { %13711 = vmatprep.subr.msk.bf16.mxu1 %vm2285_vm5, %v11240_v14  ;;  %v15354_v0 = vpop.f32.mrb[18].mxu0 }
 0x495   : > { %v15358_v2 = vpop.f32.mrb[19].mxu0 }
 0x496   : > { %12486 = vmatmul.mubr.msk.bf16.vlgmr.msra.gmra.mrb[32].mxu1 %vm2077_vm4, %v13987_v58  ;;  %v15362_v4 = vpop.f32.mrb[20].mxu0 }
 0x497   : > { %12489 = vmatprep.mubr.msk.bf16.mxu1 %vm2077_vm4, %v13988_v61  ;;  %12494 = vmatpush3.bf16.msra.mxu1 %v2559_v13  ;;  %v15364_v5 = vpop.f32.mrb[21].mxu0 }
 0x498   : > { %13712 = vmatprep.subr.msk.bf16.mxu1 %vm2285_vm5, %v15346_v29  ;;  %v15366_v6 = vpop.f32.mrb[22].mxu0  ;;  %v16797_v29 = vpack.c.bf16 %v15354_v0, %v15348_v63 }
 0x499   : > { %v15370_v8 = vpop.f32.mrb[23].mxu0 }
 0x49a   : > { %v15374_v10 = vpop.f32.mrb[24].mxu0 }
 0x49b   : > { %v15376_v11 = vpop.f32.mrb[25].mxu0 }
 0x49c   : > { %v15378_v12 = vpop.f32.mrb[26].mxu0 }
 0x49d   : > { %v15382_v16 = vpop.f32.mrb[27].mxu0  ;;  %v16801_v0 = vpack.c.bf16 %v15378_v12, %v15374_v10 }
 0x49e   : > { %12490 = vmatmul.mubr.msk.bf16.gmra.mrb[36].mxu1 %vm2077_vm4, %v13989_v62  ;;  %v15386_v18 = vpop.f32.mrb[28].mxu0 }
 0x49f   : > { %v15388_v19 = vpop.f32.mrb[29].mxu0 }
 0x4a0   : > { %v15390_v20 = vpop.f32.mrb[30].mxu0 }
 0x4a1   : > { %v15394_v22 = vpop.f32.mrb[31].mxu0 }
 0x4a2   : > { %v15398_v24 = vpop.f32.mrb[32].mxu0 }
 0x4a3   : > { %v15400_v25 = vpop.f32.mrb[33].mxu0 }
 0x4a4   : > { %v15402_v26 = vpop.f32.mrb[34].mxu0 }
 0x4a5   : > { %v15406_v34 = vpop.f32.mrb[35].mxu0 }
 0x4a6   : > { %v15410_v37 = vpop.f32.mrb[36].mxu0 }
 0x4a7   : > { %v15412_v38 = vpop.f32.mrb[37].mxu0 }
 0x4a8   : > { %v15414_v40 = vpop.f32.mrb[38].mxu0 }
 0x4a9   : > { %v15418_v44 = vpop.f32.mrb[39].mxu0  ;;  %v16807_v10 = vpack.c.bf16 %v15414_v40, %v15410_v37 }
 0x4aa   : > { %v15422_v47 = vpop.f32.mrb[40].mxu0 }
 0x4ab   : > { %v15424_v49 = vpop.f32.mrb[41].mxu0 }
 0x4ac   : > { %v15426_v52 = vpop.f32.mrb[42].mxu0 }
 0x4ad   : > { %v15430_v55 = vpop.f32.mrb[43].mxu0 }
 0x4ae   : > { %v15434_v14 = vpop.f32.mrb[44].mxu0 }
 0x4af   : > { %v15436_v58 = vpop.f32.mrb[45].mxu0 }
 0x4b0   : > { %v15438_v61 = vpop.f32.mrb[46].mxu0 }
 0x4b1   : > { %v15442_v62 = vpop.f32.mrb[47].mxu0 }
 0x4b2   : > { %v15446_v60 = vpop.f32.mrb[48].mxu0 }
 0x4b3   : > { %v15448_v59 = vpop.f32.mrb[49].mxu0 }
 0x4b4   : > { %v15450_v50 = vpop.f32.mrb[50].mxu0 }
 0x4b5   : > { %v15454_v42 = vpop.f32.mrb[51].mxu0 }
 0x4b6   : > { %v15458_v32 = vpop.f32.mrb[52].mxu0 }
 0x4b7   : > { %v15460_v13 = vpop.f32.mrb[53].mxu0 }
 0x4b8   : > { %v15462_v53 = vpop.f32.mrb[54].mxu0 }
 0x4b9   : > { %v15466_v56 = vpop.f32.mrb[55].mxu0 }
 0x4ba   : > { %v15470_v43 = vpop.f32.mrb[56].mxu0 }
 0x4bb   : > { %v15472_v46 = vpop.f32.mrb[57].mxu0 }
 0x4bc   : > { %v15474_v41 = vpop.f32.mrb[58].mxu0 }
 0x4bd   : > { %v15478_v35 = vpop.f32.mrb[59].mxu0 }
 0x4be   : > { %v15482_v51 = vpop.f32.mrb[60].mxu0 }
 0x4bf   : > { %v15484_v23 = vpop.f32.mrb[61].mxu0 }
 0x4c0   : > { %v15486_v33 = vpop.f32.mrb[62].mxu0 }
 0x4c1   : > { %v15490_v17 = vpop.f32.mrb[63].mxu0 }
 0x569   : > { %v12487_v21 = vpop.f32.mrb[32].mxu1 }
 0x56a   : > { %v2509_v9 = vpop.f32.mrb[33].mxu1 }
 0x56b   : > { %v12488_v1 = vpop.f32.mrb[34].mxu1 }
 0x56c   : > { %v2543_v3 = vpack.c.bf16 %v12488_v1, %v12487_v21  ;;  %v2512_v48 = vpop.f32.mrb[35].mxu1 }
 0x56d   : > { %v2542_v57 = vpack.c.bf16 %v2512_v48, %v2509_v9  ;;  %v16796_v48 = vpack.c.bf16 %v15358_v2, %v15352_v28  ;;  %v11324_v28 = vld [vmem:[%s16794_s22 + $0x18] sm:$0xf]  ;;  %v16802_v2 = vpack.c.bf16 %v15394_v22, %v15388_v19  ;;  %v16806_v9 = vpack.c.bf16 %v15418_v44, %v15412_v38 }
 0x56e   : > { %v16812_v19 = vpack.c.bf16 %v15438_v61, %v15434_v14 }
 0x56f   : > { %12495 = vmatprep.mubr.msk.bf16.mxu1 %vm2272_vm6, %v2542_v57  ;;  %v2959_v57 = vsel %vm2285_vm5, %v11282_v15, 0 }
 0x570   : > { %12496 = vmatmul.mubr.msk.bf16.vlgmr.msra.gmra.mrb[24].mxu1 %vm2272_vm6, %v2543_v3  ;;  %v16803_v3 = vpack.c.bf16 %v15390_v20, %v15386_v18  ;;  %v16810_v18 = vpack.c.bf16 %v15442_v62, %v15436_v58  ;;  %v16813_v20 = vpack.c.bf16 %v15454_v42, %v15448_v59  ;;  %v16817_v42 = vpack.c.bf16 %v15478_v35, %v15472_v46 }
 0x571   : > { %v12491_v31 = vpop.f32.mrb[36].mxu1  ;;  %12520 = vmatpush3.bf16.msra.mxu1 %v2759_v54  ;;  %v11303_v54 = vld [vmem:[%s16794_s22 + $0x14] sm:$0xf]  ;;  %v16819_v59 = vpack.c.bf16 %v15490_v17, %v15484_v23 }
 0x572   : > { %v2525_v45 = vpop.f32.mrb[37].mxu1  ;;  %13713 = vmatprep.subr.msk.bf16.mxu1 %vm2285_vm5, %v11282_v15  ;;  %v3159_v63 = vsel %vm2285_vm5, %v11303_v54, 0  ;;  %v11366_v15 = vld [vmem:[%s16794_s22 + $0x20] sm:$0xf] }
 0x573   : > { %v12492_v30 = vpop.f32.mrb[38].mxu1  ;;  %v3759_v22 = vsel %vm2285_vm5, %v11366_v15, 0 }
 0x574   : > { %v2545_v39 = vpack.c.bf16 %v12492_v30, %v12491_v31  ;;  %v2528_v1 = vpop.f32.mrb[39].mxu1  ;;  %v16798_v30 = vpack.c.bf16 %v15370_v8, %v15364_v5  ;;  %v3359_v5 = vsel %vm2285_vm5, %v11324_v28, 0  ;;  %v16805_v8 = vpack.c.bf16 %v15402_v26, %v15398_v24  ;;  %v11371_v31 = vld [vmem:[%s16811_s23] ss:$0 sm:$0xff]  ;;  %s16843_s23 = sld [smem:[#allocation43_spill]] }
 0x575   : > { %v2544_v21 = vpack.c.bf16 %v2528_v1, %v2525_v45  ;;  %v16800_v45 = vpack.c.bf16 %v15382_v16, %v15376_v11  ;;  %v16808_v11 = vpack.c.bf16 %v15430_v55, %v15424_v49  ;;  %v16809_v16 = vpack.c.bf16 %v15426_v52, %v15422_v47 }
 0x576   : > { %v16814_v24 = vpack.c.bf16 %v15450_v50, %v15446_v60  ;;  %v16816_v26 = vpack.c.bf16 %v15462_v53, %v15458_v32  ;;  %v16818_v50 = vpack.c.bf16 %v15474_v41, %v15470_v43  ;;  %v16820_v32 = vpack.c.bf16 %v15486_v33, %v15482_v51 }
 0x577   : > { %12499 = vmatprep.mubr.msk.bf16.mxu1 %vm2272_vm6, %v2544_v21  ;;  %v3882_v60 = vsel %vm2285_vm5, %v15495_v7, 0 }
 0x578   : > { %12500 = vmatmul.mubr.msk.bf16.gmra.mrb[28].mxu1 %vm2272_vm6, %v2545_v39  ;;  %v16799_v39 = vpack.c.bf16 %v15366_v6, %v15362_v4  ;;  %v16804_v4 = vpack.c.bf16 %v15406_v34, %v15400_v25  ;;  %v11345_v6 = vld [vmem:[%s16794_s22 + $0x1c] sm:$0xf]  ;;  %v16815_v25 = vpack.c.bf16 %v15466_v56, %v15460_v13  ;;  %12660 = vmatpush3.bf16.msra.mxu0 %v3882_v60 }
 0x579   : > { %12521 = vmatprep.mubr.msk.bf16.mxu1 %vm2272_vm6, %v16796_v48  ;;  %v3559_v12 = vsel %vm2285_vm5, %v11345_v6, 0 }
 0x580   : > { %12522 = vmatmul.mubr.msk.bf16.vlgmr.msra.gmra.mrb[24].mxu1 %vm2272_vm6, %v16797_v29  ;;  %v11372_v29 = vld [vmem:[%s16822_s18] ss:$0 sm:$0xff]  ;;  %s16844_s18 = sld [smem:[#allocation41_spill]] }
 0x581   : > { %12525 = vmatprep.mubr.msk.bf16.mxu1 %vm2272_vm6, %v16798_v30  ;;  %12546 = vmatpush3.bf16.msra.mxu1 %v2959_v57  ;;  %v13996_v57 = vld [vmem:[%s16821_s30] sm:$0xff]  }
 0x582   : > { %13714 = vmatprep.subr.msk.bf16.mxu1 %vm2285_vm5, %v11303_v54  ;;  %12669 = vmatprep.subr.bf16.mxu0 %v13996_v57  ;;  %v13997_v54 = vld [vmem:[%s16821_s30 + $0x8] sm:$0xff]  }
 0x588   : > { %12526 = vmatmul.mubr.msk.bf16.gmra.mrb[28].mxu1 %vm2272_vm6, %v16799_v39 }
 0x589   : > { %12547 = vmatprep.mubr.msk.bf16.mxu1 %vm2272_vm6, %v16800_v45 }
 0x590   : > { %12548 = vmatmul.mubr.msk.bf16.vlgmr.msra.gmra.mrb[24].mxu1 %vm2272_vm6, %v16801_v0 }
 0x591   : > { %12551 = vmatprep.mubr.msk.bf16.mxu1 %vm2272_vm6, %v16802_v2  ;;  %12572 = vmatpush3.bf16.msra.mxu1 %v3159_v63 }
 0x592   : > { %13715 = vmatprep.subr.msk.bf16.mxu1 %vm2285_vm5, %v11324_v28 }
 0x598   : > { %12552 = vmatmul.mubr.msk.bf16.gmra.mrb[28].mxu1 %vm2272_vm6, %v16803_v3 }
 0x599   : > { %12573 = vmatprep.mubr.msk.bf16.mxu1 %vm2272_vm6, %v16804_v4 }
 0x5a0   : > { %12574 = vmatmul.mubr.msk.bf16.vlgmr.msra.gmra.mrb[24].mxu1 %vm2272_vm6, %v16805_v8  ;;  %v16823_v8 = vmax.f32 %v15131_v27, 0.0 }
 0x5a1   : > { %12577 = vmatprep.mubr.msk.bf16.mxu1 %vm2272_vm6, %v16806_v9  ;;  %12598 = vmatpush3.bf16.msra.mxu1 %v3359_v5 }
 0x5a2   : > { %13716 = vmatprep.subr.msk.bf16.mxu1 %vm2285_vm5, %v11345_v6 }
 0x5a8   : > { %12578 = vmatmul.mubr.msk.bf16.gmra.mrb[28].mxu1 %vm2272_vm6, %v16807_v10 }
 0x5a9   : > { %12599 = vmatprep.mubr.msk.bf16.mxu1 %vm2272_vm6, %v16808_v11  ;;  %v16824_v11 = vmax.f32 %v15141_v36, 0.0 }
 0x5b0   : > { %12600 = vmatmul.mubr.msk.bf16.vlgmr.msra.gmra.mrb[24].mxu1 %vm2272_vm6, %v16809_v16 }
 0x5b1   : > { %12603 = vmatprep.mubr.msk.bf16.mxu1 %vm2272_vm6, %v16810_v18  ;;  %12624 = vmatpush3.bf16.msra.mxu1 %v3559_v12 }
 0x5b2   : > { %13717 = vmatprep.subr.msk.bf16.mxu1 %vm2285_vm5, %v11366_v15  ;;  %v16825_v15 = vld [vmem:[#allocation77_spill] sm:$0xff] }
 0x5b3   : > { %v16826_v16 = vmax.f32 %v16825_v15, 0.0 }
 0x5b8   : > { %12604 = vmatmul.mubr.msk.bf16.gmra.mrb[28].mxu1 %vm2272_vm6, %v16812_v19  ;;  %v16827_v19 = vld [vmem:[#allocation76_spill] sm:$0xff] }
 0x5b9   : > { %12625 = vmatprep.mubr.msk.bf16.mxu1 %vm2272_vm6, %v16813_v20  ;;  %v16828_v20 = vmax.f32 %v16827_v19, 0.0 }
 0x5c0   : > { %12626 = vmatmul.mubr.msk.bf16.vlgmr.msra.gmra.mrb[24].mxu1 %vm2272_vm6, %v16814_v24 }
 0x5c1   : > { %12629 = vmatprep.mubr.msk.bf16.mxu1 %vm2272_vm6, %v16815_v25  ;;  %12650 = vmatpush3.bf16.msra.mxu1 %v3759_v22 }
 0x5c8   : > { %12630 = vmatmul.mubr.msk.bf16.gmra.mrb[28].mxu1 %vm2272_vm6, %v16816_v26 }
 0x5c9   : > { %12651 = vmatprep.mubr.msk.bf16.mxu1 %vm2272_vm6, %v16817_v42 }
 0x5d0   : > { %12652 = vmatmul.mubr.msk.bf16.vlgmr.msra.gmra.mrb[24].mxu1 %vm2272_vm6, %v16818_v50 }
 0x5d1   : > { %12655 = vmatprep.mubr.msk.bf16.mxu1 %vm2272_vm6, %v16819_v59 }
 0x5d8   : > { %12656 = vmatmul.mubr.msk.bf16.gmra.mrb[28].mxu1 %vm2272_vm6, %v16820_v32 }
 0x6a3   : > { %v12653_v34 = vpop.f32.mrb[24].mxu1 }
 0x6a4   : > { %v3843_v35 = vadd.f32 %v12653_v34, %v11371_v31  ;;  %v3795_v41 = vpop.f32.mrb[25].mxu1 }
 0x6a5   : > { %v3841_v37 = vadd.f32 %v11371_v31, %v3795_v41  ;;  %v12654_v38 = vpop.f32.mrb[26].mxu1 }
 0x6a6   : > { %v3844_v40 = vadd.f32 %v12654_v38, %v11371_v31  ;;  %v3798_v43 = vpop.f32.mrb[27].mxu1  ;;  %v3851_v23 = vmax.f32 %v3843_v35, 0.0 }
 0x6a7   : > { %v3842_v17 = vadd.f32 %v11371_v31, %v3798_v43  ;;  %v3849_v46 = vmax.f32 %v3841_v37, 0.0  ;;  %v16829_v43 = vld [vmem:[#allocation78_spill] sm:$0xff] }
 0x6a8   : > { %v3852_v44 = vmax.f32 %v3844_v40, 0.0 }
 0x6a9   : > { %v3850_v47 = vmax.f32 %v3842_v17, 0.0  ;;  %v16830_v17 = vmax.f32 %v16829_v43, 0.0  ;;  %v14001_v43 = vld [vmem:[%s16832_s2 + $0x38] sm:$0xff]  }
 0x6aa   : > { %v3859_v33 = vpack.c.bf16 %v3852_v44, %v3851_v23 }
 0x6ab   : > { %v3858_v51 = vpack.c.bf16 %v3850_v47, %v3849_v46  ;;  %v12657_v49 = vpop.f32.mrb[28].mxu1  ;;  %v16833_v46 = vld [vmem:[#allocation80_spill] sm:$0xff] }
 0x6ac   : > { %v3847_v52 = vadd.f32 %v12657_v49, %v11371_v31  ;;  %v3811_v53 = vpop.f32.mrb[29].mxu1  ;;  %v16834_v47 = vmax.f32 %v16833_v46, 0.0  ;;  %v14005_v46 = vld [vmem:[%s16832_s2 + $0x48] sm:$0xff]  }
 0x6ad   : > { %v3845_v7 = vadd.f32 %v11371_v31, %v3811_v53  ;;  %v12658_v55 = vpop.f32.mrb[30].mxu1  ;;  %12661 = vmatprep.mubr.msk.bf16.mxu0 %vm2272_vm6, %v3858_v51  ;;  %v16835_v51 = vld [vmem:[#allocation81_spill] sm:$0xff]  ;;  %v16838_v53 = vld [vmem:[#allocation79_spill] sm:$0xff] }
 0x6ae   : > { %v3848_v56 = vadd.f32 %v12658_v55, %v11371_v31  ;;  %v3814_v14 = vpop.f32.mrb[31].mxu1  ;;  %12662 = vmatmul.mubr.msk.bf16.vlgmr.msra.gmra.mrb[64].mxu0 %vm2272_vm6, %v3859_v33  ;;  %v3855_v61 = vmax.f32 %v3847_v52, 0.0  ;;  %v16836_v49 = vmax.f32 %v16835_v51, 0.0  ;;  %v14009_v51 = vld [vmem:[%s16832_s2 + $0x58] sm:$0xff]  }
 0x6af   : > { %v3846_v58 = vadd.f32 %v11371_v31, %v3814_v14  ;;  %v3853_v62 = vmax.f32 %v3845_v7, 0.0  ;;  %12670 = vmatpush3.bf16.msra.mxu0 %v13996_v57  ;;  %v16839_v7 = vmax.f32 %v16838_v53, 0.0  ;;  %v14011_v53 = vld [vmem:[%s16832_s2 + $0x68] sm:$0xff]  }
 0x6b0   : > { %v3856_v13 = vmax.f32 %v3848_v56, 0.0  ;;  %12671 = vmatprep.subr.bf16.mxu0 %v13997_v54 }
 0x6b1   : > { %v3854_v1 = vmax.f32 %v3846_v58, 0.0 }
 0x6b2   : > { %v3861_v21 = vpack.c.bf16 %v3856_v13, %v3855_v61 }
 0x6b3   : > { %v3860_v48 = vpack.c.bf16 %v3854_v1, %v3853_v62  ;;  %12672 = vmatpush3.bf16.msra.mxu0 %v13997_v54  ;;  %v13998_v1 = vld [vmem:[%s16831_s11 + $0x20] sm:$0xff]   ;;  %s16845_s11 = sld [smem:[#allocation44_spill]] }
 0x6b5   : > { %12665 = vmatprep.mubr.msk.bf16.mxu0 %vm2272_vm6, %v3860_v48  ;;  %v11377_v48 = vld [vmem:[%s16837_s16] ss:$0 sm:$0xff]  ;;  %s16846_s16 = sld [smem:[#allocation49_spill]] }
 0x6b6   : > { %12666 = vmatmul.mubr.msk.bf16.gmra.mrb[68].mxu0 %vm2272_vm6, %v3861_v21  ;;  %v14002_v21 = vld [vmem:[%s16832_s2] sm:$0xff]  }
 0x6b7   : > { %12689 = vmatprep.mubr.msk.bf16.mxu1 %vm2077_vm4, %v14002_v21  ;;  %v14016_v21 = vld [vmem:[%s16832_s2 + $0x90] sm:$0xff]  }
 0x781   : > { %v12663_v30 = vpop.f32.mrb[64].mxu0 }
 0x782   : > { %v3927_v39 = vadd.f32 %v12663_v30, %v11372_v29  ;;  %v3918_v45 = vpop.f32.mrb[65].mxu0 }
 0x783   : > { %v3919_v63 = vadd.f32 %v11372_v29, %v3918_v45  ;;  %v12664_v28 = vpop.f32.mrb[66].mxu0 }
 0x784   : > { %v3951_v0 = vmax.f32 %v3927_v39, 0.0  ;;  %v3930_v2 = vadd.f32 %v12664_v28, %v11372_v29  ;;  %v3921_v3 = vpop.f32.mrb[67].mxu0 }
 0x785   : > { %v3949_v4 = vmax.f32 %v3919_v63, 0.0  ;;  %v3922_v5 = vadd.f32 %v11372_v29, %v3921_v3 }
 0x786   : > { %v3952_v6 = vmax.f32 %v3930_v2, 0.0  ;;  %v15632_v12 = vadd.f32 %v3951_v0, %v16824_v11 }
 0x787   : > { %v15628_v9 = vadd.f32 %v3949_v4, %v16823_v8  ;;  %v3950_v10 = vmax.f32 %v3922_v5, 0.0 }
 0x788   : > { %v15636_v18 = vadd.f32 %v3952_v6, %v16826_v16  ;;  %v3967_v32 = vmax.f32 %v15632_v12, 0.0 }
 0x789   : > { %v15640_v22 = vadd.f32 %v3950_v10, %v16828_v20  ;;  %v12667_v24 = vpop.f32.mrb[68].mxu0  ;;  %v3965_v42 = vmax.f32 %v15628_v9, 0.0 }
 0x78a   : > { %v3968_v25 = vmax.f32 %v15636_v18, 0.0  ;;  %v3943_v26 = vadd.f32 %v12667_v24, %v11372_v29  ;;  %v3934_v27 = vpop.f32.mrb[69].mxu0 }
 0x78b   : > { %v3966_v50 = vmax.f32 %v15640_v22, 0.0  ;;  %v3935_v36 = vadd.f32 %v11372_v29, %v3934_v27  ;;  %v12668_v59 = vpop.f32.mrb[70].mxu0 }
 0x78c   : > { %v3955_v60 = vmax.f32 %v3943_v26, 0.0  ;;  %v3946_v31 = vadd.f32 %v12668_v59, %v11372_v29  ;;  %v3937_v34 = vpop.f32.mrb[71].mxu0  ;;  %v3978_v38 = vpack.c.bf16 %v3968_v25, %v3967_v32 }
 0x78d   : > { %v3953_v35 = vmax.f32 %v3935_v36, 0.0  ;;  %v3938_v41 = vadd.f32 %v11372_v29, %v3937_v34  ;;  %v3977_v37 = vpack.c.bf16 %v3966_v50, %v3965_v42  ;;  %v11408_v34 = vld [vmem:[%s16840_s26 + $0x4] sm:$0xf] }
 0x78e   : > { %v3956_v40 = vmax.f32 %v3946_v31, 0.0  ;;  %v15661_v33 = vadd.f32 %v3955_v60, %v16834_v47  ;;  %v14008_v47 = vld [vmem:[%s16832_s2 + $0x50] sm:$0xff]  }
 0x78f   : > { %v15656_v23 = vadd.f32 %v3953_v35, %v16830_v17  ;;  %v3954_v44 = vmax.f32 %v3938_v41, 0.0  ;;  %12673 = vmatprep.mubr.msk.bf16.mxu0 %vm1959_vm3, %v3977_v37  ;;  %v13999_v35 = vld [vmem:[%s16832_s2 + $0x28] sm:$0xff]   ;;  %v14000_v37 = vld [vmem:[%s16832_s2 + $0x30] sm:$0xff]   ;;  %v14007_v17 = vld [vmem:[%s16832_s2 + $0x18] sm:$0xff]  }
 0x790   : > { %v15665_v52 = vadd.f32 %v3956_v40, %v16836_v49  ;;  %12674 = vmatmul.mubr.msk.bf16.vlgmr.msra.gmra.mrb[72].mxu0 %vm1959_vm3, %v3978_v38  ;;  %v3971_v61 = vmax.f32 %v15661_v33, 0.0  ;;  %v14003_v41 = vld [vmem:[%s16832_s2 + $0x8] sm:$0xff]   ;;  %v14006_v38 = vld [vmem:[%s16832_s2 + $0x10] sm:$0xff]   ;;  %v4324_v40 = vsel %vm2285_vm5, %v11408_v34, 0  ;;  %v14010_v49 = vld [vmem:[%s16832_s2 + $0x60] sm:$0xff]  }
 0x791   : > { %v15670_v55 = vadd.f32 %v3954_v44, %v16839_v7  ;;  %v3969_v14 = vmax.f32 %v15656_v23, 0.0  ;;  %v14004_v44 = vld [vmem:[%s16832_s2 + $0x40] sm:$0xff]   ;;  %v14012_v7 = vld [vmem:[%s16832_s2 + $0x70] sm:$0xff]  }
 0x792   : > { %v3972_v56 = vmax.f32 %v15665_v52, 0.0  ;;  %v14603_v52 = vmov 0.0  }
 0x793   : > { %v3970_v58 = vmax.f32 %v15670_v55, 0.0  ;;  %v11570_v55 = vld [vmem:[%s16845_s11] ss:$0 sm:$0xff]  ;;  %s16850_s11 = sld [smem:[#allocation47_spill]] }
 0x794   : > { %v3980_v62 = vpack.c.bf16 %v3972_v56, %v3971_v61 }
 0x795   : > { %v3979_v13 = vpack.c.bf16 %v3970_v58, %v3969_v14 }
 0x797   : > { %12677 = vmatprep.mubr.msk.bf16.mxu0 %vm1959_vm3, %v3979_v13  ;;  %v14013_v13 = vld [vmem:[%s16832_s2 + $0x78] sm:$0xff]  }
 0x798   : > { %12678 = vmatmul.mubr.msk.bf16.gmra.mrb[76].mxu0 %vm1959_vm3, %v3980_v62  ;;  %v14014_v62 = vld [vmem:[%s16832_s2 + $0x80] sm:$0xff]  }
 0x799   : > { %12705 = vmatprep.mubr.msk.bf16.mxu0 %vm2077_vm4, %v13998_v1  ;;  %v14015_v1 = vld [vmem:[%s16832_s2 + $0x88] sm:$0xff]  }
 0x863   : > { %v12675_v57 = vpop.f32.mrb[72].mxu0 }
 0x864   : > { %v4055_v54 = vadd.f32 %v12675_v57, %v11377_v48  ;;  %v4046_v29 = vpop.f32.mrb[73].mxu0  ;;  %v14018_v57 = vld [vmem:[%s16832_s2 + $0xa0] sm:$0xff]  }
 0x865   : > { %v4047_v30 = vadd.f32 %v11377_v48, %v4046_v29  ;;  %v12676_v39 = vpop.f32.mrb[74].mxu0  ;;  %v14020_v29 = vld [vmem:[%s16832_s2 + $0xb0] sm:$0xff]  }
 0x866   : > { %v4058_v45 = vadd.f32 %v12676_v39, %v11377_v48  ;;  %v4049_v63 = vpop.f32.mrb[75].mxu0  ;;  %v4079_v0 = vmax.f32 %v4055_v54, 0.0  ;;  %v14019_v54 = vld [vmem:[%s16832_s2 + $0xa8] sm:$0xff]   ;;  %v14022_v39 = vld [vmem:[%s16832_s2 + $0xc0] sm:$0xff]  }
 0x867   : > { %v4050_v28 = vadd.f32 %v11377_v48, %v4049_v63  ;;  %v4077_v3 = vmax.f32 %v4047_v30, 0.0  ;;  %v14021_v30 = vld [vmem:[%s16832_s2 + $0xb8] sm:$0xff]   ;;  %v14024_v63 = vld [vmem:[%s16832_s2 + $0xd0] sm:$0xff]  }
 0x868   : > { %v4080_v2 = vmax.f32 %v4058_v45, 0.0  ;;  %v14023_v45 = vld [vmem:[%s16832_s2 + $0xc8] sm:$0xff]  }
 0x869   : > { %v4078_v4 = vmax.f32 %v4050_v28, 0.0  ;;  %v14025_v28 = vld [vmem:[%s16832_s2 + $0xd8] sm:$0xff]  }
 0x86a   : > { %v15691_v5 = vpack.c.bf16 %v4080_v2, %v4079_v0  ;;  %v14026_v0 = vld [vmem:[%s16832_s2 + $0xe0] sm:$0xff]   ;;  %v14027_v2 = vld [vmem:[%s16832_s2 + $0xe8] sm:$0xff]  }
 0x86b   : > { %v15693_v6 = vpack.c.bf16 %v4078_v4, %v4077_v3  ;;  %v12679_v8 = vpop.f32.mrb[76].mxu0  ;;  %v14028_v3 = vld [vmem:[%s16832_s2 + $0xf0] sm:$0xff]   ;;  %v4194_v4 = vld [vmem:[%s16840_s26] sm:$0xf] }
 0x86c   : > { %v4071_v10 = vadd.f32 %v12679_v8, %v11377_v48  ;;  %v4062_v11 = vpop.f32.mrb[77].mxu0  ;;  %v14029_v8 = vld [vmem:[%s16832_s2 + $0xf8] sm:$0xff]  }
 0x86d   : > { %v4063_v15 = vadd.f32 %v11377_v48, %v4062_v11  ;;  %v12680_v16 = vpop.f32.mrb[78].mxu0  ;;  %12681 = vmatprep.subr.bf16.mxu1 %v15693_v6  ;;  %12697 = vmatprep.subr.bf16.mxu0 %v15693_v6  ;;  %v14032_v11 = vld [vmem:[%s16832_s2 + $0x110] sm:$0xff]  }
 0x86e   : > { %v4074_v19 = vadd.f32 %v12680_v16, %v11377_v48  ;;  %v4065_v20 = vpop.f32.mrb[79].mxu0  ;;  %12682 = vmatpush3.bf16.msra.mxu1 %v15693_v6  ;;  %12698 = vmatpush3.bf16.msra.mxu0 %v15693_v6  ;;  %v4083_v26 = vmax.f32 %v4071_v10, 0.0  ;;  %v14030_v10 = vld [vmem:[%s16832_s2 + $0x100] sm:$0xff]  }
 0x86f   : > { %v4066_v24 = vadd.f32 %v11377_v48, %v4065_v20  ;;  %12683 = vmatprep.subr.bf16.mxu1 %v15691_v5  ;;  %12699 = vmatprep.subr.bf16.mxu0 %v15691_v5  ;;  %v4081_v36 = vmax.f32 %v4063_v15, 0.0  ;;  %v14017_v48 = vld [vmem:[%s16832_s2 + $0x98] sm:$0xff]  }
 0x870   : > { %v4084_v27 = vmax.f32 %v4074_v19, 0.0 }
 0x871   : > { %v4082_v59 = vmax.f32 %v4066_v24, 0.0 }
 0x872   : > { %v15701_v60 = vpack.c.bf16 %v4084_v27, %v4083_v26  ;;  %12684 = vmatpush3.bf16.msra.mxu1 %v15691_v5  ;;  %12700 = vmatpush3.bf16.msra.mxu0 %v15691_v5 }
 0x873   : > { %v15705_v31 = vpack.c.bf16 %v4082_v59, %v4081_v36 }
 0x875   : > { %12685 = vmatprep.subr.bf16.mxu1 %v15705_v31  ;;  %12701 = vmatprep.subr.bf16.mxu0 %v15705_v31 }
 0x876   : > { %12686 = vmatpush3.bf16.msra.mxu1 %v15705_v31  ;;  %12702 = vmatpush3.bf16.msra.mxu0 %v15705_v31 }
 0x877   : > { %12687 = vmatprep.subr.bf16.mxu1 %v15701_v60  ;;  %12703 = vmatprep.subr.bf16.mxu0 %v15701_v60 }
 0x87a   : > { %12688 = vmatpush3.bf16.msra.mxu1 %v15701_v60  ;;  %12704 = vmatpush3.bf16.msra.mxu0 %v15701_v60 }
 0x87b   : > { %12733 = vmatprep.subr.bf16.mxu0 %v15693_v6  ;;  %13719 = vmatprep.subr.msk.bf16.mxu1 %vm2285_vm5, %v11408_v34 }
 0x87d   : > { %12706 = vmatmul.mubr.msk.bf16.vlgmr.msra.gmra.mrb[80].mxu0 %vm2077_vm4, %v13999_v35  ;;  %12690 = vmatmul.mubr.msk.bf16.vlgmr.msra.gmra.mrb[40].mxu1 %vm2077_vm4, %v14003_v41  ;;  %v4404_v35 = vsel %vm2285_vm5, %v4194_v4, 0  ;;  %v11433_v41 = vld [vmem:[%s16840_s26 + $0x8] sm:$0xf] }
 0x87e   : > { %12734 = vmatpush3.bf16.msra.mxu0 %v15693_v6  ;;  %12709 = vmatprep.mubr.msk.bf16.mxu0 %vm2077_vm4, %v14000_v37 }
 0x87f   : > { %12735 = vmatprep.subr.bf16.mxu0 %v15691_v5  ;;  %12693 = vmatprep.mubr.msk.bf16.mxu1 %vm2077_vm4, %v14006_v38 }
 0x880   : > { %12714 = vmatpush3.bf16.msra.mxu1 %v4324_v40 }
 0x881   : > { %13720 = vmatprep.subr.msk.bf16.mxu1 %vm2285_vm5, %v4194_v4 }
 0x882   : > { %12736 = vmatpush3.bf16.msra.mxu0 %v15691_v5 }
 0x883   : > { %12737 = vmatprep.subr.bf16.mxu0 %v15705_v31 }
 0x885   : > { %12710 = vmatmul.mubr.msk.bf16.gmra.mrb[84].mxu0 %vm2077_vm4, %v14001_v43  ;;  %12694 = vmatmul.mubr.msk.bf16.gmra.mrb[44].mxu1 %vm2077_vm4, %v14007_v17 }
 0x886   : > { %12738 = vmatpush3.bf16.msra.mxu0 %v15705_v31  ;;  %12741 = vmatprep.mubr.msk.bf16.mxu0 %vm2077_vm4, %v14004_v44 }
 0x887   : > { %12739 = vmatprep.subr.bf16.mxu0 %v15701_v60 }
 0x88a   : > { %12740 = vmatpush3.bf16.msra.mxu0 %v15701_v60 }
 0x88b   : > { %12759 = vmatprep.subr.bf16.mxu0 %v15693_v6 }
 0x88d   : > { %12742 = vmatmul.mubr.msk.bf16.vlgmr.msra.gmra.mrb[88].mxu0 %vm2077_vm4, %v14005_v46 }
 0x88e   : > { %12760 = vmatpush3.bf16.msra.mxu0 %v15693_v6  ;;  %12745 = vmatprep.mubr.msk.bf16.mxu0 %vm2077_vm4, %v14008_v47 }
 0x88f   : > { %12761 = vmatprep.subr.bf16.mxu0 %v15691_v5 }
 0x892   : > { %12762 = vmatpush3.bf16.msra.mxu0 %v15691_v5 }
 0x893   : > { %12763 = vmatprep.subr.bf16.mxu0 %v15705_v31 }
 0x895   : > { %12746 = vmatmul.mubr.msk.bf16.gmra.mrb[92].mxu0 %vm2077_vm4, %v14009_v51 }
 0x896   : > { %12764 = vmatpush3.bf16.msra.mxu0 %v15705_v31  ;;  %12767 = vmatprep.mubr.msk.bf16.mxu0 %vm2077_vm4, %v14010_v49 }
 0x897   : > { %12765 = vmatprep.subr.bf16.mxu0 %v15701_v60 }
 0x89a   : > { %12766 = vmatpush3.bf16.msra.mxu0 %v15701_v60 }
 0x89b   : > { %12785 = vmatprep.subr.bf16.mxu0 %v15693_v6 }
 0x89d   : > { %12768 = vmatmul.mubr.msk.bf16.vlgmr.msra.gmra.mrb[96].mxu0 %vm2077_vm4, %v14011_v53 }
 0x89e   : > { %12786 = vmatpush3.bf16.msra.mxu0 %v15693_v6  ;;  %12771 = vmatprep.mubr.msk.bf16.mxu0 %vm2077_vm4, %v14012_v7 }
 0x89f   : > { %12787 = vmatprep.subr.bf16.mxu0 %v15691_v5 }
 0x8a2   : > { %12788 = vmatpush3.bf16.msra.mxu0 %v15691_v5 }
 0x8a3   : > { %12789 = vmatprep.subr.bf16.mxu0 %v15705_v31 }
 0x8a5   : > { %12772 = vmatmul.mubr.msk.bf16.gmra.mrb[100].mxu0 %vm2077_vm4, %v14013_v13  ;;  %v15852_v13 = vld [vmem:[%s16841_s7] sm:$0xf]  ;;  %s16847_s7 = sld [smem:[#allocation45_spill]] }
 0x8a6   : > { %12790 = vmatpush3.bf16.msra.mxu0 %v15705_v31  ;;  %12793 = vmatprep.mubr.msk.bf16.mxu0 %vm2077_vm4, %v14014_v62 }
 0x8a7   : > { %12791 = vmatprep.subr.bf16.mxu0 %v15701_v60 }
 0x8aa   : > { %12792 = vmatpush3.bf16.msra.mxu0 %v15701_v60 }
 0x8ab   : > { %12811 = vmatprep.subr.bf16.mxu0 %v15693_v6 }
 0x8ad   : > { %12794 = vmatmul.mubr.msk.bf16.vlgmr.msra.gmra.mrb[104].mxu0 %vm2077_vm4, %v14015_v1 }
 0x8ae   : > { %12812 = vmatpush3.bf16.msra.mxu0 %v15693_v6  ;;  %12797 = vmatprep.mubr.msk.bf16.mxu0 %vm2077_vm4, %v14016_v21 }
 0x8af   : > { %12813 = vmatprep.subr.bf16.mxu0 %v15691_v5 }
 0x8b2   : > { %12814 = vmatpush3.bf16.msra.mxu0 %v15691_v5 }
 0x8b3   : > { %12815 = vmatprep.subr.bf16.mxu0 %v15705_v31 }
 0x8b5   : > { %12798 = vmatmul.mubr.msk.bf16.gmra.mrb[108].mxu0 %vm2077_vm4, %v14017_v48 }
 0x8b6   : > { %12816 = vmatpush3.bf16.msra.mxu0 %v15705_v31  ;;  %12819 = vmatprep.mubr.msk.bf16.mxu0 %vm2077_vm4, %v14018_v57 }
 0x8b7   : > { %12817 = vmatprep.subr.bf16.mxu0 %v15701_v60 }
 0x8ba   : > { %12818 = vmatpush3.bf16.msra.mxu0 %v15701_v60 }
 0x8bb   : > { %12837 = vmatprep.subr.bf16.mxu0 %v15693_v6 }
 0x8bd   : > { %12820 = vmatmul.mubr.msk.bf16.vlgmr.msra.gmra.mrb[112].mxu0 %vm2077_vm4, %v14019_v54 }
 0x8be   : > { %12838 = vmatpush3.bf16.msra.mxu0 %v15693_v6  ;;  %12823 = vmatprep.mubr.msk.bf16.mxu0 %vm2077_vm4, %v14020_v29  ;;  %v4596_v29 = vsel %vm2285_vm5, %v11433_v41, 0 }
 0x8bf   : > { %12839 = vmatprep.subr.bf16.mxu0 %v15691_v5 }
 0x8c2   : > { %12840 = vmatpush3.bf16.msra.mxu0 %v15691_v5 }
 0x8c3   : > { %12841 = vmatprep.subr.bf16.mxu0 %v15705_v31 }
 0x8c5   : > { %12824 = vmatmul.mubr.msk.bf16.gmra.mrb[116].mxu0 %vm2077_vm4, %v14021_v30  ;;  %v11454_v30 = vld [vmem:[%s16840_s26 + $0xc] sm:$0xf] }
 0x8c6   : > { %12842 = vmatpush3.bf16.msra.mxu0 %v15705_v31  ;;  %12845 = vmatprep.mubr.msk.bf16.mxu0 %vm2077_vm4, %v14022_v39 }
 0x8c7   : > { %12843 = vmatprep.subr.bf16.mxu0 %v15701_v60 }
 0x8ca   : > { %12844 = vmatpush3.bf16.msra.mxu0 %v15701_v60 }
 0x8cb   : > { %12863 = vmatprep.subr.bf16.mxu0 %v15693_v6 }
 0x8cd   : > { %12846 = vmatmul.mubr.msk.bf16.vlgmr.msra.gmra.mrb[120].mxu0 %vm2077_vm4, %v14023_v45 }
 0x8ce   : > { %12864 = vmatpush3.bf16.msra.mxu0 %v15693_v6  ;;  %12849 = vmatprep.mubr.msk.bf16.mxu0 %vm2077_vm4, %v14024_v63 }
 0x8cf   : > { %12865 = vmatprep.subr.bf16.mxu0 %v15691_v5 }
 0x8d2   : > { %12866 = vmatpush3.bf16.msra.mxu0 %v15691_v5 }
 0x8d3   : > { %12867 = vmatprep.subr.bf16.mxu0 %v15705_v31 }
 0x8d5   : > { %12850 = vmatmul.mubr.msk.bf16.gmra.mrb[124].mxu0 %vm2077_vm4, %v14025_v28 }
 0x8d6   : > { %12868 = vmatpush3.bf16.msra.mxu0 %v15705_v31  ;;  %12871 = vmatprep.mubr.msk.bf16.mxu0 %vm2077_vm4, %v14026_v0 }
 0x8d7   : > { %12869 = vmatprep.subr.bf16.mxu0 %v15701_v60 }
 0x8da   : > { %12870 = vmatpush3.bf16.msra.mxu0 %v15701_v60 }
 0x8db   : > { %12889 = vmatprep.subr.bf16.mxu0 %v15693_v6 }
 0x8dd   : > { %12872 = vmatmul.mubr.msk.bf16.vlgmr.msra.gmra.mrb[128].mxu0 %vm2077_vm4, %v14027_v2 }
 0x8de   : > { %12890 = vmatpush3.bf16.msra.mxu0 %v15693_v6  ;;  %12875 = vmatprep.mubr.msk.bf16.mxu0 %vm2077_vm4, %v14028_v3  ;;  %v14031_v6 = vld [vmem:[%s16832_s2 + $0x108] sm:$0xff]  }
 0x8df   : > { %12891 = vmatprep.subr.bf16.mxu0 %v15691_v5 }
 0x8e2   : > { %12892 = vmatpush3.bf16.msra.mxu0 %v15691_v5  ;;  %v14033_v5 = vld [vmem:[%s16832_s2 + $0x118] sm:$0xff]  }
 0x8e3   : > { %12893 = vmatprep.subr.bf16.mxu0 %v15705_v31 }
 0x8e5   : > { %12876 = vmatmul.mubr.msk.bf16.gmra.mrb[132].mxu0 %vm2077_vm4, %v14029_v8 }
 0x8e6   : > { %12894 = vmatpush3.bf16.msra.mxu0 %v15705_v31  ;;  %12897 = vmatprep.mubr.msk.bf16.mxu0 %vm2077_vm4, %v14030_v10 }
 0x8e7   : > { %12895 = vmatprep.subr.bf16.mxu0 %v15701_v60 }
 0x8ea   : > { %12896 = vmatpush3.bf16.msra.mxu0 %v15701_v60 }
 0x8eb   : > { %13728 = vmatprep.subr.msk.bf16.mxu0 %vm2285_vm5, %v15852_v13 }
 0x8ed   : > { %12898 = vmatmul.mubr.msk.bf16.vlgmr.msra.gmra.mrb[136].mxu0 %vm2077_vm4, %v14031_v6 }
 0x8ee   : > { %12901 = vmatprep.mubr.msk.bf16.mxu0 %vm2077_vm4, %v14032_v11 }
 0x8f5   : > { %12902 = vmatmul.mubr.msk.bf16.gmra.mrb[140].mxu0 %vm2077_vm4, %v14033_v5  ;;  %v4796_v5 = vsel %vm2285_vm5, %v11454_v30, 0 }
 0x950   : > { %v12707_v15 = vpop.f32.mrb[80].mxu0  ;;  %v12691_v16 = vpop.f32.mrb[40].mxu1 }
 0x951   : > { %v4274_v19 = vpop.f32.mrb[81].mxu0  ;;  %v4163_v20 = vpop.f32.mrb[41].mxu1 }
 0x952   : > { %v12708_v24 = vpop.f32.mrb[82].mxu0  ;;  %v12692_v26 = vpop.f32.mrb[42].mxu1 }
 0x953   : > { %v4308_v27 = vpack.c.bf16 %v12708_v24, %v12707_v15  ;;  %v4277_v36 = vpop.f32.mrb[83].mxu0  ;;  %v4196_v59 = vpack.c.bf16 %v12692_v26, %v12691_v16  ;;  %v4166_v31 = vpop.f32.mrb[43].mxu1  ;;  %v11475_v15 = vld [vmem:[%s16840_s26 + $0x10] sm:$0xf] }
 0x954   : > { %v4307_v60 = vpack.c.bf16 %v4277_v36, %v4274_v19  ;;  %v4195_v34 = vpack.c.bf16 %v4166_v31, %v4163_v20 }
 0x956   : > { %12715 = vmatprep.mubr.msk.bf16.mxu1 %vm2272_vm6, %v4307_v60 }
 0x957   : > { %12716 = vmatmul.mubr.msk.bf16.vlgmr.msra.gmra.mrb[48].mxu1 %vm2272_vm6, %v4308_v27 }
 0x958   : > { %v12711_v37 = vpop.f32.mrb[84].mxu0  ;;  %12724 = vmatpush3.bf16.msra.mxu1 %v4404_v35  ;;  %v12695_v38 = vpop.f32.mrb[44].mxu1 }
 0x959   : > { %v4290_v40 = vpop.f32.mrb[85].mxu0  ;;  %v4179_v43 = vpop.f32.mrb[45].mxu1  ;;  %13721 = vmatprep.subr.msk.bf16.mxu1 %vm2285_vm5, %v11433_v41  ;;  %v4996_v41 = vsel %vm2285_vm5, %v11475_v15, 0 }
 0x95a   : > { %v12712_v17 = vpop.f32.mrb[86].mxu0  ;;  %v12696_v44 = vpop.f32.mrb[46].mxu1 }
 0x95b   : > { %v4310_v46 = vpack.c.bf16 %v12712_v17, %v12711_v37  ;;  %v4293_v47 = vpop.f32.mrb[87].mxu0  ;;  %v4198_v51 = vpack.c.bf16 %v12696_v44, %v12695_v38  ;;  %v4182_v49 = vpop.f32.mrb[47].mxu1  ;;  %v11496_v37 = vld [vmem:[%s16840_s26 + $0x14] sm:$0xf] }
 0x95c   : > { %v4309_v53 = vpack.c.bf16 %v4293_v47, %v4290_v40  ;;  %v4197_v7 = vpack.c.bf16 %v4182_v49, %v4179_v43 }
 0x95e   : > { %12719 = vmatprep.mubr.msk.bf16.mxu1 %vm2272_vm6, %v4309_v53 }
 0x95f   : > { %12720 = vmatmul.mubr.msk.bf16.gmra.mrb[52].mxu1 %vm2272_vm6, %v4310_v46 }
 0x960   : > { %12725 = vmatprep.mubr.msk.bf16.mxu1 %vm2272_vm6, %v4195_v34  ;;  %v12743_v62 = vpop.f32.mrb[88].mxu0 }
 0x961   : > { %v4546_v1 = vpop.f32.mrb[89].mxu0 }
 0x962   : > { %v12744_v21 = vpop.f32.mrb[90].mxu0 }
 0x963   : > { %v4580_v48 = vpack.c.bf16 %v12744_v21, %v12743_v62  ;;  %v4549_v57 = vpop.f32.mrb[91].mxu0  ;;  %v11517_v21 = vld [vmem:[%s16840_s26 + $0x18] sm:$0xf] }
 0x964   : > { %v4579_v54 = vpack.c.bf16 %v4549_v57, %v4546_v1  ;;  %v5196_v1 = vsel %vm2285_vm5, %v11496_v37, 0 }
 0x967   : > { %12726 = vmatmul.mubr.msk.bf16.vlgmr.msra.gmra.mrb[48].mxu1 %vm2272_vm6, %v4196_v59 }
 0x968   : > { %12729 = vmatprep.mubr.msk.bf16.mxu1 %vm2272_vm6, %v4197_v7  ;;  %12750 = vmatpush3.bf16.msra.mxu1 %v4596_v29  ;;  %v12747_v39 = vpop.f32.mrb[92].mxu0 }
 0x969   : > { %v4562_v45 = vpop.f32.mrb[93].mxu0  ;;  %13722 = vmatprep.subr.msk.bf16.mxu1 %vm2285_vm5, %v11454_v30 }
 0x96a   : > { %v12748_v63 = vpop.f32.mrb[94].mxu0 }
 0x96b   : > { %v4582_v28 = vpack.c.bf16 %v12748_v63, %v12747_v39  ;;  %v4565_v0 = vpop.f32.mrb[95].mxu0 }
 0x96c   : > { %v4581_v2 = vpack.c.bf16 %v4565_v0, %v4562_v45 }
 0x96f   : > { %12730 = vmatmul.mubr.msk.bf16.gmra.mrb[52].mxu1 %vm2272_vm6, %v4198_v51 }
 0x970   : > { %12751 = vmatprep.mubr.msk.bf16.mxu1 %vm2272_vm6, %v4579_v54  ;;  %v12769_v3 = vpop.f32.mrb[96].mxu0 }
 0x971   : > { %v4746_v4 = vpop.f32.mrb[97].mxu0 }
 0x972   : > { %v12770_v8 = vpop.f32.mrb[98].mxu0 }
 0x973   : > { %v4780_v10 = vpack.c.bf16 %v12770_v8, %v12769_v3  ;;  %v4749_v6 = vpop.f32.mrb[99].mxu0  ;;  %v11538_v8 = vld [vmem:[%s16840_s26 + $0x1c] sm:$0xf] }
 0x974   : > { %v4779_v11 = vpack.c.bf16 %v4749_v6, %v4746_v4  ;;  %v5396_v4 = vsel %vm2285_vm5, %v11517_v21, 0 }
 0x977   : > { %12752 = vmatmul.mubr.msk.bf16.vlgmr.msra.gmra.mrb[48].mxu1 %vm2272_vm6, %v4580_v48 }
 0x978   : > { %12755 = vmatprep.mubr.msk.bf16.mxu1 %vm2272_vm6, %v4581_v2  ;;  %12776 = vmatpush3.bf16.msra.mxu1 %v4796_v5  ;;  %v12773_v16 = vpop.f32.mrb[100].mxu0 }
 0x979   : > { %v4762_v19 = vpop.f32.mrb[101].mxu0  ;;  %13723 = vmatprep.subr.msk.bf16.mxu1 %vm2285_vm5, %v11475_v15 }
 0x97a   : > { %v12774_v20 = vpop.f32.mrb[102].mxu0 }
 0x97b   : > { %v4782_v24 = vpack.c.bf16 %v12774_v20, %v12773_v16  ;;  %v4765_v26 = vpop.f32.mrb[103].mxu0 }
 0x97c   : > { %v4781_v27 = vpack.c.bf16 %v4765_v26, %v4762_v19 }
 0x97f   : > { %12756 = vmatmul.mubr.msk.bf16.gmra.mrb[52].mxu1 %vm2272_vm6, %v4582_v28 }
 0x980   : > { %12777 = vmatprep.mubr.msk.bf16.mxu1 %vm2272_vm6, %v4779_v11  ;;  %v12795_v36 = vpop.f32.mrb[104].mxu0 }
 0x981   : > { %v4946_v59 = vpop.f32.mrb[105].mxu0 }
 0x982   : > { %v12796_v31 = vpop.f32.mrb[106].mxu0 }
 0x983   : > { %v4980_v60 = vpack.c.bf16 %v12796_v31, %v12795_v36  ;;  %v4949_v34 = vpop.f32.mrb[107].mxu0  ;;  %v11559_v31 = vld [vmem:[%s16840_s26 + $0x20] sm:$0xf] }
 0x984   : > { %v4979_v35 = vpack.c.bf16 %v4949_v34, %v4946_v59  ;;  %v5596_v59 = vsel %vm2285_vm5, %v11538_v8, 0 }
 0x987   : > { %12778 = vmatmul.mubr.msk.bf16.vlgmr.msra.gmra.mrb[48].mxu1 %vm2272_vm6, %v4780_v10 }
 0x988   : > { %12781 = vmatprep.mubr.msk.bf16.mxu1 %vm2272_vm6, %v4781_v27  ;;  %12802 = vmatpush3.bf16.msra.mxu1 %v4996_v41  ;;  %v12799_v38 = vpop.f32.mrb[108].mxu0 }
 0x989   : > { %v4962_v40 = vpop.f32.mrb[109].mxu0  ;;  %13724 = vmatprep.subr.msk.bf16.mxu1 %vm2285_vm5, %v11496_v37 }
 0x98a   : > { %v12800_v43 = vpop.f32.mrb[110].mxu0 }
 0x98b   : > { %v4982_v17 = vpack.c.bf16 %v12800_v43, %v12799_v38  ;;  %v4965_v44 = vpop.f32.mrb[111].mxu0 }
 0x98c   : > { %v4981_v46 = vpack.c.bf16 %v4965_v44, %v4962_v40 }
 0x98f   : > { %12782 = vmatmul.mubr.msk.bf16.gmra.mrb[52].mxu1 %vm2272_vm6, %v4782_v24 }
 0x990   : > { %12803 = vmatprep.mubr.msk.bf16.mxu1 %vm2272_vm6, %v4979_v35  ;;  %v12821_v47 = vpop.f32.mrb[112].mxu0 }
 0x991   : > { %v5146_v51 = vpop.f32.mrb[113].mxu0 }
 0x992   : > { %v12822_v49 = vpop.f32.mrb[114].mxu0 }
 0x993   : > { %v5180_v53 = vpack.c.bf16 %v12822_v49, %v12821_v47  ;;  %v5149_v7 = vpop.f32.mrb[115].mxu0 }
 0x994   : > { %v5179_v62 = vpack.c.bf16 %v5149_v7, %v5146_v51  ;;  %v5796_v51 = vsel %vm2285_vm5, %v11559_v31, 0 }
 0x997   : > { %12804 = vmatmul.mubr.msk.bf16.vlgmr.msra.gmra.mrb[48].mxu1 %vm2272_vm6, %v4980_v60 }
 0x998   : > { %12807 = vmatprep.mubr.msk.bf16.mxu1 %vm2272_vm6, %v4981_v46  ;;  %12828 = vmatpush3.bf16.msra.mxu1 %v5196_v1  ;;  %v12825_v48 = vpop.f32.mrb[116].mxu0 }
 0x999   : > { %v5162_v57 = vpop.f32.mrb[117].mxu0  ;;  %13725 = vmatprep.subr.msk.bf16.mxu1 %vm2285_vm5, %v11517_v21 }
 0x99a   : > { %v12826_v54 = vpop.f32.mrb[118].mxu0 }
 0x99b   : > { %v5182_v29 = vpack.c.bf16 %v12826_v54, %v12825_v48  ;;  %v5165_v30 = vpop.f32.mrb[119].mxu0  ;;  %v5919_v48 = vsel %vm2285_vm5, %v15852_v13, 0 }
 0x99c   : > { %v5181_v39 = vpack.c.bf16 %v5165_v30, %v5162_v57  ;;  %12916 = vmatpush3.bf16.msra.mxu0 %v5919_v48  ;;  %v11564_v57 = vld [vmem:[%s16842_s24] ss:$0 sm:$0xff]  ;;  %s16848_s24 = smov %s16847_s7 }
 0x99f   : > { %12808 = vmatmul.mubr.msk.bf16.gmra.mrb[52].mxu1 %vm2272_vm6, %v4982_v17 }
 0x9a0   : > { %12829 = vmatprep.mubr.msk.bf16.mxu1 %vm2272_vm6, %v5179_v62  ;;  %v12847_v45 = vpop.f32.mrb[120].mxu0 }
 0x9a1   : > { %v5346_v63 = vpop.f32.mrb[121].mxu0 }
 0x9a2   : > { %v12848_v28 = vpop.f32.mrb[122].mxu0 }
 0x9a3   : > { %v5380_v0 = vpack.c.bf16 %v12848_v28, %v12847_v45  ;;  %v5349_v2 = vpop.f32.mrb[123].mxu0 }
 0x9a4   : > { %v5379_v3 = vpack.c.bf16 %v5349_v2, %v5346_v63 }
 0x9a7   : > { %12830 = vmatmul.mubr.msk.bf16.vlgmr.msra.gmra.mrb[48].mxu1 %vm2272_vm6, %v5180_v53 }
 0x9a8   : > { %12833 = vmatprep.mubr.msk.bf16.mxu1 %vm2272_vm6, %v5181_v39  ;;  %12854 = vmatpush3.bf16.msra.mxu1 %v5396_v4  ;;  %v12851_v10 = vpop.f32.mrb[124].mxu0 }
 0x9a9   : > { %v5362_v6 = vpop.f32.mrb[125].mxu0  ;;  %13726 = vmatprep.subr.msk.bf16.mxu1 %vm2285_vm5, %v11538_v8 }
 0x9aa   : > { %v12852_v11 = vpop.f32.mrb[126].mxu0 }
 0x9ab   : > { %v5382_v5 = vpack.c.bf16 %v12852_v11, %v12851_v10  ;;  %v5365_v15 = vpop.f32.mrb[127].mxu0 }
 0x9ac   : > { %v5381_v16 = vpack.c.bf16 %v5365_v15, %v5362_v6 }
 0x9af   : > { %12834 = vmatmul.mubr.msk.bf16.gmra.mrb[52].mxu1 %vm2272_vm6, %v5182_v29 }
 0x9b0   : > { %12855 = vmatprep.mubr.msk.bf16.mxu1 %vm2272_vm6, %v5379_v3  ;;  %v12873_v19 = vpop.f32.mrb[128].mxu0 }
 0x9b1   : > { %v5546_v20 = vpop.f32.mrb[129].mxu0 }
 0x9b2   : > { %v12874_v24 = vpop.f32.mrb[130].mxu0 }
 0x9b3   : > { %v5580_v26 = vpack.c.bf16 %v12874_v24, %v12873_v19  ;;  %v5549_v27 = vpop.f32.mrb[131].mxu0 }
 0x9b4   : > { %v5579_v36 = vpack.c.bf16 %v5549_v27, %v5546_v20 }
 0x9b7   : > { %12856 = vmatmul.mubr.msk.bf16.vlgmr.msra.gmra.mrb[48].mxu1 %vm2272_vm6, %v5380_v0 }
 0x9b8   : > { %12859 = vmatprep.mubr.msk.bf16.mxu1 %vm2272_vm6, %v5381_v16  ;;  %12880 = vmatpush3.bf16.msra.mxu1 %v5596_v59  ;;  %v12877_v60 = vpop.f32.mrb[132].mxu0 }
 0x9b9   : > { %v5562_v34 = vpop.f32.mrb[133].mxu0  ;;  %13727 = vmatprep.subr.msk.bf16.mxu1 %vm2285_vm5, %v11559_v31 }
 0x9ba   : > { %v12878_v35 = vpop.f32.mrb[134].mxu0 }
 0x9bb   : > { %v5582_v41 = vpack.c.bf16 %v12878_v35, %v12877_v60  ;;  %v5565_v37 = vpop.f32.mrb[135].mxu0  ;;  %v14035_v35 = vld [vmem:[%s16843_s23 + $0x8] sm:$0xff]  }
 0x9bc   : > { %v5581_v38 = vpack.c.bf16 %v5565_v37, %v5562_v34  ;;  %v14034_v34 = vld [vmem:[%s16843_s23] sm:$0xff]  }
 0x9bd   : > { %12925 = vmatprep.subr.bf16.mxu0 %v14034_v34 }
 0x9bf   : > { %12860 = vmatmul.mubr.msk.bf16.gmra.mrb[52].mxu1 %vm2272_vm6, %v5382_v5 }
 0x9c0   : > { %12881 = vmatprep.mubr.msk.bf16.mxu1 %vm2272_vm6, %v5579_v36  ;;  %v12899_v40 = vpop.f32.mrb[136].mxu0 }
 0x9c1   : > { %v5746_v43 = vpop.f32.mrb[137].mxu0 }
 0x9c2   : > { %v12900_v17 = vpop.f32.mrb[138].mxu0 }
 0x9c3   : > { %v5780_v44 = vpack.c.bf16 %v12900_v17, %v12899_v40  ;;  %v5749_v46 = vpop.f32.mrb[139].mxu0 }
 0x9c4   : > { %v5779_v47 = vpack.c.bf16 %v5749_v46, %v5746_v43 }
 0x9c7   : > { %12882 = vmatmul.mubr.msk.bf16.vlgmr.msra.gmra.mrb[48].mxu1 %vm2272_vm6, %v5580_v26 }
 0x9c8   : > { %12885 = vmatprep.mubr.msk.bf16.mxu1 %vm2272_vm6, %v5581_v38  ;;  %12906 = vmatpush3.bf16.msra.mxu1 %v5796_v51  ;;  %v12903_v49 = vpop.f32.mrb[140].mxu0 }
 0x9c9   : > { %v5762_v53 = vpop.f32.mrb[141].mxu0  ;;  %12937 = vmatprep.subr.bf16.mxu1 %v14603_v52 }
 0x9ca   : > { %v12904_v7 = vpop.f32.mrb[142].mxu0 }
 0x9cb   : > { %v5782_v62 = vpack.c.bf16 %v12904_v7, %v12903_v49  ;;  %v5765_v1 = vpop.f32.mrb[143].mxu0 }
 0x9cc   : > { %v5781_v21 = vpack.c.bf16 %v5765_v1, %v5762_v53 }
 0x9cf   : > { %12886 = vmatmul.mubr.msk.bf16.gmra.mrb[52].mxu1 %vm2272_vm6, %v5582_v41  ;;  %v11565_v41 = vld [vmem:[%s16844_s18] ss:$0 sm:$0xff]  ;;  %s16849_s18 = sld [smem:[#allocation50_spill]] }
 0x9d0   : > { %12907 = vmatprep.mubr.msk.bf16.mxu1 %vm2272_vm6, %v5779_v47 }
 0x9d7   : > { %12908 = vmatmul.mubr.msk.bf16.vlgmr.msra.gmra.mrb[48].mxu1 %vm2272_vm6, %v5780_v44 }
 0x9d8   : > { %12911 = vmatprep.mubr.msk.bf16.mxu1 %vm2272_vm6, %v5781_v21 }
 0x9df   : > { %12912 = vmatmul.mubr.msk.bf16.gmra.mrb[52].mxu1 %vm2272_vm6, %v5782_v62 }
 0x9e0   : > { %12945 = vmatprep.mubr.msk.bf16.mxu1 %vm14604_vm7, %v14603_v52 }
 0xaaa   : > { %v12909_v54 = vpop.f32.mrb[48].mxu1 }
 0xaab   : > { %v5880_v29 = vadd.f32 %v12909_v54, %v11564_v57  ;;  %v5832_v30 = vpop.f32.mrb[49].mxu1 }
 0xaac   : > { %v5878_v39 = vadd.f32 %v11564_v57, %v5832_v30  ;;  %v12910_v45 = vpop.f32.mrb[50].mxu1 }
 0xaad   : > { %v5881_v63 = vadd.f32 %v12910_v45, %v11564_v57  ;;  %v5835_v28 = vpop.f32.mrb[51].mxu1  ;;  %v5888_v2 = vmax.f32 %v5880_v29, 0.0 }
 0xaae   : > { %v5879_v0 = vadd.f32 %v11564_v57, %v5835_v28  ;;  %v5886_v4 = vmax.f32 %v5878_v39, 0.0 }
 0xaaf   : > { %v5889_v3 = vmax.f32 %v5881_v63, 0.0 }
 0xab0   : > { %v5887_v8 = vmax.f32 %v5879_v0, 0.0 }
 0xab1   : > { %v5896_v10 = vpack.c.bf16 %v5889_v3, %v5888_v2 }
 0xab2   : > { %v5895_v6 = vpack.c.bf16 %v5887_v8, %v5886_v4  ;;  %v12913_v11 = vpop.f32.mrb[52].mxu1 }
 0xab3   : > { %v5884_v5 = vadd.f32 %v12913_v11, %v11564_v57  ;;  %v5848_v15 = vpop.f32.mrb[53].mxu1 }
 0xab4   : > { %v5882_v13 = vadd.f32 %v11564_v57, %v5848_v15  ;;  %v12914_v16 = vpop.f32.mrb[54].mxu1  ;;  %12917 = vmatprep.mubr.msk.bf16.mxu0 %vm2272_vm6, %v5895_v6 }
 0xab5   : > { %v5885_v19 = vadd.f32 %v12914_v16, %v11564_v57  ;;  %v5851_v20 = vpop.f32.mrb[55].mxu1  ;;  %12918 = vmatmul.mubr.msk.bf16.vlgmr.msra.gmra.mrb[144].mxu0 %vm2272_vm6, %v5896_v10  ;;  %v5892_v26 = vmax.f32 %v5884_v5, 0.0 }
 0xab6   : > { %v5883_v24 = vadd.f32 %v11564_v57, %v5851_v20  ;;  %v5890_v36 = vmax.f32 %v5882_v13, 0.0  ;;  %12926 = vmatpush3.bf16.msra.mxu0 %v14034_v34 }
 0xab7   : > { %v5893_v27 = vmax.f32 %v5885_v19, 0.0  ;;  %12927 = vmatprep.subr.bf16.mxu0 %v14035_v35 }
 0xab8   : > { %v5891_v59 = vmax.f32 %v5883_v24, 0.0 }
 0xab9   : > { %v5898_v31 = vpack.c.bf16 %v5893_v27, %v5892_v26 }
 0xaba   : > { %v5897_v60 = vpack.c.bf16 %v5891_v59, %v5890_v36  ;;  %12928 = vmatpush3.bf16.msra.mxu0 %v14035_v35 }
 0xabb   : > { %12949 = vmatprep.subr.bf16.mxu0 %v14603_v52 }
 0xabc   : > { %12921 = vmatprep.mubr.msk.bf16.mxu0 %vm2272_vm6, %v5897_v60 }
 0xabd   : > { %12922 = vmatmul.mubr.msk.bf16.gmra.mrb[148].mxu0 %vm2272_vm6, %v5898_v31 }
 0xb88   : > { %v12919_v37 = vpop.f32.mrb[144].mxu0 }
 0xb89   : > { %v5964_v38 = vadd.f32 %v12919_v37, %v11565_v41  ;;  %v5955_v40 = vpop.f32.mrb[145].mxu0 }
 0xb8a   : > { %v5956_v43 = vadd.f32 %v11565_v41, %v5955_v40  ;;  %v12920_v17 = vpop.f32.mrb[146].mxu0 }
 0xb8b   : > { %v5988_v44 = vmax.f32 %v5964_v38, 0.0  ;;  %v5967_v46 = vadd.f32 %v12920_v17, %v11565_v41  ;;  %v5958_v47 = vpop.f32.mrb[147].mxu0 }
 0xb8c   : > { %v5986_v51 = vmax.f32 %v5956_v43, 0.0  ;;  %v5959_v49 = vadd.f32 %v11565_v41, %v5958_v47 }
 0xb8d   : > { %v5996_v53 = vadd.f32 %v5988_v44, %v3967_v32  ;;  %v5989_v7 = vmax.f32 %v5967_v46, 0.0 }
 0xb8e   : > { %v5994_v62 = vadd.f32 %v5986_v51, %v3965_v42  ;;  %v5987_v1 = vmax.f32 %v5959_v49, 0.0 }
 0xb8f   : > { %v5997_v21 = vadd.f32 %v5989_v7, %v3968_v25  ;;  %v6004_v54 = vmax.f32 %v5996_v53, 0.0  ;;  %v14036_v53 = vld [vmem:[%s16846_s16 + $0x8] sm:$0xff]   ;;  %v14037_v7 = vld [vmem:[%s16846_s16] sm:$0xff]  }
 0xb90   : > { %v5995_v48 = vadd.f32 %v5987_v1, %v3966_v50  ;;  %v12923_v57 = vpop.f32.mrb[148].mxu0  ;;  %v6002_v45 = vmax.f32 %v5994_v62, 0.0  ;;  %v14038_v62 = vld [vmem:[%s16846_s16 + $0x10] sm:$0xff]   ;;  %v14039_v1 = vld [vmem:[%s16847_s7 + $0x8] sm:$0xff]   ;;  %s16851_s7 = sld [smem:[#allocation46_spill]] }
 0xb91   : > { %v6005_v29 = vmax.f32 %v5997_v21, 0.0  ;;  %v5980_v30 = vadd.f32 %v12923_v57, %v11565_v41  ;;  %v5971_v39 = vpop.f32.mrb[149].mxu0 }
 0xb92   : > { %v6003_v63 = vmax.f32 %v5995_v48, 0.0  ;;  %v5972_v12 = vadd.f32 %v11565_v41, %v5971_v39  ;;  %v12924_v32 = vpop.f32.mrb[150].mxu0  ;;  %v14040_v39 = vld [vmem:[%s16848_s24] sm:$0xff]  }
 0xb93   : > { %v15925_v28 = vpack.c.bf16 %v6005_v29, %v6004_v54  ;;  %v5992_v9 = vmax.f32 %v5980_v30, 0.0  ;;  %v5983_v42 = vadd.f32 %v12924_v32, %v11565_v41  ;;  %v5974_v0 = vpop.f32.mrb[151].mxu0 }
 0xb94   : > { %v15927_v2 = vpack.c.bf16 %v6003_v63, %v6002_v45  ;;  %v5990_v18 = vmax.f32 %v5972_v12, 0.0  ;;  %v5975_v25 = vadd.f32 %v11565_v41, %v5974_v0 }
 0xb95   : > { %v6000_v22 = vadd.f32 %v5992_v9, %v3971_v61  ;;  %v5993_v50 = vmax.f32 %v5983_v42, 0.0  ;;  %v14041_v9 = vld [vmem:[%s16848_s24 + $0x10] sm:$0xff]  }
 0xb96   : > { %v5998_v3 = vadd.f32 %v5990_v18, %v3969_v14  ;;  %v5991_v4 = vmax.f32 %v5975_v25, 0.0  ;;  %12929 = vmatprep.mubr.msk.bf16.mxu0 %vm1959_vm3, %v15927_v2 }
 0xb97   : > { %v6001_v8 = vadd.f32 %v5993_v50, %v3972_v56  ;;  %12930 = vmatmul.mubr.msk.bf16.vlgmr.msra.gmra.mrb[152].mxu0 %vm1959_vm3, %v15925_v28  ;;  %v6008_v33 = vmax.f32 %v6000_v22, 0.0  ;;  %v14042_v50 = vld [vmem:[%s16846_s16 + $0x18] sm:$0xff]  }
 0xb98   : > { %v5999_v10 = vadd.f32 %v5991_v4, %v3970_v58  ;;  %v6006_v6 = vmax.f32 %v5998_v3, 0.0  ;;  %v14043_v3 = vld [vmem:[%s16848_s24 + $0x18] sm:$0xff]  }
 0xb99   : > { %v6009_v61 = vmax.f32 %v6001_v8, 0.0 }
 0xb9a   : > { %v6007_v11 = vmax.f32 %v5999_v10, 0.0 }
 0xb9b   : > { %v15941_v23 = vpack.c.bf16 %v6009_v61, %v6008_v33 }
 0xb9c   : > { %v15943_v14 = vpack.c.bf16 %v6007_v11, %v6006_v6 }
 0xb9e   : > { %12933 = vmatprep.mubr.msk.bf16.mxu0 %vm1959_vm3, %v15943_v14 }
 0xb9f   : > { %12934 = vmatmul.mubr.msk.bf16.gmra.mrb[156].mxu0 %vm1959_vm3, %v15941_v23 }
 0xba0   : > { %12957 = vmatprep.mubr.msk.bf16.mxu0 %vm14604_vm7, %v14603_v52 }
 0xc6a   : > { %v12931_v56 = vpop.f32.mrb[152].mxu0 }
 0xc6b   : > { %v6092_v58 = vadd.f32 %v12931_v56, %v11570_v55  ;;  %v6083_v5 = vpop.f32.mrb[153].mxu0 }
 0xc6c   : > { %v6084_v15 = vadd.f32 %v11570_v55, %v6083_v5  ;;  %v12932_v13 = vpop.f32.mrb[154].mxu0 }
 0xc6d   : > { %v6095_v16 = vadd.f32 %v12932_v13, %v11570_v55  ;;  %v6086_v19 = vpop.f32.mrb[155].mxu0  ;;  %v6116_v24 = vmax.f32 %v6092_v58, 0.0 }
 0xc6e   : > { %v6087_v20 = vadd.f32 %v11570_v55, %v6086_v19  ;;  %v6114_v27 = vmax.f32 %v6084_v15, 0.0 }
 0xc6f   : > { %v6117_v26 = vmax.f32 %v6095_v16, 0.0 }
 0xc70   : > { %v6115_v36 = vmax.f32 %v6087_v20, 0.0 }
 0xc71   : > { %v15956_v59 = vpack.c.bf16 %v6117_v26, %v6116_v24 }
 0xc72   : > { %v15958_v31 = vpack.c.bf16 %v6115_v36, %v6114_v27  ;;  %v12935_v60 = vpop.f32.mrb[156].mxu0 }
 0xc73   : > { %v6108_v34 = vadd.f32 %v12935_v60, %v11570_v55  ;;  %v6099_v35 = vpop.f32.mrb[157].mxu0 }
 0xc74   : > { %v6100_v41 = vadd.f32 %v11570_v55, %v6099_v35  ;;  %v12936_v37 = vpop.f32.mrb[158].mxu0  ;;  %12938 = vmatpush3.bf16.msra.mxu1 %v15958_v31  ;;  %12950 = vmatpush3.bf16.msra.mxu0 %v15958_v31  ;;  %v14045_v35 = vld [vmem:[%s16848_s24 + $0x20] sm:$0xff]  }
 0xc75   : > { %v6111_v38 = vadd.f32 %v12936_v37, %v11570_v55  ;;  %v6102_v40 = vpop.f32.mrb[159].mxu0  ;;  %12939 = vmatprep.subr.bf16.mxu1 %v14603_v52  ;;  %12951 = vmatprep.subr.bf16.mxu0 %v14603_v52  ;;  %v6120_v17 = vmax.f32 %v6108_v34, 0.0  ;;  %v14044_v34 = vld [vmem:[%s16846_s16 + $0x20] sm:$0xff]  }
 0xc76   : > { %v6103_v43 = vadd.f32 %v11570_v55, %v6102_v40  ;;  %v6118_v46 = vmax.f32 %v6100_v41, 0.0 }
 0xc77   : > { %v6121_v44 = vmax.f32 %v6111_v38, 0.0 }
 0xc78   : > { %v6119_v47 = vmax.f32 %v6103_v43, 0.0  ;;  %12940 = vmatpush3.bf16.msra.mxu1 %v15956_v59  ;;  %12952 = vmatpush3.bf16.msra.mxu0 %v15956_v59 }
 0xc79   : > { %v15966_v51 = vpack.c.bf16 %v6121_v44, %v6120_v17  ;;  %12941 = vmatprep.subr.bf16.mxu1 %v14603_v52  ;;  %12953 = vmatprep.subr.bf16.mxu0 %v14603_v52 }
 0xc7a   : > { %v15970_v49 = vpack.c.bf16 %v6119_v47, %v6118_v46 }
 0xc7c   : > { %12942 = vmatpush3.bf16.msra.mxu1 %v15970_v49  ;;  %12954 = vmatpush3.bf16.msra.mxu0 %v15970_v49 }
 0xc7d   : > { %12943 = vmatprep.subr.bf16.mxu1 %v14603_v52  ;;  %12955 = vmatprep.subr.bf16.mxu0 %v14603_v52 }
 0xc80   : > { %12944 = vmatpush3.bf16.msra.mxu1 %v15966_v51  ;;  %12956 = vmatpush3.bf16.msra.mxu0 %v15966_v51 }
 0xc81   : > { %12973 = vmatprep.subr.bf16.mxu0 %v14603_v52  ;;  %12961 = vmatprep.subr.bf16.mxu1 %v14603_v52 }
 0xc83   : > { %12958 = vmatmul.mubr.msk.bf16.vlgmr.msra.gmra.mrb[160].mxu0 %vm2077_vm4, %v14036_v53  ;;  %12946 = vmatmul.mubr.msk.bf16.vlgmr.msra.gmra.mrb[56].mxu1 %vm2077_vm4, %v14037_v7 }
 0xc84   : > { %12974 = vmatpush3.bf16.msra.mxu0 %v15958_v31  ;;  %12981 = vmatprep.mubr.msk.bf16.mxu0 %vm14604_vm7, %v14603_v52 }
 0xc85   : > { %12975 = vmatprep.subr.bf16.mxu0 %v14603_v52  ;;  %12963 = vmatprep.mubr.msk.bf16.mxu1 %vm14604_vm7, %v14603_v52 }
 0xc86   : > { %12962 = vmatpush3.bf16.msra.mxu1 %v14039_v1  ;;  %v14047_v1 = vld [vmem:[%s16848_s24 + $0x28] sm:$0xff]  }
 0xc87   : > { %12967 = vmatprep.subr.bf16.mxu1 %v14603_v52 }
 0xc88   : > { %12976 = vmatpush3.bf16.msra.mxu0 %v15956_v59 }
 0xc89   : > { %12977 = vmatprep.subr.bf16.mxu0 %v14603_v52 }
 0xc8c   : > { %12978 = vmatpush3.bf16.msra.mxu0 %v15970_v49 }
 0xc8d   : > { %12979 = vmatprep.subr.bf16.mxu0 %v14603_v52 }
 0xc90   : > { %12980 = vmatpush3.bf16.msra.mxu0 %v15966_v51 }
 0xc91   : > { %13003 = vmatprep.subr.bf16.mxu0 %v14603_v52 }
 0xc93   : > { %12982 = vmatmul.mubr.msk.bf16.vlgmr.msra.gmra.mrb[164].mxu0 %vm2077_vm4, %v14038_v62  ;;  %v14046_v62 = vld [vmem:[%s16846_s16 + $0x28] sm:$0xff]  }
 0xc94   : > { %13005 = vmatprep.mubr.msk.bf16.mxu0 %vm14604_vm7, %v14603_v52  ;;  %13004 = vmatpush3.bf16.msra.mxu0 %v14043_v3 }
 0xc95   : > { %13009 = vmatprep.subr.bf16.mxu0 %v14603_v52 }
 0xd56   : > { %v6225_v21 = vpop.f32.mrb[160].mxu0  ;;  %v6170_v48 = vpop.f32.mrb[56].mxu1 }
 0xd57   : > { %v12959_v57 = vpop.f32.mrb[161].mxu0  ;;  %v12947_v54 = vpop.f32.mrb[57].mxu1 }
 0xd58   : > { %v6228_v29 = vpop.f32.mrb[162].mxu0  ;;  %v6173_v30 = vpop.f32.mrb[58].mxu1 }
 0xd59   : > { %v6235_v45 = vpack.c.bf16 %v6228_v29, %v6225_v21  ;;  %v12960_v63 = vpop.f32.mrb[163].mxu0  ;;  %v6179_v12 = vpack.c.bf16 %v6173_v30, %v6170_v48  ;;  %v12948_v32 = vpop.f32.mrb[59].mxu1 }
 0xd5b   : > { %12964 = vmatmul.mubr.msk.bf16.vlgmr.msra.gmra.mrb[60].mxu1 %vm6242_vm8, %v6235_v45 }
 0xd5c   : > { %12968 = vmatpush3.bf16.msra.mxu1 %v14040_v39  ;;  %12969 = vmatprep.mubr.msk.bf16.mxu1 %vm14604_vm7, %v14603_v52 }
 0xd5d   : > { %12985 = vmatprep.subr.bf16.mxu1 %v14603_v52 }
 0xd63   : > { %12970 = vmatmul.mubr.msk.bf16.vlgmr.msra.gmra.mrb[64].mxu1 %vm6242_vm8, %v6179_v12 }
 0xd64   : > { %12986 = vmatpush3.bf16.msra.mxu1 %v14041_v9  ;;  %12987 = vmatprep.mubr.msk.bf16.mxu1 %vm14604_vm7, %v14603_v52  ;;  %v14048_v9 = vld [vmem:[%s16846_s16 + $0x30] sm:$0xff]  }
 0xd65   : > { %12991 = vmatprep.subr.bf16.mxu1 %v14603_v52 }
 0xd66   : > { %v6382_v42 = vpop.f32.mrb[164].mxu0 }
 0xd67   : > { %v12983_v0 = vpop.f32.mrb[165].mxu0 }
 0xd68   : > { %v6385_v18 = vpop.f32.mrb[166].mxu0 }
 0xd69   : > { %v6392_v25 = vpack.c.bf16 %v6385_v18, %v6382_v42  ;;  %v12984_v22 = vpop.f32.mrb[167].mxu0  ;;  %v14049_v42 = vld [vmem:[%s16848_s24 + $0x30] sm:$0xff]  }
 0xd6b   : > { %12988 = vmatmul.mubr.msk.bf16.vlgmr.msra.gmra.mrb[68].mxu1 %vm6242_vm8, %v6392_v25 }
 0xd6c   : > { %12992 = vmatpush3.bf16.msra.mxu1 %v15958_v31  ;;  %12999 = vmatprep.mubr.msk.bf16.mxu1 %vm14604_vm7, %v14603_v52 }
 0xd6d   : > { %12993 = vmatprep.subr.bf16.mxu1 %v14603_v52 }
 0xd70   : > { %12994 = vmatpush3.bf16.msra.mxu1 %v15956_v59 }
 0xd71   : > { %12995 = vmatprep.subr.bf16.mxu1 %v14603_v52 }
 0xd74   : > { %12996 = vmatpush3.bf16.msra.mxu1 %v15970_v49 }
 0xd75   : > { %12997 = vmatprep.subr.bf16.mxu1 %v14603_v52 }
 0xd78   : > { %12998 = vmatpush3.bf16.msra.mxu1 %v15966_v51 }
 0xd79   : > { %13021 = vmatprep.subr.bf16.mxu1 %v14603_v52 }
 0xd7b   : > { %13000 = vmatmul.mubr.msk.bf16.vlgmr.msra.gmra.mrb[72].mxu1 %vm2077_vm4, %v14042_v50 }
 0xd7c   : > { %13023 = vmatprep.mubr.msk.bf16.mxu1 %vm14604_vm7, %v14603_v52  ;;  %13022 = vmatpush3.bf16.msra.mxu1 %v14045_v35 }
 0xd7d   : > { %13027 = vmatprep.subr.bf16.mxu1 %v14603_v52 }
 0xe2e   : > { %v6280_v4 = vpop.f32.mrb[60].mxu1 }
 0xe2f   : > { %v12965_v8 = vpop.f32.mrb[61].mxu1 }
 0xe30   : > { %v6283_v10 = vpop.f32.mrb[62].mxu1 }
 0xe31   : > { %v12966_v33 = vpop.f32.mrb[63].mxu1 }
 0xe36   : > { %v6330_v61 = vpop.f32.mrb[64].mxu1 }
 0xe37   : > { %v6331_v6 = vadd.f32 %v6330_v61, %v6280_v4  ;;  %v12971_v11 = vpop.f32.mrb[65].mxu1 }
 0xe38   : > { %v6333_v55 = vpop.f32.mrb[66].mxu1  ;;  %v14051_v11 = vld [vmem:[%s16848_s24 + $0x38] sm:$0xff]  }
 0xe39   : > { %v6334_v56 = vadd.f32 %v6333_v55, %v6283_v10  ;;  %v12972_v58 = vpop.f32.mrb[67].mxu1 }
 0xe3e   : > { %v6436_v5 = vpop.f32.mrb[68].mxu1 }
 0xe3f   : > { %v6443_v15 = vadd.f32 %v6436_v5, %v6331_v6  ;;  %v12989_v13 = vpop.f32.mrb[69].mxu1  ;;  %v14050_v6 = vld [vmem:[%s16846_s16 + $0x38] sm:$0xff]  }
 0xe40   : > { %v6439_v16 = vpop.f32.mrb[70].mxu1 }
 0xe41   : > { %v6444_v19 = vadd.f32 %v6439_v16, %v6334_v56  ;;  %v12990_v20 = vpop.f32.mrb[71].mxu1 }
 0xe4e   : > { %v6490_v24 = vpop.f32.mrb[72].mxu1 }
 0xe4f   : > { %v13001_v26 = vpop.f32.mrb[73].mxu1 }
 0xe50   : > { %v6493_v27 = vpop.f32.mrb[74].mxu1 }
 0xe51   : > { %v6500_v36 = vpack.c.bf16 %v6493_v27, %v6490_v24  ;;  %v13002_v60 = vpop.f32.mrb[75].mxu1  ;;  %v14052_v27 = vld [vmem:[%s16846_s16 + $0x40] sm:$0xff]  }
 0xe53   : > { %13006 = vmatmul.mubr.msk.bf16.vlgmr.msra.gmra.mrb[168].mxu0 %vm6242_vm8, %v6500_v36 }
 0xe54   : > { %13010 = vmatpush3.bf16.msra.mxu0 %v15958_v31  ;;  %13017 = vmatprep.mubr.msk.bf16.mxu0 %vm14604_vm7, %v14603_v52 }
 0xe55   : > { %13011 = vmatprep.subr.bf16.mxu0 %v14603_v52 }
 0xe58   : > { %13012 = vmatpush3.bf16.msra.mxu0 %v15956_v59 }
 0xe59   : > { %13013 = vmatprep.subr.bf16.mxu0 %v14603_v52 }
 0xe5c   : > { %13014 = vmatpush3.bf16.msra.mxu0 %v15970_v49 }
 0xe5d   : > { %13015 = vmatprep.subr.bf16.mxu0 %v14603_v52 }
 0xe60   : > { %13016 = vmatpush3.bf16.msra.mxu0 %v15966_v51 }
 0xe61   : > { %13039 = vmatprep.subr.bf16.mxu0 %v14603_v52 }
 0xe63   : > { %13018 = vmatmul.mubr.msk.bf16.vlgmr.msra.gmra.mrb[172].mxu0 %vm2077_vm4, %v14044_v34 }
 0xe64   : > { %13041 = vmatprep.mubr.msk.bf16.mxu0 %vm14604_vm7, %v14603_v52  ;;  %13040 = vmatpush3.bf16.msra.mxu0 %v14047_v1 }
 0xe65   : > { %13045 = vmatprep.subr.bf16.mxu0 %v14603_v52 }
 0xf26   : > { %v6544_v41 = vpop.f32.mrb[168].mxu0 }
 0xf27   : > { %v6551_v37 = vadd.f32 %v6544_v41, %v6443_v15  ;;  %v13007_v38 = vpop.f32.mrb[169].mxu0 }
 0xf28   : > { %v6547_v40 = vpop.f32.mrb[170].mxu0 }
 0xf29   : > { %v6552_v43 = vadd.f32 %v6547_v40, %v6444_v19  ;;  %v13008_v17 = vpop.f32.mrb[171].mxu0 }
 0xf36   : > { %v6598_v44 = vpop.f32.mrb[172].mxu0 }
 0xf37   : > { %v13019_v46 = vpop.f32.mrb[173].mxu0 }
 0xf38   : > { %v6601_v47 = vpop.f32.mrb[174].mxu0 }
 0xf39   : > { %v6608_v53 = vpack.c.bf16 %v6601_v47, %v6598_v44  ;;  %v13020_v7 = vpop.f32.mrb[175].mxu0  ;;  %v11645_v47 = vld [vmem:[%s16851_s7] ss:$0 sm:$0xff]  ;;  %s16856_s7 = sld [smem:[#allocation54_spill]] }
 0xf3b   : > { %13024 = vmatmul.mubr.msk.bf16.vlgmr.msra.gmra.mrb[76].mxu1 %vm6242_vm8, %v6608_v53 }
 0xf3c   : > { %13028 = vmatpush3.bf16.msra.mxu1 %v15958_v31  ;;  %13035 = vmatprep.mubr.msk.bf16.mxu1 %vm14604_vm7, %v14603_v52 }
 0xf3d   : > { %13029 = vmatprep.subr.bf16.mxu1 %v14603_v52 }
 0xf3f   : > { %s16857_s2 = smov %s16856_s7 }
 0xf40   : > { %13030 = vmatpush3.bf16.msra.mxu1 %v15956_v59 }
 0xf41   : > { %13031 = vmatprep.subr.bf16.mxu1 %v14603_v52 }
 0xf44   : > { %13032 = vmatpush3.bf16.msra.mxu1 %v15970_v49 }
 0xf45   : > { %13033 = vmatprep.subr.bf16.mxu1 %v14603_v52 }
 0xf48   : > { %13034 = vmatpush3.bf16.msra.mxu1 %v15966_v51 }
 0xf49   : > { %13057 = vmatprep.subr.bf16.mxu1 %v14603_v52 }
 0xf4b   : > { %13036 = vmatmul.mubr.msk.bf16.vlgmr.msra.gmra.mrb[80].mxu1 %vm2077_vm4, %v14046_v62 }
 0xf4c   : > { %13059 = vmatprep.mubr.msk.bf16.mxu1 %vm14604_vm7, %v14603_v52  ;;  %13058 = vmatpush3.bf16.msra.mxu1 %v14049_v42  ;;  %v11646_v42 = vld [vmem:[#allocation2] ss:$0 sm:$0xff] }
 0xf4d   : > { %13063 = vmatprep.subr.bf16.mxu1 %v14603_v52 }
0x100e   : > { %v6652_v21 = vpop.f32.mrb[76].mxu1 }
0x100f   : > { %v6659_v48 = vadd.f32 %v6652_v21, %v6551_v37  ;;  %v13025_v57 = vpop.f32.mrb[77].mxu1  ;;  %v14055_v37 = vld [vmem:[%s16850_s11] sm:$0xff]   ;;  %s16854_s11 = sld [smem:[#allocation57_spill]] }
0x1010   : > { %v6655_v54 = vpop.f32.mrb[78].mxu1 }
0x1011   : > { %v6660_v29 = vadd.f32 %v6655_v54, %v6552_v43  ;;  %v13026_v30 = vpop.f32.mrb[79].mxu1 }
0x101e   : > { %v6706_v39 = vpop.f32.mrb[80].mxu1 }
0x101f   : > { %v13037_v45 = vpop.f32.mrb[81].mxu1 }
0x1020   : > { %v6709_v63 = vpop.f32.mrb[82].mxu1 }
0x1021   : > { %v6716_v12 = vpack.c.bf16 %v6709_v63, %v6706_v39  ;;  %v13038_v32 = vpop.f32.mrb[83].mxu1  ;;  %v14058_v63 = vld [vmem:[%s16853_s1] sm:$0xff]  }
0x1022   : > { %v14060_v32 = vld [vmem:[%s16853_s1 + $0x10] sm:$0xff]  }
0x1023   : > { %13042 = vmatmul.mubr.msk.bf16.vlgmr.msra.gmra.mrb[176].mxu0 %vm6242_vm8, %v6716_v12  ;;  %v14059_v12 = vld [vmem:[%s16853_s1 + $0x8] sm:$0xff]  }
0x1024   : > { %13046 = vmatpush3.bf16.msra.mxu0 %v15958_v31  ;;  %13053 = vmatprep.mubr.msk.bf16.mxu0 %vm14604_vm7, %v14603_v52 }
0x1025   : > { %13047 = vmatprep.subr.bf16.mxu0 %v14603_v52 }
0x1028   : > { %13048 = vmatpush3.bf16.msra.mxu0 %v15956_v59 }
0x1029   : > { %13049 = vmatprep.subr.bf16.mxu0 %v14603_v52 }
0x102c   : > { %13050 = vmatpush3.bf16.msra.mxu0 %v15970_v49 }
0x102d   : > { %13051 = vmatprep.subr.bf16.mxu0 %v14603_v52 }
0x1030   : > { %13052 = vmatpush3.bf16.msra.mxu0 %v15966_v51 }
0x1031   : > { %13075 = vmatprep.subr.bf16.mxu0 %v14603_v52 }
0x1033   : > { %13054 = vmatmul.mubr.msk.bf16.vlgmr.msra.gmra.mrb[180].mxu0 %vm2077_vm4, %v14048_v9  ;;  %v14061_v9 = vld [vmem:[%s16853_s1 + $0x18] sm:$0xff]   ;;  %s16855_s1 = smov %s16854_s11 }
0x1034   : > { %13077 = vmatprep.mubr.msk.bf16.mxu0 %vm14604_vm7, %v14603_v52  ;;  %13076 = vmatpush3.bf16.msra.mxu0 %v14051_v11 }
0x1035   : > { %13081 = vmatprep.subr.bf16.mxu0 %v14603_v52 }
0x10f6   : > { %v6760_v0 = vpop.f32.mrb[176].mxu0 }
0x10f7   : > { %v6767_v18 = vadd.f32 %v6760_v0, %v6659_v48  ;;  %v13043_v25 = vpop.f32.mrb[177].mxu0 }
0x10f8   : > { %v6763_v22 = vpop.f32.mrb[178].mxu0 }
0x10f9   : > { %v6768_v50 = vadd.f32 %v6763_v22, %v6660_v29  ;;  %v13044_v3 = vpop.f32.mrb[179].mxu0 }
0x1106   : > { %v6814_v4 = vpop.f32.mrb[180].mxu0 }
0x1107   : > { %v13055_v8 = vpop.f32.mrb[181].mxu0 }
0x1108   : > { %v6817_v10 = vpop.f32.mrb[182].mxu0 }
0x1109   : > { %v6824_v33 = vpack.c.bf16 %v6817_v10, %v6814_v4  ;;  %v13056_v61 = vpop.f32.mrb[183].mxu0  ;;  %v11654_v10 = vld [vmem:[#allocation5] ss:$0 sm:$0xff] }
0x110b   : > { %13060 = vmatmul.mubr.msk.bf16.vlgmr.msra.gmra.mrb[84].mxu1 %vm6242_vm8, %v6824_v33 }
0x110c   : > { %13064 = vmatpush3.bf16.msra.mxu1 %v15958_v31  ;;  %13071 = vmatprep.mubr.msk.bf16.mxu1 %vm14604_vm7, %v14603_v52 }
0x110d   : > { %13065 = vmatprep.subr.bf16.mxu1 %v14603_v52 }
0x1110   : > { %13066 = vmatpush3.bf16.msra.mxu1 %v15956_v59 }
0x1111   : > { %13067 = vmatprep.subr.bf16.mxu1 %v14603_v52 }
0x1114   : > { %13068 = vmatpush3.bf16.msra.mxu1 %v15970_v49 }
0x1115   : > { %13069 = vmatprep.subr.bf16.mxu1 %v14603_v52 }
0x1118   : > { %13070 = vmatpush3.bf16.msra.mxu1 %v15966_v51 }
0x1119   : > { %13093 = vmatprep.subr.bf16.mxu1 %v14603_v52 }
0x111b   : > { %13072 = vmatmul.mubr.msk.bf16.vlgmr.msra.gmra.mrb[88].mxu1 %vm2077_vm4, %v14050_v6 }
0x111c   : > { %13095 = vmatprep.mubr.msk.bf16.mxu1 %vm14604_vm7, %v14603_v52 }
0x11de   : > { %v6868_v55 = vpop.f32.mrb[84].mxu1 }
0x11df   : > { %v6875_v56 = vadd.f32 %v6868_v55, %v6767_v18  ;;  %v13061_v58 = vpop.f32.mrb[85].mxu1 }
0x11e0   : > { %v6871_v5 = vpop.f32.mrb[86].mxu1 }
0x11e1   : > { %v6876_v15 = vadd.f32 %v6871_v5, %v6768_v50  ;;  %v13062_v13 = vpop.f32.mrb[87].mxu1 }
0x11ee   : > { %v6922_v16 = vpop.f32.mrb[88].mxu1 }
0x11ef   : > { %v13073_v19 = vpop.f32.mrb[89].mxu1 }
0x11f0   : > { %v6925_v20 = vpop.f32.mrb[90].mxu1  ;;  %v11655_v19 = vld [vmem:[#allocation7] ss:$0 sm:$0xff] }
0x11f1   : > { %v6932_v24 = vpack.c.bf16 %v6925_v20, %v6922_v16  ;;  %v13074_v26 = vpop.f32.mrb[91].mxu1 }
0x11f3   : > { %13078 = vmatmul.mubr.msk.bf16.vlgmr.msra.gmra.mrb[184].mxu0 %vm6242_vm8, %v6932_v24 }
0x11f4   : > { %13082 = vmatpush3.bf16.msra.mxu0 %v15958_v31  ;;  %13089 = vmatprep.mubr.msk.bf16.mxu0 %vm14604_vm7, %v14603_v52 }
0x11f5   : > { %13083 = vmatprep.subr.bf16.mxu0 %v14603_v52 }
0x11f8   : > { %13084 = vmatpush3.bf16.msra.mxu0 %v15956_v59  ;;  %v14053_v59 = vld [vmem:[%s16848_s24 + $0x40] sm:$0xff]  }
0x11f9   : > { %13085 = vmatprep.subr.bf16.mxu0 %v14603_v52  ;;  %13094 = vmatpush3.bf16.msra.mxu1 %v14053_v59 }
0x11fa   : > { %13099 = vmatprep.subr.bf16.mxu1 %v14603_v52 }
0x11fc   : > { %13086 = vmatpush3.bf16.msra.mxu0 %v15970_v49 }
0x11fd   : > { %13087 = vmatprep.subr.bf16.mxu0 %v14603_v52 }
0x1200   : > { %13088 = vmatpush3.bf16.msra.mxu0 %v15966_v51 }
0x1201   : > { %13105 = vmatprep.subr.bf16.mxu0 %v14603_v52 }
0x1203   : > { %13090 = vmatmul.mubr.msk.bf16.vlgmr.msra.gmra.mrb[188].mxu0 %vm2077_vm4, %v14052_v27 }
0x1204   : > { %13106 = vmatpush3.bf16.msra.mxu0 %v15927_v2  ;;  %13113 = vmatprep.mubr.msk.bf16.mxu0 %vm14604_vm7, %v14603_v52  ;;  %v14054_v2 = vld [vmem:[%s16849_s18] sm:$0xff]   ;;  %s16852_s18 = sld [smem:[#allocation51_spill]] }
0x1205   : > { %13107 = vmatprep.subr.bf16.mxu0 %v14603_v52 }
0x1208   : > { %13108 = vmatpush3.bf16.msra.mxu0 %v15925_v28 }
0x1209   : > { %13109 = vmatprep.subr.bf16.mxu0 %v14603_v52 }
0x120a   : > { %v14056_v30 = vld [vmem:[%s16852_s18] sm:$0xff]   ;;  %v14057_v45 = vld [vmem:[%s16852_s18 + $0x8] sm:$0xff]  }
0x120c   : > { %13110 = vmatpush3.bf16.msra.mxu0 %v15943_v14 }
0x120d   : > { %13111 = vmatprep.subr.bf16.mxu0 %v14603_v52 }
0x1210   : > { %13112 = vmatpush3.bf16.msra.mxu0 %v15941_v23 }
0x1211   : > { %13137 = vmatprep.subr.bf16.mxu0 %v14603_v52 }
0x1213   : > { %13114 = vmatmul.mubr.msk.bf16.vlgmr.msra.gmra.mrb[192].mxu0 %vm2077_vm4, %v14054_v2 }
0x1214   : > { %13139 = vmatprep.mubr.msk.bf16.mxu0 %vm14604_vm7, %v14603_v52 }
0x12c6   : > { %v6976_v28 = vpop.f32.mrb[184].mxu0 }
0x12c7   : > { %v6983_v31 = vadd.f32 %v6976_v28, %v6875_v56  ;;  %v13079_v14 = vpop.f32.mrb[185].mxu0 }
0x12c8   : > { %v6979_v51 = vpop.f32.mrb[186].mxu0 }
0x12c9   : > { %v6984_v49 = vadd.f32 %v6979_v51, %v6876_v15  ;;  %v13080_v36 = vpop.f32.mrb[187].mxu0  ;;  %v14062_v51 = vld [vmem:[%s16854_s11] sm:$0xff]   ;;  %s16858_s11 = sld [smem:[#allocation56_spill]] }
0x12ca   : > { %v14064_v36 = vld [vmem:[%s16856_s7] sm:$0xff]   ;;  %s16859_s7 = sld [smem:[#allocation58_spill]] }
0x12d6   : > { %v7030_v23 = vpop.f32.mrb[188].mxu0 }
0x12d7   : > { %v13091_v60 = vpop.f32.mrb[189].mxu0 }
0x12d8   : > { %v7033_v34 = vpop.f32.mrb[190].mxu0 }
0x12d9   : > { %v7040_v35 = vpack.c.bf16 %v7033_v34, %v7030_v23  ;;  %v13092_v41 = vpop.f32.mrb[191].mxu0  ;;  %v14065_v23 = vld [vmem:[%s16857_s2 + $0x8] sm:$0xff]  }
0x12db   : > { %13096 = vmatmul.mubr.msk.bf16.vlgmr.msra.gmra.mrb[92].mxu1 %vm6242_vm8, %v7040_v35 }
0x12dc   : > { %13101 = vmatprep.mubr.msk.bf16.mxu1 %vm14604_vm7, %v14603_v52  ;;  %13100 = vmatpush3.bf16.msra.mxu1 %v14055_v37 }
0x12dd   : > { %13117 = vmatprep.subr.bf16.mxu1 %v14603_v52 }
0x12e6   : > { %v7210_v38 = vpop.f32.mrb[192].mxu0 }
0x12e7   : > { %v13115_v40 = vpop.f32.mrb[193].mxu0 }
0x12e8   : > { %v7213_v43 = vpop.f32.mrb[194].mxu0 }
0x12e9   : > { %v7221_v17 = vpack.c.bf16 %v7213_v43, %v7210_v38  ;;  %v13116_v44 = vpop.f32.mrb[195].mxu0 }
0x13ae   : > { %v7084_v46 = vpop.f32.mrb[92].mxu1 }
0x13af   : > { %v7091_v53 = vadd.f32 %v7084_v46, %v6983_v31  ;;  %v13097_v7 = vpop.f32.mrb[93].mxu1  ;;  %v14066_v46 = vld [vmem:[%s16855_s1 + $0x10] sm:$0xff]  }
0x13b0   : > { %v7087_v62 = vpop.f32.mrb[94].mxu1  ;;  %v14069_v7 = vld [vmem:[%s16855_s1 + $0x28] sm:$0xff]  }
0x13b1   : > { %v7100_v1 = vadd.f32 %v11645_v47, %v7091_v53  ;;  %v7092_v21 = vadd.f32 %v7087_v62, %v6984_v49  ;;  %v13098_v48 = vpop.f32.mrb[95].mxu1  ;;  %v14063_v49 = vld [vmem:[%s16855_s1 + $0x8] sm:$0xff]   ;;  %v14068_v53 = vld [vmem:[%s16855_s1 + $0x20] sm:$0xff]   ;;  %v14070_v62 = vld [vmem:[%s16855_s1 + $0x30] sm:$0xff]  }
0x13b2   : > { %v14073_v48 = vld [vmem:[%s16857_s2 + $0x10] sm:$0xff]  }
0x13b3   : > { %v7101_v57 = vadd.f32 %v11645_v47, %v7092_v21  ;;  %v7102_v54 = vmax.f32 %v7100_v1, 0.0  ;;  %v14067_v47 = vld [vmem:[%s16855_s1 + $0x18] sm:$0xff]   ;;  %v14072_v21 = vld [vmem:[%s16855_s1 + $0x40] sm:$0xff]  }
0x13b4   : > { %v14071_v1 = vld [vmem:[%s16855_s1 + $0x38] sm:$0xff]   ;;  %s16860_s1 = smov %s16859_s7 }
0x13b5   : > { %v7103_v29 = vmax.f32 %v7101_v57, 0.0 }
0x13b7   : > { %v7106_v39 = vpack.c.bf16 %v7103_v29, %v7102_v54 }
0x13b9   : > { %13102 = vmatmul.mubr.msk.bf16.vlgmr.msra.gmra.mrb[96].mxu1 %vm6242_vm8, %v7106_v39 }
0x13ba   : > { %13118 = vmatpush3.bf16.msra.mxu1 %v14056_v30  ;;  %13121 = vmatprep.mubr.msk.bf16.mxu1 %vm14604_vm7, %v14603_v52 }
0x13bb   : > { %13119 = vmatprep.subr.bf16.mxu1 %v14603_v52 }
0x13be   : > { %13120 = vmatpush3.bf16.msra.mxu1 %v14057_v45 }
0x13bf   : > { %13125 = vmatprep.subr.bf16.mxu1 %v14603_v52 }
0x13c1   : > { %13122 = vmatmul.mubr.msk.bf16.vlgmr.msra.gmra.mrb[100].mxu1 %vm1959_vm3, %v7221_v17 }
0x13c2   : > { %13133 = vmatprep.mubr.msk.bf16.mxu1 %vm14604_vm7, %v14603_v52  ;;  %13126 = vmatpush3.bf16.msra.mxu1 %v14058_v63 }
0x13c3   : > { %13127 = vmatprep.subr.bf16.mxu1 %v14603_v52 }
0x13c6   : > { %13128 = vmatpush3.bf16.msra.mxu1 %v14059_v12 }
0x13c7   : > { %13129 = vmatprep.subr.bf16.mxu1 %v14603_v52 }
0x13ca   : > { %13130 = vmatpush3.bf16.msra.mxu1 %v14060_v32 }
0x13cb   : > { %13131 = vmatprep.subr.bf16.mxu1 %v14603_v52 }
0x13ce   : > { %13132 = vmatpush3.bf16.msra.mxu1 %v14061_v9 }
0x13cf   : > { %13149 = vmatprep.subr.bf16.mxu1 %v14603_v52 }
0x148c   : > { %v7157_v0 = vpop.f32.mrb[96].mxu1 }
0x148d   : > { %v13103_v18 = vpop.f32.mrb[97].mxu1  ;;  %v7158_v22 = vadd.f32 %v11646_v42, %v7157_v0 }
0x148e   : > { %v7160_v25 = vpop.f32.mrb[98].mxu1 }
0x148f   : > { %v13104_v50 = vpop.f32.mrb[99].mxu1  ;;  %v7161_v3 = vadd.f32 %v11646_v42, %v7160_v25  ;;  %v7164_v4 = vmax.f32 %v7158_v22, 0.0  ;;  %v14074_v25 = vld [vmem:[%s16857_s2 + $0x18] sm:$0xff]  }
0x1491   : > { %v7165_v33 = vmax.f32 %v7161_v3, 0.0 }
0x1494   : > { %v7271_v8 = vpop.f32.mrb[100].mxu1 }
0x1495   : > { %v7278_v61 = vadd.f32 %v7271_v8, %v7164_v4  ;;  %v13123_v6 = vpop.f32.mrb[101].mxu1 }
0x1496   : > { %v7274_v11 = vpop.f32.mrb[102].mxu1 }
0x1497   : > { %v16150_v55 = vadd.f32 %v11654_v10, %v7278_v61  ;;  %v7279_v56 = vadd.f32 %v7274_v11, %v7165_v33  ;;  %v13124_v58 = vpop.f32.mrb[103].mxu1 }
0x1498   : > { %v14076_v58 = vld [vmem:[%s16857_s2 + $0x28] sm:$0xff]  }
0x1499   : > { %v16152_v5 = vadd.f32 %v11654_v10, %v7279_v56  ;;  %v7289_v15 = vmax.f32 %v16150_v55, 0.0  ;;  %v14075_v10 = vld [vmem:[%s16857_s2 + $0x20] sm:$0xff]  }
0x149b   : > { %v7290_v13 = vmax.f32 %v16152_v5, 0.0 }
0x149d   : > { %v7299_v16 = vpack.c.bf16 %v7290_v13, %v7289_v15 }
0x149f   : > { %13134 = vmatmul.mubr.msk.bf16.vlgmr.msra.gmra.mrb[104].mxu1 %vm2077_vm4, %v7299_v16 }
0x14a0   : > { %13151 = vmatprep.mubr.msk.bf16.mxu1 %vm14604_vm7, %v14603_v52  ;;  %13150 = vmatpush3.bf16.msra.mxu1 %v14065_v23 }
0x14a1   : > { %13161 = vmatprep.subr.bf16.mxu1 %v14603_v52 }
0x1572   : > { %v7368_v20 = vpop.f32.mrb[104].mxu1 }
0x1573   : > { %v7369_v24 = vadd.f32 %v11655_v19, %v7368_v20  ;;  %v13135_v26 = vpop.f32.mrb[105].mxu1 }
0x1574   : > { %v7371_v27 = vpop.f32.mrb[106].mxu1 }
0x1575   : > { %v7372_v59 = vadd.f32 %v11655_v19, %v7371_v27  ;;  %v13136_v2 = vpop.f32.mrb[107].mxu1  ;;  %v7375_v28 = vmax.f32 %v7369_v24, 0.0  ;;  %v14077_v27 = vld [vmem:[%s16857_s2 + $0x30] sm:$0xff]  }
0x1577   : > { %v7376_v31 = vmax.f32 %v7372_v59, 0.0 }
0x1579   : > { %v7377_v14 = vpack.c.bf16 %v7376_v31, %v7375_v28 }
0x157b   : > { %13138 = vmatpush3.bf16.msra.mxu0 %v7377_v14 }
0x157c   : > { %13143 = vmatprep.subr.bf16.mxu0 %v14603_v52 }
0x157e   : > { %13140 = vmatmul.mubr.msk.bf16.vlgmr.msra.gmra.mrb[196].mxu0 %vm6242_vm8, %v14062_v51  ;;  %v14078_v51 = vld [vmem:[%s16857_s2 + $0x38] sm:$0xff]  }
0x157f   : > { %13144 = vmatpush3.bf16.msra.mxu0 %v7377_v14  ;;  %13145 = vmatprep.mubr.msk.bf16.mxu0 %vm14604_vm7, %v14603_v52 }
0x1580   : > { %13155 = vmatprep.subr.bf16.mxu0 %v14603_v52 }
0x1586   : > { %13146 = vmatmul.mubr.msk.bf16.vlgmr.msra.gmra.mrb[200].mxu0 %vm6242_vm8, %v14063_v49 }
0x1587   : > { %13157 = vmatprep.mubr.msk.bf16.mxu0 %vm14604_vm7, %v14603_v52  ;;  %13156 = vmatpush3.bf16.msra.mxu0 %v14064_v36 }
0x1588   : > { %13167 = vmatprep.subr.bf16.mxu0 %v14603_v52 }
0x1651   : > { %v7422_v60 = vpop.f32.mrb[196].mxu0 }
0x1652   : > { %v13141_v34 = vpop.f32.mrb[197].mxu0 }
0x1653   : > { %v7425_v35 = vpop.f32.mrb[198].mxu0 }
0x1654   : > { %v7431_v41 = vpack.c.bf16 %v7425_v35, %v7422_v60  ;;  %v13142_v37 = vpop.f32.mrb[199].mxu0  ;;  %v14079_v35 = vld [vmem:[%s16857_s2 + $0x40] sm:$0xff]  }
0x1656   : > { %13158 = vmatmul.mubr.msk.bf16.vlgmr.msra.gmra.mrb[204].mxu0 %vm6242_vm8, %v7431_v41 }
0x1657   : > { %13169 = vmatprep.mubr.msk.bf16.mxu0 %vm14604_vm7, %v14603_v52  ;;  %13168 = vmatpush3.bf16.msra.mxu0 %v14073_v48 }
0x1658   : > { %13179 = vmatprep.subr.bf16.mxu0 %v14603_v52 }
0x1659   : > { %v7477_v38 = vpop.f32.mrb[200].mxu0 }
0x165a   : > { %v13147_v40 = vpop.f32.mrb[201].mxu0 }
0x165b   : > { %v7480_v43 = vpop.f32.mrb[202].mxu0 }
0x165c   : > { %v7487_v17 = vpack.c.bf16 %v7480_v43, %v7477_v38  ;;  %v13148_v44 = vpop.f32.mrb[203].mxu0 }
0x165e   : > { %13152 = vmatmul.mubr.msk.bf16.vlgmr.msra.gmra.mrb[108].mxu1 %vm6242_vm8, %v7487_v17 }
0x165f   : > { %13162 = vmatpush3.bf16.msra.mxu1 %v7377_v14  ;;  %13163 = vmatprep.mubr.msk.bf16.mxu1 %vm14604_vm7, %v14603_v52 }
0x1660   : > { %13173 = vmatprep.subr.bf16.mxu1 %v14603_v52 }
0x1666   : > { %13164 = vmatmul.mubr.msk.bf16.vlgmr.msra.gmra.mrb[112].mxu1 %vm6242_vm8, %v14066_v46  ;;  %v14080_v46 = vld [vmem:[%s16858_s11] sm:$0xff]   ;;  %s16861_s11 = sld [smem:[#allocation62_spill]] }
0x1667   : > { %13174 = vmatpush3.bf16.msra.mxu1 %v7377_v14  ;;  %13175 = vmatprep.mubr.msk.bf16.mxu1 %vm14604_vm7, %v14603_v52 }
0x1668   : > { %13185 = vmatprep.subr.bf16.mxu1 %v14603_v52 }
0x166e   : > { %13176 = vmatmul.mubr.msk.bf16.vlgmr.msra.gmra.mrb[116].mxu1 %vm6242_vm8, %v14067_v47  ;;  %v14081_v47 = vld [vmem:[%s16859_s7] sm:$0xff]   ;;  %s16863_s7 = sld [smem:[#allocation59_spill]] }
0x166f   : > { %13186 = vmatpush3.bf16.msra.mxu1 %v7377_v14  ;;  %13187 = vmatprep.mubr.msk.bf16.mxu1 %vm14604_vm7, %v14603_v52 }
0x1670   : > { %13197 = vmatprep.subr.bf16.mxu1 %v14603_v52 }
0x1674   : > { %s16864_s2 = smov %s16863_s7 }
0x1676   : > { %13188 = vmatmul.mubr.msk.bf16.vlgmr.msra.gmra.mrb[120].mxu1 %vm6242_vm8, %v14068_v53 }
0x1677   : > { %13198 = vmatpush3.bf16.msra.mxu1 %v7377_v14  ;;  %13199 = vmatprep.mubr.msk.bf16.mxu1 %vm14604_vm7, %v14603_v52 }
0x1678   : > { %13209 = vmatprep.subr.bf16.mxu1 %v14603_v52 }
0x167e   : > { %13200 = vmatmul.mubr.msk.bf16.vlgmr.msra.gmra.mrb[124].mxu1 %vm6242_vm8, %v14069_v7 }
0x167f   : > { %13210 = vmatpush3.bf16.msra.mxu1 %v7377_v14  ;;  %13211 = vmatprep.mubr.msk.bf16.mxu1 %vm14604_vm7, %v14603_v52 }
0x1680   : > { %13221 = vmatprep.subr.bf16.mxu1 %v14603_v52 }
0x1686   : > { %13212 = vmatmul.mubr.msk.bf16.vlgmr.msra.gmra.mrb[128].mxu1 %vm6242_vm8, %v14070_v62 }
0x1687   : > { %13222 = vmatpush3.bf16.msra.mxu1 %v7377_v14  ;;  %13223 = vmatprep.mubr.msk.bf16.mxu1 %vm14604_vm7, %v14603_v52 }
0x1688   : > { %13233 = vmatprep.subr.bf16.mxu1 %v14603_v52 }
0x168e   : > { %13224 = vmatmul.mubr.msk.bf16.vlgmr.msra.gmra.mrb[132].mxu1 %vm6242_vm8, %v14071_v1 }
0x168f   : > { %13234 = vmatpush3.bf16.msra.mxu1 %v7377_v14  ;;  %13235 = vmatprep.mubr.msk.bf16.mxu1 %vm14604_vm7, %v14603_v52 }
0x1690   : > { %13245 = vmatprep.subr.bf16.mxu1 %v14603_v52 }
0x1696   : > { %13236 = vmatmul.mubr.msk.bf16.vlgmr.msra.gmra.mrb[136].mxu1 %vm6242_vm8, %v14072_v21 }
0x1697   : > { %13247 = vmatprep.mubr.msk.bf16.mxu1 %vm14604_vm7, %v14603_v52  ;;  %13246 = vmatpush3.bf16.msra.mxu1 %v14080_v46 }
0x1698   : > { %13263 = vmatprep.subr.bf16.mxu1 %v14603_v52 }
0x1729   : > { %v7581_v57 = vpop.f32.mrb[204].mxu0 }
0x172a   : > { %v13159_v54 = vpop.f32.mrb[205].mxu0 }
0x172b   : > { %v7584_v29 = vpop.f32.mrb[206].mxu0 }
0x172c   : > { %v13160_v30 = vpop.f32.mrb[207].mxu0 }
0x1731   : > { %v7531_v39 = vpop.f32.mrb[108].mxu1 }
0x1732   : > { %v16220_v45 = vadd.f32 %v7581_v57, %v7531_v39  ;;  %v13153_v63 = vpop.f32.mrb[109].mxu1 }
0x1733   : > { %v7534_v12 = vpop.f32.mrb[110].mxu1 }
0x1734   : > { %v16222_v32 = vadd.f32 %v7584_v29, %v7534_v12  ;;  %v13154_v9 = vpop.f32.mrb[111].mxu1 }
0x1739   : > { %v7633_v42 = vpop.f32.mrb[112].mxu1 }
0x173a   : > { %v13165_v0 = vpop.f32.mrb[113].mxu1 }
0x173b   : > { %v7636_v18 = vpop.f32.mrb[114].mxu1 }
0x173c   : > { %v7643_v22 = vpack.c.bf16 %v7636_v18, %v7633_v42  ;;  %v13166_v50 = vpop.f32.mrb[115].mxu1 }
0x173e   : > { %13170 = vmatmul.mubr.msk.bf16.vlgmr.msra.gmra.mrb[208].mxu0 %vm6242_vm8, %v7643_v22 }
0x173f   : > { %13180 = vmatpush3.bf16.msra.mxu0 %v14074_v25  ;;  %13181 = vmatprep.mubr.msk.bf16.mxu0 %vm14604_vm7, %v14603_v52 }
0x1740   : > { %13191 = vmatprep.subr.bf16.mxu0 %v14603_v52 }
0x1741   : > { %v7741_v3 = vpop.f32.mrb[116].mxu1 }
0x1742   : > { %v13177_v4 = vpop.f32.mrb[117].mxu1 }
0x1743   : > { %v7744_v8 = vpop.f32.mrb[118].mxu1 }
0x1744   : > { %v7751_v33 = vpack.c.bf16 %v7744_v8, %v7741_v3  ;;  %v13178_v61 = vpop.f32.mrb[119].mxu1 }
0x1746   : > { %13182 = vmatmul.mubr.msk.bf16.vlgmr.msra.gmra.mrb[212].mxu0 %vm6242_vm8, %v7751_v33 }
0x1747   : > { %13192 = vmatpush3.bf16.msra.mxu0 %v14075_v10  ;;  %13193 = vmatprep.mubr.msk.bf16.mxu0 %vm14604_vm7, %v14603_v52 }
0x1748   : > { %13203 = vmatprep.subr.bf16.mxu0 %v14603_v52 }
0x1749   : > { %v7849_v6 = vpop.f32.mrb[120].mxu1 }
0x174a   : > { %v13189_v11 = vpop.f32.mrb[121].mxu1 }
0x174b   : > { %v7852_v56 = vpop.f32.mrb[122].mxu1 }
0x174c   : > { %v7859_v16 = vpack.c.bf16 %v7852_v56, %v7849_v6  ;;  %v13190_v19 = vpop.f32.mrb[123].mxu1 }
0x174e   : > { %13194 = vmatmul.mubr.msk.bf16.vlgmr.msra.gmra.mrb[216].mxu0 %vm6242_vm8, %v7859_v16 }
0x174f   : > { %13204 = vmatpush3.bf16.msra.mxu0 %v14076_v58  ;;  %13205 = vmatprep.mubr.msk.bf16.mxu0 %vm14604_vm7, %v14603_v52 }
0x1750   : > { %13215 = vmatprep.subr.bf16.mxu0 %v14603_v52 }
0x1751   : > { %v7957_v20 = vpop.f32.mrb[124].mxu1 }
0x1752   : > { %v13201_v24 = vpop.f32.mrb[125].mxu1 }
0x1753   : > { %v7960_v26 = vpop.f32.mrb[126].mxu1 }
0x1754   : > { %v7967_v59 = vpack.c.bf16 %v7960_v26, %v7957_v20  ;;  %v13202_v2 = vpop.f32.mrb[127].mxu1 }
0x1756   : > { %13206 = vmatmul.mubr.msk.bf16.vlgmr.msra.gmra.mrb[220].mxu0 %vm6242_vm8, %v7967_v59 }
0x1757   : > { %13216 = vmatpush3.bf16.msra.mxu0 %v14077_v27  ;;  %13217 = vmatprep.mubr.msk.bf16.mxu0 %vm14604_vm7, %v14603_v52  ;;  %v11729_v27 = vld [vmem:[#allocation8] ss:$0 sm:$0xff] }
0x1758   : > { %13227 = vmatprep.subr.bf16.mxu0 %v14603_v52 }
0x1759   : > { %v8065_v28 = vpop.f32.mrb[128].mxu1 }
0x175a   : > { %v13213_v31 = vpop.f32.mrb[129].mxu1 }
0x175b   : > { %v8068_v14 = vpop.f32.mrb[130].mxu1 }
0x175c   : > { %v8075_v49 = vpack.c.bf16 %v8068_v14, %v8065_v28  ;;  %v13214_v36 = vpop.f32.mrb[131].mxu1 }
0x175e   : > { %13218 = vmatmul.mubr.msk.bf16.vlgmr.msra.gmra.mrb[224].mxu0 %vm6242_vm8, %v8075_v49 }
0x175f   : > { %13228 = vmatpush3.bf16.msra.mxu0 %v14078_v51  ;;  %13229 = vmatprep.mubr.msk.bf16.mxu0 %vm14604_vm7, %v14603_v52 }
0x1760   : > { %13239 = vmatprep.subr.bf16.mxu0 %v14603_v52 }
0x1761   : > { %v8173_v23 = vpop.f32.mrb[132].mxu1 }
0x1762   : > { %v13225_v60 = vpop.f32.mrb[133].mxu1 }
0x1763   : > { %v8176_v34 = vpop.f32.mrb[134].mxu1 }
0x1764   : > { %v8183_v41 = vpack.c.bf16 %v8176_v34, %v8173_v23  ;;  %v13226_v37 = vpop.f32.mrb[135].mxu1  ;;  %v14082_v34 = vld [vmem:[%s16860_s1 + $0x8] sm:$0xff]  }
0x1765   : > { %v11730_v37 = vld [vmem:[#allocation10] ss:$0 sm:$0xff] }
0x1766   : > { %13230 = vmatmul.mubr.msk.bf16.vlgmr.msra.gmra.mrb[228].mxu0 %vm6242_vm8, %v8183_v41  ;;  %v14084_v41 = vld [vmem:[%s16860_s1 + $0x18] sm:$0xff]  }
0x1767   : > { %13240 = vmatpush3.bf16.msra.mxu0 %v14079_v35  ;;  %13241 = vmatprep.mubr.msk.bf16.mxu0 %vm14604_vm7, %v14603_v52  ;;  %v14083_v35 = vld [vmem:[%s16860_s1 + $0x10] sm:$0xff]   ;;  %s16862_s1 = smov %s16861_s11 }
0x1768   : > { %13251 = vmatprep.subr.bf16.mxu0 %v14603_v52 }
0x1769   : > { %v8281_v38 = vpop.f32.mrb[136].mxu1 }
0x176a   : > { %v13237_v40 = vpop.f32.mrb[137].mxu1 }
0x176b   : > { %v8284_v43 = vpop.f32.mrb[138].mxu1 }
0x176c   : > { %v8291_v17 = vpack.c.bf16 %v8284_v43, %v8281_v38  ;;  %v13238_v44 = vpop.f32.mrb[139].mxu1 }
0x176e   : > { %13242 = vmatmul.mubr.msk.bf16.vlgmr.msra.gmra.mrb[232].mxu0 %vm6242_vm8, %v8291_v17 }
0x176f   : > { %13259 = vmatprep.mubr.msk.bf16.mxu0 %vm14604_vm7, %v14603_v52  ;;  %13252 = vmatpush3.bf16.msra.mxu0 %v14081_v47 }
0x1770   : > { %13253 = vmatprep.subr.bf16.mxu0 %v14603_v52 }
0x1773   : > { %13254 = vmatpush3.bf16.msra.mxu0 %v14082_v34 }
0x1774   : > { %13255 = vmatprep.subr.bf16.mxu0 %v14603_v52 }
0x1777   : > { %13256 = vmatpush3.bf16.msra.mxu0 %v14083_v35 }
0x1778   : > { %13257 = vmatprep.subr.bf16.mxu0 %v14603_v52 }
0x177b   : > { %13258 = vmatpush3.bf16.msra.mxu0 %v14084_v41  ;;  %v14091_v41 = vld [vmem:[%s16864_s2 + $0x24] sm:$0xff]  }
0x177c   : > { %13275 = vmatprep.subr.bf16.mxu0 %v14603_v52 }
0x1811   : > { %v7687_v53 = vpop.f32.mrb[208].mxu0 }
0x1812   : > { %v7694_v7 = vadd.f32 %v7687_v53, %v16220_v45  ;;  %v13171_v62 = vpop.f32.mrb[209].mxu0 }
0x1813   : > { %v7690_v1 = vpop.f32.mrb[210].mxu0 }
0x1814   : > { %v7695_v21 = vadd.f32 %v7690_v1, %v16222_v32  ;;  %v13172_v48 = vpop.f32.mrb[211].mxu0 }
0x1819   : > { %v7795_v57 = vpop.f32.mrb[212].mxu0 }
0x181a   : > { %v7802_v54 = vadd.f32 %v7795_v57, %v7694_v7  ;;  %v13183_v29 = vpop.f32.mrb[213].mxu0  ;;  %v11733_v57 = vld [vmem:[#allocation11] ss:$0 sm:$0xff] }
0x181b   : > { %v7798_v30 = vpop.f32.mrb[214].mxu0 }
0x181c   : > { %v7803_v39 = vadd.f32 %v7798_v30, %v7695_v21  ;;  %v13184_v63 = vpop.f32.mrb[215].mxu0 }
0x1821   : > { %v7903_v12 = vpop.f32.mrb[216].mxu0 }
0x1822   : > { %v7910_v9 = vadd.f32 %v7903_v12, %v7802_v54  ;;  %v13195_v42 = vpop.f32.mrb[217].mxu0  ;;  %v8508_v12 = vld [vmem:[%s16861_s11] sm:$0x3]  ;;  %s16865_s11 = sld [smem:[#allocation63_spill]] }
0x1823   : > { %v7906_v0 = vpop.f32.mrb[218].mxu0  ;;  %v14085_v42 = vld [vmem:[%s16863_s7] sm:$0xff]   ;;  %s16866_s7 = sld [smem:[#allocation61_spill]] }
0x1824   : > { %v7911_v18 = vadd.f32 %v7906_v0, %v7803_v39  ;;  %v13196_v25 = vpop.f32.mrb[219].mxu0  ;;  %v14086_v0 = vld [vmem:[%s16864_s2 + $0x8] ss:$0 sps:$4 sm:$0xff]  }
0x1825   : > { %v14087_v25 = vld [vmem:[%s16864_s2 + $0xc] sm:$0xff]  }
0x1829   : > { %v8011_v22 = vpop.f32.mrb[220].mxu0 }
0x182a   : > { %v8018_v50 = vadd.f32 %v8011_v22, %v7910_v9  ;;  %v13207_v45 = vpop.f32.mrb[221].mxu0  ;;  %v11740_v9 = vld [vmem:[%s16862_s1 + $0x2] sm:$0x3]  ;;  %v14088_v22 = vld [vmem:[%s16864_s2 + $0x14] ss:$0 sps:$4 sm:$0xff]  }
0x182b   : > { %v8014_v3 = vpop.f32.mrb[222].mxu0 }
0x182c   : > { %v8019_v4 = vadd.f32 %v8014_v3, %v7911_v18  ;;  %v13208_v8 = vpop.f32.mrb[223].mxu0  ;;  %v8675_v18 = vsel %vm2285_vm5, %v14086_v0, 0  ;;  %v14098_v0 = vld [vmem:[%s16864_s2 + $0x50] ss:$0 sps:$4 sm:$0xff]  }
0x1831   : > { %v8119_v32 = vpop.f32.mrb[224].mxu0 }
0x1832   : > { %v8126_v10 = vadd.f32 %v8119_v32, %v8018_v50  ;;  %v13219_v33 = vpop.f32.mrb[225].mxu0  ;;  %v8620_v50 = vsel %vm2285_vm5, %v14088_v22, 0  ;;  %v9204_v22 = vsel %vm2285_vm5, %v14098_v0, 0 }
0x1833   : > { %v8122_v61 = vpop.f32.mrb[226].mxu0 }
0x1834   : > { %v8127_v6 = vadd.f32 %v8122_v61, %v8019_v4  ;;  %v13220_v11 = vpop.f32.mrb[227].mxu0 }
0x1839   : > { %v8227_v56 = vpop.f32.mrb[228].mxu0 }
0x183a   : > { %v8234_v58 = vadd.f32 %v8227_v56, %v8126_v10  ;;  %v13231_v16 = vpop.f32.mrb[229].mxu0  ;;  %v11751_v56 = vld [vmem:[%s16862_s1 + $0x4] sm:$0x3] }
0x183b   : > { %v8230_v19 = vpop.f32.mrb[230].mxu0  ;;  %v11767_v16 = vld [vmem:[%s16862_s1 + $0x8] sm:$0x3] }
0x183c   : > { %v8235_v20 = vadd.f32 %v8230_v19, %v8127_v6  ;;  %v13232_v24 = vpop.f32.mrb[231].mxu0  ;;  %v11775_v19 = vld [vmem:[%s16862_s1 + $0xa] sm:$0x3] }
0x183d   : > { %v11791_v24 = vld [vmem:[%s16862_s1 + $0xe] sm:$0x3] }
0x1841   : > { %v8335_v26 = vpop.f32.mrb[232].mxu0 }
0x1842   : > { %v8342_v59 = vadd.f32 %v8335_v26, %v8234_v58  ;;  %v13243_v2 = vpop.f32.mrb[233].mxu0  ;;  %v11759_v58 = vld [vmem:[%s16862_s1 + $0x6] sm:$0x3]  ;;  %v11799_v26 = vld [vmem:[%s16862_s1 + $0x10] sm:$0x3] }
0x1843   : > { %v8338_v28 = vpop.f32.mrb[234].mxu0 }
0x1844   : > { %v8351_v31 = vadd.f32 %v11729_v27, %v8342_v59  ;;  %v8343_v14 = vadd.f32 %v8338_v28, %v8235_v20  ;;  %v13244_v51 = vpop.f32.mrb[235].mxu0  ;;  %v11783_v20 = vld [vmem:[%s16862_s1 + $0xc] sm:$0x3]  ;;  %v14090_v59 = vld [vmem:[%s16864_s2 + $0x20] ss:$0 sps:$4 sm:$0xff]   ;;  %s16867_s1 = smov %s16866_s7 }
0x1845   : > { %v8780_v2 = vsel %vm2285_vm5, %v14090_v59, 0 }
0x1846   : > { %v8352_v49 = vadd.f32 %v11729_v27, %v8343_v14  ;;  %v8353_v36 = vmax.f32 %v8351_v31, 0.0  ;;  %v14089_v27 = vld [vmem:[%s16864_s2 + $0x18] sm:$0xff]  }
0x1848   : > { %v8354_v23 = vmax.f32 %v8352_v49, 0.0 }
0x184a   : > { %v8357_v60 = vpack.c.bf16 %v8354_v23, %v8353_v36 }
0x184c   : > { %13248 = vmatmul.mubr.msk.bf16.vlgmr.msra.gmra.mrb[140].mxu1 %vm6242_vm8, %v8357_v60 }
0x184d   : > { %13265 = vmatprep.mubr.msk.bf16.mxu1 %vm14604_vm7, %v14603_v52 }
0x191f   : > { %v8408_v38 = vpop.f32.mrb[140].mxu1 }
0x1920   : > { %v8409_v40 = vadd.f32 %v11730_v37, %v8408_v38  ;;  %v13249_v43 = vpop.f32.mrb[141].mxu1 }
0x1921   : > { %v8411_v17 = vpop.f32.mrb[142].mxu1 }
0x1922   : > { %v8415_v44 = vmax.f32 %v8409_v40, 0.0  ;;  %v8412_v46 = vadd.f32 %v11730_v37, %v8411_v17  ;;  %v13250_v47 = vpop.f32.mrb[143].mxu1  ;;  %v14092_v40 = vld [vmem:[%s16864_s2 + $0x2c] ss:$0 sps:$4 sm:$0xff]  }
0x1923   : > { %v14093_v47 = vld [vmem:[%s16864_s2 + $0x30] sm:$0xff]  }
0x1924   : > { %v8417_v53 = vadd.f32 %v8415_v44, %v7289_v15  ;;  %v8416_v7 = vmax.f32 %v8412_v46, 0.0  ;;  %v8886_v44 = vsel %vm2285_vm5, %v14092_v40, 0 }
0x1926   : > { %v8418_v62 = vadd.f32 %v8416_v7, %v7290_v13  ;;  %v8419_v1 = vmax.f32 %v8417_v53, 0.0 }
0x1928   : > { %v8420_v21 = vmax.f32 %v8418_v62, 0.0  ;;  %v14094_v62 = vld [vmem:[%s16864_s2 + $0x38] ss:$0 sps:$4 sm:$0xff]  }
0x192a   : > { %v16276_v48 = vpack.c.bf16 %v8420_v21, %v8419_v1 }
0x192c   : > { %13260 = vmatmul.mubr.msk.bf16.vlgmr.msra.gmra.mrb[236].mxu0 %vm2077_vm4, %v16276_v48 }
0x192d   : > { %13279 = vmatprep.mubr.msk.bf16.mxu0 %vm14604_vm7, %v14603_v52  ;;  %13276 = vmatpush3.bf16.msra.mxu0 %v14087_v25 }
0x192e   : > { %13277 = vmatprep.subr.bf16.mxu0 %v14603_v52 }
0x1931   : > { %13278 = vmatpush3.bf16.msra.mxu0 %v8620_v50 }
0x1932   : > { %13291 = vmatprep.subr.bf16.mxu0 %v14603_v52 }
0x19ff   : > { %v8498_v54 = vpop.f32.mrb[236].mxu0 }
0x1a00   : > { %v8499_v55 = vadd.f32 %v11733_v57, %v8498_v54  ;;  %v13261_v15 = vpop.f32.mrb[237].mxu0 }
0x1a01   : > { %v8501_v29 = vpop.f32.mrb[238].mxu0 }
0x1a02   : > { %v8502_v5 = vadd.f32 %v11733_v57, %v8501_v29  ;;  %v13262_v13 = vpop.f32.mrb[239].mxu0  ;;  %v8505_v30 = vmax.f32 %v8499_v55, 0.0  ;;  %v8992_v57 = vsel %vm2285_vm5, %v14094_v62, 0  ;;  %v14095_v55 = vld [vmem:[%s16864_s2 + $0x3c] sm:$0xff]  }
0x1a04   : > { %v8506_v39 = vmax.f32 %v8502_v5, 0.0  ;;  %v14096_v5 = vld [vmem:[%s16864_s2 + $0x44] ss:$0 sps:$4 sm:$0xff]  }
0x1a06   : > { %v16282_v63 = vpack.c.bf16 %v8506_v39, %v8505_v30  ;;  %v9098_v39 = vsel %vm2285_vm5, %v14096_v5, 0 }
0x1a08   : > { %13264 = vmatpush3.bf16.msra.mxu1 %v16282_v63 }
0x1a09   : > { %13269 = vmatprep.subr.bf16.mxu1 %v14603_v52 }
0x1a0b   : > { %13266 = vmatmul.mubr.msk.bf16.vlgmr.msra.gmra.mrb[144].mxu1 %vm6242_vm8, %v8508_v12  ;;  %v14097_v12 = vld [vmem:[%s16864_s2 + $0x48] sm:$0xff]  }
0x1a0c   : > { %13270 = vmatpush3.bf16.msra.mxu1 %v16282_v63  ;;  %13271 = vmatprep.mubr.msk.bf16.mxu1 %vm14604_vm7, %v14603_v52 }
0x1a0d   : > { %13283 = vmatprep.subr.bf16.mxu1 %v14603_v52 }
0x1a13   : > { %13272 = vmatmul.mubr.msk.bf16.vlgmr.msra.gmra.mrb[148].mxu1 %vm6242_vm8, %v11740_v9 }
0x1a14   : > { %13284 = vmatpush3.bf16.msra.mxu1 %v14085_v42  ;;  %13287 = vmatprep.mubr.msk.bf16.mxu1 %vm14604_vm7, %v14603_v52 }
0x1a15   : > { %13285 = vmatprep.subr.bf16.mxu1 %v14603_v52 }
0x1a18   : > { %13286 = vmatpush3.bf16.msra.mxu1 %v8675_v18 }
0x1a19   : > { %13297 = vmatprep.subr.bf16.mxu1 %v14603_v52 }
0x1ade   : > { %v8546_v45 = vpop.f32.mrb[144].mxu1 }
0x1adf   : > { %v8555_v3 = vpack.c.bf16 %v8546_v45, %v8546_v45  ;;  %v13267_v4 = vpop.f32.mrb[145].mxu1  ;;  %v14099_v45 = vld [vmem:[%s16864_s2 + $0x54] sm:$0xff]  }
0x1ae0   : > { %v8549_v8 = vpop.f32.mrb[146].mxu1 }
0x1ae1   : > { %v13268_v32 = vpop.f32.mrb[147].mxu1  ;;  %13288 = vmatmul.mubr.msk.bf16.vlgmr.msra.gmra.mrb[152].mxu1 %vm8615_vm9, %v8555_v3  ;;  %v14100_v8 = vld [vmem:[%s16864_s2 + $0x5c] ss:$0 sps:$4 sm:$0xff]  }
0x1ae2   : > { %13301 = vmatprep.mubr.msk.bf16.mxu1 %vm14604_vm7, %v14603_v52  ;;  %13298 = vmatpush3.bf16.msra.mxu1 %v14089_v27 }
0x1ae3   : > { %13299 = vmatprep.subr.bf16.mxu1 %v14603_v52 }
0x1ae6   : > { %v8595_v10 = vpop.f32.mrb[148].mxu1  ;;  %13300 = vmatpush3.bf16.msra.mxu1 %v8780_v2 }
0x1ae7   : > { %v8605_v33 = vpack.c.bf16 %v8595_v10, %v8595_v10  ;;  %v13273_v61 = vpop.f32.mrb[149].mxu1  ;;  %13311 = vmatprep.subr.bf16.mxu1 %v14603_v52 }
0x1ae8   : > { %v8598_v6 = vpop.f32.mrb[150].mxu1 }
0x1ae9   : > { %v13274_v11 = vpop.f32.mrb[151].mxu1  ;;  %13280 = vmatmul.mubr.msk.bf16.vlgmr.msra.gmra.mrb[240].mxu0 %vm8615_vm9, %v8605_v33  ;;  %v9310_v33 = vsel %vm2285_vm5, %v14100_v8, 0  ;;  %v14101_v6 = vld [vmem:[%s16864_s2 + $0x60] sm:$0xff]  }
0x1aea   : > { %13292 = vmatpush3.bf16.msra.mxu0 %v16282_v63  ;;  %13293 = vmatprep.mubr.msk.bf16.mxu0 %vm14604_vm7, %v14603_v52 }
0x1aeb   : > { %13305 = vmatprep.subr.bf16.mxu0 %v14603_v52 }
0x1af1   : > { %13294 = vmatmul.mubr.msk.bf16.vlgmr.msra.gmra.mrb[244].mxu0 %vm6242_vm8, %v11751_v56 }
0x1af2   : > { %13306 = vmatpush3.bf16.msra.mxu0 %v16282_v63  ;;  %13307 = vmatprep.mubr.msk.bf16.mxu0 %vm14604_vm7, %v14603_v52 }
0x1af3   : > { %13319 = vmatprep.subr.bf16.mxu0 %v14603_v52 }
0x1af9   : > { %13308 = vmatmul.mubr.msk.bf16.vlgmr.msra.gmra.mrb[248].mxu0 %vm6242_vm8, %v11759_v58  ;;  %v14102_v58 = vld [vmem:[%s16864_s2 + $0x68] ss:$0 sps:$4 sm:$0xff]  }
0x1afa   : > { %13320 = vmatpush3.bf16.msra.mxu0 %v16282_v63  ;;  %13321 = vmatprep.mubr.msk.bf16.mxu0 %vm14604_vm7, %v14603_v52 }
0x1afb   : > { %13333 = vmatprep.subr.bf16.mxu0 %v14603_v52 }
0x1b01   : > { %13322 = vmatmul.mubr.msk.bf16.vlgmr.msra.gmra.mrb[252].mxu0 %vm6242_vm8, %v11767_v16 }
0x1b02   : > { %13334 = vmatpush3.bf16.msra.mxu0 %v16282_v63  ;;  %13335 = vmatprep.mubr.msk.bf16.mxu0 %vm14604_vm7, %v14603_v52 }
0x1b03   : > { %13347 = vmatprep.subr.bf16.mxu0 %v14603_v52 }
0x1b09   : > { %13336 = vmatmul.mubr.msk.bf16.vlgmr.msra.gmra.mrb[0].mxu0 %vm6242_vm8, %v11775_v19 }
0x1b0a   : > { %13348 = vmatpush3.bf16.msra.mxu0 %v16282_v63  ;;  %13349 = vmatprep.mubr.msk.bf16.mxu0 %vm14604_vm7, %v14603_v52 }
0x1b0b   : > { %13361 = vmatprep.subr.bf16.mxu0 %v14603_v52 }
0x1b11   : > { %13350 = vmatmul.mubr.msk.bf16.vlgmr.msra.gmra.mrb[4].mxu0 %vm6242_vm8, %v11783_v20  ;;  %v9416_v20 = vsel %vm2285_vm5, %v14102_v58, 0 }
0x1b12   : > { %13362 = vmatpush3.bf16.msra.mxu0 %v16282_v63  ;;  %13363 = vmatprep.mubr.msk.bf16.mxu0 %vm14604_vm7, %v14603_v52 }
0x1b13   : > { %13375 = vmatprep.subr.bf16.mxu0 %v14603_v52 }
0x1b19   : > { %13364 = vmatmul.mubr.msk.bf16.vlgmr.msra.gmra.mrb[8].mxu0 %vm6242_vm8, %v11791_v24 }
0x1b1a   : > { %13376 = vmatpush3.bf16.msra.mxu0 %v16282_v63  ;;  %13377 = vmatprep.mubr.msk.bf16.mxu0 %vm14604_vm7, %v14603_v52 }
0x1b1b   : > { %13389 = vmatprep.subr.bf16.mxu0 %v14603_v52 }
0x1b21   : > { %13378 = vmatmul.mubr.msk.bf16.vlgmr.msra.gmra.mrb[12].mxu0 %vm6242_vm8, %v11799_v26 }
0x1b22   : > { %13393 = vmatprep.mubr.msk.bf16.mxu0 %vm14604_vm7, %v14603_v52 }
0x1bb4   : > { %v8711_v28 = vpop.f32.mrb[152].mxu1 }
0x1bb5   : > { %v13289_v31 = vpop.f32.mrb[153].mxu1 }
0x1bb6   : > { %v8714_v14 = vpop.f32.mrb[154].mxu1  ;;  %v14103_v31 = vld [vmem:[%s16866_s7] sm:$0xff]   ;;  %s16870_s7 = sld [smem:[#allocation65_spill]] }
0x1bb7   : > { %v13290_v51 = vpop.f32.mrb[155].mxu1  ;;  %13390 = vmatpush3.bf16.msra.mxu0 %v14103_v31  ;;  %v14104_v14 = vld [vmem:[%s16867_s1 + $0x8] ss:$0 sps:$4 sm:$0xff]  }
0x1bb8   : > { %13391 = vmatprep.subr.bf16.mxu0 %v14603_v52  ;;  %v9492_v51 = vsel %vm2285_vm5, %v14104_v14, 0 }
0x1bbb   : > { %13392 = vmatpush3.bf16.msra.mxu0 %v9492_v51  ;;  %v11818_v51 = vld [vmem:[#allocation16] ss:$0 sm:$0xff] }
0x1bbc   : > { %v8656_v49 = vpop.f32.mrb[240].mxu0  ;;  %13403 = vmatprep.subr.bf16.mxu0 %v14603_v52  ;;  %s16871_s2 = smov %s16870_s7 }
0x1bbd   : > { %v16359_v36 = vadd.f32 %v8711_v28, %v8656_v49  ;;  %v13281_v23 = vpop.f32.mrb[241].mxu0  ;;  %v9535_v28 = vld [vmem:[%s16865_s11] sm:$0x3]  ;;  %s16868_s11 = sld [smem:[#allocation64_spill]]  ;;  %v14111_v58 = vld [vmem:[%s16871_s2 + $0x10] sm:$0xff]  }
0x1bbe   : > { %v8659_v60 = vpop.f32.mrb[242].mxu0 }
0x1bbf   : > { %v13282_v34 = vpop.f32.mrb[243].mxu0 }
0x1bc3   : > { %s16869_s1 = smov %s16868_s11 }
0x1bc4   : > { %v8756_v35 = vpop.f32.mrb[244].mxu0  ;;  %v14106_v8 = vld [vmem:[%s16869_s1 + $0x8] sm:$0xff]  }
0x1bc5   : > { %v8766_v37 = vpack.c.bf16 %v8756_v35, %v8756_v35  ;;  %v13295_v38 = vpop.f32.mrb[245].mxu0 }
0x1bc6   : > { %v8759_v43 = vpop.f32.mrb[246].mxu0 }
0x1bc7   : > { %v13296_v17 = vpop.f32.mrb[247].mxu0  ;;  %13302 = vmatmul.mubr.msk.bf16.vlgmr.msra.gmra.mrb[156].mxu1 %vm8615_vm9, %v8766_v37 }
0x1bc8   : > { %13312 = vmatpush3.bf16.msra.mxu1 %v14091_v41  ;;  %13315 = vmatprep.mubr.msk.bf16.mxu1 %vm14604_vm7, %v14603_v52 }
0x1bc9   : > { %13313 = vmatprep.subr.bf16.mxu1 %v14603_v52 }
0x1bcc   : > { %13314 = vmatpush3.bf16.msra.mxu1 %v8886_v44  ;;  %v8862_v46 = vpop.f32.mrb[248].mxu0 }
0x1bcd   : > { %v8872_v53 = vpack.c.bf16 %v8862_v46, %v8862_v46  ;;  %v13309_v7 = vpop.f32.mrb[249].mxu0  ;;  %13325 = vmatprep.subr.bf16.mxu1 %v14603_v52 }
0x1bce   : > { %v8865_v1 = vpop.f32.mrb[250].mxu0 }
0x1bcf   : > { %v13310_v21 = vpop.f32.mrb[251].mxu0  ;;  %13316 = vmatmul.mubr.msk.bf16.vlgmr.msra.gmra.mrb[160].mxu1 %vm8615_vm9, %v8872_v53 }
0x1bd0   : > { %13326 = vmatpush3.bf16.msra.mxu1 %v14093_v47  ;;  %13329 = vmatprep.mubr.msk.bf16.mxu1 %vm14604_vm7, %v14603_v52 }
0x1bd1   : > { %13327 = vmatprep.subr.bf16.mxu1 %v14603_v52 }
0x1bd4   : > { %13328 = vmatpush3.bf16.msra.mxu1 %v8992_v57  ;;  %v8968_v54 = vpop.f32.mrb[252].mxu0 }
0x1bd5   : > { %v8978_v15 = vpack.c.bf16 %v8968_v54, %v8968_v54  ;;  %v13323_v29 = vpop.f32.mrb[253].mxu0  ;;  %13339 = vmatprep.subr.bf16.mxu1 %v14603_v52 }
0x1bd6   : > { %v8971_v13 = vpop.f32.mrb[254].mxu0 }
0x1bd7   : > { %v13324_v30 = vpop.f32.mrb[255].mxu0  ;;  %13330 = vmatmul.mubr.msk.bf16.vlgmr.msra.gmra.mrb[164].mxu1 %vm8615_vm9, %v8978_v15 }
0x1bd8   : > { %13340 = vmatpush3.bf16.msra.mxu1 %v14095_v55  ;;  %13343 = vmatprep.mubr.msk.bf16.mxu1 %vm14604_vm7, %v14603_v52 }
0x1bd9   : > { %13341 = vmatprep.subr.bf16.mxu1 %v14603_v52 }
0x1bdc   : > { %13342 = vmatpush3.bf16.msra.mxu1 %v9098_v39  ;;  %v9074_v63 = vpop.f32.mrb[0].mxu0 }
0x1bdd   : > { %v9084_v9 = vpack.c.bf16 %v9074_v63, %v9074_v63  ;;  %v13337_v42 = vpop.f32.mrb[1].mxu0  ;;  %13353 = vmatprep.subr.bf16.mxu1 %v14603_v52 }
0x1bde   : > { %v9077_v18 = vpop.f32.mrb[2].mxu0 }
0x1bdf   : > { %v13338_v25 = vpop.f32.mrb[3].mxu0  ;;  %13344 = vmatmul.mubr.msk.bf16.vlgmr.msra.gmra.mrb[168].mxu1 %vm8615_vm9, %v9084_v9 }
0x1be0   : > { %13354 = vmatpush3.bf16.msra.mxu1 %v14097_v12  ;;  %13357 = vmatprep.mubr.msk.bf16.mxu1 %vm14604_vm7, %v14603_v52  ;;  %v11807_v12 = vld [vmem:[#allocation13] ss:$0 sm:$0xff] }
0x1be1   : > { %13355 = vmatprep.subr.bf16.mxu1 %v14603_v52 }
0x1be4   : > { %13356 = vmatpush3.bf16.msra.mxu1 %v9204_v22  ;;  %v9180_v50 = vpop.f32.mrb[4].mxu0 }
0x1be5   : > { %v9190_v3 = vpack.c.bf16 %v9180_v50, %v9180_v50  ;;  %v13351_v4 = vpop.f32.mrb[5].mxu0  ;;  %13367 = vmatprep.subr.bf16.mxu1 %v14603_v52  ;;  %v14105_v50 = vld [vmem:[%s16868_s11] sm:$0xff]   ;;  %s16872_s11 = sld [smem:[#allocation67_spill]] }
0x1be6   : > { %v9183_v32 = vpop.f32.mrb[6].mxu0 }
0x1be7   : > { %v13352_v10 = vpop.f32.mrb[7].mxu0  ;;  %13358 = vmatmul.mubr.msk.bf16.vlgmr.msra.gmra.mrb[172].mxu1 %vm8615_vm9, %v9190_v3 }
0x1be8   : > { %13368 = vmatpush3.bf16.msra.mxu1 %v14099_v45  ;;  %13371 = vmatprep.mubr.msk.bf16.mxu1 %vm14604_vm7, %v14603_v52 }
0x1be9   : > { %13369 = vmatprep.subr.bf16.mxu1 %v14603_v52 }
0x1bec   : > { %13370 = vmatpush3.bf16.msra.mxu1 %v9310_v33  ;;  %v9286_v61 = vpop.f32.mrb[8].mxu0  ;;  %v14107_v33 = vld [vmem:[%s16869_s1 + $0x10] sm:$0xff]  }
0x1bed   : > { %v9296_v11 = vpack.c.bf16 %v9286_v61, %v9286_v61  ;;  %v13365_v56 = vpop.f32.mrb[9].mxu0  ;;  %13381 = vmatprep.subr.bf16.mxu1 %v14603_v52  ;;  %v14108_v61 = vld [vmem:[%s16869_s1 + $0x18] sm:$0xff]   ;;  %s16873_s1 = smov %s16872_s11 }
0x1bee   : > { %v9289_v16 = vpop.f32.mrb[10].mxu0  ;;  %v14110_v56 = vld [vmem:[%s16871_s2 + $0x8] sm:$0xff]  }
0x1bef   : > { %v13366_v19 = vpop.f32.mrb[11].mxu0  ;;  %13372 = vmatmul.mubr.msk.bf16.vlgmr.msra.gmra.mrb[176].mxu1 %vm8615_vm9, %v9296_v11  ;;  %v14109_v11 = vld [vmem:[%s16870_s7] sm:$0xff]   ;;  %v14112_v16 = vld [vmem:[%s16871_s2 + $0x18] sm:$0xff]   ;;  %s16874_s7 = sld [smem:[#allocation68_spill]] }
0x1bf0   : > { %13382 = vmatpush3.bf16.msra.mxu1 %v14101_v6  ;;  %13385 = vmatprep.mubr.msk.bf16.mxu1 %vm14604_vm7, %v14603_v52  ;;  %v14113_v19 = vld [vmem:[%s16871_s2 + $0x20] sm:$0xff]  }
0x1bf1   : > { %13383 = vmatprep.subr.bf16.mxu1 %v14603_v52 }
0x1bf4   : > { %13384 = vmatpush3.bf16.msra.mxu1 %v9416_v20  ;;  %v9392_v24 = vpop.f32.mrb[12].mxu0  ;;  %v14114_v20 = vld [vmem:[%s16871_s2 + $0x28] sm:$0xff]  }
0x1bf5   : > { %v9402_v26 = vpack.c.bf16 %v9392_v24, %v9392_v24  ;;  %v13379_v27 = vpop.f32.mrb[13].mxu0  ;;  %13397 = vmatprep.subr.bf16.mxu1 %v14603_v52  ;;  %s16875_s2 = smov %s16874_s7 }
0x1bf6   : > { %v9395_v59 = vpop.f32.mrb[14].mxu0 }
0x1bf7   : > { %v13380_v2 = vpop.f32.mrb[15].mxu0  ;;  %13386 = vmatmul.mubr.msk.bf16.vlgmr.msra.gmra.mrb[180].mxu1 %vm8615_vm9, %v9402_v26 }
0x1bf8   : > { %13398 = vmatpush3.bf16.msra.mxu1 %v16276_v48  ;;  %13399 = vmatprep.mubr.msk.bf16.mxu1 %vm14604_vm7, %v14603_v52  ;;  %v11808_v2 = vld [vmem:[#allocation14] ss:$0 sm:$0xff] }
0x1bf9   : > { %13415 = vmatprep.subr.bf16.mxu1 %v14603_v52 }
0x1bff   : > { %13400 = vmatmul.mubr.msk.bf16.vlgmr.msra.gmra.mrb[184].mxu1 %vm6242_vm8, %v9535_v28 }
0x1c00   : > { %13427 = vmatprep.mubr.msk.bf16.mxu1 %vm14604_vm7, %v14603_v52  ;;  %13416 = vmatpush3.bf16.msra.mxu1 %v14109_v11 }
0x1c01   : > { %13417 = vmatprep.subr.bf16.mxu1 %v14603_v52 }
0x1c04   : > { %13418 = vmatpush3.bf16.msra.mxu1 %v14110_v56 }
0x1c05   : > { %13419 = vmatprep.subr.bf16.mxu1 %v14603_v52 }
0x1c08   : > { %13420 = vmatpush3.bf16.msra.mxu1 %v14111_v58 }
0x1c09   : > { %13421 = vmatprep.subr.bf16.mxu1 %v14603_v52 }
0x1c0c   : > { %13422 = vmatpush3.bf16.msra.mxu1 %v14112_v16 }
0x1c0d   : > { %13423 = vmatprep.subr.bf16.mxu1 %v14603_v52 }
0x1c10   : > { %13424 = vmatpush3.bf16.msra.mxu1 %v14113_v19 }
0x1c11   : > { %13425 = vmatprep.subr.bf16.mxu1 %v14603_v52 }
0x1c14   : > { %13426 = vmatpush3.bf16.msra.mxu1 %v14114_v20 }
0x1c15   : > { %13443 = vmatprep.subr.bf16.mxu1 %v14603_v52 }
0x1c9a   : > { %v8816_v48 = vpop.f32.mrb[156].mxu1 }
0x1c9b   : > { %v8822_v49 = vadd.f32 %v8816_v48, %v16359_v36  ;;  %v13303_v23 = vpop.f32.mrb[157].mxu1 }
0x1c9c   : > { %v8819_v60 = vpop.f32.mrb[158].mxu1 }
0x1c9d   : > { %v13304_v34 = vpop.f32.mrb[159].mxu1 }
0x1ca2   : > { %v8922_v35 = vpop.f32.mrb[160].mxu1 }
0x1ca3   : > { %v8928_v41 = vadd.f32 %v8922_v35, %v8822_v49  ;;  %v13317_v37 = vpop.f32.mrb[161].mxu1 }
0x1ca4   : > { %v8925_v38 = vpop.f32.mrb[162].mxu1  ;;  %v11819_v37 = vld [vmem:[#allocation17] ss:$0 sm:$0xff] }
0x1ca5   : > { %v13318_v40 = vpop.f32.mrb[163].mxu1 }
0x1caa   : > { %v9028_v43 = vpop.f32.mrb[164].mxu1 }
0x1cab   : > { %v9034_v17 = vadd.f32 %v9028_v43, %v8928_v41  ;;  %v13331_v44 = vpop.f32.mrb[165].mxu1 }
0x1cac   : > { %v9031_v46 = vpop.f32.mrb[166].mxu1 }
0x1cad   : > { %v13332_v47 = vpop.f32.mrb[167].mxu1 }
0x1cb2   : > { %v9134_v53 = vpop.f32.mrb[168].mxu1 }
0x1cb3   : > { %v9140_v7 = vadd.f32 %v9134_v53, %v9034_v17  ;;  %v13345_v62 = vpop.f32.mrb[169].mxu1 }
0x1cb4   : > { %v9137_v1 = vpop.f32.mrb[170].mxu1  ;;  %v11828_v62 = vld [vmem:[%s16755_s8 + $0x2] sm:$0x3] }
0x1cb5   : > { %v13346_v21 = vpop.f32.mrb[171].mxu1  ;;  %v14115_v1 = vld [vmem:[%s16872_s11] sm:$0xff]   ;;  %s16876_s11 = sld [smem:[#allocation69_spill]] }
0x1cb6   : > { %v14116_v21 = vld [vmem:[%s16873_s1 + $0x8] ss:$0 sps:$4 sm:$0xff]  }
0x1cba   : > { %v9240_v57 = vpop.f32.mrb[172].mxu1 }
0x1cbb   : > { %v9246_v36 = vadd.f32 %v9240_v57, %v9140_v7  ;;  %v13359_v54 = vpop.f32.mrb[173].mxu1  ;;  %v9767_v7 = vld [vmem:[%s16755_s8] sm:$0x3]  ;;  %v9937_v57 = vsel %vm2285_vm5, %v14116_v21, 0  ;;  %v14128_v21 = vld [vmem:[%s16873_s1 + $0x50] ss:$0 sps:$4 sm:$0xff]  }
0x1cbc   : > { %v9243_v55 = vpop.f32.mrb[174].mxu1  ;;  %v14118_v54 = vld [vmem:[%s16873_s1 + $0x14] ss:$0 sps:$4 sm:$0xff]  }
0x1cbd   : > { %v13360_v15 = vpop.f32.mrb[175].mxu1  ;;  %v9882_v55 = vsel %vm2285_vm5, %v14118_v54, 0  ;;  %v10466_v54 = vsel %vm2285_vm5, %v14128_v21, 0  ;;  %v11895_v21 = vld [vmem:[#allocation19] ss:$0 sm:$0xff] }
0x1cc2   : > { %v9346_v29 = vpop.f32.mrb[176].mxu1 }
0x1cc3   : > { %v9352_v5 = vadd.f32 %v9346_v29, %v9246_v36  ;;  %v13373_v13 = vpop.f32.mrb[177].mxu1  ;;  %v14117_v36 = vld [vmem:[%s16873_s1 + $0xc] sm:$0xff]  }
0x1cc4   : > { %v9349_v30 = vpop.f32.mrb[178].mxu1 }
0x1cc5   : > { %v13374_v39 = vpop.f32.mrb[179].mxu1 }
0x1cca   : > { %v9452_v63 = vpop.f32.mrb[180].mxu1 }
0x1ccb   : > { %v9458_v9 = vadd.f32 %v9452_v63, %v9352_v5  ;;  %v13387_v42 = vpop.f32.mrb[181].mxu1 }
0x1ccc   : > { %v9455_v0 = vpop.f32.mrb[182].mxu1 }
0x1ccd   : > { %v9466_v18 = vadd.f32 %v11807_v12, %v9458_v9  ;;  %v13388_v25 = vpop.f32.mrb[183].mxu1  ;;  %v11839_v0 = vld [vmem:[%s16755_s8 + $0x4] sm:$0x3] }
0x1cce   : > { %v11855_v25 = vld [vmem:[%s16755_s8 + $0x8] sm:$0x3] }
0x1ccf   : > { %v9467_v22 = vmax.f32 %v9466_v18, 0.0  ;;  %v11847_v18 = vld [vmem:[%s16755_s8 + $0x6] sm:$0x3] }
0x1cd1   : > { %v9471_v45 = vpack.c.bf16 %v9467_v22, %v9467_v22  ;;  %v11863_v22 = vld [vmem:[%s16755_s8 + $0xa] sm:$0x3] }
0x1cd2   : > { %v9573_v3 = vpop.f32.mrb[184].mxu1 }
0x1cd3   : > { %13394 = vmatmul.mubr.msk.bf16.vlgmr.msra.gmra.mrb[16].mxu0 %vm8615_vm9, %v9471_v45  ;;  %v13401_v4 = vpop.f32.mrb[185].mxu1  ;;  %v9587_v6 = vpack.c.bf16 %v9573_v3, %v9573_v3  ;;  %v11879_v45 = vld [vmem:[%s16755_s8 + $0xe] sm:$0x3]  ;;  %v11887_v3 = vld [vmem:[%s16755_s8 + $0x10] sm:$0x3] }
0x1cd4   : > { %13404 = vmatpush3.bf16.msra.mxu0 %v14105_v50  ;;  %v9576_v32 = vpop.f32.mrb[186].mxu1  ;;  %13411 = vmatprep.mubr.msk.bf16.mxu0 %vm14604_vm7, %v14603_v52  ;;  %v11871_v50 = vld [vmem:[%s16755_s8 + $0xc] sm:$0x3]  ;;  %v14119_v4 = vld [vmem:[%s16873_s1 + $0x18] sm:$0xff]  }
0x1cd5   : > { %13405 = vmatprep.subr.bf16.mxu0 %v14603_v52  ;;  %v13402_v10 = vpop.f32.mrb[187].mxu1 }
0x1cd8   : > { %13406 = vmatpush3.bf16.msra.mxu0 %v14106_v8  ;;  %v14120_v8 = vld [vmem:[%s16873_s1 + $0x20] ss:$0 sps:$4 sm:$0xff]  }
0x1cd9   : > { %13407 = vmatprep.subr.bf16.mxu0 %v14603_v52  ;;  %v10042_v32 = vsel %vm2285_vm5, %v14120_v8, 0 }
0x1cdc   : > { %13408 = vmatpush3.bf16.msra.mxu0 %v14107_v33 }
0x1cdd   : > { %13409 = vmatprep.subr.bf16.mxu0 %v14603_v52 }
0x1ce0   : > { %13410 = vmatpush3.bf16.msra.mxu0 %v14108_v61 }
0x1ce1   : > { %13431 = vmatprep.subr.bf16.mxu0 %v14603_v52 }
0x1ce3   : > { %13412 = vmatmul.mubr.msk.bf16.vlgmr.msra.gmra.mrb[20].mxu0 %vm2077_vm4, %v9587_v6 }
0x1ce4   : > { %13433 = vmatprep.mubr.msk.bf16.mxu0 %vm14604_vm7, %v14603_v52 }
0x1da6   : > { %v9528_v24 = vpop.f32.mrb[16].mxu0 }
0x1da7   : > { %v13395_v26 = vpop.f32.mrb[17].mxu0  ;;  %v9529_v28 = vadd.f32 %v11808_v2, %v9528_v24  ;;  %v14121_v24 = vld [vmem:[%s16873_s1 + $0x24] sm:$0xff]  }
0x1da8   : > { %v9531_v27 = vpop.f32.mrb[18].mxu0 }
0x1da9   : > { %v13396_v59 = vpop.f32.mrb[19].mxu0  ;;  %v9534_v31 = vmax.f32 %v9529_v28, 0.0 }
0x1daa   : > { %v14122_v59 = vld [vmem:[%s16873_s1 + $0x2c] ss:$0 sps:$4 sm:$0xff]  }
0x1db6   : > { %v9649_v14 = vpop.f32.mrb[20].mxu0 }
0x1db7   : > { %v9655_v48 = vadd.f32 %v9649_v14, %v9534_v31  ;;  %v13413_v49 = vpop.f32.mrb[21].mxu0  ;;  %v10148_v31 = vsel %vm2285_vm5, %v14122_v59, 0 }
0x1db8   : > { %v9652_v23 = vpop.f32.mrb[22].mxu0 }
0x1db9   : > { %v9663_v60 = vadd.f32 %v11818_v51, %v9655_v48  ;;  %v13414_v34 = vpop.f32.mrb[23].mxu0  ;;  %v14123_v51 = vld [vmem:[%s16873_s1 + $0x30] sm:$0xff]   ;;  %v14124_v23 = vld [vmem:[%s16873_s1 + $0x38] ss:$0 sps:$4 sm:$0xff]  }
0x1dbb   : > { %v16450_v35 = vmax.f32 %v9663_v60, 0.0 }
0x1dbd   : > { %v9677_v41 = vpack.c.bf16 %v16450_v35, %v16450_v35 }
0x1dbf   : > { %13428 = vmatmul.mubr.msk.bf16.vlgmr.msra.gmra.mrb[188].mxu1 %vm9721_vm10, %v9677_v41  ;;  %v10254_v41 = vsel %vm2285_vm5, %v14124_v23, 0 }
0x1dc0   : > { %13447 = vmatprep.mubr.msk.bf16.mxu1 %vm14604_vm7, %v14603_v52  ;;  %13444 = vmatpush3.bf16.msra.mxu1 %v14117_v36 }
0x1dc1   : > { %13445 = vmatprep.subr.bf16.mxu1 %v14603_v52 }
0x1dc4   : > { %13446 = vmatpush3.bf16.msra.mxu1 %v9882_v55 }
0x1dc5   : > { %13459 = vmatprep.subr.bf16.mxu1 %v14603_v52 }
0x1e92   : > { %v9759_v38 = vpop.f32.mrb[188].mxu1 }
0x1e93   : > { %v9760_v40 = vadd.f32 %v11819_v37, %v9759_v38  ;;  %v13429_v43 = vpop.f32.mrb[189].mxu1  ;;  %v14125_v38 = vld [vmem:[%s16873_s1 + $0x3c] sm:$0xff]  }
0x1e94   : > { %v9762_v17 = vpop.f32.mrb[190].mxu1 }
0x1e95   : > { %v9765_v44 = vmax.f32 %v9760_v40, 0.0  ;;  %v13430_v46 = vpop.f32.mrb[191].mxu1  ;;  %v14126_v17 = vld [vmem:[%s16873_s1 + $0x44] ss:$0 sps:$4 sm:$0xff]  }
0x1e97   : > { %v9766_v47 = vpack.c.bf16 %v9765_v44, %v9765_v44 }
0x1e99   : > { %v16458_v53 = vsel %vm1853_vm2, %v9766_v47, 0  ;;  %v10360_v47 = vsel %vm2285_vm5, %v14126_v17, 0 }
0x1e9a   : > { %13432 = vmatpush3.bf16.msra.mxu0 %v16458_v53 }
0x1e9b   : > { %13437 = vmatprep.subr.bf16.mxu0 %v14603_v52 }
0x1e9d   : > { %13434 = vmatmul.mubr.msk.bf16.vlgmr.msra.gmra.mrb[24].mxu0 %vm9768_vm11, %v9767_v7  ;;  %v14127_v7 = vld [vmem:[%s16873_s1 + $0x48] sm:$0xff]  }
0x1e9e   : > { %13438 = vmatpush3.bf16.msra.mxu0 %v16458_v53  ;;  %13439 = vmatprep.mubr.msk.bf16.mxu0 %vm14604_vm7, %v14603_v52 }
0x1e9f   : > { %13451 = vmatprep.subr.bf16.mxu0 %v14603_v52 }
0x1ea5   : > { %13440 = vmatmul.mubr.msk.bf16.vlgmr.msra.gmra.mrb[28].mxu0 %vm9768_vm11, %v11828_v62 }
0x1ea6   : > { %13452 = vmatpush3.bf16.msra.mxu0 %v14115_v1  ;;  %13455 = vmatprep.mubr.msk.bf16.mxu0 %vm14604_vm7, %v14603_v52 }
0x1ea7   : > { %13453 = vmatprep.subr.bf16.mxu0 %v14603_v52 }
0x1eaa   : > { %13454 = vmatpush3.bf16.msra.mxu0 %v9937_v57 }
0x1eab   : > { %13465 = vmatprep.subr.bf16.mxu0 %v14603_v52 }
0x1f70   : > { %v9809_v15 = vpop.f32.mrb[24].mxu0 }
0x1f71   : > { %v9818_v29 = vpack.c.bf16 %v9809_v15, %v9809_v15  ;;  %v13435_v5 = vpop.f32.mrb[25].mxu0  ;;  %v14129_v15 = vld [vmem:[%s16873_s1 + $0x54] sm:$0xff]  }
0x1f72   : > { %v9812_v13 = vpop.f32.mrb[26].mxu0 }
0x1f73   : > { %v13436_v30 = vpop.f32.mrb[27].mxu0  ;;  %13456 = vmatmul.mubr.msk.bf16.vlgmr.msra.gmra.mrb[32].mxu0 %vm8615_vm9, %v9818_v29  ;;  %v14130_v13 = vld [vmem:[%s16873_s1 + $0x5c] ss:$0 sps:$4 sm:$0xff]  }
0x1f74   : > { %13469 = vmatprep.mubr.msk.bf16.mxu0 %vm14604_vm7, %v14603_v52  ;;  %13466 = vmatpush3.bf16.msra.mxu0 %v14119_v4 }
0x1f75   : > { %13467 = vmatprep.subr.bf16.mxu0 %v14603_v52 }
0x1f78   : > { %v9858_v39 = vpop.f32.mrb[28].mxu0  ;;  %13468 = vmatpush3.bf16.msra.mxu0 %v10042_v32 }
0x1f79   : > { %v9868_v63 = vpack.c.bf16 %v9858_v39, %v9858_v39  ;;  %v13441_v12 = vpop.f32.mrb[29].mxu0  ;;  %13479 = vmatprep.subr.bf16.mxu0 %v14603_v52 }
0x1f7a   : > { %v9861_v9 = vpop.f32.mrb[30].mxu0 }
0x1f7b   : > { %13448 = vmatmul.mubr.msk.bf16.vlgmr.msra.gmra.mrb[192].mxu1 %vm8615_vm9, %v9868_v63  ;;  %v13442_v42 = vpop.f32.mrb[31].mxu0  ;;  %v10572_v63 = vsel %vm2285_vm5, %v14130_v13, 0  ;;  %v14131_v9 = vld [vmem:[%s16873_s1 + $0x60] sm:$0xff]   ;;  %v14138_v13 = vld [vmem:[%s14869_s13 + $0x18] sm:$0xff]  }
0x1f7c   : > { %13460 = vmatpush3.bf16.msra.mxu1 %v16458_v53  ;;  %13461 = vmatprep.mubr.msk.bf16.mxu1 %vm14604_vm7, %v14603_v52 }
0x1f7d   : > { %13473 = vmatprep.subr.bf16.mxu1 %v14603_v52 }
0x1f83   : > { %13462 = vmatmul.mubr.msk.bf16.vlgmr.msra.gmra.mrb[196].mxu1 %vm9768_vm11, %v11839_v0 }
0x1f84   : > { %13474 = vmatpush3.bf16.msra.mxu1 %v16458_v53  ;;  %13475 = vmatprep.mubr.msk.bf16.mxu1 %vm14604_vm7, %v14603_v52 }
0x1f85   : > { %13487 = vmatprep.subr.bf16.mxu1 %v14603_v52 }
0x1f8b   : > { %13476 = vmatmul.mubr.msk.bf16.vlgmr.msra.gmra.mrb[200].mxu1 %vm9768_vm11, %v11847_v18  ;;  %v14132_v18 = vld [vmem:[%s16873_s1 + $0x68] ss:$0 sps:$4 sm:$0xff]  }
0x1f8c   : > { %13488 = vmatpush3.bf16.msra.mxu1 %v16458_v53  ;;  %13489 = vmatprep.mubr.msk.bf16.mxu1 %vm14604_vm7, %v14603_v52 }
0x1f8d   : > { %13501 = vmatprep.subr.bf16.mxu1 %v14603_v52 }
0x1f93   : > { %13490 = vmatmul.mubr.msk.bf16.vlgmr.msra.gmra.mrb[204].mxu1 %vm9768_vm11, %v11855_v25 }
0x1f94   : > { %13502 = vmatpush3.bf16.msra.mxu1 %v16458_v53  ;;  %13503 = vmatprep.mubr.msk.bf16.mxu1 %vm14604_vm7, %v14603_v52 }
0x1f95   : > { %13515 = vmatprep.subr.bf16.mxu1 %v14603_v52 }
0x1f9b   : > { %13504 = vmatmul.mubr.msk.bf16.vlgmr.msra.gmra.mrb[208].mxu1 %vm9768_vm11, %v11863_v22 }
0x1f9c   : > { %13516 = vmatpush3.bf16.msra.mxu1 %v16458_v53  ;;  %13517 = vmatprep.mubr.msk.bf16.mxu1 %vm14604_vm7, %v14603_v52 }
0x1f9d   : > { %13529 = vmatprep.subr.bf16.mxu1 %v14603_v52 }
0x1fa3   : > { %13518 = vmatmul.mubr.msk.bf16.vlgmr.msra.gmra.mrb[212].mxu1 %vm9768_vm11, %v11871_v50  ;;  %v10678_v50 = vsel %vm2285_vm5, %v14132_v18, 0 }
0x1fa4   : > { %13530 = vmatpush3.bf16.msra.mxu1 %v16458_v53  ;;  %13531 = vmatprep.mubr.msk.bf16.mxu1 %vm14604_vm7, %v14603_v52 }
0x1fa5   : > { %13543 = vmatprep.subr.bf16.mxu1 %v14603_v52 }
0x1fab   : > { %13532 = vmatmul.mubr.msk.bf16.vlgmr.msra.gmra.mrb[216].mxu1 %vm9768_vm11, %v11879_v45 }
0x1fac   : > { %13544 = vmatpush3.bf16.msra.mxu1 %v16458_v53  ;;  %13545 = vmatprep.mubr.msk.bf16.mxu1 %vm14604_vm7, %v14603_v52 }
0x1fad   : > { %13557 = vmatprep.subr.bf16.mxu1 %v14603_v52 }
0x1fb3   : > { %13546 = vmatmul.mubr.msk.bf16.vlgmr.msra.gmra.mrb[220].mxu1 %vm9768_vm11, %v11887_v3 }
0x1fb4   : > { %13561 = vmatprep.mubr.msk.bf16.mxu1 %vm14604_vm7, %v14603_v52 }
0x2046   : > { %v9973_v10 = vpop.f32.mrb[32].mxu0 }
0x2047   : > { %v13457_v33 = vpop.f32.mrb[33].mxu0 }
0x2048   : > { %v9976_v61 = vpop.f32.mrb[34].mxu0  ;;  %v14134_v33 = vld [vmem:[%s16875_s2 + $0x8] ss:$0 sps:$4 sm:$0xff]   ;;  %s11909_s2 = sshll.u32 %s14902_s0, 6  ;;  %s14605_s0 = smov [#allocation20]  }
0x2049   : > { %v13458_v6 = vpop.f32.mrb[35].mxu0  ;;  %v10754_v61 = vsel %vm2285_vm5, %v14134_v33, 0  ;;  %s16612_s4 = scalar_lea.hbm %s14879_s14, %s11909_s2 }
0x204a   : > { %v14135_v6 = vld [vmem:[%s14869_s13] sm:$0xff]  }
0x204e   : > { %v9918_v11 = vpop.f32.mrb[192].mxu1 }
0x204f   : > { %v16535_v56 = vadd.f32 %v9973_v10, %v9918_v11  ;;  %v13449_v58 = vpop.f32.mrb[193].mxu1  ;;  %v14133_v10 = vld [vmem:[%s16874_s7] sm:$0xff]   ;;  %v14136_v11 = vld [vmem:[%s14869_s13 + $0x8] sm:$0xff]   ;;  %s1703_s7 = sand.u32 1, %s14527_s10  }
0x2050   : > { %v9921_v16 = vpop.f32.mrb[194].mxu1  ;;  %13558 = vmatpush3.bf16.msra.mxu1 %v14133_v10  ;;  %v14137_v58 = vld [vmem:[%s14869_s13 + $0x10] sm:$0xff]   ;;  %s11158_s1 = sshll.u32 %s1703_s7, 2  ;;  %s10900_s5 = scalar_lea.sflag [#allocation4], %s1703_s7 }
0x2051   : > { %v13450_v19 = vpop.f32.mrb[195].mxu1  ;;  %13559 = vmatprep.subr.bf16.mxu1 %v14603_v52  ;;  %s1705_s3 = scalar_lea.vmem [#allocation20], %s11158_s1  ;;  %s14453_s1 = sshll.u32 %s14605_s0, 4  ;;  %s14454_s1 = int_to_ptr.vmem [resolvable:$false] %s14453_s1 }
0x2052   : > { %s14455_s8 = scalar_lea.vmem %s14454_s1, 128 }
0x2054   : > { %13560 = vmatpush3.bf16.msra.mxu1 %v10754_v61 }
0x2056   : > { %v10018_v20 = vpop.f32.mrb[196].mxu1 }
0x2057   : > { %v10028_v26 = vpack.c.bf16 %v10018_v20, %v10018_v20  ;;  %v13463_v27 = vpop.f32.mrb[197].mxu1 }
0x2058   : > { %v10021_v2 = vpop.f32.mrb[198].mxu1 }
0x2059   : > { %13470 = vmatmul.mubr.msk.bf16.vlgmr.msra.gmra.mrb[36].mxu0 %vm8615_vm9, %v10028_v26  ;;  %v13464_v28 = vpop.f32.mrb[199].mxu1 }
0x205a   : > { %13480 = vmatpush3.bf16.msra.mxu0 %v14121_v24  ;;  %13483 = vmatprep.mubr.msk.bf16.mxu0 %vm14604_vm7, %v14603_v52 }
0x205b   : > { %13481 = vmatprep.subr.bf16.mxu0 %v14603_v52 }
0x205e   : > { %v10124_v14 = vpop.f32.mrb[200].mxu1  ;;  %13482 = vmatpush3.bf16.msra.mxu0 %v10148_v31 }
0x205f   : > { %v10134_v48 = vpack.c.bf16 %v10124_v14, %v10124_v14  ;;  %v13477_v49 = vpop.f32.mrb[201].mxu1  ;;  %13493 = vmatprep.subr.bf16.mxu0 %v14603_v52 }
0x2060   : > { %v10127_v60 = vpop.f32.mrb[202].mxu1 }
0x2061   : > { %13484 = vmatmul.mubr.msk.bf16.vlgmr.msra.gmra.mrb[40].mxu0 %vm8615_vm9, %v10134_v48  ;;  %v13478_v34 = vpop.f32.mrb[203].mxu1 }
0x2062   : > { %13494 = vmatpush3.bf16.msra.mxu0 %v14123_v51  ;;  %13497 = vmatprep.mubr.msk.bf16.mxu0 %vm14604_vm7, %v14603_v52 }
0x2063   : > { %13495 = vmatprep.subr.bf16.mxu0 %v14603_v52 }
0x2066   : > { %v10230_v37 = vpop.f32.mrb[204].mxu1  ;;  %13496 = vmatpush3.bf16.msra.mxu0 %v10254_v41 }
0x2067   : > { %v10240_v40 = vpack.c.bf16 %v10230_v37, %v10230_v37  ;;  %v13491_v43 = vpop.f32.mrb[205].mxu1  ;;  %13507 = vmatprep.subr.bf16.mxu0 %v14603_v52 }
0x2068   : > { %v10233_v44 = vpop.f32.mrb[206].mxu1 }
0x2069   : > { %13498 = vmatmul.mubr.msk.bf16.vlgmr.msra.gmra.mrb[44].mxu0 %vm8615_vm9, %v10240_v40  ;;  %v13492_v46 = vpop.f32.mrb[207].mxu1 }
0x206a   : > { %13508 = vmatpush3.bf16.msra.mxu0 %v14125_v38  ;;  %13511 = vmatprep.mubr.msk.bf16.mxu0 %vm14604_vm7, %v14603_v52 }
0x206b   : > { %13509 = vmatprep.subr.bf16.mxu0 %v14603_v52 }
0x206e   : > { %v10336_v53 = vpop.f32.mrb[208].mxu1  ;;  %13510 = vmatpush3.bf16.msra.mxu0 %v10360_v47 }
0x206f   : > { %v10346_v62 = vpack.c.bf16 %v10336_v53, %v10336_v53  ;;  %v13505_v1 = vpop.f32.mrb[209].mxu1  ;;  %13521 = vmatprep.subr.bf16.mxu0 %v14603_v52 }
0x2070   : > { %v10339_v57 = vpop.f32.mrb[210].mxu1 }
0x2071   : > { %13512 = vmatmul.mubr.msk.bf16.vlgmr.msra.gmra.mrb[48].mxu0 %vm8615_vm9, %v10346_v62  ;;  %v13506_v36 = vpop.f32.mrb[211].mxu1 }
0x2072   : > { %13522 = vmatpush3.bf16.msra.mxu0 %v14127_v7  ;;  %13525 = vmatprep.mubr.msk.bf16.mxu0 %vm14604_vm7, %v14603_v52 }
0x2073   : > { %13523 = vmatprep.subr.bf16.mxu0 %v14603_v52 }
0x2076   : > { %v10442_v55 = vpop.f32.mrb[212].mxu1  ;;  %13524 = vmatpush3.bf16.msra.mxu0 %v10466_v54 }
0x2077   : > { %v10452_v29 = vpack.c.bf16 %v10442_v55, %v10442_v55  ;;  %v13519_v5 = vpop.f32.mrb[213].mxu1  ;;  %13535 = vmatprep.subr.bf16.mxu0 %v14603_v52 }
0x2078   : > { %v10445_v30 = vpop.f32.mrb[214].mxu1 }
0x2079   : > { %13526 = vmatmul.mubr.msk.bf16.vlgmr.msra.gmra.mrb[52].mxu0 %vm8615_vm9, %v10452_v29  ;;  %v13520_v39 = vpop.f32.mrb[215].mxu1  ;;  %v14139_v30 = vld [vmem:[%s14869_s13 + $0x20] sm:$0xff]  }
0x207a   : > { %13536 = vmatpush3.bf16.msra.mxu0 %v14129_v15  ;;  %13539 = vmatprep.mubr.msk.bf16.mxu0 %vm14604_vm7, %v14603_v52  ;;  %v14140_v39 = vld [vmem:[%s14869_s13 + $0x28] sm:$0xff]  }
0x207b   : > { %13537 = vmatprep.subr.bf16.mxu0 %v14603_v52 }
0x207e   : > { %v10548_v12 = vpop.f32.mrb[216].mxu1  ;;  %13538 = vmatpush3.bf16.msra.mxu0 %v10572_v63  ;;  %v11896_v63 = vld [vmem:[%s16876_s11] ss:$0 sm:$0xff]  ;;  %s10913_s11 = sshll.u32 %s1705_s3, 4  ;;  %s16614_s11 = int_to_ptr.vmem [resolvable:$true] %s10913_s11 }
0x207f   : > { %v10558_v42 = vpack.c.bf16 %v10548_v12, %v10548_v12  ;;  %v13533_v0 = vpop.f32.mrb[217].mxu1  ;;  %13549 = vmatprep.subr.bf16.mxu0 %v14603_v52  ;;  %s14449_s6 = scalar_lea.vmem %s16614_s11, 64  ;;  %p14456_p3 = scmp.lt.s32.totalorder %s16614_s11, %s14454_s1 }
0x2080   : > { %v10551_v25 = vpop.f32.mrb[218].mxu1  ;;  %p14450_p13 = scmp.ne.s32.totalorder %s16614_s11, %s14449_s6  ;;  %p14457_p4 = scmp.lt.s32.totalorder %s14455_s8, %s14449_s6 }
0x2081   : > { %13540 = vmatmul.mubr.msk.bf16.vlgmr.msra.gmra.mrb[56].mxu0 %vm8615_vm9, %v10558_v42  ;;  %v13534_v22 = vpop.f32.mrb[219].mxu1 }
0x2082   : > { %13550 = vmatpush3.bf16.msra.mxu0 %v14131_v9  ;;  %13553 = vmatprep.mubr.msk.bf16.mxu0 %vm14604_vm7, %v14603_v52  ;;  %p14451_p2 = pnand %p14450_p13, %p16877_p1  ;;  %p14458_p12 = por %p14457_p4, %p14456_p3 }
0x2083   : > { %13551 = vmatprep.subr.bf16.mxu0 %v14603_v52 }
0x2084   : > { %p14452_p0 = pneg %p14451_p2 }
0x2086   : > { %v10654_v45 = vpop.f32.mrb[220].mxu1  ;;  %13552 = vmatpush3.bf16.msra.mxu0 %v10678_v50  ;;  %p14459_p5 = pnand %p14458_p12, %p14452_p0 }
0x2087   : > { %v10664_v3 = vpack.c.bf16 %v10654_v45, %v10654_v45  ;;  %v13547_v4 = vpop.f32.mrb[221].mxu1  ;;  %13565 = vmatprep.subr.bf16.mxu0 %v14603_v52 }
0x2088   : > { %v10657_v8 = vpop.f32.mrb[222].mxu1 }
0x2089   : > { %13554 = vmatmul.mubr.msk.bf16.vlgmr.msra.gmra.mrb[60].mxu0 %vm8615_vm9, %v10664_v3  ;;  %v13548_v32 = vpop.f32.mrb[223].mxu1 }
0x208a   : > { %13577 = vmatprep.mubr.msk.bf16.mxu0 %vm14604_vm7, %v14603_v52  ;;  %13566 = vmatpush3.bf16.msra.mxu0 %v14135_v6 }
0x208b   : > { %13567 = vmatprep.subr.bf16.mxu0 %v14603_v52 }
0x208e   : > { %13568 = vmatpush3.bf16.msra.mxu0 %v14136_v11 }
0x208f   : > { %13569 = vmatprep.subr.bf16.mxu0 %v14603_v52 }
0x2092   : > { %13570 = vmatpush3.bf16.msra.mxu0 %v14137_v58 }
0x2093   : > { %13571 = vmatprep.subr.bf16.mxu0 %v14603_v52 }
0x2096   : > { %13572 = vmatpush3.bf16.msra.mxu0 %v14138_v13 }
0x2097   : > { %13573 = vmatprep.subr.bf16.mxu0 %v14603_v52 }
0x209a   : > { %13574 = vmatpush3.bf16.msra.mxu0 %v14139_v30 }
0x209b   : > { %13575 = vmatprep.subr.bf16.mxu0 %v14603_v52  ;;  %v11900_v52 = vld [vmem:[%s14874_s19] ss:$0 sm:$0xff] }
0x209e   : > { %13576 = vmatpush3.bf16.msra.mxu0 %v14140_v39 }
0x212c   : > { %v10078_v16 = vpop.f32.mrb[36].mxu0 }
0x212d   : > { %v10084_v19 = vadd.f32 %v10078_v16, %v16535_v56  ;;  %v13471_v20 = vpop.f32.mrb[37].mxu0 }
0x212e   : > { %v10081_v24 = vpop.f32.mrb[38].mxu0 }
0x212f   : > { %v13472_v26 = vpop.f32.mrb[39].mxu0 }
0x2134   : > { %v10184_v27 = vpop.f32.mrb[40].mxu0 }
0x2135   : > { %v10190_v59 = vadd.f32 %v10184_v27, %v10084_v19  ;;  %v13485_v2 = vpop.f32.mrb[41].mxu0 }
0x2136   : > { %v10187_v28 = vpop.f32.mrb[42].mxu0 }
0x2137   : > { %v13486_v31 = vpop.f32.mrb[43].mxu0 }
0x213c   : > { %v10290_v14 = vpop.f32.mrb[44].mxu0 }
0x213d   : > { %v10296_v51 = vadd.f32 %v10290_v14, %v10190_v59  ;;  %v13499_v48 = vpop.f32.mrb[45].mxu0 }
0x213e   : > { %v10293_v49 = vpop.f32.mrb[46].mxu0 }
0x213f   : > { %v13500_v23 = vpop.f32.mrb[47].mxu0 }
0x2144   : > { %v10396_v60 = vpop.f32.mrb[48].mxu0 }
0x2145   : > { %v10402_v34 = vadd.f32 %v10396_v60, %v10296_v51  ;;  %v13513_v41 = vpop.f32.mrb[49].mxu0 }
0x2146   : > { %v10399_v37 = vpop.f32.mrb[50].mxu0 }
0x2147   : > { %v13514_v38 = vpop.f32.mrb[51].mxu0 }
0x214c   : > { %v10502_v40 = vpop.f32.mrb[52].mxu0 }
0x214d   : > { %v10508_v56 = vadd.f32 %v10502_v40, %v10402_v34  ;;  %v13527_v43 = vpop.f32.mrb[53].mxu0 }
0x214e   : > { %v10505_v17 = vpop.f32.mrb[54].mxu0 }
0x214f   : > { %v13528_v44 = vpop.f32.mrb[55].mxu0 }
0x2154   : > { %v10608_v46 = vpop.f32.mrb[56].mxu0 }
0x2155   : > { %v10614_v47 = vadd.f32 %v10608_v46, %v10508_v56  ;;  %v13541_v53 = vpop.f32.mrb[57].mxu0 }
0x2156   : > { %v10611_v7 = vpop.f32.mrb[58].mxu0 }
0x2157   : > { %v13542_v62 = vpop.f32.mrb[59].mxu0 }
0x215c   : > { %v10714_v1 = vpop.f32.mrb[60].mxu0 }
0x215d   : > { %v10720_v57 = vadd.f32 %v10714_v1, %v10614_v47  ;;  %v13555_v36 = vpop.f32.mrb[61].mxu0 }
0x215e   : > { %v10717_v54 = vpop.f32.mrb[62].mxu0 }
0x215f   : > { %v10728_v55 = vadd.f32 %v11895_v21, %v10720_v57  ;;  %v13556_v15 = vpop.f32.mrb[63].mxu0 }
0x2161   : > { %v10729_v29 = vmax.f32 %v10728_v55, 0.0 }
0x2163   : > { %v10733_v5 = vpack.c.bf16 %v10729_v29, %v10729_v29 }
0x2165   : > { %13562 = vmatmul.mubr.msk.bf16.vlgmr.msra.gmra.mrb[224].mxu1 %vm8615_vm9, %v10733_v5 }
0x2238   : > { %v10790_v12 = vpop.f32.mrb[224].mxu1 }
0x2239   : > { %v10791_v9 = vadd.f32 %v11896_v63, %v10790_v12  ;;  %v13563_v42 = vpop.f32.mrb[225].mxu1 }
0x223a   : > { %v10793_v0 = vpop.f32.mrb[226].mxu1 }
0x223b   : > { %v10796_v18 = vmax.f32 %v10791_v9, 0.0  ;;  %v13564_v25 = vpop.f32.mrb[227].mxu1 }
0x223d   : > { %v10797_v22 = vadd.f32 %v10796_v18, %v16450_v35 }
0x223f   : > { %v10798_v50 = vmax.f32 %v10797_v22, 0.0 }
0x2241   : > { %v10811_v45 = vpack.c.bf16 %v10798_v50, %v10798_v50 }
0x2243   : > { %13578 = vmatmul.mubr.msk.bf16.vlgmr.msra.gmra.mrb[64].mxu0 %vm9721_vm10, %v10811_v45 }
0x2316   : > { %v10892_v3 = vpop.f32.mrb[64].mxu0 }
0x2317   : > { %v10893_v4 = vadd.f32 %v11900_v52, %v10892_v3  ;;  %v13579_v8 = vpop.f32.mrb[65].mxu0 }
0x2318   : > { %v10895_v35 = vpop.f32.mrb[66].mxu0 }
0x2319   : > { %10898 = vst [vmem:[%s1705_s3] sm:$0xf] %v10893_v4  ;;  %v13580_v32 = vpop.f32.mrb[67].mxu0 }
0x231a   : > { %14462 = shalt.err (!%p14459_p5)
}
0x231b   : > { %s14463_s3 = scalar_lea.hbm %s16612_s4, 64  ;;  %s14467_s2 = scalar_lea.hbm %s14879_s14, 128 }
0x231c   : > { %p14464_p6 = scmp.ne.s32.totalorder %s16612_s4, %s14463_s3  ;;  %p14468_p7 = scmp.lt.u32.totalorder %s16612_s4, %s14879_s14 }
0x231d   : > { %p14469_p8 = scmp.lt.u32.totalorder %s14467_s2, %s14463_s3  ;;  %p14471_p13 = scmp.lt.u32.totalorder %s14463_s3, %s16612_s4 }
0x231e   : > { %p14465_p9 = pnand %p14464_p6, %p16877_p1 }
0x231f   : > { %p14470_p11 = por %p14469_p8, %p14468_p7 }
0x2320   : > { %p14466_p10 = pneg %p14465_p9 }
0x2321   : > { %p14472_p2 = por %p14471_p13, %p14470_p11 }
0x2323   : > { %p14473_p0 = pnand %p14472_p2, %p14466_p10 }
0x2325   : > { %14476 = shalt.err (!%p14473_p0)
}
0x2326   : > { %13773 = dma.vmem_to_hbm [thread:$0]  (%p16877_p1), %s16614_s11, 64, %s16612_s4, %s10900_s5  }
0x2327 PF: > { %s16878_s8 = sld [smem:[#allocation71_spill]]  ;;  %s16879_s6 = sld [smem:[#allocation75_spill]] }
0x2328   : > { %p13835_p3 = scmp.ge.s32.totalorder %s14535_s15, 2 }
0x232d   : > { %s10925_s7 = sand.u32 1, %s16878_s8   ;;  %p16880_p4 = scmp.ne.s32.totalorder %s16879_s6, 0 }
0x232e   : > { %s10926_s0 = scalar_lea.sflag [#allocation4], %s10925_s7 }
0x232f   : > { %p13810_p12 = pnand %p13835_p3, %p16880_p4 }
0x2331   : > { %14518 = dma.done.wait (!%p13810_p12), %s10926_s0, 64  }
0x2332   : > { %14520 = vsyncadd (!%p13810_p12), %s10926_s0, 4294967232  ;;  %s16881_s15 = sld [smem:[#allocation73_spill]]  ;;  %s16882_s1 = sld [smem:[#allocation72_spill]] }
0x2333   : > { %s16883_s11 = sld [smem:[#allocation74_spill]]  ;;  %s16884_s7 = smov %s14527_s10 }
0x2338   : > { %p123_p5 = scmp.ge.s32.totalorder %s16881_s15, 4   ;;  %s16885_s10 = smov %s16882_s1 }
0x233a   :  { %125 = sbr.rel (!%p123_p5) target bundleno = 107 (0x6b), region = 461 }
0x2341   :  { %10931 = vsyncpa [#allocation3], 1 }
0x2342   :  { %10933 = vsyncpa [#allocation3 + $0x1], 1 }
0x2343   :  { %10934 = vsyncpa [#allocation6], 1 }
0x2344   :  { %10935 = vsyncpa [#allocation9], 1 }
0x2345   :  { %10936 = vsyncpa [#allocation12], 1 }
0x2346   :  { %10937 = vsyncpa [#allocation15], 1 }
0x2347   :  { %10938 = vsyncpa [#allocation18], 1 }
0x2348   :  { %10939 = vsyncpa [#allocation4], 1 }
0x2349   :  { %10941 = vsyncpa [#allocation4 + $0x1], 1 }

</bundles_post_ra>
